<compile_context>
chip_gen: v7x
topology: tpu7x:2x2x1
jax: 0.10.0
libtpu: 0.0.40
codegen_flags: <defaults>
</compile_context>

<pallas_src>
import jax
import jax.numpy as jnp
from jax.experimental import pallas as pl
from jax.experimental.pallas import tpu as pltpu

# Shapes implied by the module: fc1 = Linear(64 * 256, 128) and MaxPool1d(2)
# force seq_len = 512; hidden size = 768 (graphcodebert-base).
B = 2
L = 512
D_HID = 768
C1 = 128
C2 = 64
FC1_OUT = 128
NUM_CLASSES = 2
VOCAB = 1000

LPAD = 520           # padded sequence rows: 2 zero rows per side + tail pad to 8-multiple


def _conv_pool_kernel(xp_ref, w1_ref, b1_ref, w2_ref, b2_ref, out_ref):
    """conv1(k=3,p=1)+relu -> conv2(k=3,p=1)+relu -> maxpool(2), one batch per grid step."""
    x = xp_ref[0]                                             # (LPAD, 768) bf16, zero-padded

    # ---- conv1: 3 taps fused into a single wide matmul -------------------------------
    # p1[j, k*128:(k+1)*128] = xp[j] @ w1_tap_k
    p1 = jnp.dot(x, w1_ref[...], preferred_element_type=jnp.float32)     # (LPAD, 384) f32
    # y1[j] (j = 0..L+1) is conv1 output at sequence position j-1.
    y1 = (p1[0:L + 2, 0:C1]
          + p1[1:L + 3, C1:2 * C1]
          + p1[2:L + 4, 2 * C1:3 * C1]
          + b1_ref[...])
    y1 = jnp.maximum(y1, 0.0)                                 # (L+2, 128) f32
    # Rows 0 and L+1 are conv1 evaluated at out-of-range positions; PyTorch's conv2
    # zero padding requires them to be exactly zero.
    row = jax.lax.broadcasted_iota(jnp.int32, (L + 2, 1), 0)
    y1 = jnp.where((row >= 1) & (row <= L), y1, 0.0)

    # ---- conv2: 3 taps fused ----------------------------------------------------------
    p2 = jnp.dot(y1.astype(jnp.bfloat16), w2_ref[...],
                 preferred_element_type=jnp.float32)          # (L+2, 192) f32
    y2 = (p2[0:L, 0:C2]
          + p2[1:L + 1, C2:2 * C2]
          + p2[2:L + 2, 2 * C2:3 * C2]
          + b2_ref[...])
    y2 = jnp.maximum(y2, 0.0)                                 # (L, 64) f32

    # ---- MaxPool1d(2) along the sequence axis -----------------------------------------
    pooled = jnp.max(y2.reshape(L // 2, 2, C2), axis=1)       # (L/2, 64)
    out_ref[0] = pooled.astype(out_ref.dtype)


def conv_pool_pallas(xp, kp):
    """xp: (B, LPAD, 768) bf16 zero-padded hidden states. Returns (B, L/2, 64) bf16."""
    bsz = xp.shape[0]
    flops = 2 * bsz * (LPAD * D_HID * 3 * C1 + (L + 2) * C1 * 3 * C2)
    bytes_accessed = (bsz * LPAD * D_HID * 2            # input (bf16)
                      + D_HID * 3 * C1 * 2              # conv1 weight (bf16)
                      + C1 * 3 * C2 * 2                 # conv2 weight (bf16)
                      + (C1 + C2) * 4                   # biases (f32)
                      + bsz * (L // 2) * C2 * 2)        # pooled output (bf16)

    return pl.pallas_call(
        _conv_pool_kernel,
        out_shape=jax.ShapeDtypeStruct((bsz, L // 2, C2), jnp.bfloat16),
        grid_spec=pltpu.PrefetchScalarGridSpec(
            num_scalar_prefetch=0,
            grid=(bsz,),
            in_specs=[
                pl.BlockSpec((1, LPAD, D_HID), lambda b: (b, 0, 0)),     # hidden (padded)
                pl.BlockSpec((D_HID, 3 * C1), lambda b: (0, 0)),         # conv1 taps fused
                pl.BlockSpec((1, C1), lambda b: (0, 0)),                 # conv1 bias
                pl.BlockSpec((C1, 3 * C2), lambda b: (0, 0)),            # conv2 taps fused
                pl.BlockSpec((1, C2), lambda b: (0, 0)),                 # conv2 bias
            ],
            out_specs=pl.BlockSpec((1, L // 2, C2), lambda b: (b, 0, 0)),
        ),
        compiler_params=pltpu.CompilerParams(
            dimension_semantics=("parallel",),           # batch across TensorCores on v7x
            vmem_limit_bytes=32 * 1024 * 1024,           # fits v7x's 64 MiB physical VMEM
        ),
        cost_estimate=pl.CostEstimate(flops=flops, transcendentals=0,
                                      bytes_accessed=bytes_accessed),
    )(xp, kp['w1cat'], kp['b1'], kp['w2cat'], kp['b2'])


def encode_pad_bf16(input_ids, attention_mask, emb):
    # TODO(synk): stands in for graphcodebert.base_model(...).last_hidden_state.
    # Gather + mask + bf16 cast + zero pad emitted as one producer fusion so the hidden
    # states hit HBM exactly once, already in the kernel's padded bf16 input layout.
    h = (emb[input_ids] * attention_mask[..., None].astype(jnp.float32)).astype(jnp.bfloat16)
    return jnp.pad(h, ((0, 0), (2, LPAD - L - 2), (0, 0)))    # (B, LPAD, 768) bf16


def code_vulnerability_model(input_ids, attention_mask, pt, kp):
    xp = encode_pad_bf16(input_ids, attention_mask, pt['emb'])
    pooled = conv_pool_pallas(xp, kp)                         # (B, L/2, 64) bf16, (l, c)
    flat = pooled.reshape(pooled.shape[0], (L // 2) * C2)     # (l, c)-major flatten
    # fc1 + relu + fc2 as plain XLA matmuls: the 4 MiB fc1 weight is read exactly once
    # for all batches on every TPU generation (including v7x megacore).
    z = jnp.maximum(
        jnp.dot(flat, kp['wf1'], preferred_element_type=jnp.float32) + kp['bf1'], 0.0)
    return jnp.dot(z, kp['wf2'], preferred_element_type=jnp.float32) + kp['bf2']


def make_params(key):
    """Deterministic params in PyTorch convention (f32) + rearranged bf16 kernel layout."""
    ks = jax.random.split(key, 10)
    s = 0.02
    pt = dict(
        emb=jax.random.normal(ks[0], (VOCAB, D_HID), jnp.float32),
        w1=s * jax.random.normal(ks[1], (C1, D_HID, 3), jnp.float32),   # Conv1d (Cout,Cin,K)
        b1=s * jax.random.normal(ks[2], (C1,), jnp.float32),
        w2=s * jax.random.normal(ks[3], (C2, C1, 3), jnp.float32),
        b2=s * jax.random.normal(ks[4], (C2,), jnp.float32),
        wf1=s * jax.random.normal(ks[5], (FC1_OUT, C2 * (L // 2)), jnp.float32),  # Linear (out,in)
        bf1=s * jax.random.normal(ks[6], (FC1_OUT,), jnp.float32),
        wf2=s * jax.random.normal(ks[7], (NUM_CLASSES, FC1_OUT), jnp.float32),
        bf2=s * jax.random.normal(ks[8], (NUM_CLASSES,), jnp.float32),
    )
    # kernel layout: per-tap (Cin, Cout) matrices fused along the output dim; bf16 for
    # all large matmul weights (f32 accumulation); fc1 re-ordered for (l, c) flatten.
    w1_t = jnp.transpose(pt['w1'], (2, 1, 0))          # (3, 768, 128): [tap, cin, cout]
    w2_t = jnp.transpose(pt['w2'], (2, 1, 0))          # (3, 128, 64)
    kp = dict(
        w1cat=jnp.concatenate([w1_t[0], w1_t[1], w1_t[2]], axis=1).astype(jnp.bfloat16),
        b1=pt['b1'].reshape(1, C1),
        w2cat=jnp.concatenate([w2_t[0], w2_t[1], w2_t[2]], axis=1).astype(jnp.bfloat16),
        b2=pt['b2'].reshape(1, C2),
        wf1=jnp.transpose(pt['wf1'].reshape(FC1_OUT, C2, L // 2), (2, 1, 0))
            .reshape((L // 2) * C2, FC1_OUT).astype(jnp.bfloat16),        # (16384, 128)
        bf1=pt['bf1'].reshape(1, FC1_OUT),
        wf2=jnp.transpose(pt['wf2']),                                     # (128, 2) f32
        bf2=pt['bf2'].reshape(1, NUM_CLASSES),
    )
    return pt, kp


def encoder_stub_f32(input_ids, attention_mask, emb):
    # f32 version used by the pure-JAX reference.
    return emb[input_ids] * attention_mask[..., None].astype(jnp.float32)   # (B, L, 768)


def reference_forward(input_ids, attention_mask, pt):
    """Pure-JAX f32 reference mirroring the PyTorch NCW forward exactly."""
    hidden = encoder_stub_f32(input_ids, attention_mask, pt['emb'])   # (B, L, 768)
    x = jnp.transpose(hidden, (0, 2, 1))                              # (B, 768, L)

    def conv1d(x, w, bias):
        y = jax.lax.conv_general_dilated(x, w, window_strides=(1,), padding=[(1, 1)],
                                         dimension_numbers=('NCH', 'OIH', 'NCH'))
        return y + bias[None, :, None]

    x = jax.nn.relu(conv1d(x, pt['w1'], pt['b1']))                # (B, 128, L)
    x = jax.nn.relu(conv1d(x, pt['w2'], pt['b2']))                # (B, 64, L)
    x = jnp.max(x.reshape(x.shape[0], C2, L // 2, 2), axis=-1)    # MaxPool1d(2)
    x = x.reshape(x.shape[0], -1)                                 # flatten(1): (c, l)-major
    x = jax.nn.relu(x @ pt['wf1'].T + pt['bf1'])
    return x @ pt['wf2'].T + pt['bf2']


if __name__ == "__main__":
    key = jax.random.PRNGKey(0)
    kp_key, kid, kmask = jax.random.split(key, 3)
    pt, kp = make_params(kp_key)

    input_ids = jax.random.randint(kid, (B, L), 0, VOCAB, dtype=jnp.int32)
    attention_mask = (jax.random.uniform(kmask, (B, L)) > 0.1).astype(jnp.int32)

    fwd = jax.jit(code_vulnerability_model)
    out = jax.block_until_ready(fwd(input_ids, attention_mask, pt, kp))

    ref = jax.block_until_ready(reference_forward(input_ids, attention_mask, pt))
    assert out.shape == (B, NUM_CLASSES), out.shape
    assert jnp.allclose(out, ref, rtol=1e-2, atol=1e-2), (out, ref)

    print("KERNEL_OK")
</pallas_src>

<mosaic_0001>
module attributes {stable_mosaic.version = 11 : i64} {
  func.func @_conv_pool_kernel(%arg0: i32, %arg1: memref<1x520x768xbf16, #tpu.memory_space<vmem>>, %arg2: memref<768x384xbf16, #tpu.memory_space<vmem>>, %arg3: memref<1x128xf32, #tpu.memory_space<vmem>>, %arg4: memref<128x192xbf16, #tpu.memory_space<vmem>>, %arg5: memref<1x64xf32, #tpu.memory_space<vmem>>, %arg6: memref<1x256x64xbf16, #tpu.memory_space<vmem>>) attributes {dimension_semantics = [#tpu.dimension_semantics<parallel>], iteration_bounds = array<i64: 2>, scalar_prefetch = 0 : i64, scratch_operands = 0 : i64, tpu.core_type = #tpu.core_type<tc>, window_params = [{transform_indices = @transform_0, window_bounds = array<i64: 1, 520, 768>}, {pipeline_mode = #tpu.pipeline_mode<synchronous>, transform_indices = @transform_1, window_bounds = array<i64: 768, 384>}, {pipeline_mode = #tpu.pipeline_mode<synchronous>, transform_indices = @transform_2, window_bounds = array<i64: 1, 128>}, {pipeline_mode = #tpu.pipeline_mode<synchronous>, transform_indices = @transform_3, window_bounds = array<i64: 128, 192>}, {pipeline_mode = #tpu.pipeline_mode<synchronous>, transform_indices = @transform_4, window_bounds = array<i64: 1, 64>}, {transform_indices = @transform_5, window_bounds = array<i64: 1, 256, 64>}]} {
    %c0 = arith.constant 0 : index
    %c0_0 = arith.constant 0 : index
    %c0_1 = arith.constant 0 : index
    %0 = vector.load %arg1[%c0, %c0_0, %c0_1] : memref<1x520x768xbf16, #tpu.memory_space<vmem>>, vector<1x520x768xbf16>
    %1 = vector.shape_cast %0 : vector<1x520x768xbf16> to vector<520x768xbf16>
    %c0_2 = arith.constant 0 : index
    %c0_3 = arith.constant 0 : index
    %2 = vector.load %arg2[%c0_2, %c0_3] : memref<768x384xbf16, #tpu.memory_space<vmem>>, vector<768x384xbf16>
    %cst = arith.constant dense<0.000000e+00> : vector<520x384xf32>
    %3 = tpu.matmul %1, %2, %cst {dimension_numbers = #tpu.dot_dimension_numbers<[1], [0], [0], [1], [0, 0, 1, 1], [], []>} : vector<520x768xbf16>, vector<768x384xbf16>, vector<520x384xf32> -> vector<520x384xf32>
    %4 = vector.extract_strided_slice %3 {offsets = [0, 0], sizes = [514, 128], strides = [1, 1]} : vector<520x384xf32> to vector<514x128xf32>
    %5 = vector.extract_strided_slice %3 {offsets = [1, 128], sizes = [514, 128], strides = [1, 1]} : vector<520x384xf32> to vector<514x128xf32>
    %6 = arith.addf %4, %5 : vector<514x128xf32>
    %7 = vector.extract_strided_slice %3 {offsets = [2, 256], sizes = [514, 128], strides = [1, 1]} : vector<520x384xf32> to vector<514x128xf32>
    %8 = arith.addf %6, %7 : vector<514x128xf32>
    %c0_4 = arith.constant 0 : index
    %c0_5 = arith.constant 0 : index
    %9 = vector.load %arg3[%c0_4, %c0_5] : memref<1x128xf32, #tpu.memory_space<vmem>>, vector<1x128xf32>
    %10 = vector.broadcast %9 : vector<1x128xf32> to vector<514x128xf32>
    %11 = arith.addf %8, %10 : vector<514x128xf32>
    %cst_6 = arith.constant 0.000000e+00 : f32
    %12 = vector.broadcast %cst_6 : f32 to vector<514x128xf32>
    %13 = arith.maximumf %11, %12 : vector<514x128xf32>
    %14 = tpu.iota {dimensions = array<i32: 0>} : vector<514x1xi32>
    %c1_i32 = arith.constant 1 : i32
    %15 = vector.broadcast %c1_i32 : i32 to vector<514x1xi32>
    %16 = arith.cmpi sge, %14, %15 : vector<514x1xi32>
    %c512_i32 = arith.constant 512 : i32
    %17 = vector.broadcast %c512_i32 : i32 to vector<514x1xi32>
    %18 = arith.cmpi sle, %14, %17 : vector<514x1xi32>
    %19 = arith.andi %16, %18 : vector<514x1xi1>
    %cst_7 = arith.constant 0.000000e+00 : f32
    %20 = vector.shape_cast %19 : vector<514x1xi1> to vector<514x1xi1>
    %21 = vector.broadcast %20 : vector<514x1xi1> to vector<514x128xi1>
    %22 = vector.broadcast %cst_7 : f32 to vector<514x128xf32>
    %23 = arith.select %21, %13, %22 : vector<514x128xi1>, vector<514x128xf32>
    %24 = arith.truncf %23 : vector<514x128xf32> to vector<514x128xbf16>
    %c0_8 = arith.constant 0 : index
    %c0_9 = arith.constant 0 : index
    %25 = vector.load %arg4[%c0_8, %c0_9] : memref<128x192xbf16, #tpu.memory_space<vmem>>, vector<128x192xbf16>
    %cst_10 = arith.constant dense<0.000000e+00> : vector<514x192xf32>
    %26 = tpu.matmul %24, %25, %cst_10 {dimension_numbers = #tpu.dot_dimension_numbers<[1], [0], [0], [1], [0, 0, 1, 1], [], []>} : vector<514x128xbf16>, vector<128x192xbf16>, vector<514x192xf32> -> vector<514x192xf32>
    %27 = vector.extract_strided_slice %26 {offsets = [0, 0], sizes = [512, 64], strides = [1, 1]} : vector<514x192xf32> to vector<512x64xf32>
    %28 = vector.extract_strided_slice %26 {offsets = [1, 64], sizes = [512, 64], strides = [1, 1]} : vector<514x192xf32> to vector<512x64xf32>
    %29 = arith.addf %27, %28 : vector<512x64xf32>
    %30 = vector.extract_strided_slice %26 {offsets = [2, 128], sizes = [512, 64], strides = [1, 1]} : vector<514x192xf32> to vector<512x64xf32>
    %31 = arith.addf %29, %30 : vector<512x64xf32>
    %c0_11 = arith.constant 0 : index
    %c0_12 = arith.constant 0 : index
    %32 = vector.load %arg5[%c0_11, %c0_12] : memref<1x64xf32, #tpu.memory_space<vmem>>, vector<1x64xf32>
    %33 = vector.broadcast %32 : vector<1x64xf32> to vector<512x64xf32>
    %34 = arith.addf %31, %33 : vector<512x64xf32>
    %cst_13 = arith.constant 0.000000e+00 : f32
    %35 = vector.broadcast %cst_13 : f32 to vector<512x64xf32>
    %36 = arith.maximumf %34, %35 : vector<512x64xf32>
    %37 = vector.shape_cast %36 : vector<512x64xf32> to vector<256x2x64xf32>
    %cst_14 = arith.constant dense<0xFF800000> : vector<256x64xf32>
    %38 = vector.multi_reduction <maximumf>, %37, %cst_14 [1] : vector<256x2x64xf32> to vector<256x64xf32>
    %39 = arith.truncf %38 : vector<256x64xf32> to vector<256x64xbf16>
    %c0_15 = arith.constant 0 : index
    %c0_16 = arith.constant 0 : index
    %c0_17 = arith.constant 0 : index
    %40 = vector.load %arg6[%c0_15, %c0_16, %c0_17] : memref<1x256x64xbf16, #tpu.memory_space<vmem>>, vector<1x256x64xbf16>
    %41 = vector.shape_cast %40 : vector<1x256x64xbf16> to vector<256x64xbf16>
    %42 = vector.shape_cast %39 : vector<256x64xbf16> to vector<1x256x64xbf16>
    tpu.vector_store %arg6[%c0_15, %c0_16, %c0_17], %42 {strides = array<i32>} : memref<1x256x64xbf16, #tpu.memory_space<vmem>>, vector<1x256x64xbf16>,
    return
  }
  func.func @transform_0(%arg0: i32) -> (i32, i32, i32) {
    %c0_i32 = arith.constant 0 : i32
    %c0_i32_0 = arith.constant 0 : i32
    %c0_i32_1 = arith.constant 0 : i32
    return %arg0, %c0_i32, %c0_i32_0 : i32, i32, i32
  }
  func.func @transform_1(%arg0: i32) -> (i32, i32) {
    %c0_i32 = arith.constant 0 : i32
    %c0_i32_0 = arith.constant 0 : i32
    %c0_i32_1 = arith.constant 0 : i32
    return %c0_i32, %c0_i32_0 : i32, i32
  }
  func.func @transform_2(%arg0: i32) -> (i32, i32) {
    %c0_i32 = arith.constant 0 : i32
    %c0_i32_0 = arith.constant 0 : i32
    %c0_i32_1 = arith.constant 0 : i32
    return %c0_i32, %c0_i32_0 : i32, i32
  }
  func.func @transform_3(%arg0: i32) -> (i32, i32) {
    %c0_i32 = arith.constant 0 : i32
    %c0_i32_0 = arith.constant 0 : i32
    %c0_i32_1 = arith.constant 0 : i32
    return %c0_i32, %c0_i32_0 : i32, i32
  }
  func.func @transform_4(%arg0: i32) -> (i32, i32) {
    %c0_i32 = arith.constant 0 : i32
    %c0_i32_0 = arith.constant 0 : i32
    %c0_i32_1 = arith.constant 0 : i32
    return %c0_i32, %c0_i32_0 : i32, i32
  }
  func.func @transform_5(%arg0: i32) -> (i32, i32, i32) {
    %c0_i32 = arith.constant 0 : i32
    %c0_i32_0 = arith.constant 0 : i32
    %c0_i32_1 = arith.constant 0 : i32
    return %arg0, %c0_i32, %c0_i32_0 : i32, i32, i32
  }
}

</mosaic_0001>

<bundles_post_ra>
// kernel: code_vulnerability_model.1
= control target key start
LH: loop header
LB: loop body
LE: loop exit
PB: predicated region body
PF: predicated region fallthrough
CT: control target
= control target key end

     0   :  { %s13880_s18 = smov 0   ;;  %s17732_s0 = inlined_call_operand.vmem [shape: bf16[2,520,768], index: 0, kind: input, shape index: {}]   ;;  %s17733_s1 = inlined_call_operand.vmem [shape: bf16[768,384], index: 1, kind: input, shape index: {}]   ;;  %s17734_s2 = inlined_call_operand.vmem [shape: f32[1,128], index: 2, kind: input, shape index: {}]   ;;  %s17735_s3 = inlined_call_operand.vmem [shape: bf16[128,192], index: 3, kind: input, shape index: {}]   ;;  %s17736_s4 = inlined_call_operand.vmem [shape: f32[1,64], index: 4, kind: input, shape index: {}]   ;;  %s17737_s5 = inlined_call_operand.vmem [shape: bf16[2,256,64], index: 5, kind: output, shape index: {}]  }
   0x1 LB: > { %s11837_s19 = sadd.s32 4294967295, %s13844_s18   ;;  %p11841_p0 = scmp.ge.s32.totalorder %s13844_s18, 1  ;;  %s13844_s18 = sphi %s13880_s18, %s15_s18  }
   0x2   : > { %p187_p1 = scmp.lt.s32.totalorder %s13844_s18, 3 }
   0x4   : > { %p188_p2 = pnand %p11841_p0, %p187_p1 }
   0x6   : > { %191 = sbr.rel (%p188_p2) target bundleno = 2167 (0x877), region = 40 }
   0xd   : > { %v13291_v0 = vld [vmem:[%s17733_s1 + $0x4] ss:$12 sps:$4 sm:$0xff]   ;;  %v13293_v1 = vld [vmem:[%s17733_s1] ss:$12 sps:$4 sm:$0xff]   ;;  %v13294_v2 = vld [vmem:[%s17733_s1 + $0x1c] ss:$12 sps:$4 sm:$0xff]  }
   0xe   : > { %2362 = vmatprep.subr.bf16.mxu0 %v13291_v0  ;;  %12726 = vmatprep.subr.bf16.mxu1 %v13291_v0  ;;  %v13296_v3 = vld [vmem:[%s17733_s1 + $0x18] ss:$12 sps:$4 sm:$0xff]   ;;  %v13297_v4 = vld [vmem:[%s17733_s1 + $0x34] ss:$12 sps:$4 sm:$0xff]   ;;  %v13299_v5 = vld [vmem:[%s17733_s1 + $0x30] ss:$12 sps:$4 sm:$0xff]  }
   0xf   : > { %2363 = vmatpush1.bf16.msra.mxu0 %v13293_v1  ;;  %12742 = vmatpush1.bf16.msra.mxu1 %v13293_v1  ;;  %p215_p3 = scmp.lt.s32.totalorder %s11837_s19, 1  ;;  %v13300_v6 = vld [vmem:[%s17733_s1 + $0x4c] ss:$12 sps:$4 sm:$0xff]   ;;  %v13302_v7 = vld [vmem:[%s17733_s1 + $0x48] ss:$12 sps:$4 sm:$0xff]   ;;  %v17738_v39 = vmov 0  }
  0x10   : > { %2364 = vmatprep.subr.bf16.mxu0 %v13294_v2  ;;  %12727 = vmatprep.subr.bf16.mxu1 %v13294_v2  ;;  %v13303_v8 = vld [vmem:[%s17733_s1 + $0x64] ss:$12 sps:$4 sm:$0xff]   ;;  %v13305_v9 = vld [vmem:[%s17733_s1 + $0x60] ss:$12 sps:$4 sm:$0xff]   ;;  %v13306_v10 = vld [vmem:[%s17733_s1 + $0x7c] ss:$12 sps:$4 sm:$0xff]  }
  0x11   : > { %s18401_s19 = smov (!%p215_p3, %s11837_s19), 1  ;;  %v13308_v11 = vld [vmem:[%s17733_s1 + $0x78] ss:$12 sps:$4 sm:$0xff]   ;;  %v13309_v12 = vld [vmem:[%s17733_s1 + $0x94] ss:$12 sps:$4 sm:$0xff]   ;;  %vm4398_vm0 = vcmask 1046528  }
  0x12   : > { %s13278_s15 = smul.u32 1560, %s18401_s19  ;;  %v13311_v14 = vld [vmem:[%s17733_s1 + $0x90] ss:$12 sps:$4 sm:$0xff]   ;;  %v13312_v16 = vld [vmem:[%s17733_s1 + $0xac] ss:$12 sps:$4 sm:$0xff]   ;;  %vm4723_vm1 = vcmask 1045504  }
  0x13   : > { %2365 = vmatpush1.bf16.msra.mxu0 %v13296_v3  ;;  %12743 = vmatpush1.bf16.msra.mxu1 %v13296_v3  ;;  %v13314_v17 = vld [vmem:[%s17733_s1 + $0xa8] ss:$12 sps:$4 sm:$0xff]   ;;  %v13315_v18 = vld [vmem:[%s17733_s1 + $0xc4] ss:$12 sps:$4 sm:$0xff]   ;;  %v13317_v19 = vld [vmem:[%s17733_s1 + $0xc0] ss:$12 sps:$4 sm:$0xff]  }
  0x14   : > { %2366 = vmatprep.subr.bf16.mxu0 %v13297_v4  ;;  %12728 = vmatprep.subr.bf16.mxu1 %v13297_v4  ;;  %s13930_s24 = scalar_lea.vmem %s17732_s0, %s13278_s15  ;;  %v13318_v20 = vld [vmem:[%s17733_s1 + $0xdc] ss:$12 sps:$4 sm:$0xff]   ;;  %v13320_v21 = vld [vmem:[%s17733_s1 + $0xd8] ss:$12 sps:$4 sm:$0xff]   ;;  %v13321_v22 = vld [vmem:[%s17733_s1 + $0xf4] ss:$12 sps:$4 sm:$0xff]  }
  0x15   : > { %v13341_v13 = vld [vmem:[%s13930_s24 + $0x4] ss:$24 sps:$4 sm:$0xff]   ;;  %v13344_v15 = vld [vmem:[%s13930_s24 + $0x334] ss:$24 sps:$4 sm:$0xff]   ;;  %v13339_v35 = vld [vmem:[%s13930_s24] ss:$24 sps:$4 sm:$0xff]  }
  0x16   : > { %2394 = vmatprep.mubr.bf16.mxu0 %v13341_v13  ;;  %2564 = vmatprep.mubr.bf16.mxu1 %v13344_v15  ;;  %v13323_v23 = vld [vmem:[%s17733_s1 + $0xf0] ss:$12 sps:$4 sm:$0xff]   ;;  %v13324_v24 = vld [vmem:[%s17733_s1 + $0x10c] ss:$12 sps:$4 sm:$0xff]   ;;  %v13326_v25 = vld [vmem:[%s17733_s1 + $0x108] ss:$12 sps:$4 sm:$0xff]  }
  0x17   : > { %2367 = vmatpush1.bf16.msra.mxu0 %v13299_v5  ;;  %12744 = vmatpush1.bf16.msra.mxu1 %v13299_v5  ;;  %v13327_v26 = vld [vmem:[%s17733_s1 + $0x124] ss:$12 sps:$4 sm:$0xff]   ;;  %v13329_v27 = vld [vmem:[%s17733_s1 + $0x120] ss:$12 sps:$4 sm:$0xff]   ;;  %v13330_v28 = vld [vmem:[%s17733_s1 + $0x13c] ss:$12 sps:$4 sm:$0xff]  }
  0x18   : > { %2368 = vmatprep.subr.bf16.mxu0 %v13300_v6  ;;  %12729 = vmatprep.subr.bf16.mxu1 %v13300_v6  ;;  %v13332_v29 = vld [vmem:[%s17733_s1 + $0x138] ss:$12 sps:$4 sm:$0xff]   ;;  %v13333_v30 = vld [vmem:[%s17733_s1 + $0x154] ss:$12 sps:$4 sm:$0xff]   ;;  %v13335_v31 = vld [vmem:[%s17733_s1 + $0x150] ss:$12 sps:$4 sm:$0xff]  }
  0x19   : > { %v13336_v32 = vld [vmem:[%s17733_s1 + $0x16c] ss:$12 sps:$4 sm:$0xff]   ;;  %v13338_v33 = vld [vmem:[%s17733_s1 + $0x168] ss:$12 sps:$4 sm:$0xff]   ;;  %v13410_v34 = vld [vmem:[%s17733_s1 + $0x184] ss:$12 sps:$4 sm:$0xff]  }
  0x1a   : > { %v13342_v36 = vld [vmem:[%s13930_s24 + $0x330] ss:$24 sps:$4 sm:$0xff]   ;;  %v13346_v38 = vld [vmem:[%s13930_s24 + $0x34] ss:$24 sps:$4 sm:$0xff]   ;;  %v13348_v40 = vld [vmem:[%s13930_s24 + $0x364] ss:$24 sps:$4 sm:$0xff]  }
  0x1b   : > { %2369 = vmatpush1.bf16.msra.mxu0 %v13302_v7  ;;  %12745 = vmatpush1.bf16.msra.mxu1 %v13302_v7  ;;  %v13345_v37 = vld [vmem:[%s17733_s1 + $0x8] ss:$12 sps:$4 sm:$0xff]   ;;  %v13408_v41 = vld [vmem:[%s17733_s1 + $0x180] ss:$12 sps:$4 sm:$0xff]   ;;  %v13412_v46 = vld [vmem:[%s17733_s1 + $0x198] ss:$12 sps:$4 sm:$0xff]  }
  0x1c   : > { %2370 = vmatprep.subr.bf16.mxu0 %v13303_v8  ;;  %12730 = vmatprep.subr.bf16.mxu1 %v13303_v8  ;;  %v13414_v42 = vld [vmem:[%s17733_s1 + $0x19c] ss:$12 sps:$4 sm:$0xff]   ;;  %v13352_v43 = vld [vmem:[%s17733_s1 + $0x20] ss:$12 sps:$4 sm:$0xff]   ;;  %v13359_v49 = vld [vmem:[%s17733_s1 + $0x38] ss:$12 sps:$4 sm:$0xff]  }
  0x1d   : > { %v13350_v44 = vld [vmem:[%s13930_s24 + $0x30] ss:$24 sps:$4 sm:$0xff]   ;;  %v13351_v45 = vld [vmem:[%s13930_s24 + $0x360] ss:$24 sps:$4 sm:$0xff]   ;;  %v13353_v47 = vld [vmem:[%s13930_s24 + $0x64] ss:$24 sps:$4 sm:$0xff]  }
  0x1e   : > { %v13355_v48 = vld [vmem:[%s13930_s24 + $0x394] ss:$24 sps:$4 sm:$0xff]   ;;  %v13421_v51 = vld [vmem:[%s17733_s1 + $0x1b0] ss:$12 sps:$4 sm:$0xff]   ;;  %v13357_v53 = vld [vmem:[%s13930_s24 + $0x60] ss:$24 sps:$4 sm:$0xff]  }
  0x1f   : > { %2371 = vmatpush1.bf16.msra.mxu0 %v13305_v9  ;;  %12746 = vmatpush1.bf16.msra.mxu1 %v13305_v9  ;;  %v13423_v50 = vld [vmem:[%s17733_s1 + $0x1b4] ss:$12 sps:$4 sm:$0xff]   ;;  %v13427_v52 = vld [vmem:[%s17733_s1 + $0x1cc] ss:$12 sps:$4 sm:$0xff]   ;;  %v13358_v54 = vld [vmem:[%s13930_s24 + $0x390] ss:$24 sps:$4 sm:$0xff]  }
  0x20   : > { %2372 = vmatprep.subr.bf16.mxu0 %v13306_v10  ;;  %12731 = vmatprep.subr.bf16.mxu1 %v13306_v10  ;;  %v13366_v55 = vld [vmem:[%s17733_s1 + $0x50] ss:$12 sps:$4 sm:$0xff]   ;;  %v13425_v56 = vld [vmem:[%s17733_s1 + $0x1c8] ss:$12 sps:$4 sm:$0xff]   ;;  %v13434_v61 = vld [vmem:[%s17733_s1 + $0x1e0] ss:$12 sps:$4 sm:$0xff]  }
  0x21   : > { %v14045_v57 = vld [vmem:[%s13930_s24 + $0x94] ss:$24 sps:$4 sm:$0xff]   ;;  %v13362_v58 = vld [vmem:[%s13930_s24 + $0x3c4] ss:$24 sps:$4 sm:$0xff]   ;;  %v14063_v63 = vld [vmem:[%s13930_s24 + $0x90] ss:$24 sps:$4 sm:$0xff]  }
  0x22   : > { %v13373_v59 = vld [vmem:[%s17733_s1 + $0x68] ss:$12 sps:$4 sm:$0xff]   ;;  %v13436_v60 = vld [vmem:[%s17733_s1 + $0x1e4] ss:$12 sps:$4 sm:$0xff]   ;;  %v13380_v0 = vld [vmem:[%s17733_s1 + $0x80] ss:$12 sps:$4 sm:$0xff]  }
  0x23   : > { %2373 = vmatpush1.bf16.msra.mxu0 %v13308_v11  ;;  %12747 = vmatpush1.bf16.msra.mxu1 %v13308_v11  ;;  %v13440_v62 = vld [vmem:[%s17733_s1 + $0x1fc] ss:$12 sps:$4 sm:$0xff]   ;;  %v13365_v1 = vld [vmem:[%s13930_s24 + $0x3c0] ss:$24 sps:$4 sm:$0xff]   ;;  %v13369_v4 = vld [vmem:[%s13930_s24 + $0x3f4] ss:$24 sps:$4 sm:$0xff]  }
  0x24   : > { %2374 = vmatprep.subr.bf16.mxu0 %v13309_v12  ;;  %12732 = vmatprep.subr.bf16.mxu1 %v13309_v12  ;;  %v13438_v2 = vld [vmem:[%s17733_s1 + $0x1f8] ss:$12 sps:$4 sm:$0xff]   ;;  %v13449_v6 = vld [vmem:[%s17733_s1 + $0x214] ss:$12 sps:$4 sm:$0xff]   ;;  %v13447_v7 = vld [vmem:[%s17733_s1 + $0x210] ss:$12 sps:$4 sm:$0xff]  }
  0x25   : > { %v14074_v3 = vld [vmem:[%s13930_s24 + $0xc4] ss:$24 sps:$4 sm:$0xff]   ;;  %v13453_v8 = vld [vmem:[%s17733_s1 + $0x22c] ss:$12 sps:$4 sm:$0xff]   ;;  %v13372_v11 = vld [vmem:[%s13930_s24 + $0x3f0] ss:$24 sps:$4 sm:$0xff]  }
  0x26   : > { %v13387_v5 = vld [vmem:[%s17733_s1 + $0x98] ss:$12 sps:$4 sm:$0xff]   ;;  %v13394_v10 = vld [vmem:[%s17733_s1 + $0xb0] ss:$12 sps:$4 sm:$0xff]   ;;  %v14100_v12 = vld [vmem:[%s13930_s24 + $0xf4] ss:$24 sps:$4 sm:$0xff]  }
  0x27   : > { %2375 = vmatpush1.bf16.msra.mxu0 %v13311_v14  ;;  %12748 = vmatpush1.bf16.msra.mxu1 %v13311_v14  ;;  %v14093_v9 = vld [vmem:[%s13930_s24 + $0xc0] ss:$24 sps:$4 sm:$0xff]   ;;  %v13451_v13 = vld [vmem:[%s17733_s1 + $0x228] ss:$12 sps:$4 sm:$0xff]   ;;  %v13376_v14 = vld [vmem:[%s13930_s24 + $0x424] ss:$24 sps:$4 sm:$0xff]  }
  0x28   : > { %2376 = vmatprep.subr.bf16.mxu0 %v13312_v16  ;;  %12733 = vmatprep.subr.bf16.mxu1 %v13312_v16  ;;  %v13401_v15 = vld [vmem:[%s17733_s1 + $0xc8] ss:$12 sps:$4 sm:$0xff]   ;;  %v13462_v16 = vld [vmem:[%s17733_s1 + $0x244] ss:$12 sps:$4 sm:$0xff]   ;;  %vm13847_vm3 = vmmov 1   ;;  %s13848_s11 = smov 64  }
  0x29   : > { %vm8381_vm7 = vcmask 517120   ;;  %vm11454_vm8 = vcmask 1041409   ;;  %vm11456_vm9 = vcmask 1042434   ;;  %vm11458_vm10 = vcmask 1043459   ;;  %s12469_s16 = sshll.u32 %s18401_s19, 7 }
  0x2a   : > { %vm11460_vm11 = vcmask 1044484   ;;  %vm11462_vm12 = vcmask 1045509   ;;  %vm11464_vm13 = vcmask 1046534   ;;  %vm11466_vm14 = vcmask 1047559   ;;  %s16298_s20 = scalar_lea.vmem %s17737_s5, %s12469_s16 }
  0x2b   : > { %2377 = vmatpush1.bf16.msra.mxu0 %v13314_v17  ;;  %12749 = vmatpush1.bf16.msra.mxu1 %v13314_v17  ;;  %v13460_v17 = vld [vmem:[%s17733_s1 + $0x240] ss:$12 sps:$4 sm:$0xff]   ;;  %vm11749_vm15 = vcmask 519168  }
  0x2c   : > { %2378 = vmatprep.subr.bf16.mxu0 %v13315_v18  ;;  %12734 = vmatprep.subr.bf16.mxu1 %v13315_v18  ;;  %v13466_v18 = vld [vmem:[%s17733_s1 + $0x25c] ss:$12 sps:$4 sm:$0xff]  }
  0x2f   : > { %2379 = vmatpush1.bf16.msra.mxu0 %v13317_v19  ;;  %12750 = vmatpush1.bf16.msra.mxu1 %v13317_v19  ;;  %v14123_v19 = vld [vmem:[%s13930_s24 + $0xf0] ss:$24 sps:$4 sm:$0xff]  }
  0x30   : > { %2380 = vmatprep.subr.bf16.mxu0 %v13318_v20  ;;  %12735 = vmatprep.subr.bf16.mxu1 %v13318_v20  ;;  %v13411_v20 = vld [vmem:[%s17733_s1 + $0xe0] ss:$12 sps:$4 sm:$0xff]  }
  0x33   : > { %2381 = vmatpush1.bf16.msra.mxu0 %v13320_v21  ;;  %12751 = vmatpush1.bf16.msra.mxu1 %v13320_v21  ;;  %v13464_v21 = vld [vmem:[%s17733_s1 + $0x258] ss:$12 sps:$4 sm:$0xff]  }
  0x34   : > { %2382 = vmatprep.subr.bf16.mxu0 %v13321_v22  ;;  %12736 = vmatprep.subr.bf16.mxu1 %v13321_v22  ;;  %v13379_v22 = vld [vmem:[%s13930_s24 + $0x420] ss:$24 sps:$4 sm:$0xff]  }
  0x37   : > { %2383 = vmatpush1.bf16.msra.mxu0 %v13323_v23  ;;  %12752 = vmatpush1.bf16.msra.mxu1 %v13323_v23  ;;  %v14134_v23 = vld [vmem:[%s13930_s24 + $0x124] ss:$24 sps:$4 sm:$0xff]  }
  0x38   : > { %2384 = vmatprep.subr.bf16.mxu0 %v13324_v24  ;;  %12737 = vmatprep.subr.bf16.mxu1 %v13324_v24  ;;  %v13383_v24 = vld [vmem:[%s13930_s24 + $0x454] ss:$24 sps:$4 sm:$0xff]  }
  0x3b   : > { %2385 = vmatpush1.bf16.msra.mxu0 %v13326_v25  ;;  %12753 = vmatpush1.bf16.msra.mxu1 %v13326_v25  ;;  %v13424_v25 = vld [vmem:[%s17733_s1 + $0xf8] ss:$12 sps:$4 sm:$0xff]  }
  0x3c   : > { %2386 = vmatprep.subr.bf16.mxu0 %v13327_v26  ;;  %12738 = vmatprep.subr.bf16.mxu1 %v13327_v26  ;;  %v13475_v26 = vld [vmem:[%s17733_s1 + $0x274] ss:$12 sps:$4 sm:$0xff]  }
  0x3f   : > { %2387 = vmatpush1.bf16.msra.mxu0 %v13329_v27  ;;  %12754 = vmatpush1.bf16.msra.mxu1 %v13329_v27  ;;  %v13473_v27 = vld [vmem:[%s17733_s1 + $0x270] ss:$12 sps:$4 sm:$0xff]  }
  0x40   : > { %2388 = vmatprep.subr.bf16.mxu0 %v13330_v28  ;;  %12739 = vmatprep.subr.bf16.mxu1 %v13330_v28  ;;  %v13479_v28 = vld [vmem:[%s17733_s1 + $0x28c] ss:$12 sps:$4 sm:$0xff]  }
  0x43   : > { %2389 = vmatpush1.bf16.msra.mxu0 %v13332_v29  ;;  %12755 = vmatpush1.bf16.msra.mxu1 %v13332_v29  ;;  %v14153_v29 = vld [vmem:[%s13930_s24 + $0x120] ss:$24 sps:$4 sm:$0xff]  }
  0x44   : > { %2390 = vmatprep.subr.bf16.mxu0 %v13333_v30  ;;  %12740 = vmatprep.subr.bf16.mxu1 %v13333_v30  ;;  %v13386_v30 = vld [vmem:[%s13930_s24 + $0x450] ss:$24 sps:$4 sm:$0xff]  }
  0x47   : > { %2391 = vmatpush1.bf16.msra.mxu0 %v13335_v31  ;;  %12756 = vmatpush1.bf16.msra.mxu1 %v13335_v31  ;;  %v13437_v31 = vld [vmem:[%s17733_s1 + $0x110] ss:$12 sps:$4 sm:$0xff]  }
  0x48   : > { %2392 = vmatprep.subr.bf16.mxu0 %v13336_v32  ;;  %12741 = vmatprep.subr.bf16.mxu1 %v13336_v32  ;;  %v14160_v32 = vld [vmem:[%s13930_s24 + $0x154] ss:$24 sps:$4 sm:$0xff]  }
  0x4b   : > { %2393 = vmatpush1.bf16.msra.mxu0 %v13338_v33  ;;  %12757 = vmatpush1.bf16.msra.mxu1 %v13338_v33  ;;  %v13477_v33 = vld [vmem:[%s17733_s1 + $0x288] ss:$12 sps:$4 sm:$0xff]  }
  0x4c   : > { %3445 = vmatprep.subr.bf16.mxu1 %v17738_v39  ;;  %2723 = vmatprep.subr.bf16.mxu0 %v13410_v34  ;;  %v13390_v34 = vld [vmem:[%s13930_s24 + $0x484] ss:$24 sps:$4 sm:$0xff]  }
  0x4e   : > { %2395 = vmatmul.mubr.bf16.vlgmr.msra.gmra.mrb[0].mxu0 %v13339_v35  ;;  %2565 = vmatmul.mubr.bf16.vlgmr.msra.gmra.mrb[0].mxu1 %v13342_v36  ;;  %v13450_v35 = vld [vmem:[%s17733_s1 + $0x128] ss:$12 sps:$4 sm:$0xff]   ;;  %v13485_v36 = vld [vmem:[%s17733_s1 + $0x2a0] ss:$12 sps:$4 sm:$0xff]  }
  0x4f   : > { %3446 = vmatpush1.bf16.msra.mxu1 %v13345_v37  ;;  %2404 = vmatprep.mubr.bf16.mxu0 %v13346_v38  ;;  %v13487_v37 = vld [vmem:[%s17733_s1 + $0x2a4] ss:$12 sps:$4 sm:$0xff]   ;;  %v13463_v38 = vld [vmem:[%s17733_s1 + $0x140] ss:$12 sps:$4 sm:$0xff]  }
  0x50   : > { %2574 = vmatprep.mubr.bf16.mxu1 %v13348_v40  ;;  %3447 = vmatprep.subr.bf16.mxu1 %v17738_v39  ;;  %v13491_v40 = vld [vmem:[%s17733_s1 + $0x2bc] ss:$12 sps:$4 sm:$0xff]  }
  0x51   : > { %2724 = vmatpush1.bf16.msra.mxu0 %v13408_v41  ;;  %v13489_v41 = vld [vmem:[%s17733_s1 + $0x2b8] ss:$12 sps:$4 sm:$0xff]  }
  0x52   : > { %2725 = vmatprep.subr.bf16.mxu0 %v13414_v42  ;;  %v14189_v42 = vld [vmem:[%s13930_s24 + $0x150] ss:$24 sps:$4 sm:$0xff]  }
  0x53   : > { %3448 = vmatpush1.bf16.msra.mxu1 %v13352_v43  ;;  %v13393_v43 = vld [vmem:[%s13930_s24 + $0x480] ss:$24 sps:$4 sm:$0xff]  }
  0x54   : > { %3449 = vmatprep.subr.bf16.mxu1 %v17738_v39 }
  0x55   : > { %2726 = vmatpush1.bf16.msra.mxu0 %v13412_v46  ;;  %v13476_v46 = vld [vmem:[%s17733_s1 + $0x158] ss:$12 sps:$4 sm:$0xff]  }
  0x56   : > { %2405 = vmatmul.mubr.bf16.gmra.mrb[4].mxu0 %v13350_v44  ;;  %2575 = vmatmul.mubr.bf16.gmra.mrb[4].mxu1 %v13351_v45  ;;  %v14193_v44 = vld [vmem:[%s13930_s24 + $0x184] ss:$24 sps:$4 sm:$0xff]   ;;  %v13397_v45 = vld [vmem:[%s13930_s24 + $0x4b4] ss:$24 sps:$4 sm:$0xff]  }
  0x57   : > { %2414 = vmatprep.mubr.bf16.mxu0 %v13353_v47  ;;  %2584 = vmatprep.mubr.bf16.mxu1 %v13355_v48  ;;  %v13497_v47 = vld [vmem:[%s17733_s1 + $0x2d4] ss:$12 sps:$4 sm:$0xff]   ;;  %v13495_v48 = vld [vmem:[%s17733_s1 + $0x2d0] ss:$12 sps:$4 sm:$0xff]  }
  0x58   : > { %3450 = vmatpush1.bf16.msra.mxu1 %v13359_v49  ;;  %2727 = vmatprep.subr.bf16.mxu0 %v13423_v50  ;;  %v13488_v49 = vld [vmem:[%s17733_s1 + $0x170] ss:$12 sps:$4 sm:$0xff]   ;;  %v13501_v50 = vld [vmem:[%s17733_s1 + $0x2ec] ss:$12 sps:$4 sm:$0xff]  }
  0x59   : > { %3451 = vmatprep.subr.bf16.mxu1 %v17738_v39  ;;  %2728 = vmatpush1.bf16.msra.mxu0 %v13421_v51  ;;  %v13499_v51 = vld [vmem:[%s17733_s1 + $0x2e8] ss:$12 sps:$4 sm:$0xff]  }
  0x5a   : > { %2729 = vmatprep.subr.bf16.mxu0 %v13427_v52  ;;  %v14219_v52 = vld [vmem:[%s13930_s24 + $0x180] ss:$24 sps:$4 sm:$0xff]  }
  0x5c   : > { %3452 = vmatpush1.bf16.msra.mxu1 %v13366_v55  ;;  %v13404_v55 = vld [vmem:[%s13930_s24 + $0x4e4] ss:$24 sps:$4 sm:$0xff]  }
  0x5d   : > { %3453 = vmatprep.subr.bf16.mxu1 %v17738_v39  ;;  %2730 = vmatpush1.bf16.msra.mxu0 %v13425_v56  ;;  %v14231_v56 = vld [vmem:[%s13930_s24 + $0x1b0] ss:$24 sps:$4 sm:$0xff]  }
  0x5e   : > { %2415 = vmatmul.mubr.bf16.gmra.mrb[8].mxu0 %v13357_v53  ;;  %2585 = vmatmul.mubr.bf16.gmra.mrb[8].mxu1 %v13358_v54  ;;  %v13400_v53 = vld [vmem:[%s13930_s24 + $0x4b0] ss:$24 sps:$4 sm:$0xff]   ;;  %v14223_v54 = vld [vmem:[%s13930_s24 + $0x1b4] ss:$24 sps:$4 sm:$0xff]  }
  0x5f   : > { %2424 = vmatprep.mubr.bf16.mxu0 %v14045_v57  ;;  %2594 = vmatprep.mubr.bf16.mxu1 %v13362_v58  ;;  %v13407_v58 = vld [vmem:[%s13930_s24 + $0x4e0] ss:$24 sps:$4 sm:$0xff]  }
  0x60   : > { %3454 = vmatpush1.bf16.msra.mxu1 %v13373_v59  ;;  %2731 = vmatprep.subr.bf16.mxu0 %v13436_v60  ;;  %v14235_v59 = vld [vmem:[%s13930_s24 + $0x1e4] ss:$24 sps:$4 sm:$0xff]   ;;  %v13417_v60 = vld [vmem:[%s13930_s24 + $0x514] ss:$24 sps:$4 sm:$0xff]  }
  0x61   : > { %3455 = vmatprep.subr.bf16.mxu1 %v17738_v39  ;;  %2732 = vmatpush1.bf16.msra.mxu0 %v13434_v61  ;;  %v14241_v61 = vld [vmem:[%s13930_s24 + $0x1e0] ss:$24 sps:$4 sm:$0xff]  }
  0x62   : > { %2733 = vmatprep.subr.bf16.mxu0 %v13440_v62  ;;  %v13420_v62 = vld [vmem:[%s13930_s24 + $0x510] ss:$24 sps:$4 sm:$0xff]  }
  0x64   : > { %3456 = vmatpush1.bf16.msra.mxu1 %v13380_v0  ;;  %v14245_v0 = vld [vmem:[%s13930_s24 + $0x214] ss:$24 sps:$4 sm:$0xff]  }
  0x65   : > { %3457 = vmatprep.subr.bf16.mxu1 %v17738_v39  ;;  %2734 = vmatpush1.bf16.msra.mxu0 %v13438_v2  ;;  %v14251_v2 = vld [vmem:[%s13930_s24 + $0x210] ss:$24 sps:$4 sm:$0xff]  }
  0x66   : > { %2425 = vmatmul.mubr.bf16.gmra.mrb[12].mxu0 %v14063_v63  ;;  %2595 = vmatmul.mubr.bf16.gmra.mrb[12].mxu1 %v13365_v1  ;;  %v13430_v1 = vld [vmem:[%s13930_s24 + $0x544] ss:$24 sps:$4 sm:$0xff]  }
  0x67   : > { %2434 = vmatprep.mubr.bf16.mxu0 %v14074_v3  ;;  %2604 = vmatprep.mubr.bf16.mxu1 %v13369_v4  ;;  %v13433_v4 = vld [vmem:[%s13930_s24 + $0x540] ss:$24 sps:$4 sm:$0xff]  }
  0x68   : > { %3458 = vmatpush1.bf16.msra.mxu1 %v13387_v5  ;;  %2735 = vmatprep.subr.bf16.mxu0 %v13449_v6  ;;  %v14255_v5 = vld [vmem:[%s13930_s24 + $0x244] ss:$24 sps:$4 sm:$0xff]   ;;  %v14258_v6 = vld [vmem:[%s13930_s24 + $0x574] ss:$24 sps:$4 sm:$0xff]  }
  0x69   : > { %3459 = vmatprep.subr.bf16.mxu1 %v17738_v39  ;;  %2736 = vmatpush1.bf16.msra.mxu0 %v13447_v7  ;;  %v14264_v7 = vld [vmem:[%s13930_s24 + $0x240] ss:$24 sps:$4 sm:$0xff]  }
  0x6a   : > { %2737 = vmatprep.subr.bf16.mxu0 %v13453_v8  ;;  %v14267_v8 = vld [vmem:[%s13930_s24 + $0x570] ss:$24 sps:$4 sm:$0xff]  }
  0x6c   : > { %3460 = vmatpush1.bf16.msra.mxu1 %v13394_v10  ;;  %v14270_v10 = vld [vmem:[%s13930_s24 + $0x274] ss:$24 sps:$4 sm:$0xff]  }
  0x6d   : > { %3461 = vmatprep.subr.bf16.mxu1 %v17738_v39  ;;  %2738 = vmatpush1.bf16.msra.mxu0 %v13451_v13  ;;  %v14280_v13 = vld [vmem:[%s13930_s24 + $0x270] ss:$24 sps:$4 sm:$0xff]  }
  0x6e   : > { %2435 = vmatmul.mubr.bf16.gmra.mrb[16].mxu0 %v14093_v9  ;;  %2605 = vmatmul.mubr.bf16.gmra.mrb[16].mxu1 %v13372_v11  ;;  %v14273_v11 = vld [vmem:[%s13930_s24 + $0x5a4] ss:$24 sps:$4 sm:$0xff]  }
  0x6f   : > { %2444 = vmatprep.mubr.bf16.mxu0 %v14100_v12  ;;  %2614 = vmatprep.mubr.bf16.mxu1 %v13376_v14  ;;  %v14283_v14 = vld [vmem:[%s13930_s24 + $0x5a0] ss:$24 sps:$4 sm:$0xff]  }
  0x70   : > { %3462 = vmatpush1.bf16.msra.mxu1 %v13401_v15  ;;  %2739 = vmatprep.subr.bf16.mxu0 %v13462_v16  ;;  %v14286_v15 = vld [vmem:[%s13930_s24 + $0x2a4] ss:$24 sps:$4 sm:$0xff]   ;;  %v14289_v16 = vld [vmem:[%s13930_s24 + $0x5d4] ss:$24 sps:$4 sm:$0xff]  }
  0x71   : > { %3463 = vmatprep.subr.bf16.mxu1 %v17738_v39  ;;  %2740 = vmatpush1.bf16.msra.mxu0 %v13460_v17  ;;  %v418_v17 = vld [vmem:[%s13930_s24 + $0x600] sm:$0xff] }
  0x72   : > { %2741 = vmatprep.subr.bf16.mxu0 %v13466_v18  ;;  %v14297_v18 = vld [vmem:[%s13930_s24 + $0x2a0] ss:$24 sps:$4 sm:$0xff]  }
  0x74   : > { %3464 = vmatpush1.bf16.msra.mxu1 %v13411_v20  ;;  %v14300_v20 = vld [vmem:[%s13930_s24 + $0x5d0] ss:$24 sps:$4 sm:$0xff]  }
  0x75   : > { %3465 = vmatprep.subr.bf16.mxu1 %v17738_v39  ;;  %2742 = vmatpush1.bf16.msra.mxu0 %v13464_v21  ;;  %v14303_v21 = vld [vmem:[%s13930_s24 + $0x2d4] ss:$24 sps:$4 sm:$0xff]  }
  0x76   : > { %2445 = vmatmul.mubr.bf16.gmra.mrb[20].mxu0 %v14123_v19  ;;  %2615 = vmatmul.mubr.bf16.gmra.mrb[20].mxu1 %v13379_v22  ;;  %v14305_v22 = vcombine.high %v418_v17, %v418_v17 }
  0x77   : > { %2454 = vmatprep.mubr.bf16.mxu0 %v14134_v23  ;;  %2624 = vmatprep.mubr.bf16.mxu1 %v13383_v24  ;;  %v14312_v24 = vld [vmem:[%s13930_s24 + $0x2d0] ss:$24 sps:$4 sm:$0xff]  }
  0x78   : > { %3466 = vmatpush1.bf16.msra.mxu1 %v13424_v25  ;;  %2743 = vmatprep.subr.bf16.mxu0 %v13475_v26  ;;  %v14314_v25 = vcombine.low %v418_v17, %v418_v17  ;;  %v14317_v26 = vld [vmem:[%s13930_s24 + $0x304] ss:$24 sps:$4 sm:$0xff]   ;;  %v13587_v17 = vld [vmem:[%s17733_s1 + $0x2a8] ss:$12 sps:$4 sm:$0xff]  }
  0x79   : > { %3467 = vmatprep.subr.bf16.mxu1 %v17738_v39  ;;  %2744 = vmatpush1.bf16.msra.mxu0 %v13473_v27  ;;  %v13801_v27 = vld [vmem:[%s13930_s24 + $0x4] ss:$24 sps:$4 sm:$0xff]  }
  0x7a   : > { %2745 = vmatprep.subr.bf16.mxu0 %v13479_v28  ;;  %v14324_v28 = vld [vmem:[%s13930_s24 + $0x300] ss:$24 sps:$4 sm:$0xff]  }
  0x7c   : > { %3468 = vmatpush1.bf16.msra.mxu1 %v13437_v31  ;;  %v14330_v31 = vld [vmem:[%s13930_s24 + $0xc] ss:$24 sps:$4 sm:$0xff]  }
  0x7d   : > { %3469 = vmatprep.subr.bf16.mxu1 %v17738_v39  ;;  %2746 = vmatpush1.bf16.msra.mxu0 %v13477_v33  ;;  %v13802_v33 = vld [vmem:[%s13930_s24] ss:$24 sps:$4 sm:$0xff]  }
  0x7e   : > { %2455 = vmatmul.mubr.bf16.gmra.mrb[24].mxu0 %v14153_v29  ;;  %2625 = vmatmul.mubr.bf16.gmra.mrb[24].mxu1 %v13386_v30  ;;  %v13498_v30 = vld [vmem:[%s17733_s1 + $0x188] ss:$12 sps:$4 sm:$0xff]  }
  0x7f   : > { %2464 = vmatprep.mubr.bf16.mxu0 %v14160_v32  ;;  %2634 = vmatprep.mubr.bf16.mxu1 %v13390_v34  ;;  %v13508_v34 = vld [vmem:[%s17733_s1 + $0x1a0] ss:$12 sps:$4 sm:$0xff]  }
  0x80   : > { %3470 = vmatpush1.bf16.msra.mxu1 %v13450_v35  ;;  %2747 = vmatprep.subr.bf16.mxu0 %v13487_v37  ;;  %v13803_v35 = vld [vmem:[%s13930_s24 + $0x34] ss:$24 sps:$4 sm:$0xff]  }
  0x81   : > { %3471 = vmatprep.subr.bf16.mxu1 %v17738_v39  ;;  %2748 = vmatpush1.bf16.msra.mxu0 %v13485_v36  ;;  %v14341_v36 = vld [vmem:[%s13930_s24 + $0x8] ss:$24 sps:$4 sm:$0xff]   ;;  %v14344_v37 = vld [vmem:[%s13930_s24 + $0x3c] ss:$24 sps:$4 sm:$0xff]  }
  0x82   : > { %2749 = vmatprep.subr.bf16.mxu0 %v13491_v40  ;;  %v13804_v40 = vld [vmem:[%s13930_s24 + $0x30] ss:$24 sps:$4 sm:$0xff]  }
  0x84   : > { %3472 = vmatpush1.bf16.msra.mxu1 %v13463_v38  ;;  %v13515_v38 = vld [vmem:[%s17733_s1 + $0x1b8] ss:$12 sps:$4 sm:$0xff]  }
  0x85   : > { %3473 = vmatprep.subr.bf16.mxu1 %v17738_v39  ;;  %2750 = vmatpush1.bf16.msra.mxu0 %v13489_v41  ;;  %v13805_v41 = vld [vmem:[%s13930_s24 + $0x64] ss:$24 sps:$4 sm:$0xff]  }
  0x86   : > { %2465 = vmatmul.mubr.bf16.gmra.mrb[28].mxu0 %v14189_v42  ;;  %2635 = vmatmul.mubr.bf16.gmra.mrb[28].mxu1 %v13393_v43  ;;  %v13522_v43 = vld [vmem:[%s17733_s1 + $0x1d0] ss:$12 sps:$4 sm:$0xff]  }
  0x87   : > { %2474 = vmatprep.mubr.bf16.mxu0 %v14193_v44  ;;  %2644 = vmatprep.mubr.bf16.mxu1 %v13397_v45  ;;  %v14359_v45 = vld [vmem:[%s13930_s24 + $0x38] ss:$24 sps:$4 sm:$0xff]  }
  0x88   : > { %3474 = vmatpush1.bf16.msra.mxu1 %v13476_v46  ;;  %2751 = vmatprep.subr.bf16.mxu0 %v13497_v47  ;;  %v14362_v46 = vld [vmem:[%s13930_s24 + $0x6c] ss:$24 sps:$4 sm:$0xff]   ;;  %v13529_v47 = vld [vmem:[%s17733_s1 + $0x1e8] ss:$12 sps:$4 sm:$0xff]  }
  0x89   : > { %3475 = vmatprep.subr.bf16.mxu1 %v17738_v39  ;;  %2752 = vmatpush1.bf16.msra.mxu0 %v13495_v48  ;;  %v13806_v48 = vld [vmem:[%s13930_s24 + $0x60] ss:$24 sps:$4 sm:$0xff]  }
  0x8a   : > { %2753 = vmatprep.subr.bf16.mxu0 %v13501_v50  ;;  %v14377_v50 = vld [vmem:[%s13930_s24 + $0x68] ss:$24 sps:$4 sm:$0xff]  }
  0x8c   : > { %3476 = vmatpush1.bf16.msra.mxu1 %v13488_v49  ;;  %v13536_v49 = vld [vmem:[%s17733_s1 + $0x200] ss:$12 sps:$4 sm:$0xff]  }
  0x8d   : > { %3741 = vmatprep.subr.bf16.mxu1 %v17738_v39  ;;  %2754 = vmatpush1.bf16.msra.mxu0 %v13499_v51  ;;  %v14380_v51 = vld [vmem:[%s13930_s24 + $0x9c] ss:$24 sps:$4 sm:$0xff]  }
  0x8e   : > { %2475 = vmatmul.mubr.bf16.gmra.mrb[32].mxu0 %v14219_v52  ;;  %2645 = vmatmul.mubr.bf16.gmra.mrb[32].mxu1 %v13400_v53  ;;  %v13543_v53 = vld [vmem:[%s17733_s1 + $0x218] ss:$12 sps:$4 sm:$0xff]  }
  0x8f   : > { %2484 = vmatprep.mubr.bf16.mxu0 %v14223_v54  ;;  %2654 = vmatprep.mubr.bf16.mxu1 %v13404_v55  ;;  %v14395_v55 = vld [vmem:[%s13930_s24 + $0x98] ss:$24 sps:$4 sm:$0xff]  }
  0x96   : > { %2485 = vmatmul.mubr.bf16.gmra.mrb[36].mxu0 %v14231_v56  ;;  %2655 = vmatmul.mubr.bf16.gmra.mrb[36].mxu1 %v13407_v58  ;;  %v14398_v58 = vld [vmem:[%s13930_s24 + $0xcc] ss:$24 sps:$4 sm:$0xff]  }
  0x97   : > { %2494 = vmatprep.mubr.bf16.mxu0 %v14235_v59  ;;  %2664 = vmatprep.mubr.bf16.mxu1 %v13417_v60  ;;  %v14413_v60 = vld [vmem:[%s13930_s24 + $0xc8] ss:$24 sps:$4 sm:$0xff]  }
  0x9e   : > { %2495 = vmatmul.mubr.bf16.gmra.mrb[40].mxu0 %v14241_v61  ;;  %2665 = vmatmul.mubr.bf16.gmra.mrb[40].mxu1 %v13420_v62  ;;  %v14416_v62 = vld [vmem:[%s13930_s24 + $0xfc] ss:$24 sps:$4 sm:$0xff]  }
  0x9f   : > { %2504 = vmatprep.mubr.bf16.mxu0 %v14245_v0  ;;  %2674 = vmatprep.mubr.bf16.mxu1 %v13430_v1  ;;  %v14431_v1 = vld [vmem:[%s13930_s24 + $0x12c] ss:$24 sps:$4 sm:$0xff]  }
  0xa6   : > { %2505 = vmatmul.mubr.bf16.gmra.mrb[44].mxu0 %v14251_v2  ;;  %2675 = vmatmul.mubr.bf16.gmra.mrb[44].mxu1 %v13433_v4  ;;  %v13580_v4 = vld [vmem:[%s17733_s1 + $0x290] ss:$12 sps:$4 sm:$0xff]  }
  0xa7   : > { %2514 = vmatprep.mubr.bf16.mxu0 %v14255_v5  ;;  %2684 = vmatprep.mubr.bf16.mxu1 %v14258_v6 }
  0xae   : > { %2515 = vmatmul.mubr.bf16.gmra.mrb[48].mxu0 %v14264_v7  ;;  %2685 = vmatmul.mubr.bf16.gmra.mrb[48].mxu1 %v14267_v8 }
  0xaf   : > { %2524 = vmatprep.mubr.bf16.mxu0 %v14270_v10  ;;  %2694 = vmatprep.mubr.bf16.mxu1 %v14273_v11 }
  0xb6   : > { %2525 = vmatmul.mubr.bf16.gmra.mrb[52].mxu0 %v14280_v13  ;;  %2695 = vmatmul.mubr.bf16.gmra.mrb[52].mxu1 %v14283_v14 }
  0xb7   : > { %2534 = vmatprep.mubr.bf16.mxu0 %v14286_v15  ;;  %2704 = vmatprep.mubr.bf16.mxu1 %v14289_v16 }
  0xbe   : > { %2535 = vmatmul.mubr.bf16.gmra.mrb[56].mxu0 %v14297_v18  ;;  %2705 = vmatmul.mubr.bf16.gmra.mrb[56].mxu1 %v14300_v20 }
  0xbf   : > { %2544 = vmatprep.mubr.bf16.mxu0 %v14303_v21  ;;  %2714 = vmatprep.mubr.bf16.mxu1 %v14305_v22 }
  0xc6   : > { %2545 = vmatmul.mubr.bf16.gmra.mrb[60].mxu0 %v14312_v24  ;;  %2715 = vmatmul.mubr.bf16.gmra.mrb[60].mxu1 %v14314_v25 }
  0xc7   : > { %2554 = vmatprep.mubr.bf16.mxu0 %v14317_v26  ;;  %3477 = vmatprep.mubr.bf16.mxu1 %v13801_v27  ;;  %v13594_v27 = vld [vmem:[%s17733_s1 + $0x304] ss:$12 sps:$4 sm:$0xff]  }
  0xc8   : > { %3084 = vmatprep.subr.bf16.mxu0 %v13594_v27  ;;  %v13614_v27 = vld [vmem:[%s17733_s1 + $0x378] ss:$12 sps:$4 sm:$0xff]  }
  0xce   : > { %2555 = vmatmul.mubr.bf16.gmra.mrb[64].mxu0 %v14324_v28  ;;  %3478 = vmatmul.mubr.bf16.vlgmr.msra.gmra.mrb[64].mxu1 %v13802_v33  ;;  %v13595_v33 = vld [vmem:[%s17733_s1 + $0x318] ss:$12 sps:$4 sm:$0xff]  }
  0xcf   : > { %3742 = vmatpush1.bf16.msra.mxu1 %v13498_v30  ;;  %2755 = vmatprep.mubr.bf16.mxu0 %v14330_v31 }
  0xd0   : > { %3485 = vmatprep.mubr.bf16.mxu1 %v13803_v35  ;;  %3743 = vmatprep.subr.bf16.mxu1 %v17738_v39  ;;  %v14502_v35 = vld [vmem:[%s13930_s24 + $0x1e8] ss:$24 sps:$4 sm:$0xff]  }
  0xd3   : > { %3744 = vmatpush1.bf16.msra.mxu1 %v13508_v34 }
  0xd4   : > { %3745 = vmatprep.subr.bf16.mxu1 %v17738_v39 }
  0xd6   : > { %2756 = vmatmul.mubr.bf16.vlgmr.msra.gmra.mrb[0].mxu0 %v14341_v36  ;;  %3486 = vmatmul.mubr.bf16.gmra.mrb[68].mxu1 %v13804_v40 }
  0xd7   : > { %2765 = vmatprep.mubr.bf16.mxu0 %v14344_v37  ;;  %3493 = vmatprep.mubr.bf16.mxu1 %v13805_v41  ;;  %v13601_v41 = vld [vmem:[%s17733_s1 + $0x330] ss:$12 sps:$4 sm:$0xff]  }
  0xd8   : > { %3746 = vmatpush1.bf16.msra.mxu1 %v13515_v38  ;;  %v14507_v38 = vld [vmem:[%s13930_s24 + $0x21c] ss:$24 sps:$4 sm:$0xff]  }
  0xd9   : > { %3747 = vmatprep.subr.bf16.mxu1 %v17738_v39 }
  0xdc   : > { %3748 = vmatpush1.bf16.msra.mxu1 %v13522_v43  ;;  %v13604_v43 = vld [vmem:[%s17733_s1 + $0x2c0] ss:$12 sps:$4 sm:$0xff]  }
  0xdd   : > { %3749 = vmatprep.subr.bf16.mxu1 %v17738_v39 }
  0xde   : > { %2766 = vmatmul.mubr.bf16.gmra.mrb[4].mxu0 %v14359_v45  ;;  %3494 = vmatmul.mubr.bf16.gmra.mrb[72].mxu1 %v13806_v48 }
  0xdf   : > { %2775 = vmatprep.mubr.bf16.mxu0 %v14362_v46  ;;  %3501 = vmatprep.mubr.bf16.mxu1 %v14045_v57  ;;  %v13550_v57 = vld [vmem:[%s17733_s1 + $0x230] ss:$12 sps:$4 sm:$0xff]  }
  0xe0   : > { %3750 = vmatpush1.bf16.msra.mxu1 %v13529_v47  ;;  %v13607_v47 = vld [vmem:[%s17733_s1 + $0x34c] ss:$12 sps:$4 sm:$0xff]  }
  0xe1   : > { %3751 = vmatprep.subr.bf16.mxu1 %v17738_v39 }
  0xe4   : > { %3752 = vmatpush1.bf16.msra.mxu1 %v13536_v49 }
  0xe5   : > { %3753 = vmatprep.subr.bf16.mxu1 %v17738_v39 }
  0xe6   : > { %2776 = vmatmul.mubr.bf16.gmra.mrb[8].mxu0 %v14377_v50  ;;  %3502 = vmatmul.mubr.bf16.gmra.mrb[76].mxu1 %v14063_v63  ;;  %v13557_v63 = vld [vmem:[%s17733_s1 + $0x248] ss:$12 sps:$4 sm:$0xff]  }
  0xe7   : > { %2785 = vmatprep.mubr.bf16.mxu0 %v14380_v51  ;;  %3509 = vmatprep.mubr.bf16.mxu1 %v14074_v3  ;;  %v13564_v3 = vld [vmem:[%s17733_s1 + $0x260] ss:$12 sps:$4 sm:$0xff]  }
  0xe8   : > { %3754 = vmatpush1.bf16.msra.mxu1 %v13543_v53  ;;  %v14536_v53 = vld [vmem:[%s13930_s24 + $0x218] ss:$24 sps:$4 sm:$0xff]  }
  0xe9   : > { %3755 = vmatprep.subr.bf16.mxu1 %v17738_v39 }
  0xec   : > { %3756 = vmatpush1.bf16.msra.mxu1 %v13550_v57 }
  0xed   : > { %3757 = vmatprep.subr.bf16.mxu1 %v17738_v39 }
  0xee   : > { %2786 = vmatmul.mubr.bf16.gmra.mrb[12].mxu0 %v14395_v55  ;;  %3510 = vmatmul.mubr.bf16.gmra.mrb[80].mxu1 %v14093_v9  ;;  %v13571_v9 = vld [vmem:[%s17733_s1 + $0x278] ss:$12 sps:$4 sm:$0xff]  }
  0xef   : > { %2795 = vmatprep.mubr.bf16.mxu0 %v14398_v58  ;;  %3517 = vmatprep.mubr.bf16.mxu1 %v14100_v12  ;;  %v14428_v12 = vld [vmem:[%s13930_s24 + $0xf8] ss:$24 sps:$4 sm:$0xff]  }
  0xf0   : > { %3758 = vmatpush1.bf16.msra.mxu1 %v13557_v63 }
  0xf1   : > { %3759 = vmatprep.subr.bf16.mxu1 %v17738_v39 }
  0xf4   : > { %3760 = vmatpush1.bf16.msra.mxu1 %v13564_v3  ;;  %v13613_v3 = vld [vmem:[%s17733_s1 + $0x364] ss:$12 sps:$4 sm:$0xff]  }
  0xf5   : > { %3761 = vmatprep.subr.bf16.mxu1 %v17738_v39 }
  0xf6   : > { %2796 = vmatmul.mubr.bf16.gmra.mrb[16].mxu0 %v14413_v60  ;;  %3518 = vmatmul.mubr.bf16.gmra.mrb[84].mxu1 %v14123_v19  ;;  %v14438_v19 = vld [vmem:[%s13930_s24 + $0x128] ss:$24 sps:$4 sm:$0xff]  }
  0xf7   : > { %2805 = vmatprep.mubr.bf16.mxu0 %v14416_v62  ;;  %3525 = vmatprep.mubr.bf16.mxu1 %v14134_v23  ;;  %v14441_v23 = vld [vmem:[%s13930_s24 + $0x15c] ss:$24 sps:$4 sm:$0xff]  }
  0xf8   : > { %3762 = vmatpush1.bf16.msra.mxu1 %v13571_v9  ;;  %v13611_v9 = vld [vmem:[%s17733_s1 + $0x360] ss:$12 sps:$4 sm:$0xff]  }
  0xf9   : > { %3763 = vmatprep.subr.bf16.mxu1 %v17738_v39 }
  0xfc   : > { %3764 = vmatpush1.bf16.msra.mxu1 %v13580_v4  ;;  %v13616_v4 = vld [vmem:[%s17733_s1 + $0x37c] ss:$12 sps:$4 sm:$0xff]  }
  0xfd   : > { %3765 = vmatprep.subr.bf16.mxu1 %v17738_v39 }
  0xfe   : > { %2806 = vmatmul.mubr.bf16.gmra.mrb[20].mxu0 %v14428_v12  ;;  %3526 = vmatmul.mubr.bf16.gmra.mrb[88].mxu1 %v14153_v29  ;;  %v14452_v29 = vld [vmem:[%s13930_s24 + $0x158] ss:$24 sps:$4 sm:$0xff]  }
  0xff   : > { %2815 = vmatprep.mubr.bf16.mxu0 %v14431_v1  ;;  %3533 = vmatprep.mubr.bf16.mxu1 %v14160_v32  ;;  %v14455_v32 = vld [vmem:[%s13930_s24 + $0x18c] ss:$24 sps:$4 sm:$0xff]  }
 0x100   : > { %3766 = vmatpush1.bf16.msra.mxu1 %v13587_v17 }
 0x101   : > { %3767 = vmatprep.subr.bf16.mxu1 %v17738_v39 }
 0x104   : > { %3768 = vmatpush1.bf16.msra.mxu1 %v13604_v43  ;;  %v13623_v43 = vld [vmem:[%s17733_s1 + $0x2d8] ss:$12 sps:$4 sm:$0xff]  }
 0x105   : > { %3769 = vmatprep.subr.bf16.mxu1 %v17738_v39 }
 0x106   : > { %2816 = vmatmul.mubr.bf16.gmra.mrb[24].mxu0 %v14438_v19  ;;  %3534 = vmatmul.mubr.bf16.gmra.mrb[92].mxu1 %v14189_v42  ;;  %v14462_v42 = vld [vmem:[%s13930_s24 + $0x188] ss:$24 sps:$4 sm:$0xff]  }
 0x107   : > { %2825 = vmatprep.mubr.bf16.mxu0 %v14441_v23  ;;  %3541 = vmatprep.mubr.bf16.mxu1 %v14193_v44  ;;  %v14465_v44 = vld [vmem:[%s13930_s24 + $0x1bc] ss:$24 sps:$4 sm:$0xff]  }
 0x108   : > { %3770 = vmatpush1.bf16.msra.mxu1 %v13623_v43  ;;  %v13635_v43 = vld [vmem:[%s17733_s1 + $0x3dc] ss:$12 sps:$4 sm:$0xff]  }
 0x109   : > { %3771 = vmatprep.subr.bf16.mxu1 %v17738_v39 }
 0x10e   : > { %2826 = vmatmul.mubr.bf16.gmra.mrb[28].mxu0 %v14452_v29  ;;  %3542 = vmatmul.mubr.bf16.gmra.mrb[96].mxu1 %v14219_v52  ;;  %v14476_v52 = vld [vmem:[%s13930_s24 + $0x1b8] ss:$24 sps:$4 sm:$0xff]  }
 0x10f   : > { %2835 = vmatprep.mubr.bf16.mxu0 %v14455_v32  ;;  %3549 = vmatprep.mubr.bf16.mxu1 %v14223_v54  ;;  %v14479_v54 = vld [vmem:[%s13930_s24 + $0x1ec] ss:$24 sps:$4 sm:$0xff]  }
 0x116   : > { %2836 = vmatmul.mubr.bf16.gmra.mrb[32].mxu0 %v14462_v42  ;;  %3550 = vmatmul.mubr.bf16.gmra.mrb[100].mxu1 %v14231_v56  ;;  %v13592_v56 = vld [vmem:[%s17733_s1 + $0x300] ss:$12 sps:$4 sm:$0xff]  }
 0x117   : > { %2845 = vmatprep.mubr.bf16.mxu0 %v14465_v44  ;;  %3557 = vmatprep.mubr.bf16.mxu1 %v14235_v59  ;;  %v13597_v59 = vld [vmem:[%s17733_s1 + $0x31c] ss:$12 sps:$4 sm:$0xff]  }
 0x118   : > { %3085 = vmatpush1.bf16.msra.mxu0 %v13592_v56 }
 0x119   : > { %3086 = vmatprep.subr.bf16.mxu0 %v13597_v59  ;;  %v14566_v59 = vld [vmem:[%s13930_s24 + $0x248] ss:$24 sps:$4 sm:$0xff]  }
 0x11c   : > { %3087 = vmatpush1.bf16.msra.mxu0 %v13595_v33  ;;  %v14571_v33 = vld [vmem:[%s13930_s24 + $0x27c] ss:$24 sps:$4 sm:$0xff]  }
 0x11e   : > { %2846 = vmatmul.mubr.bf16.gmra.mrb[36].mxu0 %v14476_v52  ;;  %3558 = vmatmul.mubr.bf16.gmra.mrb[104].mxu1 %v14241_v61 }
 0x11f   : > { %2855 = vmatprep.mubr.bf16.mxu0 %v14479_v54  ;;  %3565 = vmatprep.mubr.bf16.mxu1 %v14245_v0  ;;  %v13603_v0 = vld [vmem:[%s17733_s1 + $0x334] ss:$12 sps:$4 sm:$0xff]  }
 0x120   : > { %3088 = vmatprep.subr.bf16.mxu0 %v13603_v0 }
 0x121   : > { %v14494_v30 = vpop.f32.mrb[0].mxu1  ;;  %3089 = vmatpush1.bf16.msra.mxu0 %v13601_v41  ;;  %v13620_v41 = vld [vmem:[%s17733_s1 + $0x390] ss:$12 sps:$4 sm:$0xff]  }
 0x122   : > { %17883 = vst [vmem:[#allocation2_spill] sm:$0xff] %v14494_v30  ;;  %v14499_v34 = vpop.f32.mrb[1].mxu1  ;;  %3090 = vmatprep.subr.bf16.mxu0 %v13607_v47  ;;  %v13626_v47 = vld [vmem:[%s17733_s1 + $0x3ac] ss:$12 sps:$4 sm:$0xff]  }
 0x123   : > { %17884 = vst [vmem:[#allocation3_spill] sm:$0xff] %v14499_v34  ;;  %v14504_v61 = vpop.f32.mrb[2].mxu1 }
 0x124   : > { %17885 = vst [vmem:[#allocation4_spill] sm:$0xff] %v14504_v61  ;;  %v14509_v40 = vpop.f32.mrb[3].mxu1 }
 0x125   : > { %17886 = vst [vmem:[#allocation5_spill] sm:$0xff] %v14509_v40 }
 0x126   : > { %2856 = vmatmul.mubr.bf16.gmra.mrb[40].mxu0 %v14502_v35  ;;  %3566 = vmatmul.mubr.bf16.gmra.mrb[108].mxu1 %v14251_v2  ;;  %v13605_v2 = vld [vmem:[%s17733_s1 + $0x348] ss:$12 sps:$4 sm:$0xff]  }
 0x127   : > { %2865 = vmatprep.mubr.bf16.mxu0 %v14507_v38  ;;  %3573 = vmatprep.mubr.bf16.mxu1 %v14255_v5  ;;  %v14541_v5 = vld [vmem:[%s13930_s24 + $0x24c] ss:$24 sps:$4 sm:$0xff]  }
 0x128   : > { %3091 = vmatpush1.bf16.msra.mxu0 %v13605_v2 }
 0x129   : > { %v14527_v48 = vpop.f32.mrb[4].mxu1  ;;  %3092 = vmatprep.subr.bf16.mxu0 %v13613_v3 }
 0x12a   : > { %17887 = vst [vmem:[#allocation6_spill] sm:$0xff] %v14527_v48  ;;  %v14533_v49 = vpop.f32.mrb[5].mxu1 }
 0x12b   : > { %17888 = vst [vmem:[#allocation7_spill] sm:$0xff] %v14533_v49  ;;  %v14538_v57 = vpop.f32.mrb[6].mxu1 }
 0x12c   : > { %17889 = vst [vmem:[#allocation8_spill] sm:$0xff] %v14538_v57  ;;  %v14543_v63 = vpop.f32.mrb[7].mxu1  ;;  %3093 = vmatpush1.bf16.msra.mxu0 %v13611_v9  ;;  %v14600_v9 = vld [vmem:[%s13930_s24 + $0x278] ss:$24 sps:$4 sm:$0xff]  }
 0x12d   : > { %17890 = vst [vmem:[#allocation9_spill] sm:$0xff] %v14543_v63  ;;  %3094 = vmatprep.subr.bf16.mxu0 %v13616_v4 }
 0x12e   : > { %2866 = vmatmul.mubr.bf16.gmra.mrb[44].mxu0 %v14536_v53  ;;  %3574 = vmatmul.mubr.bf16.gmra.mrb[112].mxu1 %v14264_v7 }
 0x12f   : > { %2875 = vmatprep.mubr.bf16.mxu0 %v14541_v5  ;;  %3581 = vmatprep.mubr.bf16.mxu1 %v14270_v10  ;;  %v13622_v10 = vld [vmem:[%s17733_s1 + $0x394] ss:$12 sps:$4 sm:$0xff]  }
 0x130   : > { %3095 = vmatpush1.bf16.msra.mxu0 %v13614_v27 }
 0x131   : > { %v14558_v17 = vpop.f32.mrb[8].mxu1  ;;  %3096 = vmatprep.subr.bf16.mxu0 %v13622_v10  ;;  %v13632_v10 = vld [vmem:[%s17733_s1 + $0x3c4] ss:$12 sps:$4 sm:$0xff]  }
 0x132   : > { %17891 = vst [vmem:[#allocation10_spill] sm:$0xff] %v14558_v17  ;;  %v14563_v56 = vpop.f32.mrb[9].mxu1 }
 0x133   : > { %17892 = vst [vmem:[#allocation11_spill] sm:$0xff] %v14563_v56  ;;  %v14568_v7 = vpop.f32.mrb[10].mxu1 }
 0x134   : > { %17893 = vst [vmem:[#allocation12_spill] sm:$0xff] %v14568_v7  ;;  %v14573_v0 = vpop.f32.mrb[11].mxu1  ;;  %3097 = vmatpush1.bf16.msra.mxu0 %v13620_v41  ;;  %v13630_v41 = vld [vmem:[%s17733_s1 + $0x3c0] ss:$12 sps:$4 sm:$0xff]  }
 0x135   : > { %17894 = vst [vmem:[#allocation13_spill] sm:$0xff] %v14573_v0  ;;  %3098 = vmatprep.subr.bf16.mxu0 %v13626_v47 }
 0x136   : > { %2876 = vmatmul.mubr.bf16.gmra.mrb[48].mxu0 %v14566_v59  ;;  %3582 = vmatmul.mubr.bf16.gmra.mrb[116].mxu1 %v14280_v13  ;;  %v13624_v13 = vld [vmem:[%s17733_s1 + $0x3a8] ss:$12 sps:$4 sm:$0xff]  }
 0x137   : > { %2885 = vmatprep.mubr.bf16.mxu0 %v14571_v33  ;;  %3589 = vmatprep.mubr.bf16.mxu1 %v14286_v15  ;;  %v14605_v15 = vld [vmem:[%s13930_s24 + $0x2ac] ss:$24 sps:$4 sm:$0xff]  }
 0x138   : > { %3099 = vmatpush1.bf16.msra.mxu0 %v13624_v13  ;;  %v13633_v13 = vld [vmem:[%s17733_s1 + $0x3d8] ss:$12 sps:$4 sm:$0xff]  }
 0x139   : > { %v14591_v2 = vpop.f32.mrb[12].mxu1  ;;  %3100 = vmatprep.subr.bf16.mxu0 %v13632_v10  ;;  %v13639_v10 = vld [vmem:[%s17733_s1 + $0x3f0] ss:$12 sps:$4 sm:$0xff]  }
 0x13a   : > { %17895 = vst [vmem:[#allocation14_spill] sm:$0xff] %v14591_v2  ;;  %v14597_v3 = vpop.f32.mrb[13].mxu1  ;;  %v14699_v2 = vld [vmem:[%s13930_s24 + $0x33c] ss:$24 sps:$4 sm:$0xff]  }
 0x13b   : > { %17896 = vst [vmem:[#allocation15_spill] sm:$0xff] %v14597_v3  ;;  %v14602_v4 = vpop.f32.mrb[14].mxu1 }
 0x13c   : > { %17897 = vst [vmem:[#allocation16_spill] sm:$0xff] %v14602_v4  ;;  %v14607_v27 = vpop.f32.mrb[15].mxu1  ;;  %3101 = vmatpush1.bf16.msra.mxu0 %v13630_v41  ;;  %v14635_v4 = vld [vmem:[%s13930_s24 + $0x2dc] ss:$24 sps:$4 sm:$0xff]  }
 0x13d   : > { %17898 = vst [vmem:[#allocation17_spill] sm:$0xff] %v14607_v27  ;;  %v14630_v27 = vld [vmem:[%s13930_s24 + $0x2a8] ss:$24 sps:$4 sm:$0xff]   ;;  %3102 = vmatprep.subr.bf16.mxu0 %v13635_v43  ;;  %v13642_v41 = vld [vmem:[%s17733_s1 + $0x2f0] ss:$12 sps:$4 sm:$0xff]  }
 0x13e   : > { %2886 = vmatmul.mubr.bf16.gmra.mrb[52].mxu0 %v14600_v9  ;;  %3590 = vmatmul.mubr.bf16.gmra.mrb[120].mxu1 %v14297_v18  ;;  %v13645_v43 = vld [vmem:[%s17733_s1 + $0x40c] ss:$12 sps:$4 sm:$0xff]  }
 0x13f   : > { %2895 = vmatprep.mubr.bf16.mxu0 %v14605_v15  ;;  %3597 = vmatprep.mubr.bf16.mxu1 %v14303_v21  ;;  %v13641_v21 = vld [vmem:[%s17733_s1 + $0x3f4] ss:$12 sps:$4 sm:$0xff]  }
 0x140   : > { %3103 = vmatpush1.bf16.msra.mxu0 %v13633_v13  ;;  %3772 = vmatpush1.bf16.msra.mxu1 %v13642_v41  ;;  %v13649_v41 = vld [vmem:[%s17733_s1 + $0x420] ss:$12 sps:$4 sm:$0xff]  }
 0x141   : > { %v14622_v47 = vpop.f32.mrb[16].mxu1  ;;  %3104 = vmatprep.subr.bf16.mxu0 %v13641_v21 }
 0x142   : > { %17899 = vst [vmem:[#allocation18_spill] sm:$0xff] %v14622_v47  ;;  %v14627_v39 = vpop.f32.mrb[17].mxu1 }
 0x143   : > { %17900 = vst [vmem:[#allocation19_spill] sm:$0xff] %v14627_v39  ;;  %v14632_v18 = vpop.f32.mrb[18].mxu1  ;;  %v14664_v39 = vld [vmem:[%s13930_s24 + $0x2d8] ss:$24 sps:$4 sm:$0xff]  }
 0x144   : > { %17901 = vst [vmem:[#allocation20_spill] sm:$0xff] %v14632_v18  ;;  %v14637_v3 = vpop.f32.mrb[19].mxu1  ;;  %3105 = vmatpush1.bf16.msra.mxu0 %v13639_v10  ;;  %v13651_v10 = vld [vmem:[%s17733_s1 + $0x424] ss:$12 sps:$4 sm:$0xff]  }
 0x145   : > { %17902 = vst [vmem:[#allocation21_spill] sm:$0xff] %v14637_v3  ;;  %v17904_v3 = vmov 0   ;;  %3106 = vmatprep.subr.bf16.mxu0 %v13645_v43  ;;  %v13654_v43 = vld [vmem:[%s17733_s1 + $0x43c] ss:$12 sps:$4 sm:$0xff]  }
 0x146   : > { %2896 = vmatmul.mubr.bf16.gmra.mrb[56].mxu0 %v14630_v27  ;;  %3598 = vmatmul.mubr.bf16.gmra.mrb[124].mxu1 %v14312_v24  ;;  %v13643_v24 = vld [vmem:[%s17733_s1 + $0x408] ss:$12 sps:$4 sm:$0xff]  }
 0x147   : > { %2905 = vmatprep.mubr.bf16.mxu0 %v14635_v4  ;;  %3605 = vmatprep.mubr.bf16.mxu1 %v14317_v26  ;;  %v14669_v26 = vld [vmem:[%s13930_s24 + $0x30c] ss:$24 sps:$4 sm:$0xff]  }
 0x148   : > { %4037 = vmatprep.subr.bf16.mxu1 %v17904_v3  ;;  %3107 = vmatpush1.bf16.msra.mxu0 %v13643_v24 }
 0x149   : > { %v14655_v13 = vpop.f32.mrb[20].mxu1  ;;  %3108 = vmatprep.subr.bf16.mxu0 %v13651_v10  ;;  %v13657_v10 = vld [vmem:[%s17733_s1 + $0x450] ss:$12 sps:$4 sm:$0xff]  }
 0x14a   : > { %17903 = vst [vmem:[#allocation22_spill] sm:$0xff] %v14655_v13  ;;  %v14661_v18 = vpop.f32.mrb[21].mxu1 }
 0x14b   : > { %17905 = vst [vmem:[#allocation23_spill] sm:$0xff] %v14661_v18  ;;  %v14666_v47 = vpop.f32.mrb[22].mxu1 }
 0x14c   : > { %17906 = vst [vmem:[#allocation24_spill] sm:$0xff] %v14666_v47  ;;  %v14671_v21 = vpop.f32.mrb[23].mxu1  ;;  %3109 = vmatpush1.bf16.msra.mxu0 %v13649_v41  ;;  %v13652_v47 = vld [vmem:[%s17733_s1 + $0x438] ss:$12 sps:$4 sm:$0xff]   ;;  %v13808_v41 = vld [vmem:[%s13930_s24 + $0x330] ss:$24 sps:$4 sm:$0xff]  }
 0x14d   : > { %17907 = vst [vmem:[#allocation25_spill] sm:$0xff] %v14671_v21  ;;  %v13807_v21 = vld [vmem:[%s13930_s24 + $0x334] ss:$24 sps:$4 sm:$0xff]   ;;  %3110 = vmatprep.subr.bf16.mxu0 %v13654_v43  ;;  %v13809_v43 = vld [vmem:[%s13930_s24 + $0x364] ss:$24 sps:$4 sm:$0xff]  }
 0x14e   : > { %2906 = vmatmul.mubr.bf16.gmra.mrb[60].mxu0 %v14664_v39  ;;  %3606 = vmatmul.mubr.bf16.gmra.mrb[128].mxu1 %v14324_v28  ;;  %v14694_v28 = vld [vmem:[%s13930_s24 + $0x308] ss:$24 sps:$4 sm:$0xff]  }
 0x14f   : > { %2915 = vmatprep.mubr.bf16.mxu0 %v14669_v26  ;;  %3613 = vmatprep.mubr.bf16.mxu1 %v13807_v21  ;;  %v13659_v21 = vld [vmem:[%s17733_s1 + $0x454] ss:$12 sps:$4 sm:$0xff]  }
 0x150   : > { %3111 = vmatpush1.bf16.msra.mxu0 %v13652_v47 }
 0x151   : > { %v14686_v24 = vpop.f32.mrb[24].mxu1  ;;  %3112 = vmatprep.subr.bf16.mxu0 %v13659_v21 }
 0x152   : > { %17908 = vst [vmem:[#allocation26_spill] sm:$0xff] %v14686_v24  ;;  %v14691_v18 = vpop.f32.mrb[25].mxu1  ;;  %v14729_v24 = vld [vmem:[%s13930_s24 + $0x36c] ss:$24 sps:$4 sm:$0xff]  }
 0x153   : > { %17909 = vst [vmem:[#allocation27_spill] sm:$0xff] %v14691_v18  ;;  %v14696_v13 = vpop.f32.mrb[26].mxu1  ;;  %v14724_v18 = vld [vmem:[%s13930_s24 + $0x338] ss:$24 sps:$4 sm:$0xff]  }
 0x154   : > { %17910 = vst [vmem:[#allocation28_spill] sm:$0xff] %v14696_v13  ;;  %v14701_v0 = vpop.f32.mrb[27].mxu1  ;;  %3113 = vmatpush1.bf16.msra.mxu0 %v13657_v10  ;;  %v13661_v13 = vld [vmem:[%s17733_s1 + $0x468] ss:$12 sps:$4 sm:$0xff]   ;;  %v13810_v10 = vld [vmem:[%s13930_s24 + $0x360] ss:$24 sps:$4 sm:$0xff]  }
 0x155   : > { %17911 = vst [vmem:[#allocation29_spill] sm:$0xff] %v14701_v0  ;;  %v13663_v0 = vld [vmem:[%s17733_s1 + $0x46c] ss:$12 sps:$4 sm:$0xff]  }
 0x156   : > { %2916 = vmatmul.mubr.bf16.gmra.mrb[64].mxu0 %v14694_v28  ;;  %3614 = vmatmul.mubr.bf16.gmra.mrb[132].mxu1 %v13808_v41 }
 0x157   : > { %2925 = vmatprep.mubr.bf16.mxu0 %v14699_v2  ;;  %3621 = vmatprep.mubr.bf16.mxu1 %v13809_v43 }
 0x158   : > { %3114 = vmatprep.subr.bf16.mxu0 %v13663_v0 }
 0x159   : > { %v14716_v47 = vpop.f32.mrb[28].mxu1  ;;  %3115 = vmatpush1.bf16.msra.mxu0 %v13661_v13  ;;  %v14747_v13 = vld [vmem:[%s13930_s24 + $0x39c] ss:$24 sps:$4 sm:$0xff]  }
 0x15a   : > { %17912 = vst [vmem:[#allocation30_spill] sm:$0xff] %v14716_v47  ;;  %v14721_v41 = vpop.f32.mrb[29].mxu1 }
 0x15b   : > { %17913 = vst [vmem:[#allocation31_spill] sm:$0xff] %v14721_v41  ;;  %v14726_v43 = vpop.f32.mrb[30].mxu1  ;;  %v13811_v41 = vld [vmem:[%s13930_s24 + $0x394] ss:$24 sps:$4 sm:$0xff]  }
 0x15c   : > { %17914 = vst [vmem:[#allocation32_spill] sm:$0xff] %v14726_v43  ;;  %v14731_v21 = vpop.f32.mrb[31].mxu1  ;;  %v14742_v43 = vld [vmem:[%s13930_s24 + $0x368] ss:$24 sps:$4 sm:$0xff]  }
 0x15d   : > { %17915 = vst [vmem:[#allocation33_spill] sm:$0xff] %v14731_v21 }
 0x15e   : > { %2926 = vmatmul.mubr.bf16.gmra.mrb[68].mxu0 %v14724_v18  ;;  %3622 = vmatmul.mubr.bf16.gmra.mrb[136].mxu1 %v13810_v10  ;;  %v13812_v10 = vld [vmem:[%s13930_s24 + $0x390] ss:$24 sps:$4 sm:$0xff]  }
 0x15f   : > { %2935 = vmatprep.mubr.bf16.mxu0 %v14729_v24  ;;  %3629 = vmatprep.mubr.bf16.mxu1 %v13811_v41  ;;  %v13813_v41 = vld [vmem:[%s13930_s24 + $0x3c4] ss:$24 sps:$4 sm:$0xff]  }
 0x161   : > { %v14737_v47 = vpop.f32.mrb[32].mxu1 }
 0x162   : > { %17916 = vst [vmem:[#allocation34_spill] sm:$0xff] %v14737_v47  ;;  %v14739_v0 = vpop.f32.mrb[33].mxu1 }
 0x163   : > { %17917 = vst [vmem:[#allocation35_spill] sm:$0xff] %v14739_v0  ;;  %v14744_v7 = vpop.f32.mrb[34].mxu1 }
 0x164   : > { %17918 = vst [vmem:[#allocation36_spill] sm:$0xff] %v14744_v7  ;;  %v14749_v21 = vpop.f32.mrb[35].mxu1  ;;  %v14760_v7 = vld [vmem:[%s13930_s24 + $0x398] ss:$24 sps:$4 sm:$0xff]  }
 0x165   : > { %17919 = vst [vmem:[#allocation37_spill] sm:$0xff] %v14749_v21  ;;  %v14765_v21 = vld [vmem:[%s13930_s24 + $0x3cc] ss:$24 sps:$4 sm:$0xff]  }
 0x166   : > { %2936 = vmatmul.mubr.bf16.gmra.mrb[72].mxu0 %v14742_v43  ;;  %3630 = vmatmul.mubr.bf16.gmra.mrb[140].mxu1 %v13812_v10  ;;  %v13814_v10 = vld [vmem:[%s13930_s24 + $0x3c0] ss:$24 sps:$4 sm:$0xff]  }
 0x167   : > { %2945 = vmatprep.mubr.bf16.mxu0 %v14747_v13  ;;  %3637 = vmatprep.mubr.bf16.mxu1 %v13813_v41  ;;  %v13815_v41 = vld [vmem:[%s13930_s24 + $0x3f4] ss:$24 sps:$4 sm:$0xff]  }
 0x169   : > { %v14755_v0 = vpop.f32.mrb[36].mxu1 }
 0x16a   : > { %17920 = vst [vmem:[#allocation38_spill] sm:$0xff] %v14755_v0  ;;  %v14757_v47 = vpop.f32.mrb[37].mxu1 }
 0x16b   : > { %17921 = vst [vmem:[#allocation39_spill] sm:$0xff] %v14757_v47  ;;  %v14762_v56 = vpop.f32.mrb[38].mxu1 }
 0x16c   : > { %17922 = vst [vmem:[#allocation40_spill] sm:$0xff] %v14762_v56  ;;  %v14767_v17 = vpop.f32.mrb[39].mxu1  ;;  %v14778_v56 = vld [vmem:[%s13930_s24 + $0x3c8] ss:$24 sps:$4 sm:$0xff]  }
 0x16d   : > { %17923 = vst [vmem:[#allocation41_spill] sm:$0xff] %v14767_v17  ;;  %v14783_v17 = vld [vmem:[%s13930_s24 + $0x3fc] ss:$24 sps:$4 sm:$0xff]  }
 0x16e   : > { %2946 = vmatmul.mubr.bf16.gmra.mrb[76].mxu0 %v14760_v7  ;;  %3638 = vmatmul.mubr.bf16.gmra.mrb[144].mxu1 %v13814_v10  ;;  %v13816_v10 = vld [vmem:[%s13930_s24 + $0x3f0] ss:$24 sps:$4 sm:$0xff]  }
 0x16f   : > { %2955 = vmatprep.mubr.bf16.mxu0 %v14765_v21  ;;  %3645 = vmatprep.mubr.bf16.mxu1 %v13815_v41  ;;  %v13817_v41 = vld [vmem:[%s13930_s24 + $0x424] ss:$24 sps:$4 sm:$0xff]  }
 0x171   : > { %v14773_v47 = vpop.f32.mrb[40].mxu1 }
 0x172   : > { %17924 = vst [vmem:[#allocation42_spill] sm:$0xff] %v14773_v47  ;;  %v14775_v0 = vpop.f32.mrb[41].mxu1 }
 0x173   : > { %17925 = vst [vmem:[#allocation43_spill] sm:$0xff] %v14775_v0  ;;  %v14780_v63 = vpop.f32.mrb[42].mxu1 }
 0x174   : > { %17926 = vst [vmem:[#allocation44_spill] sm:$0xff] %v14780_v63  ;;  %v14785_v57 = vpop.f32.mrb[43].mxu1  ;;  %v14796_v63 = vld [vmem:[%s13930_s24 + $0x3f8] ss:$24 sps:$4 sm:$0xff]  }
 0x175   : > { %17927 = vst [vmem:[#allocation45_spill] sm:$0xff] %v14785_v57  ;;  %v14801_v57 = vld [vmem:[%s13930_s24 + $0x42c] ss:$24 sps:$4 sm:$0xff]  }
 0x176   : > { %2956 = vmatmul.mubr.bf16.gmra.mrb[80].mxu0 %v14778_v56  ;;  %3646 = vmatmul.mubr.bf16.gmra.mrb[148].mxu1 %v13816_v10  ;;  %v13818_v10 = vld [vmem:[%s13930_s24 + $0x420] ss:$24 sps:$4 sm:$0xff]  }
 0x177   : > { %2965 = vmatprep.mubr.bf16.mxu0 %v14783_v17  ;;  %3653 = vmatprep.mubr.bf16.mxu1 %v13817_v41  ;;  %v13819_v41 = vld [vmem:[%s13930_s24 + $0x454] ss:$24 sps:$4 sm:$0xff]  }
 0x179   : > { %v14791_v0 = vpop.f32.mrb[44].mxu1 }
 0x17a   : > { %17928 = vst [vmem:[#allocation46_spill] sm:$0xff] %v14791_v0  ;;  %v14793_v47 = vpop.f32.mrb[45].mxu1 }
 0x17b   : > { %17929 = vst [vmem:[#allocation47_spill] sm:$0xff] %v14793_v47  ;;  %v14798_v49 = vpop.f32.mrb[46].mxu1 }
 0x17c   : > { %17930 = vst [vmem:[#allocation48_spill] sm:$0xff] %v14798_v49  ;;  %v14803_v48 = vpop.f32.mrb[47].mxu1  ;;  %v14814_v49 = vld [vmem:[%s13930_s24 + $0x428] ss:$24 sps:$4 sm:$0xff]  }
 0x17d   : > { %17931 = vst [vmem:[#allocation49_spill] sm:$0xff] %v14803_v48  ;;  %v14819_v48 = vld [vmem:[%s13930_s24 + $0x45c] ss:$24 sps:$4 sm:$0xff]  }
 0x17e   : > { %2966 = vmatmul.mubr.bf16.gmra.mrb[84].mxu0 %v14796_v63  ;;  %3654 = vmatmul.mubr.bf16.gmra.mrb[152].mxu1 %v13818_v10  ;;  %17935 = vst [vmem:[#allocation53_spill] sm:$0xff] %v14819_v48  ;;  %v13820_v10 = vld [vmem:[%s13930_s24 + $0x450] ss:$24 sps:$4 sm:$0xff]  }
 0x17f   : > { %2975 = vmatprep.mubr.bf16.mxu0 %v14801_v57  ;;  %3661 = vmatprep.mubr.bf16.mxu1 %v13819_v41  ;;  %v13821_v41 = vld [vmem:[%s13930_s24 + $0x484] ss:$24 sps:$4 sm:$0xff]  }
 0x181   : > { %v14809_v47 = vpop.f32.mrb[48].mxu1 }
 0x182   : > { %17932 = vst [vmem:[#allocation50_spill] sm:$0xff] %v14809_v47  ;;  %v14811_v0 = vpop.f32.mrb[49].mxu1 }
 0x183   : > { %17933 = vst [vmem:[#allocation51_spill] sm:$0xff] %v14811_v0  ;;  %v14816_v40 = vpop.f32.mrb[50].mxu1 }
 0x184   : > { %17934 = vst [vmem:[#allocation52_spill] sm:$0xff] %v14816_v40  ;;  %v14821_v61 = vpop.f32.mrb[51].mxu1  ;;  %v14832_v40 = vld [vmem:[%s13930_s24 + $0x458] ss:$24 sps:$4 sm:$0xff]  }
 0x185   : > { %17936 = vst [vmem:[#allocation54_spill] sm:$0xff] %v14821_v61  ;;  %17939 = vst [vmem:[#allocation57_spill] sm:$0xff] %v14832_v40  ;;  %v14837_v61 = vld [vmem:[%s13930_s24 + $0x48c] ss:$24 sps:$4 sm:$0xff]  }
 0x186   : > { %2976 = vmatmul.mubr.bf16.gmra.mrb[88].mxu0 %v14814_v49  ;;  %3662 = vmatmul.mubr.bf16.gmra.mrb[156].mxu1 %v13820_v10  ;;  %17941 = vst [vmem:[#allocation59_spill] sm:$0xff] %v14837_v61  ;;  %v13822_v10 = vld [vmem:[%s13930_s24 + $0x480] ss:$24 sps:$4 sm:$0xff]  }
 0x187   : > { %2985 = vmatprep.mubr.bf16.mxu0 %v14819_v48  ;;  %3669 = vmatprep.mubr.bf16.mxu1 %v13821_v41  ;;  %v13823_v41 = vld [vmem:[%s13930_s24 + $0x4b4] ss:$24 sps:$4 sm:$0xff]  }
 0x189   : > { %v14827_v0 = vpop.f32.mrb[52].mxu1 }
 0x18a   : > { %17937 = vst [vmem:[#allocation55_spill] sm:$0xff] %v14827_v0  ;;  %v14829_v47 = vpop.f32.mrb[53].mxu1 }
 0x18b   : > { %17938 = vst [vmem:[#allocation56_spill] sm:$0xff] %v14829_v47  ;;  %v14834_v34 = vpop.f32.mrb[54].mxu1 }
 0x18c   : > { %17940 = vst [vmem:[#allocation58_spill] sm:$0xff] %v14834_v34  ;;  %v14839_v30 = vpop.f32.mrb[55].mxu1  ;;  %v14850_v34 = vld [vmem:[%s13930_s24 + $0x488] ss:$24 sps:$4 sm:$0xff]  }
 0x18d   : > { %17942 = vst [vmem:[#allocation60_spill] sm:$0xff] %v14839_v30  ;;  %17945 = vst [vmem:[#allocation63_spill] sm:$0xff] %v14850_v34  ;;  %v14855_v30 = vld [vmem:[%s13930_s24 + $0x4bc] ss:$24 sps:$4 sm:$0xff]  }
 0x18e   : > { %2986 = vmatmul.mubr.bf16.gmra.mrb[92].mxu0 %v14832_v40  ;;  %3670 = vmatmul.mubr.bf16.gmra.mrb[160].mxu1 %v13822_v10  ;;  %v13824_v10 = vld [vmem:[%s13930_s24 + $0x4b0] ss:$24 sps:$4 sm:$0xff]  }
 0x18f   : > { %2995 = vmatprep.mubr.bf16.mxu0 %v14837_v61  ;;  %3677 = vmatprep.mubr.bf16.mxu1 %v13823_v41  ;;  %v13825_v41 = vld [vmem:[%s13930_s24 + $0x4e4] ss:$24 sps:$4 sm:$0xff]  }
 0x190   : > { %v14871_v61 = vld [vmem:[%s13930_s24 + $0x4ec] ss:$24 sps:$4 sm:$0xff]  }
 0x191   : > { %v14845_v47 = vpop.f32.mrb[56].mxu1  ;;  %17950 = vst [vmem:[#allocation68_spill] sm:$0xff] %v14871_v61 }
 0x192   : > { %17943 = vst [vmem:[#allocation61_spill] sm:$0xff] %v14845_v47  ;;  %v14847_v0 = vpop.f32.mrb[57].mxu1  ;;  %v14868_v47 = vld [vmem:[%s13930_s24 + $0x4b8] ss:$24 sps:$4 sm:$0xff]  }
 0x193   : > { %17944 = vst [vmem:[#allocation62_spill] sm:$0xff] %v14847_v0  ;;  %v14852_v48 = vpop.f32.mrb[58].mxu1 }
 0x194   : > { %17946 = vst [vmem:[#allocation64_spill] sm:$0xff] %v14852_v48  ;;  %v14857_v40 = vpop.f32.mrb[59].mxu1 }
 0x195   : > { %17947 = vst [vmem:[#allocation65_spill] sm:$0xff] %v14857_v40 }
 0x196   : > { %2996 = vmatmul.mubr.bf16.gmra.mrb[96].mxu0 %v14850_v34  ;;  %3678 = vmatmul.mubr.bf16.gmra.mrb[164].mxu1 %v13824_v10  ;;  %v13826_v10 = vld [vmem:[%s13930_s24 + $0x4e0] ss:$24 sps:$4 sm:$0xff]  }
 0x197   : > { %3005 = vmatprep.mubr.bf16.mxu0 %v14855_v30  ;;  %3685 = vmatprep.mubr.bf16.mxu1 %v13825_v41  ;;  %v13827_v41 = vld [vmem:[%s13930_s24 + $0x514] ss:$24 sps:$4 sm:$0xff]  }
 0x199   : > { %v14863_v0 = vpop.f32.mrb[60].mxu1 }
 0x19a   : > { %17948 = vst [vmem:[#allocation66_spill] sm:$0xff] %v14863_v0  ;;  %v14865_v48 = vpop.f32.mrb[61].mxu1  ;;  %v14881_v0 = vld [vmem:[%s13930_s24 + $0x51c] ss:$24 sps:$4 sm:$0xff]  }
 0x19b   : > { %17949 = vst [vmem:[#allocation67_spill] sm:$0xff] %v14865_v48  ;;  %v2720_v40 = vpop.f32.mrb[62].mxu1  ;;  %v14878_v48 = vld [vmem:[%s13930_s24 + $0x4e8] ss:$24 sps:$4 sm:$0xff]   ;;  %17951 = vst [vmem:[#allocation69_spill] sm:$0xff] %v14881_v0 }
 0x19c   : > { %v2721_v34 = vpop.f32.mrb[63].mxu1  ;;  %v13828_v40 = vld [vmem:[%s13930_s24 + $0x510] ss:$24 sps:$4 sm:$0xff]  }
 0x19d   : > { %v13829_v34 = vld [vmem:[%s13930_s24 + $0x544] ss:$24 sps:$4 sm:$0xff]  }
 0x19e   : > { %3006 = vmatmul.mubr.bf16.gmra.mrb[100].mxu0 %v14868_v47  ;;  %3686 = vmatmul.mubr.bf16.gmra.mrb[168].mxu1 %v13826_v10  ;;  %v14888_v10 = vld [vmem:[%s13930_s24 + $0x518] ss:$24 sps:$4 sm:$0xff]  }
 0x19f   : > { %3015 = vmatprep.mubr.bf16.mxu0 %v14871_v61  ;;  %3693 = vmatprep.mubr.bf16.mxu1 %v13827_v41  ;;  %v14891_v61 = vld [vmem:[%s13930_s24 + $0x54c] ss:$24 sps:$4 sm:$0xff]   ;;  %v13830_v41 = vld [vmem:[%s13930_s24 + $0x540] ss:$24 sps:$4 sm:$0xff]  }
 0x1a6   : > { %3016 = vmatmul.mubr.bf16.gmra.mrb[104].mxu0 %v14878_v48  ;;  %3694 = vmatmul.mubr.bf16.gmra.mrb[172].mxu1 %v13828_v40  ;;  %v14898_v40 = vld [vmem:[%s13930_s24 + $0x548] ss:$24 sps:$4 sm:$0xff]  }
 0x1a7   : > { %3025 = vmatprep.mubr.bf16.mxu0 %v14881_v0  ;;  %3701 = vmatprep.mubr.bf16.mxu1 %v13829_v34  ;;  %v14901_v0 = vld [vmem:[%s13930_s24 + $0x57c] ss:$24 sps:$4 sm:$0xff]   ;;  %v14908_v34 = vld [vmem:[%s13930_s24 + $0x578] ss:$24 sps:$4 sm:$0xff]  }
 0x1a8   : > { %17952 = vst [vmem:[#allocation70_spill] sm:$0xff] %v14908_v34 }
 0x1ae   : > { %3026 = vmatmul.mubr.bf16.gmra.mrb[108].mxu0 %v14888_v10  ;;  %3702 = vmatmul.mubr.bf16.gmra.mrb[176].mxu1 %v13830_v41  ;;  %v14911_v41 = vld [vmem:[%s13930_s24 + $0x5ac] ss:$24 sps:$4 sm:$0xff]  }
 0x1af   : > { %3035 = vmatprep.mubr.bf16.mxu0 %v14891_v61  ;;  %3709 = vmatprep.mubr.bf16.mxu1 %v14258_v6  ;;  %v14918_v6 = vld [vmem:[%s13930_s24 + $0x5a8] ss:$24 sps:$4 sm:$0xff]  }
 0x1b6   : > { %3036 = vmatmul.mubr.bf16.gmra.mrb[112].mxu0 %v14898_v40  ;;  %3710 = vmatmul.mubr.bf16.gmra.mrb[180].mxu1 %v14267_v8  ;;  %v14921_v8 = vld [vmem:[%s13930_s24 + $0x5dc] ss:$24 sps:$4 sm:$0xff]  }
 0x1b7   : > { %3045 = vmatprep.mubr.bf16.mxu0 %v14901_v0  ;;  %3717 = vmatprep.mubr.bf16.mxu1 %v14273_v11  ;;  %v419_v11 = vld [vmem:[%s13930_s24 + $0x608] sm:$0xff] }
 0x1be   : > { %3046 = vmatmul.mubr.bf16.gmra.mrb[116].mxu0 %v14908_v34  ;;  %3718 = vmatmul.mubr.bf16.gmra.mrb[184].mxu1 %v14283_v14  ;;  %v14929_v34 = vld [vmem:[%s13930_s24 + $0x5d8] ss:$24 sps:$4 sm:$0xff]   ;;  %v14931_v14 = vcombine.high %v419_v11, %v419_v11 }
 0x1bf   : > { %3055 = vmatprep.mubr.bf16.mxu0 %v14911_v41  ;;  %3725 = vmatprep.mubr.bf16.mxu1 %v14289_v16  ;;  %v14937_v16 = vcombine.low %v419_v11, %v419_v11  ;;  %v14957_v11 = vld [vmem:[%s13930_s24 + $0x44] ss:$24 sps:$4 sm:$0xff]  }
 0x1c6   : > { %3056 = vmatmul.mubr.bf16.gmra.mrb[120].mxu0 %v14918_v6  ;;  %3726 = vmatmul.mubr.bf16.gmra.mrb[188].mxu1 %v14300_v20  ;;  %v13660_v20 = vld [vmem:[%s17733_s1 + $0x308] ss:$12 sps:$4 sm:$0xff]  }
 0x1c7   : > { %3065 = vmatprep.mubr.bf16.mxu0 %v14921_v8  ;;  %3733 = vmatprep.mubr.bf16.mxu1 %v14305_v22  ;;  %v14943_v22 = vld [vmem:[%s13930_s24 + $0x14] ss:$24 sps:$4 sm:$0xff]  }
 0x1ce   : > { %3066 = vmatmul.mubr.bf16.gmra.mrb[124].mxu0 %v14929_v34  ;;  %3734 = vmatmul.mubr.bf16.gmra.mrb[192].mxu1 %v14314_v25  ;;  %v13670_v25 = vld [vmem:[%s17733_s1 + $0x320] ss:$12 sps:$4 sm:$0xff]  }
 0x1cf   : > { %3075 = vmatprep.mubr.bf16.mxu0 %v14931_v14  ;;  %3773 = vmatprep.mubr.bf16.mxu1 %v14330_v31  ;;  %v14954_v31 = vld [vmem:[%s13930_s24 + $0x10] ss:$24 sps:$4 sm:$0xff]  }
 0x1d6   : > { %3076 = vmatmul.mubr.bf16.gmra.mrb[128].mxu0 %v14937_v16  ;;  %3774 = vmatmul.mubr.bf16.vlgmr.msra.gmra.mrb[64].mxu1 %v14341_v36  ;;  %v13677_v36 = vld [vmem:[%s17733_s1 + $0x338] ss:$12 sps:$4 sm:$0xff]  }
 0x1d7   : > { %4038 = vmatpush1.bf16.msra.mxu1 %v13660_v20  ;;  %3116 = vmatprep.mubr.bf16.mxu0 %v14943_v22  ;;  %v14972_v20 = vld [vmem:[%s13930_s24 + $0x40] ss:$24 sps:$4 sm:$0xff]  }
 0x1d8   : > { %3781 = vmatprep.mubr.bf16.mxu1 %v14344_v37  ;;  %4039 = vmatprep.subr.bf16.mxu1 %v17904_v3  ;;  %v13684_v37 = vld [vmem:[%s17733_s1 + $0x350] ss:$12 sps:$4 sm:$0xff]  }
 0x1db   : > { %4040 = vmatpush1.bf16.msra.mxu1 %v13670_v25  ;;  %v14975_v25 = vld [vmem:[%s13930_s24 + $0x74] ss:$24 sps:$4 sm:$0xff]  }
 0x1dc   : > { %4041 = vmatprep.subr.bf16.mxu1 %v17904_v3 }
 0x1de   : > { %3117 = vmatmul.mubr.bf16.vlgmr.msra.gmra.mrb[0].mxu0 %v14954_v31  ;;  %3782 = vmatmul.mubr.bf16.gmra.mrb[68].mxu1 %v14359_v45  ;;  %v13691_v45 = vld [vmem:[%s17733_s1 + $0x368] ss:$12 sps:$4 sm:$0xff]  }
 0x1df   : > { %3126 = vmatprep.mubr.bf16.mxu0 %v14957_v11  ;;  %3789 = vmatprep.mubr.bf16.mxu1 %v14362_v46  ;;  %v13698_v46 = vld [vmem:[%s17733_s1 + $0x380] ss:$12 sps:$4 sm:$0xff]  }
 0x1e0   : > { %4042 = vmatpush1.bf16.msra.mxu1 %v13677_v36  ;;  %v14990_v36 = vld [vmem:[%s13930_s24 + $0x70] ss:$24 sps:$4 sm:$0xff]  }
 0x1e1   : > { %4043 = vmatprep.subr.bf16.mxu1 %v17904_v3 }
 0x1e4   : > { %4044 = vmatpush1.bf16.msra.mxu1 %v13684_v37  ;;  %v14993_v37 = vld [vmem:[%s13930_s24 + $0xa4] ss:$24 sps:$4 sm:$0xff]  }
 0x1e5   : > { %4045 = vmatprep.subr.bf16.mxu1 %v17904_v3 }
 0x1e6   : > { %3127 = vmatmul.mubr.bf16.gmra.mrb[4].mxu0 %v14972_v20  ;;  %3790 = vmatmul.mubr.bf16.gmra.mrb[72].mxu1 %v14377_v50  ;;  %v13705_v50 = vld [vmem:[%s17733_s1 + $0x398] ss:$12 sps:$4 sm:$0xff]  }
 0x1e7   : > { %3136 = vmatprep.mubr.bf16.mxu0 %v14975_v25  ;;  %3797 = vmatprep.mubr.bf16.mxu1 %v14380_v51  ;;  %v13712_v51 = vld [vmem:[%s17733_s1 + $0x3b0] ss:$12 sps:$4 sm:$0xff]  }
 0x1e8   : > { %4046 = vmatpush1.bf16.msra.mxu1 %v13691_v45  ;;  %v15008_v45 = vld [vmem:[%s13930_s24 + $0xa0] ss:$24 sps:$4 sm:$0xff]  }
 0x1e9   : > { %4047 = vmatprep.subr.bf16.mxu1 %v17904_v3 }
 0x1ec   : > { %4048 = vmatpush1.bf16.msra.mxu1 %v13698_v46  ;;  %v15011_v46 = vld [vmem:[%s13930_s24 + $0xd4] ss:$24 sps:$4 sm:$0xff]  }
 0x1ed   : > { %4049 = vmatprep.subr.bf16.mxu1 %v17904_v3 }
 0x1ee   : > { %3137 = vmatmul.mubr.bf16.gmra.mrb[8].mxu0 %v14990_v36  ;;  %3798 = vmatmul.mubr.bf16.gmra.mrb[76].mxu1 %v14395_v55  ;;  %v13719_v55 = vld [vmem:[%s17733_s1 + $0x3c8] ss:$12 sps:$4 sm:$0xff]  }
 0x1ef   : > { %3146 = vmatprep.mubr.bf16.mxu0 %v14993_v37  ;;  %3805 = vmatprep.mubr.bf16.mxu1 %v14398_v58  ;;  %v13726_v58 = vld [vmem:[%s17733_s1 + $0x3e0] ss:$12 sps:$4 sm:$0xff]  }
 0x1f0   : > { %4050 = vmatpush1.bf16.msra.mxu1 %v13705_v50  ;;  %v15026_v50 = vld [vmem:[%s13930_s24 + $0xd0] ss:$24 sps:$4 sm:$0xff]  }
 0x1f1   : > { %4051 = vmatprep.subr.bf16.mxu1 %v17904_v3 }
 0x1f4   : > { %4052 = vmatpush1.bf16.msra.mxu1 %v13712_v51  ;;  %v15029_v51 = vld [vmem:[%s13930_s24 + $0x104] ss:$24 sps:$4 sm:$0xff]  }
 0x1f5   : > { %4053 = vmatprep.subr.bf16.mxu1 %v17904_v3 }
 0x1f6   : > { %3147 = vmatmul.mubr.bf16.gmra.mrb[12].mxu0 %v15008_v45  ;;  %3806 = vmatmul.mubr.bf16.gmra.mrb[80].mxu1 %v14413_v60  ;;  %v13733_v60 = vld [vmem:[%s17733_s1 + $0x3f8] ss:$12 sps:$4 sm:$0xff]  }
 0x1f7   : > { %3156 = vmatprep.mubr.bf16.mxu0 %v15011_v46  ;;  %3813 = vmatprep.mubr.bf16.mxu1 %v14416_v62  ;;  %v15041_v62 = vld [vmem:[%s13930_s24 + $0x100] ss:$24 sps:$4 sm:$0xff]  }
 0x1f8   : > { %4054 = vmatpush1.bf16.msra.mxu1 %v13719_v55  ;;  %v15044_v55 = vld [vmem:[%s13930_s24 + $0x134] ss:$24 sps:$4 sm:$0xff]  }
 0x1f9   : > { %4055 = vmatprep.subr.bf16.mxu1 %v17904_v3 }
 0x1fc   : > { %4056 = vmatpush1.bf16.msra.mxu1 %v13726_v58  ;;  %v15058_v58 = vld [vmem:[%s13930_s24 + $0x164] ss:$24 sps:$4 sm:$0xff]  }
 0x1fd   : > { %4057 = vmatprep.subr.bf16.mxu1 %v17904_v3 }
 0x1fe   : > { %3157 = vmatmul.mubr.bf16.gmra.mrb[16].mxu0 %v15026_v50  ;;  %3814 = vmatmul.mubr.bf16.gmra.mrb[84].mxu1 %v14428_v12  ;;  %v13742_v12 = vld [vmem:[%s17733_s1 + $0x410] ss:$12 sps:$4 sm:$0xff]  }
 0x1ff   : > { %3166 = vmatprep.mubr.bf16.mxu0 %v15029_v51  ;;  %3821 = vmatprep.mubr.bf16.mxu1 %v14431_v1  ;;  %v15054_v1 = vld [vmem:[%s13930_s24 + $0x130] ss:$24 sps:$4 sm:$0xff]  }
 0x200   : > { %4058 = vmatpush1.bf16.msra.mxu1 %v13733_v60  ;;  %v15082_v60 = vld [vmem:[%s13930_s24 + $0x1c4] ss:$24 sps:$4 sm:$0xff]  }
 0x201   : > { %4059 = vmatprep.subr.bf16.mxu1 %v17904_v3 }
 0x204   : > { %4060 = vmatpush1.bf16.msra.mxu1 %v13742_v12  ;;  %v15102_v12 = vld [vmem:[%s13930_s24 + $0x224] ss:$24 sps:$4 sm:$0xff]  }
 0x205   : > { %4061 = vmatprep.subr.bf16.mxu1 %v17904_v3 }
 0x206   : > { %3167 = vmatmul.mubr.bf16.gmra.mrb[20].mxu0 %v15041_v62  ;;  %3822 = vmatmul.mubr.bf16.gmra.mrb[88].mxu1 %v14438_v19  ;;  %v15065_v19 = vld [vmem:[%s13930_s24 + $0x160] ss:$24 sps:$4 sm:$0xff]  }
 0x207   : > { %3176 = vmatprep.mubr.bf16.mxu0 %v15044_v55  ;;  %3829 = vmatprep.mubr.bf16.mxu1 %v14441_v23  ;;  %v15068_v23 = vld [vmem:[%s13930_s24 + $0x194] ss:$24 sps:$4 sm:$0xff]  }
 0x20e   : > { %3177 = vmatmul.mubr.bf16.gmra.mrb[24].mxu0 %v15054_v1  ;;  %3830 = vmatmul.mubr.bf16.gmra.mrb[92].mxu1 %v14452_v29  ;;  %v13749_v29 = vld [vmem:[%s17733_s1 + $0x428] ss:$12 sps:$4 sm:$0xff]  }
 0x20f   : > { %3186 = vmatprep.mubr.bf16.mxu0 %v15058_v58  ;;  %3837 = vmatprep.mubr.bf16.mxu1 %v14455_v32  ;;  %v15078_v32 = vld [vmem:[%s13930_s24 + $0x190] ss:$24 sps:$4 sm:$0xff]  }
 0x210   : > { %4062 = vmatpush1.bf16.msra.mxu1 %v13749_v29  ;;  %v13767_v29 = vld [vmem:[%s17733_s1 + $0x458] ss:$12 sps:$4 sm:$0xff]  }
 0x211   : > { %4063 = vmatprep.subr.bf16.mxu1 %v17904_v3 }
 0x216   : > { %3187 = vmatmul.mubr.bf16.gmra.mrb[28].mxu0 %v15065_v19  ;;  %3838 = vmatmul.mubr.bf16.gmra.mrb[96].mxu1 %v14462_v42  ;;  %v15089_v42 = vld [vmem:[%s13930_s24 + $0x1c0] ss:$24 sps:$4 sm:$0xff]  }
 0x217   : > { %3196 = vmatprep.mubr.bf16.mxu0 %v15068_v23  ;;  %3845 = vmatprep.mubr.bf16.mxu1 %v14465_v44  ;;  %v15092_v44 = vld [vmem:[%s13930_s24 + $0x1f4] ss:$24 sps:$4 sm:$0xff]  }
 0x21e   : > { %3197 = vmatmul.mubr.bf16.gmra.mrb[32].mxu0 %v15078_v32  ;;  %3846 = vmatmul.mubr.bf16.gmra.mrb[100].mxu1 %v14476_v52  ;;  %v15099_v52 = vld [vmem:[%s13930_s24 + $0x1f0] ss:$24 sps:$4 sm:$0xff]  }
 0x21f   : > { %3206 = vmatprep.mubr.bf16.mxu0 %v15082_v60  ;;  %3853 = vmatprep.mubr.bf16.mxu1 %v14479_v54  ;;  %v13757_v54 = vld [vmem:[%s17733_s1 + $0x440] ss:$12 sps:$4 sm:$0xff]  }
 0x220   : > { %4064 = vmatpush1.bf16.msra.mxu1 %v13757_v54  ;;  %v15153_v54 = vld [vmem:[%s13930_s24 + $0x2b0] ss:$24 sps:$4 sm:$0xff]  }
 0x221   : > { %4065 = vmatprep.subr.bf16.mxu1 %v17904_v3 }
 0x224   : > { %4066 = vmatpush1.bf16.msra.mxu1 %v13767_v29  ;;  %v15192_v29 = vld [vmem:[%s13930_s24 + $0x340] ss:$24 sps:$4 sm:$0xff]  }
 0x225   : > { %4067 = vmatprep.subr.bf16.mxu1 %v17904_v3 }
 0x226   : > { %3207 = vmatmul.mubr.bf16.gmra.mrb[36].mxu0 %v15089_v42  ;;  %3854 = vmatmul.mubr.bf16.gmra.mrb[104].mxu1 %v14502_v35  ;;  %v15113_v35 = vld [vmem:[%s13930_s24 + $0x220] ss:$24 sps:$4 sm:$0xff]  }
 0x227   : > { %3216 = vmatprep.mubr.bf16.mxu0 %v15092_v44  ;;  %3861 = vmatprep.mubr.bf16.mxu1 %v14507_v38  ;;  %v15116_v38 = vld [vmem:[%s13930_s24 + $0x254] ss:$24 sps:$4 sm:$0xff]  }
 0x22e   : > { %3217 = vmatmul.mubr.bf16.gmra.mrb[40].mxu0 %v15099_v52  ;;  %3862 = vmatmul.mubr.bf16.gmra.mrb[108].mxu1 %v14536_v53  ;;  %v15123_v53 = vld [vmem:[%s13930_s24 + $0x250] ss:$24 sps:$4 sm:$0xff]  }
 0x22f   : > { %3226 = vmatprep.mubr.bf16.mxu0 %v15102_v12  ;;  %3869 = vmatprep.mubr.bf16.mxu1 %v14541_v5  ;;  %v15126_v5 = vld [vmem:[%s13930_s24 + $0x284] ss:$24 sps:$4 sm:$0xff]  }
 0x236   : > { %3227 = vmatmul.mubr.bf16.gmra.mrb[44].mxu0 %v15113_v35  ;;  %3870 = vmatmul.mubr.bf16.gmra.mrb[112].mxu1 %v14566_v59  ;;  %v13763_v59 = vld [vmem:[%s17735_s3] ss:$8 sps:$4 sm:$0xff]  }
 0x237   : > { %3236 = vmatprep.mubr.bf16.mxu0 %v15116_v38  ;;  %3877 = vmatprep.mubr.bf16.mxu1 %v14571_v33  ;;  %v13765_v33 = vld [vmem:[%s17735_s3 + $0x4] ss:$8 sps:$4 sm:$0xff]  }
 0x238   : > { %5705 = vmatprep.subr.bf16.mxu0 %v13765_v33  ;;  %v15156_v33 = vld [vmem:[%s13930_s24 + $0x2e4] ss:$24 sps:$4 sm:$0xff]  }
 0x239   : > { %5706 = vmatpush1.bf16.msra.mxu0 %v13763_v59  ;;  %v15166_v59 = vld [vmem:[%s13930_s24 + $0x2e0] ss:$24 sps:$4 sm:$0xff]  }
 0x23e   : > { %3237 = vmatmul.mubr.bf16.gmra.mrb[48].mxu0 %v15123_v53  ;;  %3878 = vmatmul.mubr.bf16.gmra.mrb[116].mxu1 %v14600_v9  ;;  %v15142_v9 = vld [vmem:[%s13930_s24 + $0x280] ss:$24 sps:$4 sm:$0xff]  }
 0x23f   : > { %3246 = vmatprep.mubr.bf16.mxu0 %v15126_v5  ;;  %3885 = vmatprep.mubr.bf16.mxu1 %v14605_v15  ;;  %v15146_v15 = vld [vmem:[%s13930_s24 + $0x2b4] ss:$24 sps:$4 sm:$0xff]  }
 0x246   : > { %3247 = vmatmul.mubr.bf16.gmra.mrb[52].mxu0 %v15142_v9  ;;  %3886 = vmatmul.mubr.bf16.gmra.mrb[120].mxu1 %v14630_v27  ;;  %v13774_v27 = vld [vmem:[%s17733_s1 + $0x470] ss:$12 sps:$4 sm:$0xff]  }
 0x247   : > { %3256 = vmatprep.mubr.bf16.mxu0 %v15146_v15  ;;  %3893 = vmatprep.mubr.bf16.mxu1 %v14635_v4  ;;  %v15169_v4 = vld [vmem:[%s13930_s24 + $0x314] ss:$24 sps:$4 sm:$0xff]  }
 0x248   : > { %4068 = vmatpush1.bf16.msra.mxu1 %v13774_v27  ;;  %v15195_v27 = vld [vmem:[%s13930_s24 + $0x374] ss:$24 sps:$4 sm:$0xff]  }
 0x24e   : > { %3257 = vmatmul.mubr.bf16.gmra.mrb[56].mxu0 %v15153_v54  ;;  %3894 = vmatmul.mubr.bf16.gmra.mrb[124].mxu1 %v14664_v39  ;;  %v15176_v39 = vld [vmem:[%s13930_s24 + $0x310] ss:$24 sps:$4 sm:$0xff]  }
 0x24f   : > { %3266 = vmatprep.mubr.bf16.mxu0 %v15156_v33  ;;  %3901 = vmatprep.mubr.bf16.mxu1 %v14669_v26  ;;  %v15179_v26 = vld [vmem:[%s13930_s24 + $0x344] ss:$24 sps:$4 sm:$0xff]  }
 0x256   : > { %3267 = vmatmul.mubr.bf16.gmra.mrb[60].mxu0 %v15166_v59  ;;  %3902 = vmatmul.mubr.bf16.gmra.mrb[128].mxu1 %v14694_v28  ;;  %v13780_v28 = vld [vmem:[%s17735_s3 + $0x10] ss:$8 sps:$4 sm:$0xff]  }
 0x257   : > { %3276 = vmatprep.mubr.bf16.mxu0 %v15169_v4  ;;  %3909 = vmatprep.mubr.bf16.mxu1 %v14699_v2  ;;  %v13782_v2 = vld [vmem:[%s17735_s3 + $0x14] ss:$8 sps:$4 sm:$0xff]  }
 0x258   : > { %5707 = vmatprep.subr.bf16.mxu0 %v13782_v2  ;;  %v15241_v2 = vld [vmem:[%s13930_s24 + $0x434] ss:$24 sps:$4 sm:$0xff]  }
 0x259   : > { %5708 = vmatpush1.bf16.msra.mxu0 %v13780_v28  ;;  %v15212_v28 = vld [vmem:[%s13930_s24 + $0x3a0] ss:$24 sps:$4 sm:$0xff]   ;;  %17956 = vst [vmem:[#allocation74_spill] sm:$0xff] %v15241_v2 }
 0x25e   : > { %3277 = vmatmul.mubr.bf16.gmra.mrb[64].mxu0 %v15176_v39  ;;  %3910 = vmatmul.mubr.bf16.gmra.mrb[132].mxu1 %v14724_v18  ;;  %v15202_v18 = vld [vmem:[%s13930_s24 + $0x370] ss:$24 sps:$4 sm:$0xff]  }
 0x25f   : > { %3286 = vmatprep.mubr.bf16.mxu0 %v15179_v26  ;;  %3917 = vmatprep.mubr.bf16.mxu1 %v14729_v24  ;;  %v15205_v24 = vld [vmem:[%s13930_s24 + $0x3a4] ss:$24 sps:$4 sm:$0xff]  }
 0x266   : > { %3287 = vmatmul.mubr.bf16.gmra.mrb[68].mxu0 %v15192_v29  ;;  %3918 = vmatmul.mubr.bf16.gmra.mrb[136].mxu1 %v14742_v43  ;;  %v15215_v43 = vld [vmem:[%s13930_s24 + $0x3d4] ss:$24 sps:$4 sm:$0xff]  }
 0x267   : > { %3296 = vmatprep.mubr.bf16.mxu0 %v15195_v27  ;;  %3925 = vmatprep.mubr.bf16.mxu1 %v14747_v13  ;;  %v15222_v13 = vld [vmem:[%s13930_s24 + $0x3d0] ss:$24 sps:$4 sm:$0xff]  }
 0x268   : > { %17953 = vst [vmem:[#allocation71_spill] sm:$0xff] %v15222_v13 }
 0x26e   : > { %3297 = vmatmul.mubr.bf16.gmra.mrb[72].mxu0 %v15202_v18  ;;  %3926 = vmatmul.mubr.bf16.gmra.mrb[140].mxu1 %v14760_v7  ;;  %v15225_v7 = vld [vmem:[%s13930_s24 + $0x404] ss:$24 sps:$4 sm:$0xff]  }
 0x26f   : > { %3306 = vmatprep.mubr.bf16.mxu0 %v15205_v24  ;;  %3933 = vmatprep.mubr.bf16.mxu1 %v14765_v21  ;;  %17954 = vst [vmem:[#allocation72_spill] sm:$0xff] %v15225_v7  ;;  %v15238_v21 = vld [vmem:[%s13930_s24 + $0x400] ss:$24 sps:$4 sm:$0xff]  }
 0x270   : > { %17955 = vst [vmem:[#allocation73_spill] sm:$0xff] %v15238_v21 }
 0x276   : > { %3307 = vmatmul.mubr.bf16.gmra.mrb[76].mxu0 %v15212_v28  ;;  %3934 = vmatmul.mubr.bf16.gmra.mrb[144].mxu1 %v14778_v56  ;;  %v13783_v56 = vld [vmem:[%s17735_s3 + $0x20] ss:$8 sps:$4 sm:$0xff]  }
 0x277   : > { %3316 = vmatprep.mubr.bf16.mxu0 %v15215_v43  ;;  %3941 = vmatprep.mubr.bf16.mxu1 %v14783_v17  ;;  %v13785_v17 = vld [vmem:[%s17735_s3 + $0x24] ss:$8 sps:$4 sm:$0xff]  }
 0x278   : > { %5709 = vmatprep.subr.bf16.mxu0 %v13785_v17  ;;  %v17960_v17 = vld [vmem:[#allocation57_spill] sm:$0xff] }
 0x279   : > { %5710 = vmatpush1.bf16.msra.mxu0 %v13783_v56  ;;  %v17961_v56 = vld [vmem:[#allocation59_spill] sm:$0xff] }
 0x27e   : > { %3317 = vmatmul.mubr.bf16.gmra.mrb[80].mxu0 %v15222_v13  ;;  %3942 = vmatmul.mubr.bf16.gmra.mrb[148].mxu1 %v14796_v63  ;;  %v15248_v63 = vld [vmem:[%s13930_s24 + $0x430] ss:$24 sps:$4 sm:$0xff]   ;;  %v15300_v13 = vld [vmem:[%s13930_s24 + $0x524] ss:$24 sps:$4 sm:$0xff]  }
 0x27f   : > { %3326 = vmatprep.mubr.bf16.mxu0 %v15225_v7  ;;  %3949 = vmatprep.mubr.bf16.mxu1 %v14801_v57  ;;  %v17957_v57 = vld [vmem:[#allocation53_spill] sm:$0xff]  ;;  %17974 = vst [vmem:[#allocation78_spill] sm:$0xff] %v15300_v13 }
 0x280   : > { %17958 = vst [vmem:[#allocation53_spill] sm:$0xff] %v15248_v63  ;;  %v15251_v7 = vld [vmem:[%s13930_s24 + $0x464] ss:$24 sps:$4 sm:$0xff]  }
 0x281   : > { %17959 = vst [vmem:[#allocation75_spill] sm:$0xff] %v15251_v7 }
 0x286   : > { %3327 = vmatmul.mubr.bf16.gmra.mrb[84].mxu0 %v15238_v21  ;;  %3950 = vmatmul.mubr.bf16.gmra.mrb[152].mxu1 %v14814_v49  ;;  %v15258_v21 = vld [vmem:[%s13930_s24 + $0x460] ss:$24 sps:$4 sm:$0xff]   ;;  %v15261_v49 = vld [vmem:[%s13930_s24 + $0x494] ss:$24 sps:$4 sm:$0xff]  }
 0x287   : > { %3336 = vmatprep.mubr.bf16.mxu0 %v15241_v2  ;;  %3957 = vmatprep.mubr.bf16.mxu1 %v17957_v57  ;;  %17962 = vst [vmem:[#allocation57_spill] sm:$0xff] %v15258_v21  ;;  %17963 = vst [vmem:[#allocation59_spill] sm:$0xff] %v15261_v49  ;;  %v17964_v57 = vld [vmem:[#allocation63_spill] sm:$0xff] }
 0x28e   : > { %3337 = vmatmul.mubr.bf16.gmra.mrb[88].mxu0 %v15248_v63  ;;  %3958 = vmatmul.mubr.bf16.gmra.mrb[156].mxu1 %v17960_v17  ;;  %v15268_v63 = vld [vmem:[%s13930_s24 + $0x490] ss:$24 sps:$4 sm:$0xff]   ;;  %v15271_v17 = vld [vmem:[%s13930_s24 + $0x4c4] ss:$24 sps:$4 sm:$0xff]  }
 0x28f   : > { %3346 = vmatprep.mubr.bf16.mxu0 %v15251_v7  ;;  %3965 = vmatprep.mubr.bf16.mxu1 %v17961_v56  ;;  %17965 = vst [vmem:[#allocation63_spill] sm:$0xff] %v15268_v63  ;;  %17966 = vst [vmem:[#allocation76_spill] sm:$0xff] %v15271_v17  ;;  %v17967_v56 = vld [vmem:[#allocation68_spill] sm:$0xff]  ;;  %v17972_v7 = vld [vmem:[#allocation66_spill] sm:$0xff] }
 0x296   : > { %3347 = vmatmul.mubr.bf16.gmra.mrb[92].mxu0 %v15258_v21  ;;  %3966 = vmatmul.mubr.bf16.gmra.mrb[160].mxu1 %v17964_v57  ;;  %v13786_v57 = vld [vmem:[%s17735_s3 + $0x30] ss:$8 sps:$4 sm:$0xff]  }
 0x297   : > { %3356 = vmatprep.mubr.bf16.mxu0 %v15261_v49  ;;  %3973 = vmatprep.mubr.bf16.mxu1 %v14855_v30  ;;  %v13788_v30 = vld [vmem:[%s17735_s3 + $0x34] ss:$8 sps:$4 sm:$0xff]   ;;  %v15284_v49 = vld [vmem:[%s13930_s24 + $0x4c0] ss:$24 sps:$4 sm:$0xff]   ;;  %v15294_v21 = vld [vmem:[%s13930_s24 + $0x4f0] ss:$24 sps:$4 sm:$0xff]  }
 0x298   : > { %17968 = vst [vmem:[#allocation68_spill] sm:$0xff] %v15284_v49  ;;  %5711 = vmatprep.subr.bf16.mxu0 %v13788_v30 }
 0x299   : > { %5712 = vmatpush1.bf16.msra.mxu0 %v13786_v57  ;;  %v17975_v57 = vld [vmem:[#allocation67_spill] sm:$0xff] }
 0x29e   : > { %3357 = vmatmul.mubr.bf16.gmra.mrb[96].mxu0 %v15268_v63  ;;  %3974 = vmatmul.mubr.bf16.gmra.mrb[164].mxu1 %v14868_v47  ;;  %v15287_v63 = vld [vmem:[%s13930_s24 + $0x4f4] ss:$24 sps:$4 sm:$0xff]   ;;  %v17970_v47 = vld [vmem:[#allocation69_spill] sm:$0xff] }
 0x29f   : > { %3366 = vmatprep.mubr.bf16.mxu0 %v15271_v17  ;;  %3981 = vmatprep.mubr.bf16.mxu1 %v17967_v56  ;;  %17969 = vst [vmem:[#allocation77_spill] sm:$0xff] %v15287_v63  ;;  %17971 = vst [vmem:[#allocation69_spill] sm:$0xff] %v15294_v21 }
 0x2a6   : > { %3367 = vmatmul.mubr.bf16.gmra.mrb[100].mxu0 %v15284_v49  ;;  %3982 = vmatmul.mubr.bf16.gmra.mrb[168].mxu1 %v14878_v48 }
 0x2a7   : > { %3376 = vmatprep.mubr.bf16.mxu0 %v15287_v63  ;;  %3989 = vmatprep.mubr.bf16.mxu1 %v17970_v47 }
 0x2a9   : > { %v3077_v56 = vpop.f32.mrb[128].mxu0 }
 0x2aa   : > { %v3079_v17 = vpop.f32.mrb[129].mxu0  ;;  %v15297_v2 = vadd.f32 %v3077_v56, %v17972_v7  ;;  %v15310_v7 = vld [vmem:[%s13930_s24 + $0x520] ss:$24 sps:$4 sm:$0xff]  }
 0x2ab   : > { %v3081_v30 = vpop.f32.mrb[130].mxu0  ;;  %v15303_v49 = vadd.f32 %v3079_v17, %v17975_v57  ;;  %17977 = vst [vmem:[#allocation79_spill] sm:$0xff] %v15310_v7 }
 0x2ac   : > { %17973 = vst [vmem:[#allocation66_spill] sm:$0xff] %v15297_v2  ;;  %v3082_v48 = vpop.f32.mrb[131].mxu0  ;;  %v15313_v30 = vld [vmem:[%s13930_s24 + $0x554] ss:$24 sps:$4 sm:$0xff]  }
 0x2ad   : > { %17976 = vst [vmem:[#allocation67_spill] sm:$0xff] %v15303_v49  ;;  %17978 = vst [vmem:[#allocation80_spill] sm:$0xff] %v15313_v30 }
 0x2ae   : > { %3377 = vmatmul.mubr.bf16.gmra.mrb[104].mxu0 %v15294_v21  ;;  %3990 = vmatmul.mubr.bf16.gmra.mrb[172].mxu1 %v14888_v10 }
 0x2af   : > { %3386 = vmatprep.mubr.bf16.mxu0 %v15300_v13  ;;  %3997 = vmatprep.mubr.bf16.mxu1 %v14891_v61  ;;  %v15323_v13 = vld [vmem:[%s13930_s24 + $0x550] ss:$24 sps:$4 sm:$0xff]  }
 0x2b0   : > { %17980 = vst [vmem:[#allocation82_spill] sm:$0xff] %v15323_v13 }
 0x2b1   : > { %v3118_v47 = vpop.f32.mrb[0].mxu0 }
 0x2b2   : > { %v3120_v63 = vpop.f32.mrb[1].mxu0 }
 0x2b3   : > { %v3122_v56 = vpop.f32.mrb[2].mxu0  ;;  %v4399_v57 = vrot.slane %v3120_v63, 1 }
 0x2b4   : > { %v3124_v17 = vpop.f32.mrb[3].mxu0 }
 0x2b5   : > { %v4400_v48 = vrot.slane %v3124_v17, 1  ;;  %v15326_v17 = vld [vmem:[%s13930_s24 + $0x584] ss:$24 sps:$4 sm:$0xff]  }
 0x2b6   : > { %3387 = vmatmul.mubr.bf16.gmra.mrb[108].mxu0 %v15310_v7  ;;  %3998 = vmatmul.mubr.bf16.gmra.mrb[176].mxu1 %v14898_v40  ;;  %17981 = vst [vmem:[#allocation83_spill] sm:$0xff] %v15326_v17 }
 0x2b7   : > { %v4401_v10 = vsel %vm4398_vm0, %v4399_v57, %v4400_v48  ;;  %3396 = vmatprep.mubr.bf16.mxu0 %v15313_v30  ;;  %4005 = vmatprep.mubr.bf16.mxu1 %v14901_v0  ;;  %v17982_v30 = vld [vmem:[#allocation70_spill] sm:$0xff] }
 0x2b8   : > { %v15320_v61 = vadd.f32 %v4401_v10, %v3118_v47 }
 0x2b9   : > { %v3128_v49 = vpop.f32.mrb[4].mxu0 }
 0x2ba   : > { %17979 = vst [vmem:[#allocation81_spill] sm:$0xff] %v15320_v61  ;;  %v3130_v2 = vpop.f32.mrb[5].mxu0  ;;  %v15339_v61 = vld [vmem:[%s13930_s24 + $0x580] ss:$24 sps:$4 sm:$0xff]  }
 0x2bb   : > { %v4402_v21 = vrot.slane %v3130_v2, 1  ;;  %v3132_v63 = vpop.f32.mrb[6].mxu0  ;;  %17984 = vst [vmem:[#allocation84_spill] sm:$0xff] %v15339_v61 }
 0x2bc   : > { %v3134_v7 = vpop.f32.mrb[7].mxu0 }
 0x2bd   : > { %v4403_v40 = vsel %vm4398_vm0, %v4400_v48, %v4402_v21  ;;  %v4404_v57 = vrot.slane %v3134_v7, 1  ;;  %v13789_v7 = vld [vmem:[%s17735_s3 + $0x40] ss:$8 sps:$4 sm:$0xff]  }
 0x2be   : > { %3397 = vmatmul.mubr.bf16.gmra.mrb[112].mxu0 %v15323_v13  ;;  %4006 = vmatmul.mubr.bf16.gmra.mrb[180].mxu1 %v17982_v30  ;;  %v15331_v0 = vadd.f32 %v4403_v40, %v3122_v56  ;;  %v13791_v56 = vld [vmem:[%s17735_s3 + $0x44] ss:$8 sps:$4 sm:$0xff]  }
 0x2bf   : > { %v4405_v47 = vsel %vm4398_vm0, %v4402_v21, %v4404_v57  ;;  %3406 = vmatprep.mubr.bf16.mxu0 %v15326_v17  ;;  %4013 = vmatprep.mubr.bf16.mxu1 %v14911_v41  ;;  %v15348_v40 = vld [vmem:[%s13930_s24 + $0x5b4] ss:$24 sps:$4 sm:$0xff]  }
 0x2c0   : > { %v15336_v2 = vadd.f32 %v4405_v47, %v3128_v49  ;;  %17985 = vst [vmem:[#allocation85_spill] sm:$0xff] %v15348_v40  ;;  %5713 = vmatprep.subr.bf16.mxu0 %v13791_v56 }
 0x2c1   : > { %v3138_v10 = vpop.f32.mrb[8].mxu0  ;;  %5714 = vmatpush1.bf16.msra.mxu0 %v13789_v7 }
 0x2c2   : > { %17983 = vst [vmem:[#allocation70_spill] sm:$0xff] %v15336_v2  ;;  %v3140_v48 = vpop.f32.mrb[9].mxu0 }
 0x2c3   : > { %v4406_v30 = vrot.slane %v3140_v48, 1  ;;  %v3142_v21 = vpop.f32.mrb[10].mxu0 }
 0x2c4   : > { %v3144_v41 = vpop.f32.mrb[11].mxu0 }
 0x2c5   : > { %v4407_v49 = vsel %vm4398_vm0, %v4404_v57, %v4406_v30  ;;  %v4408_v47 = vrot.slane %v3144_v41, 1  ;;  %v15361_v57 = vld [vmem:[%s13930_s24 + $0x5b0] ss:$24 sps:$4 sm:$0xff]   ;;  %v15364_v41 = vld [vmem:[%s13930_s24 + $0x5e4] ss:$24 sps:$4 sm:$0xff]  }
 0x2c6   : > { %v15351_v17 = vadd.f32 %v4407_v49, %v3132_v63  ;;  %3407 = vmatmul.mubr.bf16.gmra.mrb[116].mxu0 %v15339_v61  ;;  %4014 = vmatmul.mubr.bf16.gmra.mrb[184].mxu1 %v14918_v6  ;;  %17987 = vst [vmem:[#allocation87_spill] sm:$0xff] %v15361_v57  ;;  %17988 = vst [vmem:[#allocation88_spill] sm:$0xff] %v15364_v41 }
 0x2c7   : > { %v4409_v2 = vsel %vm4398_vm0, %v4406_v30, %v4408_v47  ;;  %3416 = vmatprep.mubr.bf16.mxu0 %v15348_v40  ;;  %4021 = vmatprep.mubr.bf16.mxu1 %v14921_v8 }
 0x2c8   : > { %v15358_v48 = vadd.f32 %v4409_v2, %v3138_v10  ;;  %v420_v2 = vld [vmem:[%s13930_s24 + $0x610] sm:$0xff] }
 0x2c9   : > { %v3148_v56 = vpop.f32.mrb[12].mxu0 }
 0x2ca   : > { %17986 = vst [vmem:[#allocation86_spill] sm:$0xff] %v15358_v48  ;;  %v3150_v13 = vpop.f32.mrb[13].mxu0  ;;  %v15378_v48 = vld [vmem:[%s13930_s24 + $0x5e0] ss:$24 sps:$4 sm:$0xff]  }
 0x2cb   : > { %v4410_v7 = vrot.slane %v3150_v13, 1  ;;  %v3152_v63 = vpop.f32.mrb[14].mxu0  ;;  %17989 = vst [vmem:[#allocation89_spill] sm:$0xff] %v15378_v48 }
 0x2cc   : > { %v3154_v49 = vpop.f32.mrb[15].mxu0 }
 0x2cd   : > { %v4411_v6 = vsel %vm4398_vm0, %v4408_v47, %v4410_v7  ;;  %v4412_v30 = vrot.slane %v3154_v49, 1  ;;  %v15380_v49 = vcombine.high %v420_v2, %v420_v2 }
 0x2ce   : > { %v15367_v61 = vadd.f32 %v4411_v6, %v3142_v21  ;;  %3417 = vmatmul.mubr.bf16.gmra.mrb[120].mxu0 %v15361_v57  ;;  %4022 = vmatmul.mubr.bf16.gmra.mrb[188].mxu1 %v14929_v34 }
 0x2cf   : > { %v4413_v8 = vsel %vm4398_vm0, %v4410_v7, %v4412_v30  ;;  %3426 = vmatprep.mubr.bf16.mxu0 %v15364_v41  ;;  %4029 = vmatprep.mubr.bf16.mxu1 %v14931_v14  ;;  %v15392_v41 = vcombine.low %v420_v2, %v420_v2 }
 0x2d0   : > { %v15374_v13 = vadd.f32 %v4413_v8, %v3148_v56 }
 0x2d1   : > { %v3158_v10 = vpop.f32.mrb[16].mxu0 }
 0x2d2   : > { %v3160_v40 = vpop.f32.mrb[17].mxu0 }
 0x2d3   : > { %v4414_v47 = vrot.slane %v3160_v40, 1  ;;  %v3162_v21 = vpop.f32.mrb[18].mxu0 }
 0x2d4   : > { %v3164_v6 = vpop.f32.mrb[19].mxu0 }
 0x2d5   : > { %v4415_v34 = vsel %vm4398_vm0, %v4412_v30, %v4414_v47  ;;  %v4416_v57 = vrot.slane %v3164_v6, 1 }
 0x2d6   : > { %v15383_v7 = vadd.f32 %v4415_v34, %v3152_v63  ;;  %3427 = vmatmul.mubr.bf16.gmra.mrb[124].mxu0 %v15378_v48  ;;  %4030 = vmatmul.mubr.bf16.gmra.mrb[192].mxu1 %v14937_v16 }
 0x2d7   : > { %v4417_v14 = vsel %vm4398_vm0, %v4414_v47, %v4416_v57  ;;  %3436 = vmatprep.mubr.bf16.mxu0 %v15380_v49  ;;  %4069 = vmatprep.mubr.bf16.mxu1 %v14943_v22 }
 0x2d8   : > { %17990 = vst [vmem:[#allocation90_spill] sm:$0xff] %v15383_v7  ;;  %v15390_v40 = vadd.f32 %v4417_v14, %v3158_v10 }
 0x2d9   : > { %v3168_v56 = vpop.f32.mrb[20].mxu0 }
 0x2da   : > { %v3170_v8 = vpop.f32.mrb[21].mxu0 }
 0x2db   : > { %v4418_v30 = vrot.slane %v3170_v8, 1  ;;  %v3172_v6 = vpop.f32.mrb[22].mxu0 }
 0x2dc   : > { %v3174_v63 = vpop.f32.mrb[23].mxu0 }
 0x2dd   : > { %v4419_v34 = vsel %vm4398_vm0, %v4416_v57, %v4418_v30  ;;  %v4420_v48 = vrot.slane %v3174_v63, 1 }
 0x2de   : > { %v15395_v7 = vadd.f32 %v4419_v34, %v3162_v21  ;;  %3437 = vmatmul.mubr.bf16.gmra.mrb[132].mxu0 %v15392_v41  ;;  %4070 = vmatmul.mubr.bf16.vlgmr.msra.gmra.mrb[64].mxu1 %v14954_v31 }
 0x2df   : > { %v4421_v16 = vsel %vm4398_vm0, %v4418_v30, %v4420_v48  ;;  %4077 = vmatprep.mubr.bf16.mxu1 %v14957_v11  ;;  %5737 = vmatprep.mubr.bf16.mxu0 %v17904_v3  ;;  %v13794_v30 = vld [vmem:[%s17735_s3 + $0x54] ss:$8 sps:$4 sm:$0xff]  }
 0x2e0   : > { %v15402_v22 = vadd.f32 %v4421_v16, %v3168_v56  ;;  %v13792_v56 = vld [vmem:[%s17735_s3 + $0x50] ss:$8 sps:$4 sm:$0xff]   ;;  %5715 = vmatprep.subr.bf16.mxu0 %v13794_v30 }
 0x2e1   : > { %v3178_v2 = vpop.f32.mrb[24].mxu0  ;;  %5716 = vmatpush1.bf16.msra.mxu0 %v13792_v56 }
 0x2e2   : > { %v3180_v10 = vpop.f32.mrb[25].mxu0 }
 0x2e3   : > { %v4422_v47 = vrot.slane %v3180_v10, 1  ;;  %v3182_v14 = vpop.f32.mrb[26].mxu0 }
 0x2e4   : > { %v3184_v57 = vpop.f32.mrb[27].mxu0 }
 0x2e5   : > { %v4423_v21 = vsel %vm4398_vm0, %v4420_v48, %v4422_v47  ;;  %v4424_v8 = vrot.slane %v3184_v57, 1 }
 0x2e6   : > { %v15405_v63 = vadd.f32 %v4423_v21, %v3172_v6  ;;  %4078 = vmatmul.mubr.bf16.gmra.mrb[68].mxu1 %v14972_v20 }
 0x2e7   : > { %v4425_v31 = vsel %vm4398_vm0, %v4422_v47, %v4424_v8  ;;  %4085 = vmatprep.mubr.bf16.mxu1 %v14975_v25 }
 0x2e8   : > { %17991 = vst [vmem:[#allocation91_spill] sm:$0xff] %v15405_v63  ;;  %v15410_v11 = vadd.f32 %v4425_v31, %v3178_v2 }
 0x2e9   : > { %v3188_v48 = vpop.f32.mrb[28].mxu0 }
 0x2ea   : > { %17992 = vst [vmem:[#allocation92_spill] sm:$0xff] %v15410_v11  ;;  %v3190_v34 = vpop.f32.mrb[29].mxu0 }
 0x2eb   : > { %v4426_v6 = vrot.slane %v3190_v34, 1  ;;  %v3192_v16 = vpop.f32.mrb[30].mxu0 }
 0x2ec   : > { %v3194_v20 = vpop.f32.mrb[31].mxu0 }
 0x2ed   : > { %v4427_v10 = vsel %vm4398_vm0, %v4424_v8, %v4426_v6  ;;  %v4428_v25 = vrot.slane %v3194_v20, 1 }
 0x2ee   : > { %v15419_v2 = vadd.f32 %v4427_v10, %v3182_v14  ;;  %4086 = vmatmul.mubr.bf16.gmra.mrb[72].mxu1 %v14990_v36 }
 0x2ef   : > { %v4429_v47 = vsel %vm4398_vm0, %v4426_v6, %v4428_v25  ;;  %4093 = vmatprep.mubr.bf16.mxu1 %v14993_v37 }
 0x2f0   : > { %v15424_v57 = vadd.f32 %v4429_v47, %v3188_v48 }
 0x2f1   : > { %v3198_v21 = vpop.f32.mrb[32].mxu0 }
 0x2f2   : > { %v3200_v31 = vpop.f32.mrb[33].mxu0 }
 0x2f3   : > { %v4430_v30 = vrot.slane %v3200_v31, 1  ;;  %v3202_v34 = vpop.f32.mrb[34].mxu0 }
 0x2f4   : > { %v3204_v11 = vpop.f32.mrb[35].mxu0 }
 0x2f5   : > { %v4431_v56 = vsel %vm4398_vm0, %v4428_v25, %v4430_v30  ;;  %v4432_v63 = vrot.slane %v3204_v11, 1 }
 0x2f6   : > { %v15427_v8 = vadd.f32 %v4431_v56, %v3192_v16  ;;  %4094 = vmatmul.mubr.bf16.gmra.mrb[76].mxu1 %v15008_v45 }
 0x2f7   : > { %v4433_v36 = vsel %vm4398_vm0, %v4430_v30, %v4432_v63  ;;  %4101 = vmatprep.mubr.bf16.mxu1 %v15011_v46 }
 0x2f8   : > { %v15432_v14 = vadd.f32 %v4433_v36, %v3198_v21 }
 0x2f9   : > { %v3208_v37 = vpop.f32.mrb[36].mxu0 }
 0x2fa   : > { %v3210_v48 = vpop.f32.mrb[37].mxu0 }
 0x2fb   : > { %v4434_v6 = vrot.slane %v3210_v48, 1  ;;  %v3212_v20 = vpop.f32.mrb[38].mxu0 }
 0x2fc   : > { %v3214_v10 = vpop.f32.mrb[39].mxu0 }
 0x2fd   : > { %v4435_v47 = vsel %vm4398_vm0, %v4432_v63, %v4434_v6  ;;  %v4436_v31 = vrot.slane %v3214_v10, 1 }
 0x2fe   : > { %v15435_v25 = vadd.f32 %v4435_v47, %v3202_v34  ;;  %4102 = vmatmul.mubr.bf16.gmra.mrb[80].mxu1 %v15026_v50 }
 0x2ff   : > { %v4437_v45 = vsel %vm4398_vm0, %v4434_v6, %v4436_v31  ;;  %4109 = vmatprep.mubr.bf16.mxu1 %v15029_v51  ;;  %v13795_v51 = vld [vmem:[%s17735_s3 + $0x60] ss:$8 sps:$4 sm:$0xff]  }
 0x300   : > { %v15440_v11 = vadd.f32 %v4437_v45, %v3208_v37  ;;  %v13797_v37 = vld [vmem:[%s17735_s3 + $0x64] ss:$8 sps:$4 sm:$0xff]  }
 0x301   : > { %v3218_v46 = vpop.f32.mrb[40].mxu0  ;;  %5717 = vmatprep.subr.bf16.mxu0 %v13797_v37 }
 0x302   : > { %v3220_v16 = vpop.f32.mrb[41].mxu0  ;;  %5718 = vmatpush1.bf16.msra.mxu0 %v13795_v51 }
 0x303   : > { %v4438_v21 = vrot.slane %v3220_v16, 1  ;;  %v3222_v30 = vpop.f32.mrb[42].mxu0 }
 0x304   : > { %v3224_v56 = vpop.f32.mrb[43].mxu0 }
 0x305   : > { %v4439_v36 = vsel %vm4398_vm0, %v4436_v31, %v4438_v21  ;;  %v4440_v48 = vrot.slane %v3224_v56, 1 }
 0x306   : > { %v15443_v63 = vadd.f32 %v4439_v36, %v3212_v20  ;;  %4110 = vmatmul.mubr.bf16.gmra.mrb[84].mxu1 %v15041_v62 }
 0x307   : > { %v4441_v50 = vsel %vm4398_vm0, %v4438_v21, %v4440_v48  ;;  %4117 = vmatprep.mubr.bf16.mxu1 %v15044_v55 }
 0x308   : > { %v15448_v34 = vadd.f32 %v4441_v50, %v3218_v46 }
 0x309   : > { %v3228_v6 = vpop.f32.mrb[44].mxu0 }
 0x30a   : > { %v3230_v10 = vpop.f32.mrb[45].mxu0 }
 0x30b   : > { %v4442_v20 = vrot.slane %v3230_v10, 1  ;;  %v3232_v47 = vpop.f32.mrb[46].mxu0 }
 0x30c   : > { %v3234_v62 = vpop.f32.mrb[47].mxu0 }
 0x30d   : > { %v4443_v31 = vsel %vm4398_vm0, %v4440_v48, %v4442_v20  ;;  %v4444_v55 = vrot.slane %v3234_v62, 1 }
 0x30e   : > { %v15457_v45 = vadd.f32 %v4443_v31, %v3222_v30  ;;  %4118 = vmatmul.mubr.bf16.gmra.mrb[88].mxu1 %v15054_v1 }
 0x30f   : > { %v4445_v46 = vsel %vm4398_vm0, %v4442_v20, %v4444_v55  ;;  %4125 = vmatprep.mubr.bf16.mxu1 %v15058_v58 }
 0x310   : > { %v15462_v16 = vadd.f32 %v4445_v46, %v3228_v6 }
 0x311   : > { %v3238_v21 = vpop.f32.mrb[48].mxu0 }
 0x312   : > { %v3240_v56 = vpop.f32.mrb[49].mxu0 }
 0x313   : > { %v4446_v36 = vrot.slane %v3240_v56, 1  ;;  %v3242_v50 = vpop.f32.mrb[50].mxu0 }
 0x314   : > { %v3244_v37 = vpop.f32.mrb[51].mxu0 }
 0x315   : > { %v4447_v51 = vsel %vm4398_vm0, %v4444_v55, %v4446_v36  ;;  %v4448_v10 = vrot.slane %v3244_v37, 1 }
 0x316   : > { %v15465_v48 = vadd.f32 %v4447_v51, %v3232_v47  ;;  %4126 = vmatmul.mubr.bf16.gmra.mrb[92].mxu1 %v15065_v19 }
 0x317   : > { %v4449_v1 = vsel %vm4398_vm0, %v4446_v36, %v4448_v10  ;;  %4133 = vmatprep.mubr.bf16.mxu1 %v15068_v23 }
 0x318   : > { %v15470_v30 = vadd.f32 %v4449_v1, %v3238_v21 }
 0x319   : > { %v3248_v58 = vpop.f32.mrb[52].mxu0 }
 0x31a   : > { %v3250_v6 = vpop.f32.mrb[53].mxu0 }
 0x31b   : > { %v4450_v20 = vrot.slane %v3250_v6, 1  ;;  %v3252_v62 = vpop.f32.mrb[54].mxu0 }
 0x31c   : > { %v3254_v31 = vpop.f32.mrb[55].mxu0 }
 0x31d   : > { %v4451_v46 = vsel %vm4398_vm0, %v4448_v10, %v4450_v20  ;;  %v4452_v56 = vrot.slane %v3254_v31, 1  ;;  %v13800_v31 = vld [vmem:[%s17735_s3 + $0x74] ss:$8 sps:$4 sm:$0xff]  }
 0x31e   : > { %v15473_v55 = vadd.f32 %v4451_v46, %v3242_v50  ;;  %4134 = vmatmul.mubr.bf16.gmra.mrb[96].mxu1 %v15078_v32  ;;  %5719 = vmatprep.subr.bf16.mxu0 %v13800_v31 }
 0x31f   : > { %v4453_v19 = vsel %vm4398_vm0, %v4450_v20, %v4452_v56  ;;  %4141 = vmatprep.mubr.bf16.mxu1 %v15082_v60  ;;  %v13798_v20 = vld [vmem:[%s17735_s3 + $0x70] ss:$8 sps:$4 sm:$0xff]  }
 0x320   : > { %v15478_v47 = vadd.f32 %v4453_v19, %v3248_v58  ;;  %5720 = vmatpush1.bf16.msra.mxu0 %v13798_v20 }
 0x321   : > { %v3258_v23 = vpop.f32.mrb[56].mxu0 }
 0x322   : > { %v3260_v21 = vpop.f32.mrb[57].mxu0 }
 0x323   : > { %v4454_v36 = vrot.slane %v3260_v21, 1  ;;  %v3262_v37 = vpop.f32.mrb[58].mxu0 }
 0x324   : > { %v3264_v51 = vpop.f32.mrb[59].mxu0 }
 0x325   : > { %v4455_v1 = vsel %vm4398_vm0, %v4452_v56, %v4454_v36  ;;  %v4456_v6 = vrot.slane %v3264_v51, 1 }
 0x326   : > { %v15481_v10 = vadd.f32 %v4455_v1, %v3252_v62  ;;  %4142 = vmatmul.mubr.bf16.gmra.mrb[100].mxu1 %v15089_v42 }
 0x327   : > { %v4457_v32 = vsel %vm4398_vm0, %v4454_v36, %v4456_v6  ;;  %4149 = vmatprep.mubr.bf16.mxu1 %v15092_v44 }
 0x328   : > { %v15486_v50 = vadd.f32 %v4457_v32, %v3258_v23 }
 0x329   : > { %v3268_v60 = vpop.f32.mrb[60].mxu0 }
 0x32a   : > { %v3270_v58 = vpop.f32.mrb[61].mxu0 }
 0x32b   : > { %v4458_v62 = vrot.slane %v3270_v58, 1  ;;  %v3272_v46 = vpop.f32.mrb[62].mxu0 }
 0x32c   : > { %v3274_v56 = vpop.f32.mrb[63].mxu0 }
 0x32d   : > { %v4459_v42 = vsel %vm4398_vm0, %v4456_v6, %v4458_v62  ;;  %v4460_v19 = vrot.slane %v3274_v56, 1 }
 0x32e   : > { %v15495_v44 = vadd.f32 %v4459_v42, %v3262_v37  ;;  %4150 = vmatmul.mubr.bf16.gmra.mrb[104].mxu1 %v15099_v52  ;;  %v17997_v42 = vld [vmem:[#allocation3_spill] sm:$0xff] }
 0x32f   : > { %v4461_v23 = vsel %vm4398_vm0, %v4458_v62, %v4460_v19  ;;  %4157 = vmatprep.mubr.bf16.mxu1 %v15102_v12 }
 0x330   : > { %v15500_v21 = vadd.f32 %v4461_v23, %v3268_v60  ;;  %v17996_v60 = vld [vmem:[#allocation2_spill] sm:$0xff] }
 0x331   : > { %v3278_v36 = vpop.f32.mrb[64].mxu0 }
 0x332   : > { %17993 = vst [vmem:[#allocation93_spill] sm:$0xff] %v15500_v21  ;;  %v3280_v51 = vpop.f32.mrb[65].mxu0  ;;  %v17998_v21 = vld [vmem:[#allocation4_spill] sm:$0xff] }
 0x333   : > { %v4462_v1 = vrot.slane %v3280_v51, 1  ;;  %v3282_v32 = vpop.f32.mrb[66].mxu0 }
 0x334   : > { %v3284_v58 = vpop.f32.mrb[67].mxu0 }
 0x335   : > { %v4463_v31 = vsel %vm4398_vm0, %v4460_v19, %v4462_v1  ;;  %v4464_v6 = vrot.slane %v3284_v58, 1 }
 0x336   : > { %v15503_v56 = vadd.f32 %v4463_v31, %v3272_v46  ;;  %4158 = vmatmul.mubr.bf16.gmra.mrb[108].mxu1 %v15113_v35  ;;  %v17999_v31 = vld [vmem:[#allocation5_spill] sm:$0xff] }
 0x337   : > { %v4465_v52 = vsel %vm4398_vm0, %v4462_v1, %v4464_v6  ;;  %4165 = vmatprep.mubr.bf16.mxu1 %v15116_v38 }
 0x338   : > { %17994 = vst [vmem:[#allocation94_spill] sm:$0xff] %v15503_v56  ;;  %v15508_v37 = vadd.f32 %v4465_v52, %v3278_v36 }
 0x339   : > { %v3288_v12 = vpop.f32.mrb[68].mxu0 }
 0x33a   : > { %17995 = vst [vmem:[#allocation95_spill] sm:$0xff] %v15508_v37  ;;  %v12758_v20 = vadd.f32 %v3288_v12, %v17996_v60  ;;  %v3290_v62 = vpop.f32.mrb[69].mxu0  ;;  %v18000_v60 = vld [vmem:[#allocation6_spill] sm:$0xff] }
 0x33b   : > { %v12759_v23 = vadd.f32 %v3290_v62, %v17997_v42  ;;  %v3292_v51 = vpop.f32.mrb[70].mxu0  ;;  %v18001_v42 = vld [vmem:[#allocation7_spill] sm:$0xff] }
 0x33c   : > { %v12760_v19 = vadd.f32 %v3292_v51, %v17998_v21  ;;  %v3294_v58 = vpop.f32.mrb[71].mxu0 }
 0x33d   : > { %v4466_v46 = vrot.slane %v12759_v23, 1  ;;  %v12761_v56 = vadd.f32 %v3294_v58, %v17999_v31  ;;  %v18002_v58 = vld [vmem:[#allocation8_spill] sm:$0xff] }
 0x33e   : > { %4166 = vmatmul.mubr.bf16.gmra.mrb[112].mxu1 %v15123_v53 }
 0x33f   : > { %v4467_v35 = vsel %vm4398_vm0, %v4464_v6, %v4466_v46  ;;  %v4468_v38 = vrot.slane %v12761_v56, 1  ;;  %4173 = vmatprep.mubr.bf16.mxu1 %v15126_v5  ;;  %v18003_v56 = vld [vmem:[#allocation9_spill] sm:$0xff] }
 0x340   : > { %v15517_v36 = vadd.f32 %v4467_v35, %v3282_v32 }
 0x341   : > { %v4469_v1 = vsel %vm4398_vm0, %v4466_v46, %v4468_v38  ;;  %v3298_v52 = vpop.f32.mrb[72].mxu0 }
 0x342   : > { %v15520_v12 = vadd.f32 %v12758_v20, %v4469_v1  ;;  %v12762_v21 = vadd.f32 %v3298_v52, %v18000_v60  ;;  %v3300_v62 = vpop.f32.mrb[73].mxu0  ;;  %v18004_v52 = vld [vmem:[#allocation10_spill] sm:$0xff] }
 0x343   : > { %v12763_v23 = vadd.f32 %v3300_v62, %v18001_v42  ;;  %v3302_v51 = vpop.f32.mrb[74].mxu0  ;;  %v18005_v42 = vld [vmem:[#allocation11_spill] sm:$0xff] }
 0x344   : > { %v12764_v53 = vadd.f32 %v3302_v51, %v18002_v58  ;;  %v3304_v31 = vpop.f32.mrb[75].mxu0  ;;  %v18006_v58 = vld [vmem:[#allocation12_spill] sm:$0xff] }
 0x345   : > { %v4470_v6 = vrot.slane %v12763_v23, 1  ;;  %v12765_v37 = vadd.f32 %v3304_v31, %v18003_v56 }
 0x346   : > { %4174 = vmatmul.mubr.bf16.gmra.mrb[116].mxu1 %v15142_v9 }
 0x347   : > { %v4471_v5 = vsel %vm4398_vm0, %v4468_v38, %v4470_v6  ;;  %v4472_v32 = vrot.slane %v12765_v37, 1  ;;  %4181 = vmatprep.mubr.bf16.mxu1 %v15146_v15  ;;  %v18007_v37 = vld [vmem:[#allocation13_spill] sm:$0xff] }
 0x348   : > { %v15529_v20 = vadd.f32 %v12760_v19, %v4471_v5 }
 0x349   : > { %v4473_v46 = vsel %vm4398_vm0, %v4470_v6, %v4472_v32  ;;  %v3308_v35 = vpop.f32.mrb[76].mxu0 }
 0x34a   : > { %v15532_v1 = vadd.f32 %v12762_v21, %v4473_v46  ;;  %v12766_v60 = vadd.f32 %v3308_v35, %v18004_v52  ;;  %v3310_v62 = vpop.f32.mrb[77].mxu0  ;;  %v18008_v35 = vld [vmem:[#allocation14_spill] sm:$0xff] }
 0x34b   : > { %v12767_v23 = vadd.f32 %v3310_v62, %v18005_v42  ;;  %v3312_v51 = vpop.f32.mrb[78].mxu0  ;;  %v18009_v42 = vld [vmem:[#allocation15_spill] sm:$0xff] }
 0x34c   : > { %v12768_v9 = vadd.f32 %v3312_v51, %v18006_v58  ;;  %v3314_v31 = vpop.f32.mrb[79].mxu0  ;;  %v18010_v58 = vld [vmem:[#allocation16_spill] sm:$0xff] }
 0x34d   : > { %v4474_v38 = vrot.slane %v12767_v23, 1  ;;  %v12769_v56 = vadd.f32 %v3314_v31, %v18007_v37  ;;  %v18011_v37 = vld [vmem:[#allocation17_spill] sm:$0xff] }
 0x34e   : > { %4182 = vmatmul.mubr.bf16.gmra.mrb[120].mxu1 %v15153_v54 }
 0x34f   : > { %v4475_v15 = vsel %vm4398_vm0, %v4472_v32, %v4474_v38  ;;  %v4476_v19 = vrot.slane %v12769_v56, 1  ;;  %4189 = vmatprep.mubr.bf16.mxu1 %v15156_v33 }
 0x350   : > { %v15541_v21 = vadd.f32 %v12764_v53, %v4475_v15 }
 0x351   : > { %v4477_v6 = vsel %vm4398_vm0, %v4474_v38, %v4476_v19  ;;  %v3318_v5 = vpop.f32.mrb[80].mxu0 }
 0x352   : > { %v15544_v46 = vadd.f32 %v12766_v60, %v4477_v6  ;;  %v12770_v52 = vadd.f32 %v3318_v5, %v18008_v35  ;;  %v3320_v62 = vpop.f32.mrb[81].mxu0  ;;  %v18012_v5 = vld [vmem:[#allocation18_spill] sm:$0xff] }
 0x353   : > { %v12771_v23 = vadd.f32 %v3320_v62, %v18009_v42  ;;  %v3322_v51 = vpop.f32.mrb[82].mxu0  ;;  %v18013_v42 = vld [vmem:[#allocation19_spill] sm:$0xff] }
 0x354   : > { %v12772_v54 = vadd.f32 %v3322_v51, %v18010_v58  ;;  %v3324_v31 = vpop.f32.mrb[83].mxu0  ;;  %v18014_v58 = vld [vmem:[#allocation20_spill] sm:$0xff] }
 0x355   : > { %v4478_v32 = vrot.slane %v12771_v23, 1  ;;  %v12773_v56 = vadd.f32 %v3324_v31, %v18011_v37  ;;  %v18015_v37 = vld [vmem:[#allocation21_spill] sm:$0xff] }
 0x356   : > { %4190 = vmatmul.mubr.bf16.gmra.mrb[124].mxu1 %v15166_v59 }
 0x357   : > { %v4479_v33 = vsel %vm4398_vm0, %v4476_v19, %v4478_v32  ;;  %v4480_v53 = vrot.slane %v12773_v56, 1  ;;  %4197 = vmatprep.mubr.bf16.mxu1 %v15169_v4 }
 0x358   : > { %v15553_v60 = vadd.f32 %v12768_v9, %v4479_v33 }
 0x359   : > { %v4481_v38 = vsel %vm4398_vm0, %v4478_v32, %v4480_v53  ;;  %v3328_v15 = vpop.f32.mrb[84].mxu0 }
 0x35a   : > { %v15556_v6 = vadd.f32 %v12770_v52, %v4481_v38  ;;  %v12774_v35 = vadd.f32 %v3328_v15, %v18012_v5  ;;  %v3330_v62 = vpop.f32.mrb[85].mxu0  ;;  %v18016_v15 = vld [vmem:[#allocation22_spill] sm:$0xff] }
 0x35b   : > { %v12775_v23 = vadd.f32 %v3330_v62, %v18013_v42  ;;  %v3332_v51 = vpop.f32.mrb[86].mxu0  ;;  %v18017_v42 = vld [vmem:[#allocation23_spill] sm:$0xff] }
 0x35c   : > { %v12776_v59 = vadd.f32 %v3332_v51, %v18014_v58  ;;  %v3334_v31 = vpop.f32.mrb[87].mxu0  ;;  %v18018_v58 = vld [vmem:[#allocation24_spill] sm:$0xff] }
 0x35d   : > { %v4482_v19 = vrot.slane %v12775_v23, 1  ;;  %v12777_v56 = vadd.f32 %v3334_v31, %v18015_v37  ;;  %v18019_v37 = vld [vmem:[#allocation25_spill] sm:$0xff] }
 0x35e   : > { %4198 = vmatmul.mubr.bf16.gmra.mrb[128].mxu1 %v15176_v39 }
 0x35f   : > { %v4483_v4 = vsel %vm4398_vm0, %v4480_v53, %v4482_v19  ;;  %v4484_v9 = vrot.slane %v12777_v56, 1  ;;  %4205 = vmatprep.mubr.bf16.mxu1 %v15179_v26 }
 0x360   : > { %v15565_v52 = vadd.f32 %v12772_v54, %v4483_v4 }
 0x361   : > { %v4485_v32 = vsel %vm4398_vm0, %v4482_v19, %v4484_v9  ;;  %v3338_v33 = vpop.f32.mrb[88].mxu0 }
 0x362   : > { %v15568_v38 = vadd.f32 %v12774_v35, %v4485_v32  ;;  %v12778_v5 = vadd.f32 %v3338_v33, %v18016_v15  ;;  %v3340_v62 = vpop.f32.mrb[89].mxu0  ;;  %v18020_v33 = vld [vmem:[#allocation26_spill] sm:$0xff] }
 0x363   : > { %v12779_v23 = vadd.f32 %v3340_v62, %v18017_v42  ;;  %v3342_v51 = vpop.f32.mrb[90].mxu0  ;;  %v18021_v42 = vld [vmem:[#allocation27_spill] sm:$0xff] }
 0x364   : > { %v12780_v39 = vadd.f32 %v3342_v51, %v18018_v58  ;;  %v3344_v31 = vpop.f32.mrb[91].mxu0  ;;  %v18022_v58 = vld [vmem:[#allocation28_spill] sm:$0xff] }
 0x365   : > { %v4486_v53 = vrot.slane %v12779_v23, 1  ;;  %v12781_v56 = vadd.f32 %v3344_v31, %v18019_v37  ;;  %v18023_v37 = vld [vmem:[#allocation29_spill] sm:$0xff] }
 0x366   : > { %4206 = vmatmul.mubr.bf16.gmra.mrb[132].mxu1 %v15192_v29 }
 0x367   : > { %v4487_v26 = vsel %vm4398_vm0, %v4484_v9, %v4486_v53  ;;  %v4488_v54 = vrot.slane %v12781_v56, 1  ;;  %4213 = vmatprep.mubr.bf16.mxu1 %v15195_v27 }
 0x368   : > { %v15577_v35 = vadd.f32 %v12776_v59, %v4487_v26 }
 0x369   : > { %v4489_v19 = vsel %vm4398_vm0, %v4486_v53, %v4488_v54  ;;  %v3348_v4 = vpop.f32.mrb[92].mxu0 }
 0x36a   : > { %v15580_v32 = vadd.f32 %v12778_v5, %v4489_v19  ;;  %v12782_v15 = vadd.f32 %v3348_v4, %v18020_v33  ;;  %v3350_v62 = vpop.f32.mrb[93].mxu0  ;;  %v18024_v4 = vld [vmem:[#allocation30_spill] sm:$0xff] }
 0x36b   : > { %v12783_v23 = vadd.f32 %v3350_v62, %v18021_v42  ;;  %v3352_v51 = vpop.f32.mrb[94].mxu0  ;;  %v18025_v42 = vld [vmem:[#allocation31_spill] sm:$0xff] }
 0x36c   : > { %v12784_v29 = vadd.f32 %v3352_v51, %v18022_v58  ;;  %v3354_v31 = vpop.f32.mrb[95].mxu0  ;;  %v18026_v58 = vld [vmem:[#allocation32_spill] sm:$0xff] }
 0x36d   : > { %v4490_v9 = vrot.slane %v12783_v23, 1  ;;  %v12785_v56 = vadd.f32 %v3354_v31, %v18023_v37  ;;  %v18027_v37 = vld [vmem:[#allocation33_spill] sm:$0xff] }
 0x36e   : > { %4214 = vmatmul.mubr.bf16.gmra.mrb[136].mxu1 %v15202_v18 }
 0x36f   : > { %v4491_v27 = vsel %vm4398_vm0, %v4488_v54, %v4490_v9  ;;  %v4492_v59 = vrot.slane %v12785_v56, 1  ;;  %4221 = vmatprep.mubr.bf16.mxu1 %v15205_v24 }
 0x370   : > { %v15589_v5 = vadd.f32 %v12780_v39, %v4491_v27 }
 0x371   : > { %v4493_v53 = vsel %vm4398_vm0, %v4490_v9, %v4492_v59  ;;  %v3358_v26 = vpop.f32.mrb[96].mxu0 }
 0x372   : > { %v15592_v19 = vadd.f32 %v12782_v15, %v4493_v53  ;;  %v12786_v33 = vadd.f32 %v3358_v26, %v18024_v4  ;;  %v3360_v62 = vpop.f32.mrb[97].mxu0  ;;  %v18030_v26 = vld [vmem:[#allocation34_spill] sm:$0xff] }
 0x373   : > { %v12787_v23 = vadd.f32 %v3360_v62, %v18025_v42  ;;  %v3362_v51 = vpop.f32.mrb[98].mxu0  ;;  %v18031_v42 = vld [vmem:[#allocation35_spill] sm:$0xff] }
 0x374   : > { %v12788_v18 = vadd.f32 %v3362_v51, %v18026_v58  ;;  %v3364_v31 = vpop.f32.mrb[99].mxu0  ;;  %v18032_v58 = vld [vmem:[#allocation36_spill] sm:$0xff] }
 0x375   : > { %v4494_v54 = vrot.slane %v12787_v23, 1  ;;  %v12789_v56 = vadd.f32 %v3364_v31, %v18027_v37  ;;  %v18033_v37 = vld [vmem:[#allocation37_spill] sm:$0xff] }
 0x376   : > { %4222 = vmatmul.mubr.bf16.gmra.mrb[140].mxu1 %v15212_v28 }
 0x377   : > { %v4495_v24 = vsel %vm4398_vm0, %v4492_v59, %v4494_v54  ;;  %v4496_v39 = vrot.slane %v12789_v56, 1  ;;  %4229 = vmatprep.mubr.bf16.mxu1 %v15215_v43  ;;  %v18034_v43 = vld [vmem:[#allocation71_spill] sm:$0xff] }
 0x378   : > { %v15601_v15 = vadd.f32 %v12784_v29, %v4495_v24  ;;  %v18035_v24 = vld [vmem:[#allocation72_spill] sm:$0xff] }
 0x379   : > { %v4497_v9 = vsel %vm4398_vm0, %v4494_v54, %v4496_v39  ;;  %v3368_v27 = vpop.f32.mrb[100].mxu0 }
 0x37a   : > { %18028 = vst [vmem:[#allocation2_spill] sm:$0xff] %v15601_v15  ;;  %v15604_v53 = vadd.f32 %v12786_v33, %v4497_v9  ;;  %v12790_v4 = vadd.f32 %v3368_v27, %v18030_v26  ;;  %v3370_v62 = vpop.f32.mrb[101].mxu0 }
 0x37b   : > { %v12791_v23 = vadd.f32 %v3370_v62, %v18031_v42  ;;  %v3372_v51 = vpop.f32.mrb[102].mxu0  ;;  %v18038_v62 = vld [vmem:[#allocation38_spill] sm:$0xff] }
 0x37c   : > { %18029 = vst [vmem:[#allocation3_spill] sm:$0xff] %v15604_v53  ;;  %v12792_v28 = vadd.f32 %v3372_v51, %v18032_v58  ;;  %v3374_v31 = vpop.f32.mrb[103].mxu0 }
 0x37d   : > { %v4498_v59 = vrot.slane %v12791_v23, 1  ;;  %v12793_v56 = vadd.f32 %v3374_v31, %v18033_v37  ;;  %v18039_v23 = vld [vmem:[#allocation39_spill] sm:$0xff]  ;;  %v18040_v37 = vld [vmem:[#allocation40_spill] sm:$0xff] }
 0x37e   : > { %4230 = vmatmul.mubr.bf16.gmra.mrb[144].mxu1 %v18034_v43 }
 0x37f   : > { %v4499_v29 = vsel %vm4398_vm0, %v4496_v39, %v4498_v59  ;;  %v4500_v54 = vrot.slane %v12793_v56, 1  ;;  %4237 = vmatprep.mubr.bf16.mxu1 %v18035_v24  ;;  %v18041_v56 = vld [vmem:[#allocation41_spill] sm:$0xff] }
 0x380   : > { %v15613_v33 = vadd.f32 %v12788_v18, %v4499_v29  ;;  %v18042_v24 = vld [vmem:[#allocation73_spill] sm:$0xff]  ;;  %v18043_v29 = vld [vmem:[#allocation74_spill] sm:$0xff] }
 0x381   : > { %v4501_v9 = vsel %vm4398_vm0, %v4498_v59, %v4500_v54  ;;  %v3378_v27 = vpop.f32.mrb[104].mxu0 }
 0x382   : > { %18036 = vst [vmem:[#allocation4_spill] sm:$0xff] %v15613_v33  ;;  %v15616_v26 = vadd.f32 %v12790_v4, %v4501_v9  ;;  %v12794_v42 = vadd.f32 %v3378_v27, %v18038_v62  ;;  %v3380_v51 = vpop.f32.mrb[105].mxu0 }
 0x383   : > { %v12795_v58 = vadd.f32 %v3380_v51, %v18039_v23  ;;  %v3382_v31 = vpop.f32.mrb[106].mxu0  ;;  %v18046_v51 = vld [vmem:[#allocation42_spill] sm:$0xff] }
 0x384   : > { %18037 = vst [vmem:[#allocation5_spill] sm:$0xff] %v15616_v26  ;;  %v12796_v43 = vadd.f32 %v3382_v31, %v18040_v37  ;;  %v3384_v53 = vpop.f32.mrb[107].mxu0 }
 0x385   : > { %v4502_v39 = vrot.slane %v12795_v58, 1  ;;  %v12797_v15 = vadd.f32 %v3384_v53, %v18041_v56  ;;  %v18047_v58 = vld [vmem:[#allocation43_spill] sm:$0xff]  ;;  %v18048_v56 = vld [vmem:[#allocation44_spill] sm:$0xff] }
 0x386   : > { %4238 = vmatmul.mubr.bf16.gmra.mrb[148].mxu1 %v18042_v24 }
 0x387   : > { %v4503_v18 = vsel %vm4398_vm0, %v4500_v54, %v4502_v39  ;;  %v4504_v59 = vrot.slane %v12797_v15, 1  ;;  %4245 = vmatprep.mubr.bf16.mxu1 %v18043_v29  ;;  %v18049_v15 = vld [vmem:[#allocation45_spill] sm:$0xff] }
 0x388   : > { %v15625_v4 = vadd.f32 %v12792_v28, %v4503_v18  ;;  %v18050_v29 = vld [vmem:[#allocation53_spill] sm:$0xff]  ;;  %v18051_v18 = vld [vmem:[#allocation75_spill] sm:$0xff] }
 0x389   : > { %v4505_v9 = vsel %vm4398_vm0, %v4502_v39, %v4504_v59  ;;  %v3388_v27 = vpop.f32.mrb[108].mxu0 }
 0x38a   : > { %18044 = vst [vmem:[#allocation6_spill] sm:$0xff] %v15625_v4  ;;  %v15628_v62 = vadd.f32 %v12794_v42, %v4505_v9  ;;  %v12798_v23 = vadd.f32 %v3388_v27, %v18046_v51  ;;  %v3390_v31 = vpop.f32.mrb[109].mxu0 }
 0x38b   : > { %v12799_v37 = vadd.f32 %v3390_v31, %v18047_v58  ;;  %v3392_v53 = vpop.f32.mrb[110].mxu0  ;;  %v18054_v31 = vld [vmem:[#allocation46_spill] sm:$0xff] }
 0x38c   : > { %18045 = vst [vmem:[#allocation7_spill] sm:$0xff] %v15628_v62  ;;  %v12800_v24 = vadd.f32 %v3392_v53, %v18048_v56  ;;  %v3394_v26 = vpop.f32.mrb[111].mxu0 }
 0x38d   : > { %v4506_v54 = vrot.slane %v12799_v37, 1  ;;  %v12801_v33 = vadd.f32 %v3394_v26, %v18049_v15  ;;  %v18055_v37 = vld [vmem:[#allocation47_spill] sm:$0xff]  ;;  %v18056_v15 = vld [vmem:[#allocation48_spill] sm:$0xff] }
 0x38e   : > { %4246 = vmatmul.mubr.bf16.gmra.mrb[152].mxu1 %v18050_v29 }
 0x38f   : > { %v4507_v28 = vsel %vm4398_vm0, %v4504_v59, %v4506_v54  ;;  %v4508_v39 = vrot.slane %v12801_v33, 1  ;;  %4253 = vmatprep.mubr.bf16.mxu1 %v18051_v18  ;;  %v18057_v33 = vld [vmem:[#allocation49_spill] sm:$0xff] }
 0x390   : > { %v15637_v42 = vadd.f32 %v12796_v43, %v4507_v28  ;;  %v18058_v18 = vld [vmem:[#allocation57_spill] sm:$0xff]  ;;  %v18059_v28 = vld [vmem:[#allocation59_spill] sm:$0xff] }
 0x391   : > { %v4509_v9 = vsel %vm4398_vm0, %v4506_v54, %v4508_v39  ;;  %v3398_v27 = vpop.f32.mrb[112].mxu0 }
 0x392   : > { %18052 = vst [vmem:[#allocation8_spill] sm:$0xff] %v15637_v42  ;;  %v15640_v51 = vadd.f32 %v12798_v23, %v4509_v9  ;;  %v12802_v58 = vadd.f32 %v3398_v27, %v18054_v31  ;;  %v3400_v53 = vpop.f32.mrb[113].mxu0 }
 0x393   : > { %v12803_v56 = vadd.f32 %v3400_v53, %v18055_v37  ;;  %v3402_v26 = vpop.f32.mrb[114].mxu0  ;;  %v18062_v53 = vld [vmem:[#allocation50_spill] sm:$0xff] }
 0x394   : > { %18053 = vst [vmem:[#allocation9_spill] sm:$0xff] %v15640_v51  ;;  %v12804_v29 = vadd.f32 %v3402_v26, %v18056_v15  ;;  %v3404_v62 = vpop.f32.mrb[115].mxu0 }
 0x395   : > { %v4510_v59 = vrot.slane %v12803_v56, 1  ;;  %v12805_v4 = vadd.f32 %v3404_v62, %v18057_v33  ;;  %v18063_v56 = vld [vmem:[#allocation51_spill] sm:$0xff]  ;;  %v18064_v33 = vld [vmem:[#allocation52_spill] sm:$0xff] }
 0x396   : > { %4254 = vmatmul.mubr.bf16.gmra.mrb[156].mxu1 %v18058_v18 }
 0x397   : > { %v4511_v43 = vsel %vm4398_vm0, %v4508_v39, %v4510_v59  ;;  %v4512_v54 = vrot.slane %v12805_v4, 1  ;;  %4261 = vmatprep.mubr.bf16.mxu1 %v18059_v28  ;;  %v18065_v4 = vld [vmem:[#allocation54_spill] sm:$0xff]  ;;  %v18066_v28 = vld [vmem:[#allocation63_spill] sm:$0xff] }
 0x398   : > { %v15649_v23 = vadd.f32 %v12800_v24, %v4511_v43  ;;  %v18067_v43 = vld [vmem:[#allocation76_spill] sm:$0xff] }
 0x399   : > { %v4513_v9 = vsel %vm4398_vm0, %v4510_v59, %v4512_v54  ;;  %v3408_v27 = vpop.f32.mrb[116].mxu0 }
 0x39a   : > { %18060 = vst [vmem:[#allocation10_spill] sm:$0xff] %v15649_v23  ;;  %v15652_v31 = vadd.f32 %v12802_v58, %v4513_v9  ;;  %v12806_v37 = vadd.f32 %v3408_v27, %v18062_v53  ;;  %v3410_v26 = vpop.f32.mrb[117].mxu0 }
 0x39b   : > { %v12807_v15 = vadd.f32 %v3410_v26, %v18063_v56  ;;  %v3412_v62 = vpop.f32.mrb[118].mxu0  ;;  %v18070_v26 = vld [vmem:[#allocation55_spill] sm:$0xff] }
 0x39c   : > { %18061 = vst [vmem:[#allocation11_spill] sm:$0xff] %v15652_v31  ;;  %v12808_v18 = vadd.f32 %v3412_v62, %v18064_v33  ;;  %v3414_v51 = vpop.f32.mrb[119].mxu0 }
 0x39d   : > { %v4514_v39 = vrot.slane %v12807_v15, 1  ;;  %v12809_v42 = vadd.f32 %v3414_v51, %v18065_v4  ;;  %v18071_v15 = vld [vmem:[#allocation56_spill] sm:$0xff]  ;;  %v18072_v4 = vld [vmem:[#allocation58_spill] sm:$0xff] }
 0x39e   : > { %4262 = vmatmul.mubr.bf16.gmra.mrb[160].mxu1 %v18066_v28 }
 0x39f   : > { %v4515_v24 = vsel %vm4398_vm0, %v4512_v54, %v4514_v39  ;;  %v4516_v59 = vrot.slane %v12809_v42, 1  ;;  %4269 = vmatprep.mubr.bf16.mxu1 %v18067_v43  ;;  %v18073_v42 = vld [vmem:[#allocation60_spill] sm:$0xff] }
 0x3a0   : > { %v15661_v58 = vadd.f32 %v12804_v29, %v4515_v24  ;;  %v18074_v43 = vld [vmem:[#allocation68_spill] sm:$0xff]  ;;  %v18075_v24 = vld [vmem:[#allocation77_spill] sm:$0xff] }
 0x3a1   : > { %v4517_v9 = vsel %vm4398_vm0, %v4514_v39, %v4516_v59  ;;  %v3418_v27 = vpop.f32.mrb[120].mxu0 }
 0x3a2   : > { %18068 = vst [vmem:[#allocation12_spill] sm:$0xff] %v15661_v58  ;;  %v15664_v53 = vadd.f32 %v12806_v37, %v4517_v9  ;;  %v12810_v56 = vadd.f32 %v3418_v27, %v18070_v26  ;;  %v3420_v62 = vpop.f32.mrb[121].mxu0 }
 0x3a3   : > { %v12811_v33 = vadd.f32 %v3420_v62, %v18071_v15  ;;  %v3422_v51 = vpop.f32.mrb[122].mxu0  ;;  %v18077_v62 = vld [vmem:[#allocation61_spill] sm:$0xff] }
 0x3a4   : > { %18069 = vst [vmem:[#allocation13_spill] sm:$0xff] %v15664_v53  ;;  %v12812_v28 = vadd.f32 %v3422_v51, %v18072_v4  ;;  %v3424_v31 = vpop.f32.mrb[123].mxu0 }
 0x3a5   : > { %v4518_v54 = vrot.slane %v12811_v33, 1  ;;  %v12813_v23 = vadd.f32 %v3424_v31, %v18073_v42  ;;  %v18078_v33 = vld [vmem:[#allocation62_spill] sm:$0xff]  ;;  %v18079_v42 = vld [vmem:[#allocation64_spill] sm:$0xff] }
 0x3a6   : > { %4270 = vmatmul.mubr.bf16.gmra.mrb[164].mxu1 %v18074_v43 }
 0x3a7   : > { %v4519_v29 = vsel %vm4398_vm0, %v4516_v59, %v4518_v54  ;;  %v4520_v39 = vrot.slane %v12813_v23, 1  ;;  %4277 = vmatprep.mubr.bf16.mxu1 %v18075_v24  ;;  %v18080_v23 = vld [vmem:[#allocation65_spill] sm:$0xff] }
 0x3a8   : > { %v15673_v37 = vadd.f32 %v12808_v18, %v4519_v29  ;;  %v18081_v24 = vld [vmem:[#allocation69_spill] sm:$0xff]  ;;  %v18082_v29 = vld [vmem:[#allocation78_spill] sm:$0xff] }
 0x3a9   : > { %v4521_v9 = vsel %vm4398_vm0, %v4518_v54, %v4520_v39  ;;  %v3428_v27 = vpop.f32.mrb[124].mxu0 }
 0x3aa   : > { %v15676_v26 = vadd.f32 %v12810_v56, %v4521_v9  ;;  %v12814_v15 = vadd.f32 %v3428_v27, %v18077_v62  ;;  %v3430_v51 = vpop.f32.mrb[125].mxu0 }
 0x3ab   : > { %v12815_v4 = vadd.f32 %v3430_v51, %v18078_v33  ;;  %v3432_v31 = vpop.f32.mrb[126].mxu0  ;;  %v18084_v33 = vld [vmem:[#allocation66_spill] sm:$0xff] }
 0x3ac   : > { %18076 = vst [vmem:[#allocation14_spill] sm:$0xff] %v15676_v26  ;;  %v12816_v43 = vadd.f32 %v3432_v31, %v18079_v42  ;;  %v3434_v53 = vpop.f32.mrb[127].mxu0 }
 0x3ad   : > { %v4522_v59 = vrot.slane %v12815_v4, 1  ;;  %v12817_v58 = vadd.f32 %v3434_v53, %v18080_v23  ;;  %v18085_v53 = vld [vmem:[#allocation67_spill] sm:$0xff] }
 0x3ae   : > { %4278 = vmatmul.mubr.bf16.gmra.mrb[168].mxu1 %v18081_v24 }
 0x3af   : > { %v4523_v18 = vsel %vm4398_vm0, %v4520_v39, %v4522_v59  ;;  %v4524_v54 = vrot.slane %v12817_v58, 1  ;;  %4285 = vmatprep.mubr.bf16.mxu1 %v18082_v29 }
 0x3b0   : > { %v15685_v56 = vadd.f32 %v12812_v28, %v4523_v18 }
 0x3b1   : > { %v4525_v9 = vsel %vm4398_vm0, %v4522_v59, %v4524_v54  ;;  %v3438_v27 = vpop.f32.mrb[132].mxu0  ;;  %v4071_v62 = vpop.f32.mrb[64].mxu1 }
 0x3b2   : > { %18083 = vst [vmem:[#allocation15_spill] sm:$0xff] %v15685_v56  ;;  %v15688_v51 = vadd.f32 %v12814_v15, %v4525_v9  ;;  %v3439_v31 = vadd.f32 %v3438_v27, %v18084_v33  ;;  %v3440_v4 = vpop.f32.mrb[133].mxu0  ;;  %v4073_v42 = vpop.f32.mrb[65].mxu1  ;;  %v4724_v58 = vrot.slane %v4071_v62, 2  ;;  %v18086_v56 = vld [vmem:[#allocation79_spill] sm:$0xff]  ;;  %v18087_v27 = vld [vmem:[#allocation81_spill] sm:$0xff] }
 0x3b3   : > { %v3441_v23 = vadd.f32 %v3440_v4, %v18085_v53  ;;  %v4074_v24 = vpop.f32.mrb[66].mxu1  ;;  %v3442_v39 = vpop.f32.mrb[134].mxu0  ;;  %v18088_v42 = vld [vmem:[#allocation80_spill] sm:$0xff]  ;;  %v5120_v4 = vlaneseq }
 0x3b4   : > { %v4725_v26 = vrot.slane %v4074_v24, 2  ;;  %v4076_v29 = vpop.f32.mrb[67].mxu1  ;;  %v3443_v28 = vpop.f32.mrb[135].mxu0 }
 0x3b5   : > { %v4526_v18 = vrot.slane %v3441_v23, 1  ;;  %v15704_v23 = vld [vmem:[%s17734_s2] ss:$0 sm:$0xff] }
 0x3b6   : > { %v4726_v59 = vsel %vm4723_vm1, %v4724_v58, %v4725_v26  ;;  %4286 = vmatmul.mubr.bf16.gmra.mrb[172].mxu1 %v18086_v56  ;;  %v15706_v58 = vshrl.u32 %v5120_v4, 7 }
 0x3b7   : > { %v4527_v15 = vsel %vm4398_vm0, %v4524_v54, %v4526_v18  ;;  %v15695_v9 = vadd.f32 %v4526_v18, %v3439_v31  ;;  %v4918_v33 = vadd.f32 %v4726_v59, %v18087_v27  ;;  %4293 = vmatprep.mubr.bf16.mxu1 %v18088_v42  ;;  %v18089_v59 = vld [vmem:[#allocation82_spill] sm:$0xff] }
 0x3b8   : > { %v15699_v53 = vadd.f32 %v12816_v43, %v4527_v15  ;;  %v18090_v27 = vld [vmem:[#allocation70_spill] sm:$0xff]  ;;  %vm5186_vm2 = vcmp.ge.s32.totalorder %v15706_v58, 1 }
 0x3b9   : > { %v4079_v62 = vpop.f32.mrb[68].mxu1  ;;  %v4990_v28 = vadd.f32 %v15704_v23, %v4918_v33  ;;  %vm12204_vm4 = vmpackc.low %vm13847_vm3, %vm5186_vm2 }
 0x3ba   : > { %v4727_v24 = vrot.slane %v4079_v62, 2  ;;  %v4081_v39 = vpop.f32.mrb[69].mxu1  ;;  %v18091_v62 = vld [vmem:[#allocation83_spill] sm:$0xff] }
 0x3bb   : > { %v4082_v56 = vpop.f32.mrb[70].mxu1  ;;  %v5055_v4 = vmax.f32 %v4990_v28, 0.0  ;;  %v18092_v28 = vld [vmem:[#allocation84_spill] sm:$0xff] }
 0x3bc   : > { %v4728_v54 = vsel %vm4723_vm1, %v4725_v26, %v4727_v24  ;;  %v4729_v31 = vrot.slane %v4082_v56, 2  ;;  %v4084_v29 = vpop.f32.mrb[71].mxu1 }
 0x3bd   : > { %v4919_v43 = vadd.f32 %v4728_v54, %v15331_v0 }
 0x3be   : > { %v4730_v18 = vsel %vm4723_vm1, %v4727_v24, %v4729_v31  ;;  %4294 = vmatmul.mubr.bf16.gmra.mrb[176].mxu1 %v18089_v59 }
 0x3bf   : > { %v4991_v15 = vadd.f32 %v15704_v23, %v4919_v43  ;;  %v4920_v42 = vadd.f32 %v4730_v18, %v18090_v27  ;;  %4301 = vmatprep.mubr.bf16.mxu1 %v18091_v62 }
 0x3c1   : > { %v5056_v26 = vmax.f32 %v4991_v15, 0.0  ;;  %v4087_v39 = vpop.f32.mrb[72].mxu1  ;;  %v4992_v18 = vadd.f32 %v15704_v23, %v4920_v42  ;;  %v18093_v15 = vld [vmem:[#allocation86_spill] sm:$0xff] }
 0x3c2   : > { %v4731_v56 = vrot.slane %v4087_v39, 2  ;;  %v4089_v29 = vpop.f32.mrb[73].mxu1  ;;  %v18094_v39 = vld [vmem:[#allocation85_spill] sm:$0xff] }
 0x3c3   : > { %v12205_v0 = vpack.c.bf16 %v5056_v26, %v5055_v4  ;;  %v4090_v33 = vpop.f32.mrb[74].mxu1  ;;  %v5057_v26 = vmax.f32 %v4992_v18, 0.0  ;;  %v18096_v18 = vld [vmem:[#allocation88_spill] sm:$0xff] }
 0x3c4   : > { %v4732_v24 = vsel %vm4723_vm1, %v4729_v31, %v4731_v56  ;;  %v4733_v54 = vrot.slane %v4090_v33, 2  ;;  %v4092_v59 = vpop.f32.mrb[75].mxu1 }
 0x3c5   : > { %v4921_v43 = vadd.f32 %v4732_v24, %v15351_v17  ;;  %12206 = vmatmul.mubr.msk.bf16.vlgmr.msra.gmra.mrb[136].mxu0 %vm12204_vm4, %v12205_v0 }
 0x3c6   : > { %v4734_v27 = vsel %vm4723_vm1, %v4731_v56, %v4733_v54  ;;  %4302 = vmatmul.mubr.bf16.gmra.mrb[180].mxu1 %v18092_v28  ;;  %5747 = vmatprep.mubr.bf16.mxu0 %v17904_v3 }
 0x3c7   : > { %v4922_v62 = vadd.f32 %v4734_v27, %v18093_v15  ;;  %4309 = vmatprep.mubr.bf16.mxu1 %v18094_v39  ;;  %v4993_v4 = vadd.f32 %v15704_v23, %v4921_v43  ;;  %v18095_v39 = vld [vmem:[#allocation87_spill] sm:$0xff] }
 0x3c9   : > { %v4095_v31 = vpop.f32.mrb[76].mxu1  ;;  %v5058_v29 = vmax.f32 %v4993_v4, 0.0  ;;  %v4994_v27 = vadd.f32 %v15704_v23, %v4922_v62 }
 0x3ca   : > { %v4735_v33 = vrot.slane %v4095_v31, 2  ;;  %v4097_v17 = vpop.f32.mrb[77].mxu1 }
 0x3cb   : > { %v4098_v0 = vpop.f32.mrb[78].mxu1  ;;  %v5577_v24 = vpack.c.bf16 %v5058_v29, %v5057_v26  ;;  %v5059_v31 = vmax.f32 %v4994_v27, 0.0 }
 0x3cc   : > { %v4736_v42 = vsel %vm4723_vm1, %v4733_v54, %v4735_v33  ;;  %v4737_v56 = vrot.slane %v4098_v0, 2  ;;  %v4100_v59 = vpop.f32.mrb[79].mxu1 }
 0x3cd   : > { %v4923_v28 = vadd.f32 %v4736_v42, %v15367_v61  ;;  %5748 = vmatmul.mubr.bf16.gmra.mrb[140].mxu0 %v5577_v24  ;;  %v18097_v42 = vld [vmem:[#allocation90_spill] sm:$0xff] }
 0x3ce   : > { %v4738_v15 = vsel %vm4723_vm1, %v4735_v33, %v4737_v56  ;;  %4310 = vmatmul.mubr.bf16.gmra.mrb[184].mxu1 %v18095_v39  ;;  %5757 = vmatprep.mubr.bf16.mxu0 %v17904_v3  ;;  %v18098_v39 = vld [vmem:[#allocation89_spill] sm:$0xff] }
 0x3cf   : > { %v4924_v43 = vadd.f32 %v4738_v15, %v15374_v13  ;;  %4317 = vmatprep.mubr.bf16.mxu1 %v18096_v18  ;;  %v4995_v4 = vadd.f32 %v15704_v23, %v4923_v28 }
 0x3d1   : > { %v4103_v54 = vpop.f32.mrb[80].mxu1  ;;  %v5060_v26 = vmax.f32 %v4995_v4, 0.0  ;;  %v4996_v13 = vadd.f32 %v15704_v23, %v4924_v43 }
 0x3d2   : > { %v4739_v29 = vrot.slane %v4103_v54, 2  ;;  %v4105_v61 = vpop.f32.mrb[81].mxu1 }
 0x3d3   : > { %v4106_v17 = vpop.f32.mrb[82].mxu1  ;;  %v5578_v0 = vpack.c.bf16 %v5060_v26, %v5059_v31  ;;  %v5061_v18 = vmax.f32 %v4996_v13, 0.0 }
 0x3d4   : > { %v4740_v62 = vsel %vm4723_vm1, %v4737_v56, %v4739_v29  ;;  %v4741_v33 = vrot.slane %v4106_v17, 2  ;;  %v4108_v24 = vpop.f32.mrb[83].mxu1 }
 0x3d5   : > { %v4925_v59 = vadd.f32 %v4740_v62, %v18097_v42  ;;  %5758 = vmatmul.mubr.bf16.gmra.mrb[144].mxu0 %v5578_v0 }
 0x3d6   : > { %v4742_v15 = vsel %vm4723_vm1, %v4739_v29, %v4741_v33  ;;  %4318 = vmatmul.mubr.bf16.gmra.mrb[188].mxu1 %v18098_v39  ;;  %5767 = vmatprep.mubr.bf16.mxu0 %v17904_v3 }
 0x3d7   : > { %v4926_v28 = vadd.f32 %v4742_v15, %v15390_v40  ;;  %4325 = vmatprep.mubr.bf16.mxu1 %v15380_v49  ;;  %v4997_v27 = vadd.f32 %v15704_v23, %v4925_v59 }
 0x3d9   : > { %v4111_v56 = vpop.f32.mrb[84].mxu1  ;;  %v5062_v4 = vmax.f32 %v4997_v27, 0.0  ;;  %v4998_v40 = vadd.f32 %v15704_v23, %v4926_v28 }
 0x3da   : > { %v4743_v54 = vrot.slane %v4111_v56, 2  ;;  %v4113_v31 = vpop.f32.mrb[85].mxu1 }
 0x3db   : > { %v4114_v26 = vpop.f32.mrb[86].mxu1  ;;  %v5579_v61 = vpack.c.bf16 %v5062_v4, %v5061_v18  ;;  %v5063_v59 = vmax.f32 %v4998_v40, 0.0  ;;  %v18099_v18 = vld [vmem:[#allocation91_spill] sm:$0xff] }
 0x3dc   : > { %v4744_v43 = vsel %vm4723_vm1, %v4741_v33, %v4743_v54  ;;  %v4745_v29 = vrot.slane %v4114_v26, 2  ;;  %v4116_v17 = vpop.f32.mrb[87].mxu1 }
 0x3dd   : > { %v4927_v0 = vadd.f32 %v4744_v43, %v15395_v7  ;;  %5768 = vmatmul.mubr.bf16.gmra.mrb[148].mxu0 %v5579_v61 }
 0x3de   : > { %v4746_v49 = vsel %vm4723_vm1, %v4743_v54, %v4745_v29  ;;  %4326 = vmatmul.mubr.bf16.gmra.mrb[192].mxu1 %v15392_v41  ;;  %5777 = vmatprep.mubr.bf16.mxu0 %v17904_v3  ;;  %v18100_v54 = vld [vmem:[#allocation92_spill] sm:$0xff] }
 0x3df   : > { %v4928_v62 = vadd.f32 %v4746_v49, %v15402_v22  ;;  %v4999_v24 = vadd.f32 %v15704_v23, %v4927_v0 }
 0x3e1   : > { %v4119_v42 = vpop.f32.mrb[88].mxu1  ;;  %v5064_v33 = vmax.f32 %v4999_v24, 0.0  ;;  %v5000_v41 = vadd.f32 %v15704_v23, %v4928_v62 }
 0x3e2   : > { %v4747_v13 = vrot.slane %v4119_v42, 2  ;;  %v4121_v15 = vpop.f32.mrb[89].mxu1 }
 0x3e3   : > { %v4122_v39 = vpop.f32.mrb[90].mxu1  ;;  %v5580_v7 = vpack.c.bf16 %v5064_v33, %v5063_v59  ;;  %v5065_v43 = vmax.f32 %v5000_v41, 0.0 }
 0x3e4   : > { %v4748_v27 = vsel %vm4723_vm1, %v4745_v29, %v4747_v13  ;;  %v4749_v28 = vrot.slane %v4122_v39, 2  ;;  %v4124_v56 = vpop.f32.mrb[91].mxu1 }
 0x3e5   : > { %v4929_v4 = vadd.f32 %v4748_v27, %v18099_v18  ;;  %5778 = vmatmul.mubr.bf16.gmra.mrb[152].mxu0 %v5580_v7 }
 0x3e6   : > { %v4750_v22 = vsel %vm4723_vm1, %v4747_v13, %v4749_v28  ;;  %5787 = vmatprep.mubr.bf16.mxu0 %v17904_v3 }
 0x3e7   : > { %v4930_v31 = vadd.f32 %v4750_v22, %v18100_v54  ;;  %v5001_v26 = vadd.f32 %v15704_v23, %v4929_v4 }
 0x3e9   : > { %v4127_v61 = vpop.f32.mrb[92].mxu1  ;;  %v5066_v17 = vmax.f32 %v5001_v26, 0.0  ;;  %v5002_v33 = vadd.f32 %v15704_v23, %v4930_v31 }
 0x3ea   : > { %v4751_v0 = vrot.slane %v4127_v61, 2  ;;  %v4129_v29 = vpop.f32.mrb[93].mxu1 }
 0x3eb   : > { %v4130_v40 = vpop.f32.mrb[94].mxu1  ;;  %v5581_v49 = vpack.c.bf16 %v5066_v17, %v5065_v43  ;;  %v5067_v27 = vmax.f32 %v5002_v33, 0.0 }
 0x3ec   : > { %v4752_v24 = vsel %vm4723_vm1, %v4749_v28, %v4751_v0  ;;  %v4753_v42 = vrot.slane %v4130_v40, 2  ;;  %v4132_v59 = vpop.f32.mrb[95].mxu1 }
 0x3ed   : > { %v4931_v62 = vadd.f32 %v4752_v24, %v15419_v2  ;;  %5788 = vmatmul.mubr.bf16.gmra.mrb[156].mxu0 %v5581_v49 }
 0x3ee   : > { %v4754_v13 = vsel %vm4723_vm1, %v4751_v0, %v4753_v42  ;;  %5797 = vmatprep.mubr.bf16.mxu0 %v17904_v3 }
 0x3ef   : > { %v4932_v15 = vadd.f32 %v4754_v13, %v15424_v57  ;;  %v5003_v39 = vadd.f32 %v15704_v23, %v4931_v62 }
 0x3f1   : > { %v4135_v7 = vpop.f32.mrb[96].mxu1  ;;  %v5068_v56 = vmax.f32 %v5003_v39, 0.0  ;;  %v5004_v26 = vadd.f32 %v15704_v23, %v4932_v15 }
 0x3f2   : > { %v4755_v18 = vrot.slane %v4135_v7, 2  ;;  %v4137_v28 = vpop.f32.mrb[97].mxu1 }
 0x3f3   : > { %v4138_v4 = vpop.f32.mrb[98].mxu1  ;;  %v5582_v41 = vpack.c.bf16 %v5068_v56, %v5067_v27  ;;  %v5069_v0 = vmax.f32 %v5004_v26, 0.0 }
 0x3f4   : > { %v4756_v2 = vsel %vm4723_vm1, %v4753_v42, %v4755_v18  ;;  %v4757_v22 = vrot.slane %v4138_v4, 2  ;;  %v4140_v54 = vpop.f32.mrb[99].mxu1 }
 0x3f5   : > { %v4933_v31 = vadd.f32 %v4756_v2, %v15427_v8  ;;  %5798 = vmatmul.mubr.bf16.gmra.mrb[160].mxu0 %v5582_v41 }
 0x3f6   : > { %v4758_v57 = vsel %vm4723_vm1, %v4755_v18, %v4757_v22  ;;  %5807 = vmatprep.mubr.bf16.mxu0 %v17904_v3 }
 0x3f7   : > { %v4934_v61 = vadd.f32 %v4758_v57, %v15432_v14  ;;  %v5005_v43 = vadd.f32 %v15704_v23, %v4933_v31 }
 0x3f9   : > { %v4143_v17 = vpop.f32.mrb[100].mxu1  ;;  %v5070_v29 = vmax.f32 %v5005_v43, 0.0  ;;  %v5006_v13 = vadd.f32 %v15704_v23, %v4934_v61 }
 0x3fa   : > { %v4759_v40 = vrot.slane %v4143_v17, 2  ;;  %v4145_v49 = vpop.f32.mrb[101].mxu1 }
 0x3fb   : > { %v4146_v24 = vpop.f32.mrb[102].mxu1  ;;  %v5583_v42 = vpack.c.bf16 %v5070_v29, %v5069_v0  ;;  %v5071_v27 = vmax.f32 %v5006_v13, 0.0 }
 0x3fc   : > { %v4760_v8 = vsel %vm4723_vm1, %v4757_v22, %v4759_v40  ;;  %v4761_v59 = vrot.slane %v4146_v24, 2  ;;  %v4148_v62 = vpop.f32.mrb[103].mxu1 }
 0x3fd   : > { %v4935_v33 = vadd.f32 %v4760_v8, %v15435_v25  ;;  %5808 = vmatmul.mubr.bf16.gmra.mrb[164].mxu0 %v5583_v42 }
 0x3fe   : > { %v4762_v14 = vsel %vm4723_vm1, %v4759_v40, %v4761_v59  ;;  %5817 = vmatprep.mubr.bf16.mxu0 %v17904_v3 }
 0x3ff   : > { %v4936_v15 = vadd.f32 %v4762_v14, %v15440_v11  ;;  %v5007_v39 = vadd.f32 %v15704_v23, %v4935_v33 }
 0x401   : > { %v4151_v7 = vpop.f32.mrb[104].mxu1  ;;  %v5072_v56 = vmax.f32 %v5007_v39, 0.0  ;;  %v5008_v31 = vadd.f32 %v15704_v23, %v4936_v15 }
 0x402   : > { %v4763_v18 = vrot.slane %v4151_v7, 2  ;;  %v4153_v28 = vpop.f32.mrb[105].mxu1 }
 0x403   : > { %v4154_v4 = vpop.f32.mrb[106].mxu1  ;;  %v5584_v41 = vpack.c.bf16 %v5072_v56, %v5071_v27  ;;  %v5073_v43 = vmax.f32 %v5008_v31, 0.0 }
 0x404   : > { %v4764_v25 = vsel %vm4723_vm1, %v4761_v59, %v4763_v18  ;;  %v4765_v2 = vrot.slane %v4154_v4, 2  ;;  %v4156_v22 = vpop.f32.mrb[107].mxu1 }
 0x405   : > { %v4937_v54 = vadd.f32 %v4764_v25, %v15443_v63  ;;  %5818 = vmatmul.mubr.bf16.gmra.mrb[168].mxu0 %v5584_v41 }
 0x406   : > { %v4766_v11 = vsel %vm4723_vm1, %v4763_v18, %v4765_v2  ;;  %5827 = vmatprep.mubr.bf16.mxu0 %v17904_v3 }
 0x407   : > { %v4938_v26 = vadd.f32 %v4766_v11, %v15448_v34  ;;  %v5009_v57 = vadd.f32 %v15704_v23, %v4937_v54 }
 0x409   : > { %v4159_v61 = vpop.f32.mrb[108].mxu1  ;;  %v5074_v17 = vmax.f32 %v5009_v57, 0.0  ;;  %v5010_v59 = vadd.f32 %v15704_v23, %v4938_v26 }
 0x40a   : > { %v4767_v0 = vrot.slane %v4159_v61, 2  ;;  %v4161_v29 = vpop.f32.mrb[109].mxu1 }
 0x40b   : > { %v4162_v40 = vpop.f32.mrb[110].mxu1  ;;  %v5585_v49 = vpack.c.bf16 %v5074_v17, %v5073_v43  ;;  %v5075_v14 = vmax.f32 %v5010_v59, 0.0 }
 0x40c   : > { %v4768_v63 = vsel %vm4723_vm1, %v4765_v2, %v4767_v0  ;;  %v4769_v24 = vrot.slane %v4162_v40, 2  ;;  %v4164_v42 = vpop.f32.mrb[111].mxu1 }
 0x40d   : > { %v4939_v8 = vadd.f32 %v4768_v63, %v15457_v45  ;;  %5828 = vmatmul.mubr.bf16.gmra.mrb[172].mxu0 %v5585_v49 }
 0x40e   : > { %v4770_v34 = vsel %vm4723_vm1, %v4767_v0, %v4769_v24  ;;  %5837 = vmatprep.mubr.bf16.mxu0 %v17904_v3 }
 0x40f   : > { %v4940_v62 = vadd.f32 %v4770_v34, %v15462_v16  ;;  %v5011_v33 = vadd.f32 %v15704_v23, %v4939_v8 }
 0x411   : > { %v4167_v13 = vpop.f32.mrb[112].mxu1  ;;  %v5076_v15 = vmax.f32 %v5011_v33, 0.0  ;;  %v5012_v41 = vadd.f32 %v15704_v23, %v4940_v62 }
 0x412   : > { %v4771_v39 = vrot.slane %v4167_v13, 2  ;;  %v4169_v7 = vpop.f32.mrb[113].mxu1 }
 0x413   : > { %v4170_v27 = vpop.f32.mrb[114].mxu1  ;;  %v5586_v56 = vpack.c.bf16 %v5076_v15, %v5075_v14  ;;  %v5077_v54 = vmax.f32 %v5012_v41, 0.0 }
 0x414   : > { %v4772_v45 = vsel %vm4723_vm1, %v4769_v24, %v4771_v39  ;;  %v4773_v18 = vrot.slane %v4170_v27, 2  ;;  %v4172_v28 = vpop.f32.mrb[115].mxu1 }
 0x415   : > { %v4941_v4 = vadd.f32 %v4772_v45, %v15465_v48  ;;  %5838 = vmatmul.mubr.bf16.gmra.mrb[176].mxu0 %v5586_v56 }
 0x416   : > { %v4774_v16 = vsel %vm4723_vm1, %v4771_v39, %v4773_v18  ;;  %5847 = vmatprep.mubr.bf16.mxu0 %v17904_v3 }
 0x417   : > { %v4942_v25 = vadd.f32 %v4774_v16, %v15470_v30  ;;  %v5013_v2 = vadd.f32 %v15704_v23, %v4941_v4 }
 0x419   : > { %v4175_v22 = vpop.f32.mrb[116].mxu1  ;;  %v5078_v31 = vmax.f32 %v5013_v2, 0.0  ;;  %v5014_v29 = vadd.f32 %v15704_v23, %v4942_v25 }
 0x41a   : > { %v4775_v11 = vrot.slane %v4175_v22, 2  ;;  %v4177_v26 = vpop.f32.mrb[117].mxu1 }
 0x41b   : > { %v4178_v57 = vpop.f32.mrb[118].mxu1  ;;  %v5587_v61 = vpack.c.bf16 %v5078_v31, %v5077_v54  ;;  %v5079_v24 = vmax.f32 %v5014_v29, 0.0  ;;  %v18101_v54 = vld [vmem:[#allocation93_spill] sm:$0xff] }
 0x41c   : > { %v4776_v48 = vsel %vm4723_vm1, %v4773_v18, %v4775_v11  ;;  %v4777_v43 = vrot.slane %v4178_v57, 2  ;;  %v4180_v17 = vpop.f32.mrb[119].mxu1 }
 0x41d   : > { %v4943_v0 = vadd.f32 %v4776_v48, %v15473_v55  ;;  %5848 = vmatmul.mubr.bf16.gmra.mrb[180].mxu0 %v5587_v61 }
 0x41e   : > { %v4778_v30 = vsel %vm4723_vm1, %v4775_v11, %v4777_v43  ;;  %5857 = vmatprep.mubr.bf16.mxu0 %v17904_v3 }
 0x41f   : > { %v4944_v40 = vadd.f32 %v4778_v30, %v15478_v47  ;;  %v5015_v49 = vadd.f32 %v15704_v23, %v4943_v0 }
 0x421   : > { %v4183_v63 = vpop.f32.mrb[120].mxu1  ;;  %v5080_v42 = vmax.f32 %v5015_v49, 0.0  ;;  %v5016_v15 = vadd.f32 %v15704_v23, %v4944_v40  ;;  %v18102_v40 = vld [vmem:[#allocation94_spill] sm:$0xff] }
 0x422   : > { %v4779_v8 = vrot.slane %v4183_v63, 2  ;;  %v4185_v59 = vpop.f32.mrb[121].mxu1 }
 0x423   : > { %v4186_v34 = vpop.f32.mrb[122].mxu1  ;;  %v5588_v62 = vpack.c.bf16 %v5080_v42, %v5079_v24  ;;  %v5081_v56 = vmax.f32 %v5016_v15, 0.0  ;;  %v18103_v42 = vld [vmem:[#allocation95_spill] sm:$0xff] }
 0x424   : > { %v4780_v55 = vsel %vm4723_vm1, %v4777_v43, %v4779_v8  ;;  %v4781_v33 = vrot.slane %v4186_v34, 2  ;;  %v4188_v13 = vpop.f32.mrb[123].mxu1 }
 0x425   : > { %v4945_v14 = vadd.f32 %v4780_v55, %v15481_v10  ;;  %5858 = vmatmul.mubr.bf16.gmra.mrb[184].mxu0 %v5588_v62 }
 0x426   : > { %v4782_v47 = vsel %vm4723_vm1, %v4779_v8, %v4781_v33  ;;  %5867 = vmatprep.mubr.bf16.mxu0 %v17904_v3 }
 0x427   : > { %v4946_v39 = vadd.f32 %v4782_v47, %v15486_v50  ;;  %v5017_v7 = vadd.f32 %v15704_v23, %v4945_v14 }
 0x429   : > { %v4191_v27 = vpop.f32.mrb[124].mxu1  ;;  %v5082_v45 = vmax.f32 %v5017_v7, 0.0  ;;  %v5018_v22 = vadd.f32 %v15704_v23, %v4946_v39 }
 0x42a   : > { %v4783_v18 = vrot.slane %v4191_v27, 2  ;;  %v4193_v28 = vpop.f32.mrb[125].mxu1 }
 0x42b   : > { %v4194_v4 = vpop.f32.mrb[126].mxu1  ;;  %v5589_v41 = vpack.c.bf16 %v5082_v45, %v5081_v56  ;;  %v5083_v57 = vmax.f32 %v5018_v22, 0.0 }
 0x42c   : > { %v4784_v10 = vsel %vm4723_vm1, %v4781_v33, %v4783_v18  ;;  %v4785_v16 = vrot.slane %v4194_v4, 2  ;;  %v4196_v25 = vpop.f32.mrb[127].mxu1 }
 0x42d   : > { %v4947_v2 = vadd.f32 %v4784_v10, %v15495_v44  ;;  %5868 = vmatmul.mubr.bf16.gmra.mrb[188].mxu0 %v5589_v41 }
 0x42e   : > { %v4786_v50 = vsel %vm4723_vm1, %v4783_v18, %v4785_v16  ;;  %5877 = vmatprep.mubr.bf16.mxu0 %v17904_v3 }
 0x42f   : > { %v4948_v31 = vadd.f32 %v4786_v50, %v18101_v54  ;;  %v5019_v11 = vadd.f32 %v15704_v23, %v4947_v2 }
 0x431   : > { %v4199_v26 = vpop.f32.mrb[128].mxu1  ;;  %v5084_v61 = vmax.f32 %v5019_v11, 0.0  ;;  %v5020_v63 = vadd.f32 %v15704_v23, %v4948_v31 }
 0x432   : > { %v4787_v48 = vrot.slane %v4199_v26, 2  ;;  %v4201_v43 = vpop.f32.mrb[129].mxu1 }
 0x433   : > { %v4202_v17 = vpop.f32.mrb[130].mxu1  ;;  %v5590_v0 = vpack.c.bf16 %v5084_v61, %v5083_v57  ;;  %v5085_v62 = vmax.f32 %v5020_v63, 0.0 }
 0x434   : > { %v4788_v44 = vsel %vm4723_vm1, %v4785_v16, %v4787_v48  ;;  %v4789_v29 = vrot.slane %v4202_v17, 2  ;;  %v4204_v30 = vpop.f32.mrb[131].mxu1 }
 0x435   : > { %v4949_v49 = vadd.f32 %v4788_v44, %v18102_v40  ;;  %5878 = vmatmul.mubr.bf16.gmra.mrb[192].mxu0 %v5590_v0 }
 0x436   : > { %v4790_v24 = vsel %vm4723_vm1, %v4787_v48, %v4789_v29  ;;  %5887 = vmatprep.mubr.bf16.mxu0 %v17904_v3 }
 0x437   : > { %v4950_v8 = vadd.f32 %v4790_v24, %v18103_v42  ;;  %v5021_v59 = vadd.f32 %v15704_v23, %v4949_v49 }
 0x439   : > { %v4207_v34 = vpop.f32.mrb[132].mxu1  ;;  %v5086_v55 = vmax.f32 %v5021_v59, 0.0  ;;  %v5022_v56 = vadd.f32 %v15704_v23, %v4950_v8 }
 0x43a   : > { %v4791_v33 = vrot.slane %v4207_v34, 2  ;;  %v4209_v13 = vpop.f32.mrb[133].mxu1 }
 0x43b   : > { %v4210_v14 = vpop.f32.mrb[134].mxu1  ;;  %v5591_v15 = vpack.c.bf16 %v5086_v55, %v5085_v62  ;;  %v5087_v41 = vmax.f32 %v5022_v56, 0.0 }
 0x43c   : > { %v4792_v47 = vsel %vm4723_vm1, %v4789_v29, %v4791_v33  ;;  %v4793_v39 = vrot.slane %v4210_v14, 2  ;;  %v4212_v7 = vpop.f32.mrb[135].mxu1 }
 0x43d   : > { %v4951_v27 = vadd.f32 %v4792_v47, %v15517_v36  ;;  %5888 = vmatmul.mubr.bf16.gmra.mrb[196].mxu0 %v5591_v15 }
 0x43e   : > { %v4794_v45 = vsel %vm4723_vm1, %v4791_v33, %v4793_v39  ;;  %5897 = vmatprep.mubr.bf16.mxu0 %v17904_v3 }
 0x43f   : > { %v4952_v18 = vadd.f32 %v4794_v45, %v15520_v12  ;;  %v5023_v28 = vadd.f32 %v15704_v23, %v4951_v27 }
 0x441   : > { %v4215_v4 = vpop.f32.mrb[136].mxu1  ;;  %v5088_v10 = vmax.f32 %v5023_v28, 0.0  ;;  %v5024_v11 = vadd.f32 %v15704_v23, %v4952_v18 }
 0x442   : > { %v4795_v16 = vrot.slane %v4215_v4, 2  ;;  %v4217_v25 = vpop.f32.mrb[137].mxu1 }
 0x443   : > { %v4218_v2 = vpop.f32.mrb[138].mxu1  ;;  %v5592_v22 = vpack.c.bf16 %v5088_v10, %v5087_v41  ;;  %v5089_v48 = vmax.f32 %v5024_v11, 0.0 }
 0x444   : > { %v4796_v36 = vsel %vm4723_vm1, %v4793_v39, %v4795_v16  ;;  %v4797_v50 = vrot.slane %v4218_v2, 2  ;;  %v4220_v54 = vpop.f32.mrb[139].mxu1 }
 0x445   : > { %v4953_v31 = vadd.f32 %v4796_v36, %v15529_v20  ;;  %5898 = vmatmul.mubr.bf16.gmra.mrb[200].mxu0 %v5592_v22 }
 0x446   : > { %v4798_v12 = vsel %vm4723_vm1, %v4795_v16, %v4797_v50  ;;  %5907 = vmatprep.mubr.bf16.mxu0 %v17904_v3 }
 0x447   : > { %v4954_v26 = vadd.f32 %v4798_v12, %v15532_v1  ;;  %v5025_v57 = vadd.f32 %v15704_v23, %v4953_v31 }
 0x449   : > { %v4223_v61 = vpop.f32.mrb[140].mxu1  ;;  %v5090_v43 = vmax.f32 %v5025_v57, 0.0  ;;  %v5026_v63 = vadd.f32 %v15704_v23, %v4954_v26 }
 0x44a   : > { %v4799_v17 = vrot.slane %v4223_v61, 2  ;;  %v4225_v0 = vpop.f32.mrb[141].mxu1 }
 0x44b   : > { %v4226_v44 = vpop.f32.mrb[142].mxu1  ;;  %v5593_v29 = vpack.c.bf16 %v5090_v43, %v5089_v48  ;;  %v5091_v59 = vmax.f32 %v5026_v63, 0.0 }
 0x44c   : > { %v4800_v20 = vsel %vm4723_vm1, %v4797_v50, %v4799_v17  ;;  %v4801_v30 = vrot.slane %v4226_v44, 2  ;;  %v4228_v40 = vpop.f32.mrb[143].mxu1 }
 0x44d   : > { %v4955_v49 = vadd.f32 %v4800_v20, %v15541_v21  ;;  %5908 = vmatmul.mubr.bf16.gmra.mrb[204].mxu0 %v5593_v29 }
 0x44e   : > { %v4802_v1 = vsel %vm4723_vm1, %v4799_v17, %v4801_v30  ;;  %5917 = vmatprep.mubr.bf16.mxu0 %v17904_v3 }
 0x44f   : > { %v4956_v24 = vadd.f32 %v4802_v1, %v15544_v46  ;;  %v5027_v42 = vadd.f32 %v15704_v23, %v4955_v49 }
 0x451   : > { %v4231_v8 = vpop.f32.mrb[144].mxu1  ;;  %v5092_v34 = vmax.f32 %v5027_v42, 0.0  ;;  %v5028_v39 = vadd.f32 %v15704_v23, %v4956_v24 }
 0x452   : > { %v4803_v62 = vrot.slane %v4231_v8, 2  ;;  %v4233_v55 = vpop.f32.mrb[145].mxu1 }
 0x453   : > { %v4234_v33 = vpop.f32.mrb[146].mxu1  ;;  %v5594_v13 = vpack.c.bf16 %v5092_v34, %v5091_v59  ;;  %v5093_v45 = vmax.f32 %v5028_v39, 0.0 }
 0x454   : > { %v4804_v21 = vsel %vm4723_vm1, %v4801_v30, %v4803_v62  ;;  %v4805_v14 = vrot.slane %v4234_v33, 2  ;;  %v4236_v15 = vpop.f32.mrb[147].mxu1 }
 0x455   : > { %v4957_v47 = vadd.f32 %v4804_v21, %v15553_v60  ;;  %5918 = vmatmul.mubr.bf16.gmra.mrb[208].mxu0 %v5594_v13 }
 0x456   : > { %v4806_v46 = vsel %vm4723_vm1, %v4803_v62, %v4805_v14  ;;  %5927 = vmatprep.mubr.bf16.mxu0 %v17904_v3 }
 0x457   : > { %v4958_v7 = vadd.f32 %v4806_v46, %v15556_v6  ;;  %v5029_v27 = vadd.f32 %v15704_v23, %v4957_v47 }
 0x459   : > { %v4239_v56 = vpop.f32.mrb[148].mxu1  ;;  %v5094_v18 = vmax.f32 %v5029_v27, 0.0  ;;  %v5030_v22 = vadd.f32 %v15704_v23, %v4958_v7  ;;  %v18104_v27 = vld [vmem:[#allocation2_spill] sm:$0xff] }
 0x45a   : > { %v4807_v28 = vrot.slane %v4239_v56, 2  ;;  %v4241_v4 = vpop.f32.mrb[149].mxu1 }
 0x45b   : > { %v4242_v41 = vpop.f32.mrb[150].mxu1  ;;  %v5595_v10 = vpack.c.bf16 %v5094_v18, %v5093_v45  ;;  %v5095_v31 = vmax.f32 %v5030_v22, 0.0  ;;  %v18105_v18 = vld [vmem:[#allocation3_spill] sm:$0xff] }
 0x45c   : > { %v4808_v60 = vsel %vm4723_vm1, %v4805_v14, %v4807_v28  ;;  %v4809_v16 = vrot.slane %v4242_v41, 2  ;;  %v4244_v25 = vpop.f32.mrb[151].mxu1 }
 0x45d   : > { %v4959_v2 = vadd.f32 %v4808_v60, %v15565_v52  ;;  %5928 = vmatmul.mubr.bf16.gmra.mrb[212].mxu0 %v5595_v10 }
 0x45e   : > { %v4810_v6 = vsel %vm4723_vm1, %v4807_v28, %v4809_v16  ;;  %5937 = vmatprep.mubr.bf16.mxu0 %v17904_v3 }
 0x45f   : > { %v4960_v36 = vadd.f32 %v4810_v6, %v15568_v38  ;;  %v5031_v50 = vadd.f32 %v15704_v23, %v4959_v2 }
 0x461   : > { %v4247_v54 = vpop.f32.mrb[152].mxu1  ;;  %v5096_v11 = vmax.f32 %v5031_v50, 0.0  ;;  %v5032_v0 = vadd.f32 %v15704_v23, %v4960_v36 }
 0x462   : > { %v4811_v12 = vrot.slane %v4247_v54, 2  ;;  %v4249_v26 = vpop.f32.mrb[153].mxu1  ;;  %v18106_v54 = vld [vmem:[#allocation4_spill] sm:$0xff] }
 0x463   : > { %v4250_v57 = vpop.f32.mrb[154].mxu1  ;;  %v5596_v61 = vpack.c.bf16 %v5096_v11, %v5095_v31  ;;  %v5097_v30 = vmax.f32 %v5032_v0, 0.0  ;;  %v18107_v26 = vld [vmem:[#allocation5_spill] sm:$0xff] }
 0x464   : > { %v4812_v52 = vsel %vm4723_vm1, %v4809_v16, %v4811_v12  ;;  %v4813_v48 = vrot.slane %v4250_v57, 2  ;;  %v4252_v43 = vpop.f32.mrb[155].mxu1 }
 0x465   : > { %v4961_v17 = vadd.f32 %v4812_v52, %v15577_v35  ;;  %5938 = vmatmul.mubr.bf16.gmra.mrb[216].mxu0 %v5596_v61 }
 0x466   : > { %v4814_v38 = vsel %vm4723_vm1, %v4811_v12, %v4813_v48  ;;  %5947 = vmatprep.mubr.bf16.mxu0 %v17904_v3 }
 0x467   : > { %v4962_v44 = vadd.f32 %v4814_v38, %v15580_v32  ;;  %v5033_v29 = vadd.f32 %v15704_v23, %v4961_v17 }
 0x469   : > { %v4255_v20 = vpop.f32.mrb[156].mxu1  ;;  %v5098_v40 = vmax.f32 %v5033_v29, 0.0  ;;  %v5034_v34 = vadd.f32 %v15704_v23, %v4962_v44 }
 0x46a   : > { %v4815_v49 = vrot.slane %v4255_v20, 2  ;;  %v4257_v63 = vpop.f32.mrb[157].mxu1 }
 0x46b   : > { %v4258_v1 = vpop.f32.mrb[158].mxu1  ;;  %v5597_v24 = vpack.c.bf16 %v5098_v40, %v5097_v30  ;;  %v5099_v13 = vmax.f32 %v5034_v34, 0.0  ;;  %v18108_v40 = vld [vmem:[#allocation6_spill] sm:$0xff] }
 0x46c   : > { %v4816_v35 = vsel %vm4723_vm1, %v4813_v48, %v4815_v49  ;;  %v4817_v42 = vrot.slane %v4258_v1, 2  ;;  %v4260_v8 = vpop.f32.mrb[159].mxu1 }
 0x46d   : > { %v4963_v59 = vadd.f32 %v4816_v35, %v15589_v5  ;;  %5948 = vmatmul.mubr.bf16.gmra.mrb[220].mxu0 %v5597_v24  ;;  %v18109_v24 = vld [vmem:[#allocation7_spill] sm:$0xff] }
 0x46e   : > { %v4818_v32 = vsel %vm4723_vm1, %v4815_v49, %v4817_v42  ;;  %5957 = vmatprep.mubr.bf16.mxu0 %v17904_v3 }
 0x46f   : > { %v4964_v62 = vadd.f32 %v4818_v32, %v15592_v19  ;;  %v5035_v55 = vadd.f32 %v15704_v23, %v4963_v59 }
 0x471   : > { %v4263_v33 = vpop.f32.mrb[160].mxu1  ;;  %v5100_v21 = vmax.f32 %v5035_v55, 0.0  ;;  %v5036_v45 = vadd.f32 %v15704_v23, %v4964_v62 }
 0x472   : > { %v4819_v14 = vrot.slane %v4263_v33, 2  ;;  %v4265_v15 = vpop.f32.mrb[161].mxu1 }
 0x473   : > { %v4266_v47 = vpop.f32.mrb[162].mxu1  ;;  %v5598_v39 = vpack.c.bf16 %v5100_v21, %v5099_v13  ;;  %v5101_v10 = vmax.f32 %v5036_v45, 0.0  ;;  %v18110_v15 = vld [vmem:[#allocation8_spill] sm:$0xff] }
 0x474   : > { %v4820_v5 = vsel %vm4723_vm1, %v4817_v42, %v4819_v14  ;;  %v4821_v46 = vrot.slane %v4266_v47, 2  ;;  %v4268_v7 = vpop.f32.mrb[163].mxu1 }
 0x475   : > { %v4965_v56 = vadd.f32 %v4820_v5, %v18104_v27  ;;  %5958 = vmatmul.mubr.bf16.gmra.mrb[224].mxu0 %v5598_v39 }
 0x476   : > { %v4822_v19 = vsel %vm4723_vm1, %v4819_v14, %v4821_v46  ;;  %5967 = vmatprep.mubr.bf16.mxu0 %v17904_v3 }
 0x477   : > { %v4966_v28 = vadd.f32 %v4822_v19, %v18105_v18  ;;  %v5037_v4 = vadd.f32 %v15704_v23, %v4965_v56 }
 0x479   : > { %v4271_v41 = vpop.f32.mrb[164].mxu1  ;;  %v5102_v60 = vmax.f32 %v5037_v4, 0.0  ;;  %v5038_v11 = vadd.f32 %v15704_v23, %v4966_v28 }
 0x47a   : > { %v4823_v16 = vrot.slane %v4271_v41, 2  ;;  %v4273_v25 = vpop.f32.mrb[165].mxu1 }
 0x47b   : > { %v4274_v2 = vpop.f32.mrb[166].mxu1  ;;  %v5599_v22 = vpack.c.bf16 %v5102_v60, %v5101_v10  ;;  %v5103_v48 = vmax.f32 %v5038_v11, 0.0  ;;  %v18112_v25 = vld [vmem:[#allocation10_spill] sm:$0xff] }
 0x47c   : > { %v4824_v6 = vsel %vm4723_vm1, %v4821_v46, %v4823_v16  ;;  %v4825_v36 = vrot.slane %v4274_v2, 2  ;;  %v4276_v50 = vpop.f32.mrb[167].mxu1  ;;  %v18111_v46 = vld [vmem:[#allocation9_spill] sm:$0xff] }
 0x47d   : > { %v4967_v31 = vadd.f32 %v4824_v6, %v18106_v54  ;;  %5968 = vmatmul.mubr.bf16.gmra.mrb[228].mxu0 %v5599_v22 }
 0x47e   : > { %v4826_v12 = vsel %vm4723_vm1, %v4823_v16, %v4825_v36  ;;  %5977 = vmatprep.mubr.bf16.mxu0 %v17904_v3 }
 0x47f   : > { %v4968_v57 = vadd.f32 %v4826_v12, %v18107_v26  ;;  %v5039_v61 = vadd.f32 %v15704_v23, %v4967_v31 }
 0x481   : > { %v4279_v52 = vpop.f32.mrb[168].mxu1  ;;  %v5104_v43 = vmax.f32 %v5039_v61, 0.0  ;;  %v5040_v63 = vadd.f32 %v15704_v23, %v4968_v57 }
 0x482   : > { %v4827_v17 = vrot.slane %v4279_v52, 2  ;;  %v4281_v0 = vpop.f32.mrb[169].mxu1 }
 0x483   : > { %v4282_v38 = vpop.f32.mrb[170].mxu1  ;;  %v5600_v44 = vpack.c.bf16 %v5104_v43, %v5103_v48  ;;  %v5105_v59 = vmax.f32 %v5040_v63, 0.0  ;;  %v18114_v63 = vld [vmem:[#allocation12_spill] sm:$0xff] }
 0x484   : > { %v4828_v29 = vsel %vm4723_vm1, %v4825_v36, %v4827_v17  ;;  %v4829_v20 = vrot.slane %v4282_v38, 2  ;;  %v4284_v30 = vpop.f32.mrb[171].mxu1  ;;  %v18113_v36 = vld [vmem:[#allocation11_spill] sm:$0xff] }
 0x485   : > { %v4969_v49 = vadd.f32 %v4828_v29, %v18108_v40  ;;  %5978 = vmatmul.mubr.bf16.gmra.mrb[232].mxu0 %v5600_v44 }
 0x486   : > { %v4830_v1 = vsel %vm4723_vm1, %v4827_v17, %v4829_v20  ;;  %5987 = vmatprep.mubr.bf16.mxu0 %v17904_v3 }
 0x487   : > { %v4970_v35 = vadd.f32 %v4830_v1, %v18109_v24  ;;  %v5041_v42 = vadd.f32 %v15704_v23, %v4969_v49 }
 0x489   : > { %v4287_v8 = vpop.f32.mrb[172].mxu1  ;;  %v5106_v34 = vmax.f32 %v5041_v42, 0.0  ;;  %v5042_v39 = vadd.f32 %v15704_v23, %v4970_v35 }
 0x48a   : > { %v4831_v32 = vrot.slane %v4287_v8, 2  ;;  %v4289_v62 = vpop.f32.mrb[173].mxu1 }
 0x48b   : > { %v4290_v55 = vpop.f32.mrb[174].mxu1  ;;  %v5601_v33 = vpack.c.bf16 %v5106_v34, %v5105_v59  ;;  %v5107_v45 = vmax.f32 %v5042_v39, 0.0  ;;  %v18115_v59 = vld [vmem:[#allocation13_spill] sm:$0xff] }
 0x48c   : > { %v4832_v13 = vsel %vm4723_vm1, %v4829_v20, %v4831_v32  ;;  %v4833_v21 = vrot.slane %v4290_v55, 2  ;;  %v4292_v14 = vpop.f32.mrb[175].mxu1 }
 0x48d   : > { %v4971_v47 = vadd.f32 %v4832_v13, %v18110_v15  ;;  %5988 = vmatmul.mubr.bf16.gmra.mrb[236].mxu0 %v5601_v33 }
 0x48e   : > { %v4834_v5 = vsel %vm4723_vm1, %v4831_v32, %v4833_v21  ;;  %5997 = vmatprep.mubr.bf16.mxu0 %v17904_v3  ;;  %v15933_v32 = vld [vmem:[%s17734_s2] ss:$0 sm:$0xff] }
 0x48f   : > { %v4972_v7 = vadd.f32 %v4834_v5, %v18111_v46  ;;  %v5043_v27 = vadd.f32 %v15704_v23, %v4971_v47 }
 0x491   : > { %v4295_v56 = vpop.f32.mrb[176].mxu1  ;;  %v5108_v19 = vmax.f32 %v5043_v27, 0.0  ;;  %v5044_v22 = vadd.f32 %v15704_v23, %v4972_v7 }
 0x492   : > { %v4835_v18 = vrot.slane %v4295_v56, 2  ;;  %v4297_v28 = vpop.f32.mrb[177].mxu1 }
 0x493   : > { %v4298_v4 = vpop.f32.mrb[178].mxu1  ;;  %v5602_v41 = vpack.c.bf16 %v5108_v19, %v5107_v45  ;;  %v5109_v26 = vmax.f32 %v5044_v22, 0.0  ;;  %v18116_v22 = vld [vmem:[#allocation14_spill] sm:$0xff] }
 0x494   : > { %v4836_v10 = vsel %vm4723_vm1, %v4833_v21, %v4835_v18  ;;  %v4837_v60 = vrot.slane %v4298_v4, 2  ;;  %v4300_v16 = vpop.f32.mrb[179].mxu1 }
 0x495   : > { %v4973_v2 = vadd.f32 %v4836_v10, %v18112_v25  ;;  %5998 = vmatmul.mubr.bf16.gmra.mrb[240].mxu0 %v5602_v41 }
 0x496   : > { %v4838_v6 = vsel %vm4723_vm1, %v4835_v18, %v4837_v60  ;;  %6007 = vmatprep.mubr.bf16.mxu0 %v17904_v3 }
 0x497   : > { %v4974_v50 = vadd.f32 %v4838_v6, %v18113_v36  ;;  %v5045_v54 = vadd.f32 %v15704_v23, %v4973_v2 }
 0x498   : > { %v15913_v31 = vpop.f32.mrb[136].mxu0 }
 0x499   : > { %v4303_v11 = vpop.f32.mrb[180].mxu1  ;;  %v5741_v12 = vpop.f32.mrb[137].mxu0  ;;  %v5110_v57 = vmax.f32 %v5045_v54, 0.0  ;;  %v6131_v43 = vrot.slane %v15913_v31, 1  ;;  %v5046_v35 = vadd.f32 %v15704_v23, %v4974_v50 }
 0x49a   : > { %v4839_v61 = vrot.slane %v4303_v11, 2  ;;  %v4305_v52 = vpop.f32.mrb[181].mxu1  ;;  %v15915_v48 = vpop.f32.mrb[138].mxu0  ;;  %v6581_v20 = vrot.slane %v5741_v12, 2 }
 0x49b   : > { %v6132_v17 = vrot.slane %v15915_v48, 1  ;;  %v4306_v0 = vpop.f32.mrb[182].mxu1  ;;  %v5745_v38 = vpop.f32.mrb[139].mxu0  ;;  %v5603_v44 = vpack.c.bf16 %v5110_v57, %v5109_v26  ;;  %v5111_v21 = vmax.f32 %v5046_v35, 0.0 }
 0x49c   : > { %v4840_v29 = vsel %vm4723_vm1, %v4837_v60, %v4839_v61  ;;  %v4841_v30 = vrot.slane %v4306_v0, 2  ;;  %v6582_v40 = vrot.slane %v5745_v38, 2  ;;  %v4308_v49 = vpop.f32.mrb[183].mxu1 }
 0x49d   : > { %v4975_v1 = vadd.f32 %v4840_v29, %v18114_v63  ;;  %6008 = vmatmul.mubr.bf16.gmra.mrb[244].mxu0 %v5603_v44  ;;  %v6133_v24 = vsel %vm4398_vm0, %v6131_v43, %v6132_v17 }
 0x49e   : > { %v4842_v42 = vsel %vm4723_vm1, %v4839_v61, %v4841_v30  ;;  %6260 = vrot.lane.b32.xlu0 %v6133_v24, %s13848_s11  ;;  %6017 = vmatprep.mubr.bf16.mxu0 %v17904_v3  ;;  %v15927_v8 = vsel %vm4723_vm1, %v6581_v20, %v6582_v40  ;;  %v18117_v24 = vld [vmem:[#allocation15_spill] sm:$0xff] }
 0x49f   : > { %v4976_v34 = vadd.f32 %v4842_v42, %v18115_v59  ;;  %v5047_v62 = vadd.f32 %v15933_v32, %v4975_v1 }
 0x4a0   : > { %v15936_v23 = vpop.f32.mrb[140].mxu0 }
 0x4a1   : > { %v6134_v55 = vrot.slane %v15936_v23, 1  ;;  %v4311_v33 = vpop.f32.mrb[184].mxu1  ;;  %v5751_v13 = vpop.f32.mrb[141].mxu0  ;;  %v5112_v14 = vmax.f32 %v5047_v62, 0.0  ;;  %v5048_v16 = vadd.f32 %v15933_v32, %v4976_v34 }
 0x4a2   : > { %v4843_v15 = vrot.slane %v4311_v33, 2  ;;  %v6584_v47 = vrot.slane %v5751_v13, 2  ;;  %v4313_v39 = vpop.f32.mrb[185].mxu1  ;;  %v15939_v5 = vpop.f32.mrb[142].mxu0 }
 0x4a3   : > { %v6136_v46 = vrot.slane %v15939_v5, 1  ;;  %v4314_v7 = vpop.f32.mrb[186].mxu1  ;;  %v5755_v27 = vpop.f32.mrb[143].mxu0  ;;  %v6135_v56 = vsel %vm4398_vm0, %v6132_v17, %v6134_v55  ;;  %v5604_v45 = vpack.c.bf16 %v5112_v14, %v5111_v21  ;;  %v5113_v12 = vmax.f32 %v5048_v16, 0.0 }
 0x4a4   : > { %v4844_v19 = vsel %vm4723_vm1, %v4841_v30, %v4843_v15  ;;  %v4845_v18 = vrot.slane %v4314_v7, 2  ;;  %v6586_v28 = vrot.slane %v5755_v27, 2  ;;  %v4316_v4 = vpop.f32.mrb[187].mxu1  ;;  %6262 = vrot.lane.b32.xlu0 %v6135_v56, %s13848_s11  ;;  %v15946_v41 = vsel %vm4723_vm1, %v6582_v40, %v6584_v47 }
 0x4a5   : > { %v4977_v10 = vadd.f32 %v4844_v19, %v15673_v37  ;;  %6018 = vmatmul.mubr.bf16.gmra.mrb[248].mxu0 %v5604_v45  ;;  %v6137_v60 = vsel %vm4398_vm0, %v6134_v55, %v6136_v46 }
 0x4a6   : > { %v4846_v25 = vsel %vm4723_vm1, %v4843_v15, %v4845_v18  ;;  %6264 = vrot.lane.b32.xlu1 %v6137_v60, %s13848_s11  ;;  %6027 = vmatprep.mubr.bf16.mxu0 %v17904_v3  ;;  %v15955_v2 = vsel %vm4723_vm1, %v6584_v47, %v6586_v28 }
 0x4a7   : > { %v4978_v6 = vadd.f32 %v4846_v25, %v18116_v22  ;;  %v5049_v36 = vadd.f32 %v15933_v32, %v4977_v10 }
 0x4a8   : > { %v15959_v50 = vpop.f32.mrb[144].mxu0 }
 0x4a9   : > { %v6138_v37 = vrot.slane %v15959_v50, 1  ;;  %v4319_v54 = vpop.f32.mrb[188].mxu1  ;;  %v5761_v11 = vpop.f32.mrb[145].mxu0  ;;  %v5114_v26 = vmax.f32 %v5049_v36, 0.0  ;;  %v5050_v1 = vadd.f32 %v15933_v32, %v4978_v6 }
 0x4aa   : > { %v4847_v57 = vrot.slane %v4319_v54, 2  ;;  %v6588_v61 = vrot.slane %v5761_v11, 2  ;;  %v4321_v52 = vpop.f32.mrb[189].mxu1  ;;  %v15962_v43 = vpop.f32.mrb[146].mxu0 }
 0x4ab   : > { %v6140_v17 = vrot.slane %v15962_v43, 1  ;;  %v4322_v0 = vpop.f32.mrb[190].mxu1  ;;  %v5765_v38 = vpop.f32.mrb[147].mxu0  ;;  %v6139_v44 = vsel %vm4398_vm0, %v6136_v46, %v6138_v37  ;;  %v5605_v29 = vpack.c.bf16 %v5114_v26, %v5113_v12  ;;  %v5115_v13 = vmax.f32 %v5050_v1, 0.0 }
 0x4ac   : > { %v4848_v20 = vsel %vm4723_vm1, %v4845_v18, %v4847_v57  ;;  %v4849_v30 = vrot.slane %v4322_v0, 2  ;;  %v6590_v40 = vrot.slane %v5765_v38, 2  ;;  %v4324_v49 = vpop.f32.mrb[191].mxu1  ;;  %6266 = vrot.lane.b32.xlu1 %v6139_v44, %s13848_s11  ;;  %v15969_v63 = vsel %vm4723_vm1, %v6586_v28, %v6588_v61 }
 0x4ad   : > { %v4979_v35 = vadd.f32 %v4848_v20, %v18117_v24  ;;  %6028 = vmatmul.mubr.bf16.gmra.mrb[252].mxu0 %v5605_v29  ;;  %v6141_v42 = vsel %vm4398_vm0, %v6138_v37, %v6140_v17 }
 0x4ae   : > { %v4850_v59 = vsel %vm4723_vm1, %v4847_v57, %v4849_v30  ;;  %6268 = vrot.lane.b32.xlu0 %v6141_v42, %s13848_s11  ;;  %6037 = vmatprep.mubr.bf16.mxu0 %v17904_v3  ;;  %v15978_v34 = vsel %vm4723_vm1, %v6588_v61, %v6590_v40  ;;  %v5185_v61 = vadd.s32 512, %v15706_v58 }
 0x4af   : > { %v5051_v62 = vadd.f32 %v15933_v32, %v4979_v35  ;;  %v4980_v55 = vadd.f32 %v4850_v59, %v15688_v51 }
 0x4b0   : > { %v15982_v33 = vpop.f32.mrb[148].mxu0  ;;  %vm5315_vm5 = vcmp.le.s32.totalorder %v5185_v61, 512 }
 0x4b1   : > { %v5116_v21 = vmax.f32 %v5051_v62, 0.0  ;;  %v6142_v14 = vrot.slane %v15982_v33, 1  ;;  %v4327_v15 = vpop.f32.mrb[192].mxu1  ;;  %v5771_v47 = vpop.f32.mrb[149].mxu0  ;;  %v5052_v25 = vadd.f32 %v15933_v32, %v4980_v55  ;;  %vm12207_vm6 = vmpackc.low %vm5315_vm5, %vm5315_vm5 }
 0x4b2   : > { %v4851_v39 = vrot.slane %v4327_v15, 2  ;;  %v6592_v46 = vrot.slane %v5771_v47, 2  ;;  %v4329_v7 = vpop.f32.mrb[193].mxu1  ;;  %v15985_v27 = vpop.f32.mrb[150].mxu0 }
 0x4b3   : > { %v5606_v56 = vpack.c.bf16 %v5116_v21, %v5115_v13  ;;  %v6144_v45 = vrot.slane %v15985_v27, 1  ;;  %v4330_v19 = vpop.f32.mrb[194].mxu1  ;;  %v5775_v18 = vpop.f32.mrb[151].mxu0  ;;  %v6143_v51 = vsel %vm4398_vm0, %v6140_v17, %v6142_v14  ;;  %v5117_v54 = vmax.f32 %v5052_v25, 0.0 }
 0x4b4   : > { %v4852_v28 = vsel %vm4723_vm1, %v4849_v30, %v4851_v39  ;;  %v4982_v4 = vadd.f32 %v4851_v39, %v15695_v9  ;;  %v6594_v10 = vrot.slane %v5775_v18, 2  ;;  %v4331_v60 = vpop.f32.mrb[195].mxu1  ;;  %6270 = vrot.lane.b32.xlu1 %v6143_v51, %s13848_s11  ;;  %v15993_v16 = vsel %vm4723_vm1, %v6590_v40, %v6592_v46 }
 0x4b5   : > { %v4981_v22 = vadd.f32 %v4852_v28, %v15699_v53  ;;  %6038 = vmatmul.mubr.bf16.gmra.mrb[128].mxu0 %v5606_v56  ;;  %v6145_v6 = vsel %vm4398_vm0, %v6142_v14, %v6144_v45 }
 0x4b6   : > { %6272 = vrot.lane.b32.xlu0 %v6145_v6, %s13848_s11  ;;  %6047 = vmatprep.mubr.bf16.mxu0 %v17904_v3  ;;  %v16001_v9 = vsel %vm4723_vm1, %v6592_v46, %v6594_v10  ;;  %v5054_v52 = vadd.f32 %v15933_v32, %v4982_v4 }
 0x4b7   : > { %v5053_v36 = vadd.f32 %v15933_v32, %v4981_v22 }
 0x4b8   : > { %v16004_v37 = vpop.f32.mrb[152].mxu0  ;;  %v5119_v40 = vmax.f32 %v5054_v52, 0.0 }
 0x4b9   : > { %v5118_v11 = vmax.f32 %v5053_v36, 0.0  ;;  %v6146_v12 = vrot.slane %v16004_v37, 1  ;;  %v5781_v26 = vpop.f32.mrb[153].mxu0 }
 0x4ba   : > { %v6596_v53 = vrot.slane %v5781_v26, 2  ;;  %v16007_v57 = vpop.f32.mrb[154].mxu0  ;;  %v12208_v59 = vpack.c.bf16 %v5119_v40, %v5119_v40 }
 0x4bb   : > { %v5607_v17 = vpack.c.bf16 %v5118_v11, %v5117_v54  ;;  %v6148_v0 = vrot.slane %v16007_v57, 1  ;;  %v5785_v38 = vpop.f32.mrb[155].mxu0  ;;  %v6147_v44 = vsel %vm4398_vm0, %v6144_v45, %v6146_v12 }
 0x4bc   : > { %v6598_v29 = vrot.slane %v5785_v38, 2  ;;  %6274 = vrot.lane.b32.xlu1 %v6147_v44, %s13848_s11  ;;  %v16015_v20 = vsel %vm4723_vm1, %v6594_v10, %v6596_v53 }
 0x4bd   : > { %6048 = vmatmul.mubr.bf16.gmra.mrb[0].mxu0 %v5607_v17  ;;  %v6149_v30 = vsel %vm4398_vm0, %v6146_v12, %v6148_v0 }
 0x4be   : > { %6276 = vrot.lane.b32.xlu0 %v6149_v30, %s13848_s11  ;;  %6057 = vmatprep.mubr.bf16.mxu0 %v17904_v3  ;;  %v16021_v32 = vsel %vm4723_vm1, %v6596_v53, %v6598_v29 }
 0x4c0   : > { %v16023_v49 = vpop.f32.mrb[156].mxu0 }
 0x4c1   : > { %v6150_v1 = vrot.slane %v16023_v49, 1  ;;  %v5791_v24 = vpop.f32.mrb[157].mxu0 }
 0x4c2   : > { %v6600_v35 = vrot.slane %v5791_v24, 2  ;;  %v16026_v42 = vpop.f32.mrb[158].mxu0 }
 0x4c3   : > { %v6152_v62 = vrot.slane %v16026_v42, 1  ;;  %v5795_v55 = vpop.f32.mrb[159].mxu0  ;;  %v6151_v3 = vsel %vm4398_vm0, %v6148_v0, %v6150_v1 }
 0x4c4   : > { %v6602_v13 = vrot.slane %v5795_v55, 2  ;;  %6278 = vrot.lane.b32.xlu1 %v6151_v3, %s13848_s11  ;;  %v16032_v21 = vsel %vm4723_vm1, %v6598_v29, %v6600_v35 }
 0x4c5   : > { %12209 = vmatmul.mubr.msk.bf16.gmra.mrb[4].mxu0 %vm12207_vm6, %v12208_v59  ;;  %v6153_v14 = vsel %vm4398_vm0, %v6150_v1, %v6152_v62 }
 0x4c6   : > { %6280 = vrot.lane.b32.xlu0 %v6153_v14, %s13848_s11  ;;  %v16037_v15 = vsel %vm4723_vm1, %v6600_v35, %v6602_v13 }
 0x4c8   : > { %v16039_v47 = vpop.f32.mrb[160].mxu0 }
 0x4c9   : > { %v6154_v39 = vrot.slane %v16039_v47, 1  ;;  %v5801_v46 = vpop.f32.mrb[161].mxu0 }
 0x4ca   : > { %v6604_v7 = vrot.slane %v5801_v46, 2  ;;  %v16042_v56 = vpop.f32.mrb[162].mxu0 }
 0x4cb   : > { %18118 = vst [vmem:[#allocation16_spill] sm:$0xff] %v16042_v56  ;;  %v6156_v45 = vrot.slane %v16042_v56, 1  ;;  %v5805_v19 = vpop.f32.mrb[163].mxu0  ;;  %v6155_v18 = vsel %vm4398_vm0, %v6152_v62, %v6154_v39 }
 0x4cc   : > { %v6606_v51 = vrot.slane %v5805_v19, 2  ;;  %6282 = vrot.lane.b32.xlu1 %v6155_v18, %s13848_s11  ;;  %v16048_v28 = vsel %vm4723_vm1, %v6602_v13, %v6604_v7 }
 0x4cd   : > { %v6157_v4 = vsel %vm4398_vm0, %v6154_v39, %v6156_v45 }
 0x4ce   : > { %6284 = vrot.lane.b32.xlu0 %v6157_v4, %s13848_s11  ;;  %v16053_v10 = vsel %vm4723_vm1, %v6604_v7, %v6606_v51 }
 0x4cf   : > { %18119 = vst [vmem:[#allocation17_spill] sm:$0xff] %v16053_v10 }
 0x4d0   : > { %v16055_v60 = vpop.f32.mrb[164].mxu0 }
 0x4d1   : > { %18120 = vst [vmem:[#allocation18_spill] sm:$0xff] %v16055_v60  ;;  %v6158_v25 = vrot.slane %v16055_v60, 1  ;;  %v5811_v22 = vpop.f32.mrb[165].mxu0 }
 0x4d2   : > { %v6608_v6 = vrot.slane %v5811_v22, 2  ;;  %v16058_v36 = vpop.f32.mrb[166].mxu0 }
 0x4d3   : > { %18121 = vst [vmem:[#allocation19_spill] sm:$0xff] %v16058_v36  ;;  %v6160_v54 = vrot.slane %v16058_v36, 1  ;;  %v5815_v11 = vpop.f32.mrb[167].mxu0  ;;  %v6159_v12 = vsel %vm4398_vm0, %v6156_v45, %v6158_v25 }
 0x4d4   : > { %v6610_v26 = vrot.slane %v5815_v11, 2  ;;  %6286 = vrot.lane.b32.xlu1 %v6159_v12, %s13848_s11  ;;  %v16064_v53 = vsel %vm4723_vm1, %v6606_v51, %v6608_v6 }
 0x4d5   : > { %18122 = vst [vmem:[#allocation20_spill] sm:$0xff] %v16064_v53  ;;  %v6161_v61 = vsel %vm4398_vm0, %v6158_v25, %v6160_v54 }
 0x4d6   : > { %6288 = vrot.lane.b32.xlu0 %v6161_v61, %s13848_s11  ;;  %v16069_v52 = vsel %vm4723_vm1, %v6608_v6, %v6610_v26 }
 0x4d7   : > { %18123 = vst [vmem:[#allocation21_spill] sm:$0xff] %v16069_v52 }
 0x4d8   : > { %v16071_v17 = vpop.f32.mrb[168].mxu0 }
 0x4d9   : > { %18124 = vst [vmem:[#allocation22_spill] sm:$0xff] %v16071_v17  ;;  %v6162_v0 = vrot.slane %v16071_v17, 1  ;;  %v5821_v38 = vpop.f32.mrb[169].mxu0 }
 0x4da   : > { %v16074_v44 = vpop.f32.mrb[170].mxu0  ;;  %v6612_v62 = vrot.slane %v5821_v38, 2 }
 0x4db   : > { %18125 = vst [vmem:[#allocation23_spill] sm:$0xff] %v16074_v44  ;;  %v6164_v29 = vrot.slane %v16074_v44, 1  ;;  %v5825_v30 = vpop.f32.mrb[171].mxu0  ;;  %v6163_v40 = vsel %vm4398_vm0, %v6160_v54, %v6162_v0 }
 0x4dc   : > { %6290 = vrot.lane.b32.xlu1 %v6163_v40, %s13848_s11  ;;  %v6614_v39 = vrot.slane %v5825_v30, 2  ;;  %v16094_v7 = vsel %vm4723_vm1, %v6610_v26, %v6612_v62 }
 0x4dd   : > { %v6165_v1 = vsel %vm4398_vm0, %v6162_v0, %v6164_v29  ;;  %18128 = vst [vmem:[#allocation26_spill] sm:$0xff] %v16094_v7 }
 0x4de   : > { %6292 = vrot.lane.b32.xlu0 %v6165_v1, %s13848_s11  ;;  %v16099_v19 = vsel %vm4723_vm1, %v6612_v62, %v6614_v39 }
 0x4df   : > { %18130 = vst [vmem:[#allocation28_spill] sm:$0xff] %v16099_v19 }
 0x4e0   : > { %v16081_v24 = vpop.f32.mrb[172].mxu0 }
 0x4e1   : > { %18126 = vst [vmem:[#allocation24_spill] sm:$0xff] %v16081_v24  ;;  %v6166_v35 = vrot.slane %v16081_v24, 1  ;;  %v5831_v59 = vpop.f32.mrb[173].mxu0 }
 0x4e2   : > { %v16084_v55 = vpop.f32.mrb[174].mxu0  ;;  %v6616_v4 = vrot.slane %v5831_v59, 2 }
 0x4e3   : > { %18127 = vst [vmem:[#allocation25_spill] sm:$0xff] %v16084_v55  ;;  %v6168_v3 = vrot.slane %v16084_v55, 1  ;;  %v16087_v13 = vpop.f32.mrb[175].mxu0  ;;  %v6167_v14 = vsel %vm4398_vm0, %v6164_v29, %v6166_v35 }
 0x4e4   : > { %6294 = vrot.lane.b32.xlu0 %v6167_v14, %s13848_s11  ;;  %v16114_v12 = vsel %vm4723_vm1, %v6614_v39, %v6616_v4 }
 0x4e5   : > { %v6169_v46 = vsel %vm4398_vm0, %v6166_v35, %v6168_v3  ;;  %18134 = vst [vmem:[#allocation32_spill] sm:$0xff] %v16114_v12  ;;  %v6618_v35 = vrot.slane %v16087_v13, 2 }
 0x4e6   : > { %6296 = vrot.lane.b32.xlu1 %v6169_v46, %s13848_s11 }
 0x4e8   : > { %v16096_v45 = vpop.f32.mrb[176].mxu0 }
 0x4e9   : > { %18129 = vst [vmem:[#allocation27_spill] sm:$0xff] %v16096_v45  ;;  %v6170_v18 = vrot.slane %v16096_v45, 1  ;;  %v16102_v51 = vpop.f32.mrb[177].mxu0 }
 0x4ea   : > { %18131 = vst [vmem:[#allocation29_spill] sm:$0xff] %v16102_v51  ;;  %v16104_v25 = vpop.f32.mrb[178].mxu0 }
 0x4eb   : > { %18132 = vst [vmem:[#allocation30_spill] sm:$0xff] %v16104_v25  ;;  %v6172_v22 = vrot.slane %v16104_v25, 1  ;;  %v16107_v6 = vpop.f32.mrb[179].mxu0  ;;  %v6171_v54 = vsel %vm4398_vm0, %v6168_v3, %v6170_v18 }
 0x4ec   : > { %18133 = vst [vmem:[#allocation31_spill] sm:$0xff] %v16107_v6  ;;  %6298 = vrot.lane.b32.xlu1 %v6171_v54, %s13848_s11 }
 0x4ed   : > { %v6173_v11 = vsel %vm4398_vm0, %v6170_v18, %v6172_v22 }
 0x4ee   : > { %6300 = vrot.lane.b32.xlu0 %v6173_v11, %s13848_s11 }
 0x4f0   : > { %v16116_v26 = vpop.f32.mrb[180].mxu0 }
 0x4f1   : > { %18135 = vst [vmem:[#allocation33_spill] sm:$0xff] %v16116_v26  ;;  %v6174_v61 = vrot.slane %v16116_v26, 1  ;;  %v16119_v0 = vpop.f32.mrb[181].mxu0 }
 0x4f2   : > { %18136 = vst [vmem:[#allocation34_spill] sm:$0xff] %v16119_v0  ;;  %v16121_v38 = vpop.f32.mrb[182].mxu0 }
 0x4f3   : > { %18137 = vst [vmem:[#allocation35_spill] sm:$0xff] %v16121_v38  ;;  %v6176_v29 = vrot.slane %v16121_v38, 1  ;;  %v16124_v30 = vpop.f32.mrb[183].mxu0  ;;  %v6175_v40 = vsel %vm4398_vm0, %v6172_v22, %v6174_v61  ;;  %v16143_v22 = vsel %vm4723_vm1, %v6616_v4, %v6618_v35 }
 0x4f4   : > { %18138 = vst [vmem:[#allocation36_spill] sm:$0xff] %v16124_v30  ;;  %6302 = vrot.lane.b32.xlu0 %v6175_v40, %s13848_s11  ;;  %18143 = vst [vmem:[#allocation39_spill] sm:$0xff] %v16143_v22 }
 0x4f5   : > { %v6177_v1 = vsel %vm4398_vm0, %v6174_v61, %v6176_v29 }
 0x4f6   : > { %6304 = vrot.lane.b32.xlu1 %v6177_v1, %s13848_s11 }
 0x4f8   : > { %v16131_v59 = vpop.f32.mrb[184].mxu0 }
 0x4f9   : > { %18139 = vst [vmem:[#allocation37_spill] sm:$0xff] %v16131_v59  ;;  %v6178_v62 = vrot.slane %v16131_v59, 1  ;;  %v16134_v3 = vpop.f32.mrb[185].mxu0 }
 0x4fa   : > { %18140 = vst [vmem:[#allocation71_spill] sm:$0xff] %v16134_v3  ;;  %v16136_v14 = vpop.f32.mrb[186].mxu0 }
 0x4fb   : > { %18141 = vst [vmem:[#allocation72_spill] sm:$0xff] %v16136_v14  ;;  %v6180_v39 = vrot.slane %v16136_v14, 1  ;;  %v16139_v46 = vpop.f32.mrb[187].mxu0  ;;  %v6179_v18 = vsel %vm4398_vm0, %v6176_v29, %v6178_v62 }
 0x4fc   : > { %18142 = vst [vmem:[#allocation38_spill] sm:$0xff] %v16139_v46  ;;  %6306 = vrot.lane.b32.xlu1 %v6179_v18, %s13848_s11 }
 0x4fd   : > { %v6181_v13 = vsel %vm4398_vm0, %v6178_v62, %v6180_v39 }
 0x4fe   : > { %6308 = vrot.lane.b32.xlu0 %v6181_v13, %s13848_s11 }
 0x500   : > { %v16148_v54 = vpop.f32.mrb[188].mxu0 }
 0x501   : > { %18144 = vst [vmem:[#allocation40_spill] sm:$0xff] %v16148_v54  ;;  %v6182_v11 = vrot.slane %v16148_v54, 1  ;;  %v16151_v61 = vpop.f32.mrb[189].mxu0 }
 0x502   : > { %18145 = vst [vmem:[#allocation41_spill] sm:$0xff] %v16151_v61  ;;  %v16153_v40 = vpop.f32.mrb[190].mxu0 }
 0x503   : > { %18146 = vst [vmem:[#allocation73_spill] sm:$0xff] %v16153_v40  ;;  %v6184_v1 = vrot.slane %v16153_v40, 1  ;;  %v16156_v29 = vpop.f32.mrb[191].mxu0  ;;  %v6183_v4 = vsel %vm4398_vm0, %v6180_v39, %v6182_v11 }
 0x504   : > { %18147 = vst [vmem:[#allocation74_spill] sm:$0xff] %v16156_v29  ;;  %6310 = vrot.lane.b32.xlu0 %v6183_v4, %s13848_s11  ;;  %v13849_v4 = vmov 1983009808  }
 0x505   : > { %v6185_v62 = vsel %vm4398_vm0, %v6182_v11, %v6184_v1 }
 0x506   : > { %6312 = vrot.lane.b32.xlu1 %v6185_v62, %s13848_s11  ;;  %v7039_v62 = vunpack.c.l.s4 %v13849_v4 }
 0x508   : > { %v16162_v18 = vpop.f32.mrb[192].mxu0  ;;  %v7040_v25 = vunpack.c.0.s8 %v7039_v62 }
 0x509   : > { %18148 = vst [vmem:[#allocation42_spill] sm:$0xff] %v16162_v18  ;;  %v6186_v13 = vrot.slane %v16162_v18, 1  ;;  %v16165_v54 = vpop.f32.mrb[193].mxu0 }
 0x50a   : > { %18149 = vst [vmem:[#allocation43_spill] sm:$0xff] %v16165_v54  ;;  %v16167_v14 = vpop.f32.mrb[194].mxu0 }
 0x50b   : > { %18150 = vst [vmem:[#allocation44_spill] sm:$0xff] %v16167_v14  ;;  %v6188_v40 = vrot.slane %v16167_v14, 1  ;;  %v16170_v59 = vpop.f32.mrb[195].mxu0  ;;  %v6187_v39 = vsel %vm4398_vm0, %v6184_v1, %v6186_v13  ;;  %v16186_v1 = vld [vmem:[%s17736_s4] ss:$0 sm:$0xff] }
 0x50c   : > { %18151 = vst [vmem:[#allocation45_spill] sm:$0xff] %v16170_v59  ;;  %6314 = vrot.lane.b32.xlu1 %v6187_v39, %s13848_s11 }
 0x50d   : > { %v6189_v11 = vsel %vm4398_vm0, %v6186_v13, %v6188_v40 }
 0x50e   : > { %6316 = vrot.lane.b32.xlu0 %v6189_v11, %s13848_s11 }
 0x510   : > { %v6261_v38 = vpop.permute.xlu0 %6260  ;;  %v16176_v18 = vpop.f32.mrb[196].mxu0 }
 0x511   : > { %18152 = vst [vmem:[#allocation53_spill] sm:$0xff] %v16176_v18  ;;  %v6452_v14 = vadd.f32 %v6261_v38, %v15913_v31  ;;  %v6190_v45 = vrot.slane %v16176_v18, 1  ;;  %v16181_v55 = vpop.f32.mrb[197].mxu0  ;;  %v16197_v31 = vsub.s32 %v7040_v25, %v15706_v58  ;;  %v18156_v18 = vrot.slane %v16102_v51, 2 }
 0x512   : > { %18153 = vst [vmem:[#allocation75_spill] sm:$0xff] %v16181_v55  ;;  %v16188_v13 = vpop.f32.mrb[198].mxu0 }
 0x513   : > { %18154 = vst [vmem:[#allocation46_spill] sm:$0xff] %v16188_v13  ;;  %v6774_v39 = vadd.f32 %v15927_v8, %v6452_v14  ;;  %v6192_v11 = vrot.slane %v16188_v13, 1  ;;  %v16192_v4 = vpop.f32.mrb[199].mxu0  ;;  %v6191_v62 = vsel %vm4398_vm0, %v6188_v40, %v6190_v45  ;;  %v16204_v22 = vsel %vm4723_vm1, %v6618_v35, %v18156_v18 }
 0x514   : > { %18155 = vst [vmem:[#allocation47_spill] sm:$0xff] %v16192_v4  ;;  %6318 = vrot.lane.b32.xlu0 %v6191_v62, %s13848_s11  ;;  %18157 = vst [vmem:[#allocation48_spill] sm:$0xff] %v16204_v22 }
 0x515   : > { %v6845_v38 = vadd.f32 %v16186_v1, %v6774_v39  ;;  %v6193_v26 = vsel %vm4398_vm0, %v6190_v45, %v6192_v11 }
 0x516   : > { %v6263_v62 = vpop.permute.xlu0 %6262  ;;  %6320 = vrot.lane.b32.xlu1 %v6193_v26, %s13848_s11 }
 0x517   : > { %v6909_v45 = vmax.f32 %v6845_v38, 0.0  ;;  %v6453_v39 = vadd.f32 %v6263_v62, %v15915_v48 }
 0x518   : > { %v6265_v40 = vpop.permute.xlu1 %6264  ;;  %v16217_v13 = vpop.f32.mrb[200].mxu0 }
 0x519   : > { %18158 = vst [vmem:[#allocation49_spill] sm:$0xff] %v16217_v13  ;;  %v7037_v30 = vcombine.high %v6909_v45, %v6909_v45  ;;  %v7044_v26 = vrot.slane %v6909_v45, %v16197_v31  ;;  %v6775_v58 = vadd.f32 %v15946_v41, %v6453_v39  ;;  %v6454_v38 = vadd.f32 %v6265_v40, %v15936_v23  ;;  %v16222_v25 = vpop.f32.mrb[201].mxu0 }
 0x51a   : > { %18159 = vst [vmem:[#allocation57_spill] sm:$0xff] %v16222_v25  ;;  %v16228_v18 = vpop.f32.mrb[202].mxu0 }
 0x51b   : > { %18160 = vst [vmem:[#allocation59_spill] sm:$0xff] %v16228_v18  ;;  %v7051_v35 = vrot.slane %v7037_v30, %v16197_v31  ;;  %v7052_v59 = vcombine.high %v7044_v26, %v7044_v26  ;;  %v8382_v45 = vsel %vm8381_vm7, %v7044_v26, -inf  ;;  %v6846_v41 = vadd.f32 %v16186_v1, %v6775_v58  ;;  %v16233_v23 = vpop.f32.mrb[203].mxu0 }
 0x51c   : > { %18161 = vst [vmem:[#allocation50_spill] sm:$0xff] %v16233_v23  ;;  %v8383_v40 = vrot.slane %v8382_v45, 4  ;;  %v6776_v39 = vadd.f32 %v15955_v2, %v6454_v38  ;;  %v18162_v38 = vrot.slane %v16217_v13, 1 }
 0x51d   : > { %v7053_v8 = vcombine.high %v7051_v35, %v7051_v35  ;;  %v8389_v14 = vsel %vm8381_vm7, %v7052_v59, -inf  ;;  %v8396_v25 = vsel %vm8381_vm7, %v7051_v35, -inf  ;;  %v6910_v30 = vmax.f32 %v6846_v41, 0.0 }
 0x51e   : > { %v8384_v4 = vmax.f32 %v8382_v45, %v8383_v40  ;;  %v8390_v55 = vrot.slane %v8389_v14, 4  ;;  %v8397_v26 = vrot.slane %v8396_v25, 4  ;;  %v6847_v58 = vadd.f32 %v16186_v1, %v6776_v39 }
 0x51f   : > { %v8403_v54 = vsel %vm8381_vm7, %v7053_v8, -inf  ;;  %v7054_v29 = vcombine.high %v6910_v30, %v6910_v30  ;;  %v7061_v2 = vrot.slane %v6910_v30, %v16197_v31  ;;  %v6195_v48 = vsel %vm4398_vm0, %v6192_v11, %v18162_v38 }
 0x520   : > { %v8385_v62 = vrot.slane %v8384_v4, 2  ;;  %v8391_v23 = vmax.f32 %v8389_v14, %v8390_v55  ;;  %v8398_v59 = vmax.f32 %v8396_v25, %v8397_v26  ;;  %v8404_v61 = vrot.slane %v8403_v54, 4  ;;  %6322 = vrot.lane.b32.xlu1 %v6195_v48, %s13848_s11  ;;  %v16247_v35 = vpop.f32.mrb[204].mxu0  ;;  %v6269_v52 = vpop.permute.xlu0 %6268 }
 0x521   : > { %v7068_v45 = vrot.slane %v7054_v29, %v16197_v31  ;;  %v7069_v41 = vcombine.high %v7061_v2, %v7061_v2  ;;  %v8410_v8 = vsel %vm8381_vm7, %v7061_v2, -inf  ;;  %v16251_v40 = vmax.f32 %v6847_v58, 0.0  ;;  %v16253_v39 = vpop.f32.mrb[205].mxu0 }
 0x522   : > { %18163 = vst [vmem:[#allocation51_spill] sm:$0xff] %v16253_v39  ;;  %v8386_v30 = vmax.f32 %v8384_v4, %v8385_v62  ;;  %v8392_v46 = vrot.slane %v8391_v23, 2  ;;  %v8399_v11 = vrot.slane %v8398_v59, 2  ;;  %v8405_v38 = vmax.f32 %v8403_v54, %v8404_v61  ;;  %v16255_v55 = vpop.f32.mrb[206].mxu0 }
 0x523   : > { %v7070_v14 = vcombine.high %v7068_v45, %v7068_v45  ;;  %v8411_v25 = vrot.slane %v8410_v8, 4  ;;  %v8417_v48 = vsel %vm8381_vm7, %v7069_v41, -inf  ;;  %v8424_v29 = vsel %vm8381_vm7, %v7068_v45, -inf  ;;  %v16259_v26 = vpop.f32.mrb[207].mxu0 }
 0x524   : > { %18164 = vst [vmem:[#allocation52_spill] sm:$0xff] %v16259_v26  ;;  %v8387_v58 = vrot.slane %v8386_v30, 1  ;;  %v8393_v2 = vmax.f32 %v8391_v23, %v8392_v46  ;;  %v8400_v3 = vmax.f32 %v8398_v59, %v8399_v11  ;;  %v8406_v0 = vrot.slane %v8405_v38, 2 }
 0x525   : > { %v8412_v4 = vmax.f32 %v8410_v8, %v8411_v25  ;;  %v8418_v62 = vrot.slane %v8417_v48, 4  ;;  %v8425_v54 = vrot.slane %v8424_v29, 4  ;;  %v8431_v61 = vsel %vm8381_vm7, %v7070_v14, -inf }
 0x526   : > { %v8388_v51 = vmax.f32 %v8386_v30, %v8387_v58  ;;  %v8394_v6 = vrot.slane %v8393_v2, 1  ;;  %v8401_v22 = vrot.slane %v8400_v3, 1  ;;  %v8407_v24 = vmax.f32 %v8405_v38, %v8406_v0 }
 0x527   : > { %v8413_v41 = vrot.slane %v8412_v4, 2  ;;  %v8419_v12 = vmax.f32 %v8417_v48, %v8418_v62  ;;  %v8426_v45 = vmax.f32 %v8424_v29, %v8425_v54  ;;  %v8432_v44 = vrot.slane %v8431_v61, 4 }
 0x528   : > { %v8395_v19 = vmax.f32 %v8393_v2, %v8394_v6  ;;  %v8402_v17 = vmax.f32 %v8400_v3, %v8401_v22  ;;  %v8408_v7 = vrot.slane %v8407_v24, 1  ;;  %v12470_v46 = vpack.c.bf16 %v8388_v51, %v8388_v51  ;;  %v16262_v23 = vpop.f32.mrb[208].mxu0 }
 0x529   : > { %v8414_v59 = vmax.f32 %v8412_v4, %v8413_v41  ;;  %v8420_v8 = vrot.slane %v8419_v12, 2  ;;  %v8427_v11 = vrot.slane %v8426_v45, 2  ;;  %v8433_v25 = vmax.f32 %v8431_v61, %v8432_v44  ;;  %v16264_v14 = vpop.f32.mrb[209].mxu0 }
 0x52a   : > { %v8409_v30 = vmax.f32 %v8407_v24, %v8408_v7  ;;  %v12471_v58 = vpack.c.bf16 %v8395_v19, %v8395_v19  ;;  %v12472_v0 = vpack.c.bf16 %v8402_v17, %v8402_v17  ;;  %v11198_v38 = vunpack.c.l.b16 %v12470_v46  ;;  %v16266_v48 = vpop.f32.mrb[210].mxu0 }
 0x52b   : > { %v8415_v6 = vrot.slane %v8414_v59, 1  ;;  %v8421_v3 = vmax.f32 %v8419_v12, %v8420_v8  ;;  %v8428_v51 = vmax.f32 %v8426_v45, %v8427_v11  ;;  %v8434_v22 = vrot.slane %v8433_v25, 2  ;;  %v16268_v29 = vpop.f32.mrb[211].mxu0 }
 0x52c   : > { %v12473_v2 = vpack.c.bf16 %v8409_v30, %v8409_v30  ;;  %v11199_v4 = vunpack.c.l.b16 %v12471_v58  ;;  %v11200_v62 = vunpack.c.l.b16 %v12472_v0  ;;  %v7071_v44 = vcombine.high %v16251_v40, %v16251_v40 }
 0x52d   : > { %v8416_v24 = vmax.f32 %v8414_v59, %v8415_v6  ;;  %v8422_v17 = vrot.slane %v8421_v3, 1  ;;  %v8429_v7 = vrot.slane %v8428_v51, 1  ;;  %v8435_v19 = vmax.f32 %v8433_v25, %v8434_v22 }
 0x52e   : > { %v11201_v54 = vunpack.c.l.b16 %v12473_v2  ;;  %v11455_v61 = vsel %vm11454_vm8, %v11199_v4, %v11198_v38  ;;  %v7078_v12 = vrot.slane %v16251_v40, %v16197_v31  ;;  %v7085_v41 = vrot.slane %v7071_v44, %v16197_v31 }
 0x52f   : > { %v11457_v45 = vsel %vm11456_vm9, %v11200_v62, %v11455_v61  ;;  %v8423_v46 = vmax.f32 %v8421_v3, %v8422_v17  ;;  %v8430_v8 = vmax.f32 %v8428_v51, %v8429_v7  ;;  %v8436_v11 = vrot.slane %v8435_v19, 1 }
 0x530   : > { %v11459_v30 = vsel %vm11458_vm10, %v11201_v54, %v11457_v45  ;;  %v12474_v59 = vpack.c.bf16 %v8416_v24, %v8416_v24  ;;  %v7086_v58 = vcombine.high %v7078_v12, %v7078_v12  ;;  %v7087_v0 = vcombine.high %v7085_v41, %v7085_v41  ;;  %v16278_v25 = vpop.f32.mrb[212].mxu0 }
 0x531   : > { %v8437_v6 = vmax.f32 %v8435_v19, %v8436_v11  ;;  %v12475_v38 = vpack.c.bf16 %v8423_v46, %v8423_v46  ;;  %v12476_v22 = vpack.c.bf16 %v8430_v8, %v8430_v8  ;;  %v8438_v40 = vsel %vm8381_vm7, %v7078_v12, -inf  ;;  %v16281_v2 = vpop.f32.mrb[213].mxu0  ;;  %v6267_v19 = vpop.permute.xlu1 %6266 }
 0x532   : > { %v11202_v4 = vunpack.c.l.b16 %v12474_v59  ;;  %v8439_v62 = vrot.slane %v8438_v40, 4  ;;  %v8445_v3 = vsel %vm8381_vm7, %v7086_v58, -inf  ;;  %v8452_v51 = vsel %vm8381_vm7, %v7085_v41, -inf  ;;  %v16285_v44 = vpop.f32.mrb[214].mxu0 }
 0x533   : > { %18165 = vst [vmem:[#allocation54_spill] sm:$0xff] %v16285_v44  ;;  %v12477_v24 = vpack.c.bf16 %v8437_v6, %v8437_v6  ;;  %v11203_v17 = vunpack.c.l.b16 %v12475_v38  ;;  %v11204_v7 = vunpack.c.l.b16 %v12476_v22  ;;  %v8446_v54 = vrot.slane %v8445_v3, 4  ;;  %v16287_v61 = vpop.f32.mrb[215].mxu0 }
 0x534   : > { %18166 = vst [vmem:[#allocation63_spill] sm:$0xff] %v16287_v61  ;;  %v11461_v12 = vsel %vm11460_vm11, %v11202_v4, %v11459_v30  ;;  %v8440_v45 = vmax.f32 %v8438_v40, %v8439_v62  ;;  %v8453_v46 = vrot.slane %v8452_v51, 4  ;;  %v8459_v8 = vsel %vm8381_vm7, %v7087_v0, -inf }
 0x535   : > { %v11205_v11 = vunpack.c.l.b16 %v12477_v24  ;;  %v11463_v59 = vsel %vm11462_vm12, %v11203_v17, %v11461_v12  ;;  %v8447_v41 = vmax.f32 %v8445_v3, %v8446_v54  ;;  %v8460_v58 = vrot.slane %v8459_v8, 4 }
 0x536   : > { %v11465_v6 = vsel %vm11464_vm13, %v11204_v7, %v11463_v59  ;;  %v8441_v38 = vrot.slane %v8440_v45, 2  ;;  %v8454_v22 = vmax.f32 %v8452_v51, %v8453_v46  ;;  %v6455_v36 = vadd.f32 %v6267_v19, %v15939_v5 }
 0x537   : > { %v11467_v30 = vsel %vm11466_vm14, %v11205_v11, %v11465_v6  ;;  %v8448_v0 = vrot.slane %v8447_v41, 2  ;;  %v8461_v40 = vmax.f32 %v8459_v8, %v8460_v58  ;;  %v18167_v4 = vrot.slane %v16228_v18, 1 }
 0x538   : > { %v18168_v62 = vrot.slane %v16217_v13, 1  ;;  %v11685_v51 = vpack.c.b16 %v11467_v30, %v11467_v30  ;;  %v8442_v24 = vmax.f32 %v8440_v45, %v8441_v38  ;;  %v8455_v5 = vrot.slane %v8454_v22, 2  ;;  %v16308_v7 = vpop.f32.mrb[216].mxu0 }
 0x539   : > { %v6777_v17 = vadd.f32 %v15969_v63, %v6455_v36  ;;  %18169 = vst [vmem:[#allocation76_spill] sm:$0xff] %v16308_v7  ;;  %v8449_v54 = vmax.f32 %v8447_v41, %v8448_v0  ;;  %v8462_v19 = vrot.slane %v8461_v40, 2  ;;  %v6456_v12 = vadd.f32 %v6269_v52, %v15959_v50  ;;  %v16312_v8 = vpop.f32.mrb[217].mxu0 }
 0x53a   : > { %v6197_v3 = vsel %vm4398_vm0, %v18168_v62, %v18167_v4  ;;  %v17814_v46 = vrot.slane %v16247_v35, 1  ;;  %18170 = vst [vmem:[#allocation55_spill] sm:$0xff] %v16312_v8  ;;  %11750 = vst.msk [vmem:[%s16298_s20] sm:$0xf] %vm11749_vm15, %v11685_v51  ;;  %v8443_v11 = vrot.slane %v8442_v24, 1  ;;  %v8456_v59 = vmax.f32 %v8454_v22, %v8455_v5  ;;  %v16318_v36 = vpop.f32.mrb[218].mxu0  ;;  %v6271_v22 = vpop.permute.xlu1 %6270 }
 0x53b   : > { %6324 = vrot.lane.b32.xlu0 %v6197_v3, %s13848_s11  ;;  %v6848_v45 = vadd.f32 %v16186_v1, %v6777_v17  ;;  %18171 = vst [vmem:[#allocation56_spill] sm:$0xff] %v16318_v36  ;;  %v8450_v58 = vrot.slane %v8449_v54, 1  ;;  %v8463_v6 = vmax.f32 %v8461_v40, %v8462_v19  ;;  %v6778_v41 = vadd.f32 %v15978_v34, %v6456_v12  ;;  %v16322_v52 = vpop.f32.mrb[219].mxu0 }
 0x53c   : > { %18172 = vst [vmem:[#allocation58_spill] sm:$0xff] %v16322_v52  ;;  %v8444_v38 = vmax.f32 %v8442_v24, %v8443_v11  ;;  %v8457_v30 = vrot.slane %v8456_v59, 1  ;;  %v18173_v40 = vmov %v18167_v4 }
 0x53d   : > { %v6912_v0 = vmax.f32 %v6848_v45, 0.0  ;;  %v8451_v62 = vmax.f32 %v8449_v54, %v8450_v58  ;;  %v8464_v3 = vrot.slane %v8463_v6, 1  ;;  %v6849_v51 = vadd.f32 %v16186_v1, %v6778_v41 }
 0x53e   : > { %v6199_v34 = vsel %vm4398_vm0, %v18173_v40, %v17814_v46  ;;  %v8458_v5 = vmax.f32 %v8456_v59, %v8457_v30  ;;  %v12478_v17 = vpack.c.bf16 %v8444_v38, %v8444_v38  ;;  %v6457_v54 = vadd.f32 %v6271_v22, %v15962_v43 }
 0x53f   : > { %v7088_v19 = vcombine.high %v6912_v0, %v6912_v0  ;;  %v7095_v24 = vrot.slane %v6912_v0, %v16197_v31  ;;  %6326 = vrot.lane.b32.xlu0 %v6199_v34, %s13848_s11  ;;  %v8465_v12 = vmax.f32 %v8463_v6, %v8464_v3  ;;  %v12479_v11 = vpack.c.bf16 %v8451_v62, %v8451_v62 }
 0x540   : > { %v6913_v45 = vmax.f32 %v6849_v51, 0.0  ;;  %v12480_v58 = vpack.c.bf16 %v8458_v5, %v8458_v5  ;;  %v11206_v41 = vunpack.c.l.b16 %v12478_v17  ;;  %v16335_v50 = vpop.f32.mrb[220].mxu0 }
 0x541   : > { %v7102_v4 = vrot.slane %v7088_v19, %v16197_v31  ;;  %v7103_v63 = vcombine.high %v7095_v24, %v7095_v24  ;;  %18174 = vst [vmem:[#allocation60_spill] sm:$0xff] %v16335_v50  ;;  %v12481_v40 = vpack.c.bf16 %v8465_v12, %v8465_v12  ;;  %v11207_v59 = vunpack.c.l.b16 %v12479_v11  ;;  %v16338_v0 = vpop.f32.mrb[221].mxu0 }
 0x542   : > { %v8466_v38 = vsel %vm8381_vm7, %v7095_v24, -inf  ;;  %v7105_v30 = vcombine.high %v6913_v45, %v6913_v45  ;;  %18175 = vst [vmem:[#allocation68_spill] sm:$0xff] %v16338_v0  ;;  %v11208_v34 = vunpack.c.l.b16 %v12480_v58  ;;  %v16341_v43 = vpop.f32.mrb[222].mxu0  ;;  %v7112_v39 = vrot.slane %v6913_v45, %v16197_v31 }
 0x543   : > { %v7104_v6 = vcombine.high %v7102_v4, %v7102_v4  ;;  %v8467_v62 = vrot.slane %v8466_v38, 4  ;;  %v8473_v3 = vsel %vm8381_vm7, %v7103_v63, -inf  ;;  %18176 = vst [vmem:[#allocation77_spill] sm:$0xff] %v16341_v43  ;;  %v11209_v22 = vunpack.c.l.b16 %v12481_v40  ;;  %v16345_v19 = vpop.f32.mrb[223].mxu0 }
 0x544   : > { %v11468_v51 = vsel %vm11454_vm8, %v11207_v59, %v11206_v41  ;;  %v8474_v5 = vrot.slane %v8473_v3, 4  ;;  %v8480_v17 = vsel %vm8381_vm7, %v7102_v4, -inf  ;;  %18177 = vst [vmem:[#allocation61_spill] sm:$0xff] %v16345_v19  ;;  %v7119_v41 = vrot.slane %v7105_v30, %v16197_v31 }
 0x545   : > { %v11469_v24 = vsel %vm11456_vm9, %v11208_v34, %v11468_v51  ;;  %v8468_v12 = vmax.f32 %v8466_v38, %v8467_v62  ;;  %v8481_v11 = vrot.slane %v8480_v17, 4  ;;  %v8487_v58 = vsel %vm8381_vm7, %v7104_v6, -inf }
 0x546   : > { %v11470_v46 = vsel %vm11458_vm10, %v11209_v22, %v11469_v24  ;;  %v8475_v26 = vmax.f32 %v8473_v3, %v8474_v5  ;;  %v8488_v63 = vrot.slane %v8487_v58, 4  ;;  %v6779_v4 = vadd.f32 %v15993_v16, %v6457_v54 }
 0x547   : > { %v8469_v40 = vrot.slane %v8468_v12, 2  ;;  %v8482_v18 = vmax.f32 %v8480_v17, %v8481_v11  ;;  %v7120_v60 = vcombine.high %v7112_v39, %v7112_v39  ;;  %v8494_v38 = vsel %vm8381_vm7, %v7112_v39, -inf }
 0x548   : > { %v8476_v59 = vrot.slane %v8475_v26, 2  ;;  %v8489_v13 = vmax.f32 %v8487_v58, %v8488_v63  ;;  %v7121_v6 = vcombine.high %v7119_v41, %v7119_v41  ;;  %v8495_v51 = vrot.slane %v8494_v38, 4  ;;  %v16354_v22 = vpop.f32.mrb[224].mxu0 }
 0x549   : > { %v8470_v34 = vmax.f32 %v8468_v12, %v8469_v40  ;;  %v8483_v62 = vrot.slane %v8482_v18, 2  ;;  %18178 = vst [vmem:[#allocation62_spill] sm:$0xff] %v16354_v22  ;;  %v8501_v45 = vsel %vm8381_vm7, %v7120_v60, -inf  ;;  %v8508_v17 = vsel %vm8381_vm7, %v7119_v41, -inf  ;;  %v16358_v30 = vpop.f32.mrb[225].mxu0 }
 0x54a   : > { %v8477_v3 = vmax.f32 %v8475_v26, %v8476_v59  ;;  %v8490_v5 = vrot.slane %v8489_v13, 2  ;;  %18179 = vst [vmem:[#allocation64_spill] sm:$0xff] %v16358_v30  ;;  %v8496_v24 = vmax.f32 %v8494_v38, %v8495_v51  ;;  %v8502_v11 = vrot.slane %v8501_v45, 4  ;;  %v16360_v58 = vpop.f32.mrb[226].mxu0 }
 0x54b   : > { %v8471_v16 = vrot.slane %v8470_v34, 1  ;;  %v8484_v54 = vmax.f32 %v8482_v18, %v8483_v62  ;;  %18180 = vst [vmem:[#allocation65_spill] sm:$0xff] %v16360_v58  ;;  %v8509_v63 = vrot.slane %v8508_v17, 4  ;;  %v8515_v40 = vsel %vm8381_vm7, %v7121_v6, -inf  ;;  %v16363_v22 = vpop.f32.mrb[227].mxu0 }
 0x54c   : > { %v8478_v39 = vrot.slane %v8477_v3, 1  ;;  %v8491_v12 = vmax.f32 %v8489_v13, %v8490_v5  ;;  %18181 = vst [vmem:[#allocation69_spill] sm:$0xff] %v16363_v22  ;;  %v8497_v60 = vrot.slane %v8496_v24, 2  ;;  %v8503_v53 = vmax.f32 %v8501_v45, %v8502_v11 }
 0x54d   : > { %v8472_v26 = vmax.f32 %v8470_v34, %v8471_v16  ;;  %v8485_v59 = vrot.slane %v8484_v54, 1  ;;  %v8510_v30 = vmax.f32 %v8508_v17, %v8509_v63  ;;  %v8516_v19 = vrot.slane %v8515_v40, 4 }
 0x54e   : > { %v8479_v41 = vmax.f32 %v8477_v3, %v8478_v39  ;;  %v8492_v56 = vrot.slane %v8491_v12, 1  ;;  %v8498_v62 = vmax.f32 %v8496_v24, %v8497_v60  ;;  %v8504_v51 = vrot.slane %v8503_v53, 2 }
 0x54f   : > { %v8486_v18 = vmax.f32 %v8484_v54, %v8485_v59  ;;  %v12482_v38 = vpack.c.bf16 %v8472_v26, %v8472_v26  ;;  %v8511_v13 = vrot.slane %v8510_v30, 2  ;;  %v8517_v5 = vmax.f32 %v8515_v40, %v8516_v19 }
 0x550   : > { %v8493_v58 = vmax.f32 %v8491_v12, %v8492_v56  ;;  %v12483_v10 = vpack.c.bf16 %v8479_v41, %v8479_v41  ;;  %v8499_v0 = vrot.slane %v8498_v62, 1  ;;  %v8505_v22 = vmax.f32 %v8503_v53, %v8504_v51 }
 0x551   : > { %v12484_v43 = vpack.c.bf16 %v8486_v18, %v8486_v18  ;;  %v11210_v6 = vunpack.c.l.b16 %v12482_v38  ;;  %v8512_v50 = vmax.f32 %v8510_v30, %v8511_v13  ;;  %v8518_v45 = vrot.slane %v8517_v5, 2 }
 0x552   : > { %v12485_v34 = vpack.c.bf16 %v8493_v58, %v8493_v58  ;;  %v11211_v16 = vunpack.c.l.b16 %v12483_v10  ;;  %v8500_v11 = vmax.f32 %v8498_v62, %v8499_v0  ;;  %v8506_v54 = vrot.slane %v8505_v22, 1  ;;  %v6273_v10 = vpop.permute.xlu0 %6272 }
 0x553   : > { %v11212_v3 = vunpack.c.l.b16 %v12484_v43  ;;  %v11471_v17 = vsel %vm11460_vm11, %v11210_v6, %v11470_v46  ;;  %v8513_v56 = vrot.slane %v8512_v50, 1  ;;  %v8519_v12 = vmax.f32 %v8517_v5, %v8518_v45 }
 0x554   : > { %v11213_v39 = vunpack.c.l.b16 %v12485_v34  ;;  %v11472_v24 = vsel %vm11462_vm12, %v11211_v16, %v11471_v17  ;;  %v8507_v63 = vmax.f32 %v8505_v22, %v8506_v54  ;;  %v12486_v40 = vpack.c.bf16 %v8500_v11, %v8500_v11  ;;  %v16387_v54 = vpop.f32.mrb[228].mxu0 }
 0x555   : > { %v11473_v19 = vsel %vm11464_vm13, %v11212_v3, %v11472_v24  ;;  %v6850_v53 = vadd.f32 %v16186_v1, %v6779_v4  ;;  %v8514_v43 = vmax.f32 %v8512_v50, %v8513_v56  ;;  %v8520_v58 = vrot.slane %v8519_v12, 1  ;;  %18184 = vst [vmem:[#allocation78_spill] sm:$0xff] %v16387_v54 }
 0x556   : > { %v11474_v30 = vsel %vm11466_vm14, %v11213_v39, %v11473_v19  ;;  %v18182_v46 = vrot.slane %v16255_v55, 1  ;;  %v18183_v0 = vrot.slane %v16247_v35, 1  ;;  %v12487_v60 = vpack.c.bf16 %v8507_v63, %v8507_v63  ;;  %v6275_v19 = vpop.permute.xlu1 %6274  ;;  %v16391_v63 = vpop.f32.mrb[229].mxu0 }
 0x557   : > { %v11686_v59 = vpack.c.b16 %v11474_v30, %v11474_v30  ;;  %v11214_v41 = vunpack.c.l.b16 %v12486_v40  ;;  %v6914_v18 = vmax.f32 %v6850_v53, 0.0  ;;  %v8521_v22 = vmax.f32 %v8519_v12, %v8520_v58  ;;  %18185 = vst [vmem:[#allocation66_spill] sm:$0xff] %v16391_v63  ;;  %v16396_v30 = vpop.f32.mrb[230].mxu0 }
 0x558   : > { %v6201_v26 = vsel %vm4398_vm0, %v18183_v0, %v18182_v46  ;;  %v12488_v38 = vpack.c.bf16 %v8514_v43, %v8514_v43  ;;  %v6458_v4 = vadd.f32 %v6273_v10, %v15982_v33  ;;  %v6202_v62 = vrot.slane %v16262_v23, 1  ;;  %18186 = vst [vmem:[#allocation67_spill] sm:$0xff] %v16396_v30 }
 0x559   : > { %6328 = vrot.lane.b32.xlu1 %v6201_v26, %s13848_s11  ;;  %11751 = vst.msk [vmem:[%s16298_s20 + $0x4] sm:$0xf] %vm11749_vm15, %v11686_v59  ;;  %v11215_v50 = vunpack.c.l.b16 %v12487_v60  ;;  %v7122_v51 = vcombine.high %v6914_v18, %v6914_v18  ;;  %v7129_v13 = vrot.slane %v6914_v18, %v16197_v31  ;;  %v12489_v6 = vpack.c.bf16 %v8521_v22, %v8521_v22  ;;  %v16401_v26 = vpop.f32.mrb[231].mxu0 }
 0x55a   : > { %v11216_v34 = vunpack.c.l.b16 %v12488_v38  ;;  %v6780_v16 = vadd.f32 %v16001_v9, %v6458_v4  ;;  %v6204_v45 = vrot.slane %v16266_v48, 1  ;;  %18187 = vst [vmem:[#allocation79_spill] sm:$0xff] %v16401_v26  ;;  %v6459_v22 = vadd.f32 %v6275_v19, %v15985_v27 }
 0x55b   : > { %v11475_v3 = vsel %vm11454_vm8, %v11215_v50, %v11214_v41  ;;  %v7136_v33 = vrot.slane %v7122_v51, %v16197_v31  ;;  %v7137_v17 = vcombine.high %v7129_v13, %v7129_v13  ;;  %v8522_v11 = vsel %vm8381_vm7, %v7129_v13, -inf }
 0x55c   : > { %v11217_v39 = vunpack.c.l.b16 %v12489_v6  ;;  %v11476_v24 = vsel %vm11456_vm9, %v11216_v34, %v11475_v3  ;;  %v8523_v56 = vrot.slane %v8522_v11, 4  ;;  %v6851_v12 = vadd.f32 %v16186_v1, %v6780_v16 }
 0x55d   : > { %v7138_v9 = vcombine.high %v7136_v33, %v7136_v33  ;;  %v8529_v40 = vsel %vm8381_vm7, %v7137_v17, -inf  ;;  %v8536_v53 = vsel %vm8381_vm7, %v7136_v33, -inf  ;;  %v18188_v41 = vrot.slane %v16255_v55, 1 }
 0x55e   : > { %v16399_v43 = vsel %vm11458_vm10, %v11217_v39, %v11476_v24  ;;  %v8524_v58 = vmax.f32 %v8522_v11, %v8523_v56  ;;  %v8530_v46 = vrot.slane %v8529_v40, 4  ;;  %v8537_v0 = vrot.slane %v8536_v53, 4 }
 0x55f   : > { %v8543_v59 = vsel %vm8381_vm7, %v7138_v9, -inf  ;;  %v6915_v60 = vmax.f32 %v6851_v12, 0.0  ;;  %v6203_v18 = vsel %vm4398_vm0, %v18188_v41, %v6202_v62  ;;  %v6781_v34 = vadd.f32 %v16015_v20, %v6459_v22 }
 0x560   : > { %v8525_v38 = vrot.slane %v8524_v58, 2  ;;  %v8531_v4 = vmax.f32 %v8529_v40, %v8530_v46  ;;  %v8538_v50 = vmax.f32 %v8536_v53, %v8537_v0  ;;  %v8544_v51 = vrot.slane %v8543_v59, 4  ;;  %6330 = vrot.lane.b32.xlu1 %v6203_v18, %s13848_s11 }
 0x561   : > { %v7139_v13 = vcombine.high %v6915_v60, %v6915_v60  ;;  %v7146_v6 = vrot.slane %v6915_v60, %v16197_v31  ;;  %v6205_v16 = vsel %vm4398_vm0, %v6202_v62, %v6204_v45  ;;  %v6852_v56 = vadd.f32 %v16186_v1, %v6781_v34 }
 0x562   : > { %v8526_v3 = vmax.f32 %v8524_v58, %v8525_v38  ;;  %v8532_v33 = vrot.slane %v8531_v4, 2  ;;  %v8539_v17 = vrot.slane %v8538_v50, 2  ;;  %v8545_v11 = vmax.f32 %v8543_v59, %v8544_v51  ;;  %6332 = vrot.lane.b32.xlu0 %v6205_v16, %s13848_s11 }
 0x563   : > { %v7153_v27 = vrot.slane %v7139_v13, %v16197_v31  ;;  %v7154_v39 = vcombine.high %v7146_v6, %v7146_v6  ;;  %v8550_v24 = vsel %vm8381_vm7, %v7146_v6, -inf }
 0x564   : > { %v8527_v12 = vrot.slane %v8526_v3, 1  ;;  %v8533_v19 = vmax.f32 %v8531_v4, %v8532_v33  ;;  %v8540_v20 = vmax.f32 %v8538_v50, %v8539_v17  ;;  %v8546_v9 = vrot.slane %v8545_v11, 2 }
 0x565   : > { %v7155_v40 = vcombine.high %v7153_v27, %v7153_v27  ;;  %v8551_v53 = vrot.slane %v8550_v24, 4  ;;  %v8557_v62 = vsel %vm8381_vm7, %v7154_v39, -inf  ;;  %v8564_v58 = vsel %vm8381_vm7, %v7153_v27, -inf }
 0x566   : > { %v8528_v46 = vmax.f32 %v8526_v3, %v8527_v12  ;;  %v8534_v0 = vrot.slane %v8533_v19, 1  ;;  %v8541_v59 = vrot.slane %v8540_v20, 1  ;;  %v8547_v60 = vmax.f32 %v8545_v11, %v8546_v9  ;;  %v6277_v9 = vpop.permute.xlu0 %6276 }
 0x567   : > { %v8552_v41 = vmax.f32 %v8550_v24, %v8551_v53  ;;  %v8558_v18 = vrot.slane %v8557_v62, 4  ;;  %v8565_v22 = vrot.slane %v8564_v58, 4  ;;  %v8571_v38 = vsel %vm8381_vm7, %v7155_v40, -inf }
 0x568   : > { %v8535_v51 = vmax.f32 %v8533_v19, %v8534_v0  ;;  %v8542_v13 = vmax.f32 %v8540_v20, %v8541_v59  ;;  %v8548_v4 = vrot.slane %v8547_v60, 1  ;;  %v12490_v50 = vpack.c.bf16 %v8528_v46, %v8528_v46 }
 0x569   : > { %v8553_v6 = vrot.slane %v8552_v41, 2  ;;  %v8559_v34 = vmax.f32 %v8557_v62, %v8558_v18  ;;  %v8566_v16 = vmax.f32 %v8564_v58, %v8565_v22  ;;  %v8572_v33 = vrot.slane %v8571_v38, 4 }
 0x56a   : > { %v8549_v17 = vmax.f32 %v8547_v60, %v8548_v4  ;;  %v12491_v39 = vpack.c.bf16 %v8535_v51, %v8535_v51  ;;  %v12492_v27 = vpack.c.bf16 %v8542_v13, %v8542_v13  ;;  %v11218_v3 = vunpack.c.l.b16 %v12490_v50 }
 0x56b   : > { %v8554_v12 = vmax.f32 %v8552_v41, %v8553_v6  ;;  %v8560_v10 = vrot.slane %v8559_v34, 2  ;;  %v8567_v11 = vrot.slane %v8566_v16, 2  ;;  %v8573_v24 = vmax.f32 %v8571_v38, %v8572_v33 }
 0x56c   : > { %v12493_v53 = vpack.c.bf16 %v8549_v17, %v8549_v17  ;;  %v11219_v5 = vunpack.c.l.b16 %v12491_v39  ;;  %v11220_v40 = vunpack.c.l.b16 %v12492_v27  ;;  %v11478_v19 = vsel %vm11460_vm11, %v11218_v3, %v16399_v43 }
 0x56d   : > { %v8555_v20 = vrot.slane %v8554_v12, 1  ;;  %v8561_v46 = vmax.f32 %v8559_v34, %v8560_v10  ;;  %v8568_v62 = vmax.f32 %v8566_v16, %v8567_v11  ;;  %v8574_v58 = vrot.slane %v8573_v24, 2 }
 0x56e   : > { %v11221_v0 = vunpack.c.l.b16 %v12493_v53  ;;  %v11479_v59 = vsel %vm11462_vm12, %v11219_v5, %v11478_v19  ;;  %v6916_v60 = vmax.f32 %v6852_v56, 0.0  ;;  %v6460_v41 = vadd.f32 %v6277_v9, %v16004_v37  ;;  %v16434_v53 = vpop.f32.mrb[232].mxu0 }
 0x56f   : > { %v11480_v18 = vsel %vm11464_vm13, %v11220_v40, %v11479_v59  ;;  %v8556_v22 = vmax.f32 %v8554_v12, %v8555_v20  ;;  %v8562_v38 = vrot.slane %v8561_v46, 1  ;;  %v8569_v51 = vrot.slane %v8568_v62, 1  ;;  %18189 = vst [vmem:[#allocation81_spill] sm:$0xff] %v16434_v53 }
 0x570   : > { %v11481_v13 = vsel %vm11466_vm14, %v11221_v0, %v11480_v18  ;;  %v8575_v4 = vmax.f32 %v8573_v24, %v8574_v58  ;;  %v7156_v43 = vcombine.high %v6916_v60, %v6916_v60  ;;  %v7163_v10 = vrot.slane %v6916_v60, %v16197_v31 }
 0x571   : > { %v11687_v50 = vpack.c.b16 %v11481_v13, %v11481_v13  ;;  %v8563_v6 = vmax.f32 %v8561_v46, %v8562_v38  ;;  %v8570_v34 = vmax.f32 %v8568_v62, %v8569_v51  ;;  %v12494_v16 = vpack.c.bf16 %v8556_v22, %v8556_v22  ;;  %v16436_v62 = vpop.f32.mrb[233].mxu0 }
 0x572   : > { %v8576_v5 = vrot.slane %v8575_v4, 1  ;;  %v7170_v56 = vrot.slane %v7156_v43, %v16197_v31  ;;  %v7171_v37 = vcombine.high %v7163_v10, %v7163_v10  ;;  %v8578_v33 = vsel %vm8381_vm7, %v7163_v10, -inf  ;;  %18190 = vst [vmem:[#allocation80_spill] sm:$0xff] %v16436_v62  ;;  %v16440_v18 = vpop.f32.mrb[234].mxu0 }
 0x573   : > { %11752 = vst.msk [vmem:[%s16298_s20 + $0x8] sm:$0xf] %vm11749_vm15, %v11687_v50  ;;  %v12495_v17 = vpack.c.bf16 %v8563_v6, %v8563_v6  ;;  %v12496_v39 = vpack.c.bf16 %v8570_v34, %v8570_v34  ;;  %v11222_v27 = vunpack.c.l.b16 %v12494_v16  ;;  %v8579_v3 = vrot.slane %v8578_v33, 4  ;;  %18191 = vst [vmem:[#allocation82_spill] sm:$0xff] %v16440_v18 }
 0x574   : > { %v8577_v12 = vmax.f32 %v8575_v4, %v8576_v5  ;;  %v7172_v11 = vcombine.high %v7170_v56, %v7170_v56  ;;  %v8585_v24 = vsel %vm8381_vm7, %v7171_v37, -inf  ;;  %v8592_v9 = vsel %vm8381_vm7, %v7170_v56, -inf }
 0x575   : > { %v11223_v40 = vunpack.c.l.b16 %v12495_v17  ;;  %v11224_v19 = vunpack.c.l.b16 %v12496_v39  ;;  %v8580_v20 = vmax.f32 %v8578_v33, %v8579_v3  ;;  %v8586_v46 = vrot.slane %v8585_v24, 4  ;;  %v16448_v33 = vpop.f32.mrb[235].mxu0 }
 0x576   : > { %v12497_v58 = vpack.c.bf16 %v8577_v12, %v8577_v12  ;;  %v8593_v0 = vrot.slane %v8592_v9, 4  ;;  %v8599_v59 = vsel %vm8381_vm7, %v7172_v11, -inf  ;;  %v6782_v60 = vadd.f32 %v16021_v32, %v6460_v41  ;;  %18192 = vst [vmem:[#allocation70_spill] sm:$0xff] %v16448_v33 }
 0x577   : > { %v11482_v22 = vsel %vm11454_vm8, %v11223_v40, %v11222_v27  ;;  %v8581_v38 = vrot.slane %v8580_v20, 2  ;;  %v8587_v51 = vmax.f32 %v8585_v24, %v8586_v46  ;;  %v8600_v13 = vrot.slane %v8599_v59, 4 }
 0x578   : > { %v11225_v4 = vunpack.c.l.b16 %v12497_v58  ;;  %v11483_v43 = vsel %vm11456_vm9, %v11224_v19, %v11482_v22  ;;  %v8594_v10 = vmax.f32 %v8592_v9, %v8593_v0  ;;  %v6853_v50 = vadd.f32 %v16186_v1, %v6782_v60 }
 0x579   : > { %v8582_v6 = vmax.f32 %v8580_v20, %v8581_v38  ;;  %v8588_v34 = vrot.slane %v8587_v51, 2  ;;  %v8601_v16 = vmax.f32 %v8599_v59, %v8600_v13  ;;  %v6206_v5 = vrot.slane %v16278_v25, 1 }
 0x57a   : > { %v11484_v32 = vsel %vm11458_vm10, %v11225_v4, %v11483_v43  ;;  %v8595_v41 = vrot.slane %v8594_v10, 2  ;;  %v6917_v56 = vmax.f32 %v6853_v50, 0.0  ;;  %v6208_v3 = vrot.slane %v16285_v44, 1 }
 0x57b   : > { %v8583_v17 = vrot.slane %v8582_v6, 1  ;;  %v8589_v39 = vmax.f32 %v8587_v51, %v8588_v34  ;;  %v8602_v27 = vrot.slane %v8601_v16, 2  ;;  %v6207_v20 = vsel %vm4398_vm0, %v6204_v45, %v6206_v5 }
 0x57c   : > { %v8596_v12 = vmax.f32 %v8594_v10, %v8595_v41  ;;  %v7173_v1 = vcombine.high %v6917_v56, %v6917_v56  ;;  %v7180_v11 = vrot.slane %v6917_v56, %v16197_v31  ;;  %6334 = vrot.lane.b32.xlu0 %v6207_v20, %s13848_s11 }
 0x57d   : > { %v8584_v9 = vmax.f32 %v8582_v6, %v8583_v17  ;;  %v8590_v40 = vrot.slane %v8589_v39, 1  ;;  %v8603_v19 = vmax.f32 %v8601_v16, %v8602_v27  ;;  %v6279_v27 = vpop.permute.xlu1 %6278 }
 0x57e   : > { %v8597_v46 = vrot.slane %v8596_v12, 1  ;;  %v7187_v58 = vrot.slane %v7173_v1, %v16197_v31  ;;  %v7188_v0 = vcombine.high %v7180_v11, %v7180_v11  ;;  %v8606_v59 = vsel %vm8381_vm7, %v7180_v11, -inf }
 0x57f   : > { %v8591_v60 = vmax.f32 %v8589_v39, %v8590_v40  ;;  %v8604_v22 = vrot.slane %v8603_v19, 1  ;;  %v12498_v38 = vpack.c.bf16 %v8584_v9, %v8584_v9  ;;  %v8607_v51 = vrot.slane %v8606_v59, 4 }
 0x580   : > { %v8598_v13 = vmax.f32 %v8596_v12, %v8597_v46  ;;  %v7189_v4 = vcombine.high %v7187_v58, %v7187_v58  ;;  %v8613_v43 = vsel %vm8381_vm7, %v7188_v0, -inf  ;;  %v8620_v10 = vsel %vm8381_vm7, %v7187_v58, -inf }
 0x581   : > { %v8605_v50 = vmax.f32 %v8603_v19, %v8604_v22  ;;  %v12499_v45 = vpack.c.bf16 %v8591_v60, %v8591_v60  ;;  %v11226_v6 = vunpack.c.l.b16 %v12498_v38  ;;  %v8608_v34 = vmax.f32 %v8606_v59, %v8607_v51  ;;  %v6283_v24 = vpop.permute.xlu1 %6282 }
 0x582   : > { %v12500_v16 = vpack.c.bf16 %v8598_v13, %v8598_v13  ;;  %v8614_v41 = vrot.slane %v8613_v43, 4  ;;  %v8621_v56 = vrot.slane %v8620_v10, 4  ;;  %v8627_v17 = vsel %vm8381_vm7, %v7189_v4, -inf  ;;  %v6281_v13 = vpop.permute.xlu0 %6280 }
 0x583   : > { %v12501_v39 = vpack.c.bf16 %v8605_v50, %v8605_v50  ;;  %v11227_v1 = vunpack.c.l.b16 %v12499_v45  ;;  %v11485_v11 = vsel %vm11460_vm11, %v11226_v6, %v11484_v32  ;;  %v8609_v12 = vrot.slane %v8608_v34, 2 }
 0x584   : > { %v11228_v9 = vunpack.c.l.b16 %v12500_v16  ;;  %v8615_v40 = vmax.f32 %v8613_v43, %v8614_v41  ;;  %v8622_v20 = vmax.f32 %v8620_v10, %v8621_v56  ;;  %v8628_v46 = vrot.slane %v8627_v17, 4  ;;  %v16475_v16 = vld [vmem:[%s17736_s4] ss:$0 sm:$0xff] }
 0x585   : > { %v11229_v58 = vunpack.c.l.b16 %v12501_v39  ;;  %v11486_v19 = vsel %vm11462_vm12, %v11227_v1, %v11485_v11  ;;  %v8610_v0 = vmax.f32 %v8608_v34, %v8609_v12  ;;  %v6461_v59 = vadd.f32 %v6279_v27, %v16007_v57 }
 0x586   : > { %v11487_v60 = vsel %vm11464_vm13, %v11228_v9, %v11486_v19  ;;  %v8616_v22 = vrot.slane %v8615_v40, 2  ;;  %v8623_v38 = vrot.slane %v8622_v20, 2  ;;  %v8629_v51 = vmax.f32 %v8627_v17, %v8628_v46 }
 0x587   : > { %v11488_v32 = vsel %vm11466_vm14, %v11229_v58, %v11487_v60  ;;  %v8611_v4 = vrot.slane %v8610_v0, 1  ;;  %v6783_v43 = vadd.f32 %v16032_v21, %v6461_v59  ;;  %v6209_v10 = vsel %vm4398_vm0, %v6206_v5, %v6208_v3 }
 0x588   : > { %v11688_v50 = vpack.c.b16 %v11488_v32, %v11488_v32  ;;  %v8617_v45 = vmax.f32 %v8615_v40, %v8616_v22  ;;  %v8624_v6 = vmax.f32 %v8622_v20, %v8623_v38  ;;  %v8630_v57 = vrot.slane %v8629_v51, 2  ;;  %6336 = vrot.lane.b32.xlu1 %v6209_v10, %s13848_s11 }
 0x589   : > { %v8612_v34 = vmax.f32 %v8610_v0, %v8611_v4  ;;  %v6854_v41 = vadd.f32 %v16475_v16, %v6783_v43  ;;  %v6462_v21 = vadd.f32 %v6281_v13, %v16023_v49  ;;  %v6210_v56 = vrot.slane %v16308_v7, 1 }
 0x58a   : > { %11753 = vst.msk [vmem:[%s16298_s20 + $0xc] sm:$0xf] %vm11749_vm15, %v11688_v50  ;;  %v8618_v5 = vrot.slane %v8617_v45, 1  ;;  %v8625_v17 = vrot.slane %v8624_v6, 1  ;;  %v8631_v27 = vmax.f32 %v8629_v51, %v8630_v57  ;;  %v6212_v9 = vrot.slane %v16318_v36, 1 }
 0x58b   : > { %v12502_v1 = vpack.c.bf16 %v8612_v34, %v8612_v34  ;;  %v6918_v11 = vmax.f32 %v6854_v41, 0.0  ;;  %v6784_v12 = vadd.f32 %v16037_v15, %v6462_v21  ;;  %v6211_v15 = vsel %vm4398_vm0, %v6208_v3, %v6210_v56 }
 0x58c   : > { %v8619_v40 = vmax.f32 %v8617_v45, %v8618_v5  ;;  %v8626_v20 = vmax.f32 %v8624_v6, %v8625_v17  ;;  %v8632_v46 = vrot.slane %v8631_v27, 1  ;;  %6338 = vrot.lane.b32.xlu1 %v6211_v15, %s13848_s11 }
 0x58d   : > { %v11230_v58 = vunpack.c.l.b16 %v12502_v1  ;;  %v7190_v19 = vcombine.high %v6918_v11, %v6918_v11  ;;  %v7197_v0 = vrot.slane %v6918_v11, %v16197_v31  ;;  %v6855_v59 = vadd.f32 %v16475_v16, %v6784_v12 }
 0x58e   : > { %v8633_v60 = vmax.f32 %v8631_v27, %v8632_v46  ;;  %v12503_v22 = vpack.c.bf16 %v8619_v40, %v8619_v40  ;;  %v12504_v38 = vpack.c.bf16 %v8626_v20, %v8626_v20 }
 0x58f   : > { %v7204_v51 = vrot.slane %v7190_v19, %v16197_v31  ;;  %v7205_v13 = vcombine.high %v7197_v0, %v7197_v0  ;;  %v8634_v32 = vsel %vm8381_vm7, %v7197_v0, -inf  ;;  %v6919_v4 = vmax.f32 %v6855_v59, 0.0 }
 0x590   : > { %v12505_v43 = vpack.c.bf16 %v8633_v60, %v8633_v60  ;;  %v11231_v10 = vunpack.c.l.b16 %v12503_v22  ;;  %v11232_v50 = vunpack.c.l.b16 %v12504_v38  ;;  %v8635_v45 = vrot.slane %v8634_v32, 4 }
 0x591   : > { %v7206_v6 = vcombine.high %v7204_v51, %v7204_v51  ;;  %v8641_v57 = vsel %vm8381_vm7, %v7205_v13, -inf  ;;  %v8648_v34 = vsel %vm8381_vm7, %v7204_v51, -inf  ;;  %v7207_v41 = vcombine.high %v6919_v4, %v6919_v4 }
 0x592   : > { %v11233_v21 = vunpack.c.l.b16 %v12505_v43  ;;  %v11489_v3 = vsel %vm11454_vm8, %v11231_v10, %v11230_v58  ;;  %v8636_v5 = vmax.f32 %v8634_v32, %v8635_v45  ;;  %v8642_v17 = vrot.slane %v8641_v57, 4 }
 0x593   : > { %v11490_v27 = vsel %vm11456_vm9, %v11232_v50, %v11489_v3  ;;  %v8649_v1 = vrot.slane %v8648_v34, 4  ;;  %v8655_v11 = vsel %vm8381_vm7, %v7206_v6, -inf  ;;  %v7214_v12 = vrot.slane %v6919_v4, %v16197_v31 }
 0x594   : > { %v11491_v40 = vsel %vm11458_vm10, %v11233_v21, %v11490_v27  ;;  %v8637_v20 = vrot.slane %v8636_v5, 2  ;;  %v8643_v46 = vmax.f32 %v8641_v57, %v8642_v17  ;;  %v8656_v19 = vrot.slane %v8655_v11, 4 }
 0x595   : > { %v8650_v0 = vmax.f32 %v8648_v34, %v8649_v1  ;;  %v7221_v59 = vrot.slane %v7207_v41, %v16197_v31  ;;  %v7222_v60 = vcombine.high %v7214_v12, %v7214_v12  ;;  %v8662_v58 = vsel %vm8381_vm7, %v7214_v12, -inf }
 0x596   : > { %v8638_v22 = vmax.f32 %v8636_v5, %v8637_v20  ;;  %v8644_v38 = vrot.slane %v8643_v46, 2  ;;  %v8657_v15 = vmax.f32 %v8655_v11, %v8656_v19  ;;  %v8663_v51 = vrot.slane %v8662_v58, 4 }
 0x597   : > { %v8651_v13 = vrot.slane %v8650_v0, 2  ;;  %v7223_v32 = vcombine.high %v7221_v59, %v7221_v59  ;;  %v8669_v43 = vsel %vm8381_vm7, %v7222_v60, -inf  ;;  %v8676_v4 = vsel %vm8381_vm7, %v7221_v59, -inf }
 0x598   : > { %v8639_v10 = vrot.slane %v8638_v22, 1  ;;  %v8645_v50 = vmax.f32 %v8643_v46, %v8644_v38  ;;  %v8658_v45 = vrot.slane %v8657_v15, 2  ;;  %v8664_v6 = vmax.f32 %v8662_v58, %v8663_v51 }
 0x599   : > { %v8652_v57 = vmax.f32 %v8650_v0, %v8651_v13  ;;  %v8670_v34 = vrot.slane %v8669_v43, 4  ;;  %v8677_v41 = vrot.slane %v8676_v4, 4  ;;  %v8683_v21 = vsel %vm8381_vm7, %v7223_v32, -inf }
 0x59a   : > { %v8640_v3 = vmax.f32 %v8638_v22, %v8639_v10  ;;  %v8646_v5 = vrot.slane %v8645_v50, 1  ;;  %v8659_v17 = vmax.f32 %v8657_v15, %v8658_v45  ;;  %v8665_v27 = vrot.slane %v8664_v6, 2 }
 0x59b   : > { %v8653_v1 = vrot.slane %v8652_v57, 1  ;;  %v8671_v11 = vmax.f32 %v8669_v43, %v8670_v34  ;;  %v8678_v12 = vmax.f32 %v8676_v4, %v8677_v41  ;;  %v8684_v20 = vrot.slane %v8683_v21, 4 }
 0x59c   : > { %v8647_v19 = vmax.f32 %v8645_v50, %v8646_v5  ;;  %v8660_v60 = vrot.slane %v8659_v17, 1  ;;  %v12506_v59 = vpack.c.bf16 %v8640_v3, %v8640_v3  ;;  %v8666_v49 = vmax.f32 %v8664_v6, %v8665_v27 }
 0x59d   : > { %v8654_v46 = vmax.f32 %v8652_v57, %v8653_v1  ;;  %v8672_v38 = vrot.slane %v8671_v11, 2  ;;  %v8679_v58 = vrot.slane %v8678_v12, 2  ;;  %v8685_v0 = vmax.f32 %v8683_v21, %v8684_v20 }
 0x59e   : > { %v8661_v51 = vmax.f32 %v8659_v17, %v8660_v60  ;;  %v12507_v13 = vpack.c.bf16 %v8647_v19, %v8647_v19  ;;  %v11234_v39 = vunpack.c.l.b16 %v12506_v59  ;;  %v8667_v32 = vrot.slane %v8666_v49, 1  ;;  %v6285_v19 = vpop.permute.xlu0 %6284 }
 0x59f   : > { %v12508_v22 = vpack.c.bf16 %v8654_v46, %v8654_v46  ;;  %v8673_v10 = vmax.f32 %v8671_v11, %v8672_v38  ;;  %v8680_v15 = vmax.f32 %v8678_v12, %v8679_v58  ;;  %v8686_v45 = vrot.slane %v8685_v0, 2 }
 0x5a0   : > { %v12509_v43 = vpack.c.bf16 %v8661_v51, %v8661_v51  ;;  %v11235_v4 = vunpack.c.l.b16 %v12507_v13  ;;  %v11492_v50 = vsel %vm11460_vm11, %v11234_v39, %v11491_v40  ;;  %v8668_v34 = vmax.f32 %v8666_v49, %v8667_v32  ;;  %v6287_v32 = vpop.permute.xlu1 %6286 }
 0x5a1   : > { %v11236_v41 = vunpack.c.l.b16 %v12508_v22  ;;  %v8674_v6 = vrot.slane %v8673_v10, 1  ;;  %v8681_v57 = vrot.slane %v8680_v15, 1  ;;  %v8687_v3 = vmax.f32 %v8685_v0, %v8686_v45  ;;  %v18193_v0 = vld [vmem:[#allocation60_spill] sm:$0xff] }
 0x5a2   : > { %v11237_v5 = vunpack.c.l.b16 %v12509_v43  ;;  %v11493_v21 = vsel %vm11462_vm12, %v11235_v4, %v11492_v50  ;;  %v12510_v17 = vpack.c.bf16 %v8668_v34, %v8668_v34  ;;  %v6463_v27 = vadd.f32 %v6283_v24, %v16026_v42  ;;  %v18196_v4 = vld [vmem:[#allocation17_spill] sm:$0xff] }
 0x5a3   : > { %v11494_v1 = vsel %vm11464_vm13, %v11236_v41, %v11493_v21  ;;  %v8675_v11 = vmax.f32 %v8673_v10, %v8674_v6  ;;  %v8682_v12 = vmax.f32 %v8680_v15, %v8681_v57  ;;  %v8688_v20 = vrot.slane %v8687_v3, 1  ;;  %v18195_v15 = vld [vmem:[#allocation77_spill] sm:$0xff]  ;;  %v6289_v6 = vpop.permute.xlu0 %6288 }
 0x5a4   : > { %v11495_v39 = vsel %vm11466_vm14, %v11237_v5, %v11494_v1  ;;  %v11238_v49 = vunpack.c.l.b16 %v12510_v17  ;;  %v6785_v40 = vadd.f32 %v16048_v28, %v6463_v27  ;;  %v6213_v60 = vsel %vm4398_vm0, %v6210_v56, %v6212_v9  ;;  %v18198_v5 = vld [vmem:[#allocation16_spill] sm:$0xff] }
 0x5a5   : > { %v11689_v59 = vpack.c.b16 %v11495_v39, %v11495_v39  ;;  %v8689_v42 = vmax.f32 %v8687_v3, %v8688_v20  ;;  %v12511_v24 = vpack.c.bf16 %v8675_v11, %v8675_v11  ;;  %v12512_v46 = vpack.c.bf16 %v8682_v12, %v8682_v12  ;;  %6340 = vrot.lane.b32.xlu0 %v6213_v60, %s13848_s11  ;;  %v18199_v20 = vld [vmem:[#allocation20_spill] sm:$0xff]  ;;  %v18200_v39 = vld [vmem:[#allocation18_spill] sm:$0xff] }
 0x5a6   : > { %v6856_v38 = vadd.f32 %v16475_v16, %v6785_v40  ;;  %v6464_v58 = vadd.f32 %v6285_v19, %v16039_v47  ;;  %v6214_v51 = vrot.slane %v18193_v0, 1  ;;  %v17831_v45 = vrot.slane %v18195_v15, 1  ;;  %v18201_v40 = vld [vmem:[#allocation62_spill] sm:$0xff] }
 0x5a7   : > { %11754 = vst.msk [vmem:[%s16298_s20 + $0x10] sm:$0xf] %vm11749_vm15, %v11689_v59  ;;  %v12513_v22 = vpack.c.bf16 %v8689_v42, %v8689_v42  ;;  %v11239_v10 = vunpack.c.l.b16 %v12511_v24  ;;  %v11240_v56 = vunpack.c.l.b16 %v12512_v46  ;;  %v6465_v21 = vadd.f32 %v6287_v32, %v18198_v5 }
 0x5a8   : > { %v6920_v43 = vmax.f32 %v6856_v38, 0.0  ;;  %v6786_v50 = vadd.f32 %v18196_v4, %v6464_v58  ;;  %v6215_v47 = vsel %vm4398_vm0, %v6212_v9, %v6214_v51  ;;  %v6217_v17 = vsel %vm4398_vm0, %v6214_v51, %v17831_v45  ;;  %v18202_v51 = vld [vmem:[#allocation21_spill] sm:$0xff] }
 0x5a9   : > { %v11241_v57 = vunpack.c.l.b16 %v12513_v22  ;;  %v11496_v3 = vsel %vm11454_vm8, %v11239_v10, %v11238_v49  ;;  %6342 = vrot.lane.b32.xlu0 %v6215_v47, %s13848_s11  ;;  %6344 = vrot.lane.b32.xlu1 %v6217_v17, %s13848_s11  ;;  %v6787_v19 = vadd.f32 %v18199_v20, %v6465_v21  ;;  %v6466_v49 = vadd.f32 %v6289_v6, %v18200_v39  ;;  %v16555_v47 = vpop.f32.mrb[236].mxu0 }
 0x5aa   : > { %v11497_v27 = vsel %vm11456_vm9, %v11240_v56, %v11496_v3  ;;  %v7224_v1 = vcombine.high %v6920_v43, %v6920_v43  ;;  %v7231_v11 = vrot.slane %v6920_v43, %v16197_v31  ;;  %v6857_v12 = vadd.f32 %v16475_v16, %v6786_v50  ;;  %18204 = vst [vmem:[#allocation83_spill] sm:$0xff] %v16555_v47  ;;  %v16558_v21 = vpop.f32.mrb[237].mxu0 }
 0x5ab   : > { %v16543_v9 = vsel %vm11458_vm10, %v11241_v57, %v11497_v27  ;;  %v6858_v58 = vadd.f32 %v16475_v16, %v6787_v19  ;;  %v6788_v32 = vadd.f32 %v18202_v51, %v6466_v49  ;;  %18205 = vst [vmem:[#allocation84_spill] sm:$0xff] %v16558_v21 }
 0x5ac   : > { %v7238_v59 = vrot.slane %v7224_v1, %v16197_v31  ;;  %v7239_v42 = vcombine.high %v7231_v11, %v7231_v11  ;;  %v8690_v24 = vsel %vm8381_vm7, %v7231_v11, -inf  ;;  %v6921_v46 = vmax.f32 %v6857_v12, 0.0  ;;  %v16567_v12 = vpop.f32.mrb[238].mxu0 }
 0x5ad   : > { %v8691_v38 = vrot.slane %v8690_v24, 4  ;;  %v16562_v1 = vmax.f32 %v6858_v58, 0.0  ;;  %v16565_v11 = vadd.f32 %v16475_v16, %v6788_v32 }
 0x5ae   : > { %v7240_v56 = vcombine.high %v7238_v59, %v7238_v59  ;;  %v8697_v43 = vsel %vm8381_vm7, %v7239_v42, -inf  ;;  %v8704_v4 = vsel %vm8381_vm7, %v7238_v59, -inf  ;;  %v7241_v50 = vcombine.high %v6921_v46, %v6921_v46  ;;  %v16569_v59 = vpop.f32.mrb[239].mxu0 }
 0x5af   : > { %v8692_v6 = vmax.f32 %v8690_v24, %v8691_v38  ;;  %v8698_v57 = vrot.slane %v8697_v43, 4  ;;  %v8705_v3 = vrot.slane %v8704_v4, 4  ;;  %v7248_v5 = vrot.slane %v6921_v46, %v16197_v31  ;;  %18206 = vst [vmem:[#allocation86_spill] sm:$0xff] %v16569_v59 }
 0x5b0   : > { %v8711_v17 = vsel %vm8381_vm7, %v7240_v56, -inf  ;;  %v7255_v27 = vrot.slane %v7241_v50, %v16197_v31 }
 0x5b1   : > { %v8693_v20 = vrot.slane %v8692_v6, 2  ;;  %v8699_v19 = vmax.f32 %v8697_v43, %v8698_v57  ;;  %v8706_v39 = vmax.f32 %v8704_v4, %v8705_v3  ;;  %v8712_v49 = vrot.slane %v8711_v17, 4 }
 0x5b2   : > { %v7256_v42 = vcombine.high %v7248_v5, %v7248_v5  ;;  %v7257_v24 = vcombine.high %v7255_v27, %v7255_v27  ;;  %v8718_v46 = vsel %vm8381_vm7, %v7248_v5, -inf  ;;  %v8732_v38 = vsel %vm8381_vm7, %v7255_v27, -inf }
 0x5b3   : > { %v8694_v51 = vmax.f32 %v8692_v6, %v8693_v20  ;;  %v8700_v58 = vrot.slane %v8699_v19, 2  ;;  %v8707_v56 = vrot.slane %v8706_v39, 2  ;;  %v8713_v50 = vmax.f32 %v8711_v17, %v8712_v49 }
 0x5b4   : > { %v8719_v32 = vrot.slane %v8718_v46, 4  ;;  %v8725_v10 = vsel %vm8381_vm7, %v7256_v42, -inf  ;;  %v8733_v41 = vrot.slane %v8732_v38, 4  ;;  %v8739_v43 = vsel %vm8381_vm7, %v7257_v24, -inf }
 0x5b5   : > { %v8695_v4 = vrot.slane %v8694_v51, 1  ;;  %v8701_v57 = vmax.f32 %v8699_v19, %v8700_v58  ;;  %v8708_v3 = vmax.f32 %v8706_v39, %v8707_v56  ;;  %v8714_v28 = vrot.slane %v8713_v50, 2 }
 0x5b6   : > { %v8720_v37 = vmax.f32 %v8718_v46, %v8719_v32  ;;  %v8726_v45 = vrot.slane %v8725_v10, 4  ;;  %v8734_v60 = vmax.f32 %v8732_v38, %v8733_v41  ;;  %v8740_v5 = vrot.slane %v8739_v43, 4 }
 0x5b7   : > { %v8696_v22 = vmax.f32 %v8694_v51, %v8695_v4  ;;  %v8702_v27 = vrot.slane %v8701_v57, 1  ;;  %v8709_v6 = vrot.slane %v8708_v3, 1  ;;  %v8715_v20 = vmax.f32 %v8713_v50, %v8714_v28 }
 0x5b8   : > { %v8721_v34 = vrot.slane %v8720_v37, 2  ;;  %v8727_v17 = vmax.f32 %v8725_v10, %v8726_v45  ;;  %v8735_v49 = vrot.slane %v8734_v60, 2  ;;  %v8741_v0 = vmax.f32 %v8739_v43, %v8740_v5 }
 0x5b9   : > { %v8703_v42 = vmax.f32 %v8701_v57, %v8702_v27  ;;  %v8710_v13 = vmax.f32 %v8708_v3, %v8709_v6  ;;  %v8716_v36 = vrot.slane %v8715_v20, 1  ;;  %v12514_v24 = vpack.c.bf16 %v8696_v22, %v8696_v22 }
 0x5ba   : > { %v8722_v52 = vmax.f32 %v8720_v37, %v8721_v34  ;;  %v8728_v19 = vrot.slane %v8727_v17, 2  ;;  %v8736_v39 = vmax.f32 %v8734_v60, %v8735_v49  ;;  %v8742_v58 = vrot.slane %v8741_v0, 2 }
 0x5bb   : > { %v8717_v46 = vmax.f32 %v8715_v20, %v8716_v36  ;;  %v12515_v56 = vpack.c.bf16 %v8703_v42, %v8703_v42  ;;  %v12516_v41 = vpack.c.bf16 %v8710_v13, %v8710_v13  ;;  %v11242_v38 = vunpack.c.l.b16 %v12514_v24 }
 0x5bc   : > { %v8723_v51 = vrot.slane %v8722_v52, 1  ;;  %v8729_v32 = vmax.f32 %v8727_v17, %v8728_v19  ;;  %v8737_v4 = vrot.slane %v8736_v39, 1  ;;  %v8743_v28 = vmax.f32 %v8741_v0, %v8742_v58 }
 0x5bd   : > { %v12517_v50 = vpack.c.bf16 %v8717_v46, %v8717_v46  ;;  %v11243_v45 = vunpack.c.l.b16 %v12515_v56  ;;  %v11244_v10 = vunpack.c.l.b16 %v12516_v41  ;;  %v11499_v43 = vsel %vm11460_vm11, %v11242_v38, %v16543_v9 }
 0x5be   : > { %v8724_v57 = vmax.f32 %v8722_v52, %v8723_v51  ;;  %v8730_v22 = vrot.slane %v8729_v32, 1  ;;  %v8738_v37 = vmax.f32 %v8736_v39, %v8737_v4  ;;  %v8744_v34 = vrot.slane %v8743_v28, 1 }
 0x5bf   : > { %v11245_v60 = vunpack.c.l.b16 %v12517_v50  ;;  %v11500_v36 = vsel %vm11462_vm12, %v11243_v45, %v11499_v43  ;;  %v7258_v13 = vcombine.high %v16562_v1, %v16562_v1  ;;  %v7265_v3 = vrot.slane %v16562_v1, %v16197_v31  ;;  %v18207_v50 = vld [vmem:[#allocation65_spill] sm:$0xff] }
 0x5c0   : > { %v11501_v0 = vsel %vm11464_vm13, %v11244_v10, %v11500_v36  ;;  %v8731_v5 = vmax.f32 %v8729_v32, %v8730_v22  ;;  %v8745_v27 = vmax.f32 %v8743_v28, %v8744_v34  ;;  %v12518_v6 = vpack.c.bf16 %v8724_v57, %v8724_v57 }
 0x5c1   : > { %v11502_v52 = vsel %vm11466_vm14, %v11245_v60, %v11501_v0  ;;  %v12520_v9 = vpack.c.bf16 %v8738_v37, %v8738_v37  ;;  %v7272_v20 = vrot.slane %v7258_v13, %v16197_v31  ;;  %v7273_v17 = vcombine.high %v7265_v3, %v7265_v3 }
 0x5c2   : > { %v11690_v49 = vpack.c.b16 %v11502_v52, %v11502_v52  ;;  %v12519_v42 = vpack.c.bf16 %v8731_v5, %v8731_v5  ;;  %v12521_v24 = vpack.c.bf16 %v8745_v27, %v8745_v27  ;;  %v11246_v19 = vunpack.c.l.b16 %v12518_v6 }
 0x5c3   : > { %v11248_v39 = vunpack.c.l.b16 %v12520_v9  ;;  %v7274_v58 = vcombine.high %v7272_v20, %v7272_v20  ;;  %v8746_v1 = vsel %vm8381_vm7, %v7265_v3, -inf  ;;  %v8753_v46 = vsel %vm8381_vm7, %v7273_v17, -inf }
 0x5c4   : > { %11755 = vst.msk [vmem:[%s16298_s20 + $0x14] sm:$0xf] %vm11749_vm15, %v11690_v49  ;;  %v11247_v56 = vunpack.c.l.b16 %v12519_v42  ;;  %v11249_v41 = vunpack.c.l.b16 %v12521_v24  ;;  %v8747_v38 = vrot.slane %v8746_v1, 4  ;;  %v8754_v51 = vrot.slane %v8753_v46, 4 }
 0x5c5   : > { %v8760_v32 = vsel %vm8381_vm7, %v7272_v20, -inf  ;;  %v8767_v4 = vsel %vm8381_vm7, %v7274_v58, -inf  ;;  %v6923_v28 = vmax.f32 %v16565_v11, 0.0  ;;  %v16601_v58 = vpop.f32.mrb[240].mxu0 }
 0x5c6   : > { %v11503_v10 = vsel %vm11454_vm8, %v11247_v56, %v11246_v19  ;;  %v8748_v43 = vmax.f32 %v8746_v1, %v8747_v38  ;;  %v8755_v57 = vmax.f32 %v8753_v46, %v8754_v51  ;;  %v8761_v22 = vrot.slane %v8760_v32, 4  ;;  %18208 = vst [vmem:[#allocation85_spill] sm:$0xff] %v16601_v58  ;;  %v16603_v38 = vpop.f32.mrb[241].mxu0 }
 0x5c7   : > { %v11504_v37 = vsel %vm11456_vm9, %v11248_v39, %v11503_v10  ;;  %v8768_v34 = vrot.slane %v8767_v4, 4  ;;  %v7275_v60 = vcombine.high %v6923_v28, %v6923_v28  ;;  %v7282_v36 = vrot.slane %v6923_v28, %v16197_v31  ;;  %v16606_v10 = vpop.f32.mrb[242].mxu0 }
 0x5c8   : > { %v11505_v13 = vsel %vm11458_vm10, %v11249_v41, %v11504_v37  ;;  %v8749_v3 = vrot.slane %v8748_v43, 2  ;;  %v8756_v0 = vrot.slane %v8755_v57, 2  ;;  %v8762_v5 = vmax.f32 %v8760_v32, %v8761_v22  ;;  %18209 = vst [vmem:[#allocation87_spill] sm:$0xff] %v16606_v10 }
 0x5c9   : > { %v8769_v27 = vmax.f32 %v8767_v4, %v8768_v34  ;;  %v7289_v11 = vrot.slane %v7275_v60, %v16197_v31  ;;  %v7290_v6 = vcombine.high %v7282_v36, %v7282_v36  ;;  %v8774_v52 = vsel %vm8381_vm7, %v7282_v36, -inf  ;;  %v16608_v34 = vpop.f32.mrb[243].mxu0 }
 0x5ca   : > { %v8750_v9 = vmax.f32 %v8748_v43, %v8749_v3  ;;  %v8757_v20 = vmax.f32 %v8755_v57, %v8756_v0  ;;  %v8763_v17 = vrot.slane %v8762_v5, 2  ;;  %v8775_v49 = vrot.slane %v8774_v52, 4  ;;  %18210 = vst [vmem:[#allocation88_spill] sm:$0xff] %v16608_v34 }
 0x5cb   : > { %v8770_v42 = vrot.slane %v8769_v27, 2  ;;  %v7291_v24 = vcombine.high %v7289_v11, %v7289_v11  ;;  %v8781_v19 = vsel %vm8381_vm7, %v7290_v6, -inf  ;;  %v8788_v39 = vsel %vm8381_vm7, %v7289_v11, -inf }
 0x5cc   : > { %v8751_v1 = vrot.slane %v8750_v9, 1  ;;  %v8758_v46 = vrot.slane %v8757_v20, 1  ;;  %v8764_v56 = vmax.f32 %v8762_v5, %v8763_v17  ;;  %v8776_v41 = vmax.f32 %v8774_v52, %v8775_v49 }
 0x5cd   : > { %v8771_v51 = vmax.f32 %v8769_v27, %v8770_v42  ;;  %v8782_v32 = vrot.slane %v8781_v19, 4  ;;  %v8789_v4 = vrot.slane %v8788_v39, 4  ;;  %v8795_v28 = vsel %vm8381_vm7, %v7291_v24, -inf }
 0x5ce   : > { %v8752_v43 = vmax.f32 %v8750_v9, %v8751_v1  ;;  %v8759_v57 = vmax.f32 %v8757_v20, %v8758_v46  ;;  %v8765_v22 = vrot.slane %v8764_v56, 1  ;;  %v8777_v37 = vrot.slane %v8776_v41, 2 }
 0x5cf   : > { %v8772_v60 = vrot.slane %v8771_v51, 1  ;;  %v8783_v36 = vmax.f32 %v8781_v19, %v8782_v32  ;;  %v8790_v3 = vmax.f32 %v8788_v39, %v8789_v4  ;;  %v8796_v0 = vrot.slane %v8795_v28, 4  ;;  %v6291_v4 = vpop.permute.xlu1 %6290 }
 0x5d0   : > { %v8766_v5 = vmax.f32 %v8764_v56, %v8765_v22  ;;  %v12522_v11 = vpack.c.bf16 %v8752_v43, %v8752_v43  ;;  %v12523_v6 = vpack.c.bf16 %v8759_v57, %v8759_v57  ;;  %v8778_v27 = vmax.f32 %v8776_v41, %v8777_v37  ;;  %v6293_v57 = vpop.permute.xlu0 %6292 }
 0x5d1   : > { %v8773_v52 = vmax.f32 %v8771_v51, %v8772_v60  ;;  %v8784_v17 = vrot.slane %v8783_v36, 2  ;;  %v8791_v49 = vrot.slane %v8790_v3, 2  ;;  %v8797_v42 = vmax.f32 %v8795_v28, %v8796_v0 }
 0x5d2   : > { %v12524_v24 = vpack.c.bf16 %v8766_v5, %v8766_v5  ;;  %v11250_v45 = vunpack.c.l.b16 %v12522_v11  ;;  %v11251_v9 = vunpack.c.l.b16 %v12523_v6  ;;  %v8779_v20 = vrot.slane %v8778_v27, 1  ;;  %v18214_v11 = vld [vmem:[#allocation19_spill] sm:$0xff] }
 0x5d3   : > { %v12525_v1 = vpack.c.bf16 %v8773_v52, %v8773_v52  ;;  %v8785_v46 = vmax.f32 %v8783_v36, %v8784_v17  ;;  %v8792_v7 = vmax.f32 %v8790_v3, %v8791_v49  ;;  %v8798_v8 = vrot.slane %v8797_v42, 2 }
 0x5d4   : > { %v11252_v44 = vunpack.c.l.b16 %v12524_v24  ;;  %v11506_v19 = vsel %vm11460_vm11, %v11250_v45, %v11505_v13  ;;  %v8780_v39 = vmax.f32 %v8778_v27, %v8779_v20  ;;  %v18212_v36 = vrot.slane %v18201_v40, 1 }
 0x5d5   : > { %v11253_v41 = vunpack.c.l.b16 %v12525_v1  ;;  %v11507_v51 = vsel %vm11462_vm12, %v11251_v9, %v11506_v19  ;;  %v8786_v43 = vrot.slane %v8785_v46, 1  ;;  %v8793_v28 = vrot.slane %v8792_v7, 1  ;;  %v18217_v9 = vld [vmem:[#allocation26_spill] sm:$0xff] }
 0x5d6   : > { %v11508_v22 = vsel %vm11464_vm13, %v11252_v44, %v11507_v51  ;;  %v8799_v37 = vmax.f32 %v8797_v42, %v8798_v8  ;;  %v12526_v60 = vpack.c.bf16 %v8780_v39, %v8780_v39  ;;  %v18213_v3 = vrot.slane %v18195_v15, 1 }
 0x5d7   : > { %v11509_v13 = vsel %vm11466_vm14, %v11253_v41, %v11508_v22  ;;  %v8787_v0 = vmax.f32 %v8785_v46, %v8786_v43  ;;  %v8794_v5 = vmax.f32 %v8792_v7, %v8793_v28  ;;  %v6467_v6 = vadd.f32 %v6291_v4, %v18214_v11  ;;  %v18218_v7 = vld [vmem:[#allocation22_spill] sm:$0xff]  ;;  %v6295_v46 = vpop.permute.xlu0 %6294  ;;  %v18219_v22 = vld [vmem:[#allocation28_spill] sm:$0xff] }
 0x5d8   : > { %v6219_v45 = vsel %vm4398_vm0, %v18213_v3, %v18212_v36  ;;  %v11691_v27 = vpack.c.b16 %v11509_v13, %v11509_v13  ;;  %v8800_v52 = vrot.slane %v8799_v37, 1  ;;  %v11254_v44 = vunpack.c.l.b16 %v12526_v60  ;;  %v18221_v13 = vld [vmem:[#allocation23_spill] sm:$0xff] }
 0x5d9   : > { %6346 = vrot.lane.b32.xlu1 %v6219_v45, %s13848_s11  ;;  %v18215_v8 = vrot.slane %v18207_v50, 1  ;;  %v18216_v17 = vmov %v18212_v36  ;;  %v12527_v42 = vpack.c.bf16 %v8787_v0, %v8787_v0  ;;  %v12528_v24 = vpack.c.bf16 %v8794_v5, %v8794_v5  ;;  %v6297_v36 = vpop.permute.xlu1 %6296 }
 0x5da   : > { %v6789_v20 = vadd.f32 %v18217_v9, %v6467_v6  ;;  %v6468_v1 = vadd.f32 %v6293_v57, %v18218_v7  ;;  %11756 = vst.msk [vmem:[%s16298_s20 + $0x18] sm:$0xf] %vm11749_vm15, %v11691_v27  ;;  %v8801_v19 = vmax.f32 %v8799_v37, %v8800_v52  ;;  %v6222_v39 = vrot.slane %v16387_v54, 1 }
 0x5db   : > { %v6221_v49 = vsel %vm4398_vm0, %v18216_v17, %v18215_v8  ;;  %v17839_v41 = vrot.slane %v16396_v30, 1  ;;  %v11255_v51 = vunpack.c.l.b16 %v12527_v42  ;;  %v11256_v43 = vunpack.c.l.b16 %v12528_v24  ;;  %v18222_v17 = vld [vmem:[#allocation32_spill] sm:$0xff] }
 0x5dc   : > { %6348 = vrot.lane.b32.xlu0 %v6221_v49, %s13848_s11  ;;  %v6860_v28 = vadd.f32 %v16475_v16, %v6789_v20  ;;  %v6790_v60 = vadd.f32 %v18219_v22, %v6468_v1  ;;  %v12529_v3 = vpack.c.bf16 %v8801_v19, %v8801_v19  ;;  %v18220_v45 = vmov %v18215_v8  ;;  %v18223_v42 = vld [vmem:[#allocation24_spill] sm:$0xff]  ;;  %v18224_v19 = vld [vmem:[#allocation39_spill] sm:$0xff] }
 0x5dd   : > { %v6223_v37 = vsel %vm4398_vm0, %v18220_v45, %v6222_v39  ;;  %v6469_v0 = vadd.f32 %v6295_v46, %v18221_v13  ;;  %v11510_v5 = vsel %vm11454_vm8, %v11255_v51, %v11254_v44  ;;  %v6225_v27 = vsel %vm4398_vm0, %v6222_v39, %v17839_v41 }
 0x5de   : > { %v6924_v11 = vmax.f32 %v6860_v28, 0.0  ;;  %v6861_v6 = vadd.f32 %v16475_v16, %v6790_v60  ;;  %v11257_v52 = vunpack.c.l.b16 %v12529_v3  ;;  %v11511_v8 = vsel %vm11456_vm9, %v11256_v43, %v11510_v5  ;;  %6352 = vrot.lane.b32.xlu1 %v6225_v27, %s13848_s11 }
 0x5df   : > { %v6791_v49 = vadd.f32 %v18222_v17, %v6469_v0  ;;  %v6470_v24 = vadd.f32 %v6297_v36, %v18223_v42 }
 0x5e0   : > { %6350 = vrot.lane.b32.xlu0 %v6223_v37, %s13848_s11  ;;  %v7292_v9 = vcombine.high %v6924_v11, %v6924_v11  ;;  %v7299_v44 = vrot.slane %v6924_v11, %v16197_v31  ;;  %v6925_v20 = vmax.f32 %v6861_v6, 0.0  ;;  %v16655_v1 = vsel %vm11458_vm10, %v11257_v52, %v11511_v8  ;;  %v16671_v6 = vpop.f32.mrb[244].mxu0 }
 0x5e1   : > { %v6862_v46 = vadd.f32 %v16475_v16, %v6791_v49  ;;  %v6792_v39 = vadd.f32 %v18224_v19, %v6470_v24  ;;  %18225 = vst [vmem:[#allocation90_spill] sm:$0xff] %v16671_v6  ;;  %v16673_v49 = vpop.f32.mrb[245].mxu0 }
 0x5e2   : > { %v7306_v43 = vrot.slane %v7292_v9, %v16197_v31  ;;  %v7307_v28 = vcombine.high %v7299_v44, %v7299_v44  ;;  %v8802_v22 = vsel %vm8381_vm7, %v7299_v44, -inf  ;;  %v7309_v60 = vcombine.high %v6925_v20, %v6925_v20  ;;  %18226 = vst [vmem:[#allocation89_spill] sm:$0xff] %v16673_v49  ;;  %v16678_v44 = vpop.f32.mrb[246].mxu0 }
 0x5e3   : > { %v8803_v36 = vrot.slane %v8802_v22, 4  ;;  %v7316_v3 = vrot.slane %v6925_v20, %v16197_v31  ;;  %v16663_v45 = vmax.f32 %v6862_v46, 0.0  ;;  %v16666_v37 = vadd.f32 %v16475_v16, %v6792_v39  ;;  %18227 = vst [vmem:[#allocation91_spill] sm:$0xff] %v16678_v44 }
 0x5e4   : > { %v7308_v13 = vcombine.high %v7306_v43, %v7306_v43  ;;  %v8809_v0 = vsel %vm8381_vm7, %v7307_v28, -inf  ;;  %v8816_v5 = vsel %vm8381_vm7, %v7306_v43, -inf  ;;  %v7323_v11 = vrot.slane %v7309_v60, %v16197_v31  ;;  %v16680_v43 = vpop.f32.mrb[247].mxu0 }
 0x5e5   : > { %v8804_v27 = vmax.f32 %v8802_v22, %v8803_v36  ;;  %v8810_v52 = vrot.slane %v8809_v0, 4  ;;  %v8817_v8 = vrot.slane %v8816_v5, 4  ;;  %v7324_v17 = vcombine.high %v7316_v3, %v7316_v3  ;;  %18228 = vst [vmem:[#allocation92_spill] sm:$0xff] %v16680_v43 }
 0x5e6   : > { %v8823_v42 = vsel %vm8381_vm7, %v7308_v13, -inf  ;;  %v7325_v24 = vcombine.high %v7323_v11, %v7323_v11  ;;  %v8830_v16 = vsel %vm8381_vm7, %v7316_v3, -inf  ;;  %v8844_v9 = vsel %vm8381_vm7, %v7323_v11, -inf }
 0x5e7   : > { %v8805_v20 = vrot.slane %v8804_v27, 2  ;;  %v8811_v46 = vmax.f32 %v8809_v0, %v8810_v52  ;;  %v8818_v19 = vmax.f32 %v8816_v5, %v8817_v8  ;;  %v8824_v39 = vrot.slane %v8823_v42, 4 }
 0x5e8   : > { %v8831_v28 = vrot.slane %v8830_v16, 4  ;;  %v8837_v22 = vsel %vm8381_vm7, %v7324_v17, -inf  ;;  %v8845_v60 = vrot.slane %v8844_v9, 4  ;;  %v8851_v36 = vsel %vm8381_vm7, %v7325_v24, -inf }
 0x5e9   : > { %v8806_v13 = vmax.f32 %v8804_v27, %v8805_v20  ;;  %v8812_v51 = vrot.slane %v8811_v46, 2  ;;  %v8819_v57 = vrot.slane %v8818_v19, 2  ;;  %v8825_v3 = vmax.f32 %v8823_v42, %v8824_v39 }
 0x5ea   : > { %v8832_v4 = vmax.f32 %v8830_v16, %v8831_v28  ;;  %v8838_v11 = vrot.slane %v8837_v22, 4  ;;  %v8846_v32 = vmax.f32 %v8844_v9, %v8845_v60  ;;  %v8852_v41 = vrot.slane %v8851_v36, 4 }
 0x5eb   : > { %v8807_v7 = vrot.slane %v8806_v13, 1  ;;  %v8813_v0 = vmax.f32 %v8811_v46, %v8812_v51  ;;  %v8820_v5 = vmax.f32 %v8818_v19, %v8819_v57  ;;  %v8826_v52 = vrot.slane %v8825_v3, 2 }
 0x5ec   : > { %v8833_v8 = vrot.slane %v8832_v4, 2  ;;  %v8839_v62 = vmax.f32 %v8837_v22, %v8838_v11  ;;  %v8847_v26 = vrot.slane %v8846_v32, 2  ;;  %v8853_v54 = vmax.f32 %v8851_v36, %v8852_v41 }
 0x5ed   : > { %v8808_v17 = vmax.f32 %v8806_v13, %v8807_v7  ;;  %v8814_v63 = vrot.slane %v8813_v0, 1  ;;  %v8821_v50 = vrot.slane %v8820_v5, 1  ;;  %v8827_v24 = vmax.f32 %v8825_v3, %v8826_v52 }
 0x5ee   : > { %v8834_v27 = vmax.f32 %v8832_v4, %v8833_v8  ;;  %v8840_v20 = vrot.slane %v8839_v62, 2  ;;  %v8848_v56 = vmax.f32 %v8846_v32, %v8847_v26  ;;  %v8854_v42 = vrot.slane %v8853_v54, 2 }
 0x5ef   : > { %v8815_v16 = vmax.f32 %v8813_v0, %v8814_v63  ;;  %v8822_v39 = vmax.f32 %v8820_v5, %v8821_v50  ;;  %v8828_v9 = vrot.slane %v8827_v24, 1  ;;  %v12530_v28 = vpack.c.bf16 %v8808_v17, %v8808_v17 }
 0x5f0   : > { %v8835_v60 = vrot.slane %v8834_v27, 1  ;;  %v8841_v51 = vmax.f32 %v8839_v62, %v8840_v20  ;;  %v8849_v57 = vrot.slane %v8848_v56, 1  ;;  %v8855_v46 = vmax.f32 %v8853_v54, %v8854_v42 }
 0x5f1   : > { %v8829_v19 = vmax.f32 %v8827_v24, %v8828_v9  ;;  %v12531_v22 = vpack.c.bf16 %v8815_v16, %v8815_v16  ;;  %v12532_v11 = vpack.c.bf16 %v8822_v39, %v8822_v39  ;;  %v11258_v41 = vunpack.c.l.b16 %v12530_v28 }
 0x5f2   : > { %v8836_v7 = vmax.f32 %v8834_v27, %v8835_v60  ;;  %v8842_v36 = vrot.slane %v8841_v51, 1  ;;  %v8850_v13 = vmax.f32 %v8848_v56, %v8849_v57  ;;  %v8856_v3 = vrot.slane %v8855_v46, 1 }
 0x5f3   : > { %v12533_v4 = vpack.c.bf16 %v8829_v19, %v8829_v19  ;;  %v11259_v52 = vunpack.c.l.b16 %v12531_v22  ;;  %v11260_v26 = vunpack.c.l.b16 %v12532_v11  ;;  %v11513_v63 = vsel %vm11460_vm11, %v11258_v41, %v16655_v1 }
 0x5f4   : > { %v8843_v50 = vmax.f32 %v8841_v51, %v8842_v36  ;;  %v8857_v32 = vmax.f32 %v8855_v46, %v8856_v3  ;;  %v12534_v0 = vpack.c.bf16 %v8836_v7, %v8836_v7  ;;  %v12536_v62 = vpack.c.bf16 %v8850_v13, %v8850_v13 }
 0x5f5   : > { %v11261_v5 = vunpack.c.l.b16 %v12533_v4  ;;  %v11514_v54 = vsel %vm11462_vm12, %v11259_v52, %v11513_v63  ;;  %v7326_v8 = vcombine.high %v16663_v45, %v16663_v45  ;;  %v7333_v56 = vrot.slane %v16663_v45, %v16197_v31 }
 0x5f6   : > { %v11515_v17 = vsel %vm11464_vm13, %v11260_v26, %v11514_v54  ;;  %v12535_v24 = vpack.c.bf16 %v8843_v50, %v8843_v50  ;;  %v12537_v27 = vpack.c.bf16 %v8857_v32, %v8857_v32  ;;  %v11262_v20 = vunpack.c.l.b16 %v12534_v0  ;;  %v16705_v32 = vpop.f32.mrb[248].mxu0 }
 0x5f7   : > { %v11516_v1 = vsel %vm11466_vm14, %v11261_v5, %v11515_v17  ;;  %v11264_v42 = vunpack.c.l.b16 %v12536_v62  ;;  %v7340_v16 = vrot.slane %v7326_v8, %v16197_v31  ;;  %v7341_v39 = vcombine.high %v7333_v56, %v7333_v56  ;;  %v16709_v54 = vpop.f32.mrb[249].mxu0 }
 0x5f8   : > { %v11692_v9 = vpack.c.b16 %v11516_v1, %v11516_v1  ;;  %v11263_v28 = vunpack.c.l.b16 %v12535_v24  ;;  %v11265_v60 = vunpack.c.l.b16 %v12537_v27  ;;  %v8858_v51 = vsel %vm8381_vm7, %v7333_v56, -inf  ;;  %18229 = vst [vmem:[#allocation93_spill] sm:$0xff] %v16709_v54  ;;  %v16716_v1 = vpop.f32.mrb[250].mxu0 }
 0x5f9   : > { %v7342_v57 = vcombine.high %v7340_v16, %v7340_v16  ;;  %v8859_v46 = vrot.slane %v8858_v51, 4  ;;  %v8865_v45 = vsel %vm8381_vm7, %v7341_v39, -inf  ;;  %v8872_v19 = vsel %vm8381_vm7, %v7340_v16, -inf }
 0x5fa   : > { %11757 = vst.msk [vmem:[%s16298_s20 + $0x1c] sm:$0xf] %vm11749_vm15, %v11692_v9  ;;  %v11517_v22 = vsel %vm11454_vm8, %v11263_v28, %v11262_v20  ;;  %v8866_v11 = vrot.slane %v8865_v45, 4  ;;  %v8873_v41 = vrot.slane %v8872_v19, 4  ;;  %v6927_v7 = vmax.f32 %v16666_v37, 0.0  ;;  %v16721_v28 = vpop.f32.mrb[251].mxu0 }
 0x5fb   : > { %v11518_v36 = vsel %vm11456_vm9, %v11264_v42, %v11517_v22  ;;  %v8860_v13 = vmax.f32 %v8858_v51, %v8859_v46  ;;  %v8879_v3 = vsel %vm8381_vm7, %v7342_v57, -inf  ;;  %v18230_v24 = vrot.slane %v16434_v53, 1  ;;  %18232 = vst [vmem:[#allocation94_spill] sm:$0xff] %v16721_v28 }
 0x5fc   : > { %v11519_v52 = vsel %vm11458_vm10, %v11265_v60, %v11518_v36  ;;  %v8867_v26 = vmax.f32 %v8865_v45, %v8866_v11  ;;  %v8874_v63 = vmax.f32 %v8872_v19, %v8873_v41  ;;  %v8880_v50 = vrot.slane %v8879_v3, 4 }
 0x5fd   : > { %v8861_v0 = vrot.slane %v8860_v13, 2  ;;  %v7343_v62 = vcombine.high %v6927_v7, %v6927_v7  ;;  %v7350_v5 = vrot.slane %v6927_v7, %v16197_v31  ;;  %v18231_v27 = vrot.slane %v16396_v30, 1 }
 0x5fe   : > { %v8868_v8 = vrot.slane %v8867_v26, 2  ;;  %v8875_v56 = vrot.slane %v8874_v63, 2  ;;  %v8881_v17 = vmax.f32 %v8879_v3, %v8880_v50 }
 0x5ff   : > { %v6227_v20 = vsel %vm4398_vm0, %v18231_v27, %v18230_v24  ;;  %v8862_v42 = vmax.f32 %v8860_v13, %v8861_v0  ;;  %v7357_v16 = vrot.slane %v7343_v62, %v16197_v31  ;;  %v7358_v39 = vcombine.high %v7350_v5, %v7350_v5 }
 0x600   : > { %v8886_v9 = vsel %vm8381_vm7, %v7350_v5, -inf  ;;  %6354 = vrot.lane.b32.xlu1 %v6227_v20, %s13848_s11  ;;  %v8869_v60 = vmax.f32 %v8867_v26, %v8868_v8  ;;  %v8876_v51 = vmax.f32 %v8874_v63, %v8875_v56  ;;  %v8882_v57 = vrot.slane %v8881_v17, 2 }
 0x601   : > { %v8887_v46 = vrot.slane %v8886_v9, 4  ;;  %v8863_v45 = vrot.slane %v8862_v42, 1  ;;  %v7359_v19 = vcombine.high %v7357_v16, %v7357_v16  ;;  %v8893_v22 = vsel %vm8381_vm7, %v7358_v39, -inf }
 0x602   : > { %v8900_v11 = vsel %vm8381_vm7, %v7357_v16, -inf  ;;  %v8870_v41 = vrot.slane %v8869_v60, 1  ;;  %v8877_v7 = vrot.slane %v8876_v51, 1  ;;  %v8883_v36 = vmax.f32 %v8881_v17, %v8882_v57  ;;  %v6299_v57 = vpop.permute.xlu1 %6298 }
 0x603   : > { %v8888_v13 = vmax.f32 %v8886_v9, %v8887_v46  ;;  %v8864_v3 = vmax.f32 %v8862_v42, %v8863_v45  ;;  %v8894_v50 = vrot.slane %v8893_v22, 4  ;;  %v8901_v0 = vrot.slane %v8900_v11, 4 }
 0x604   : > { %v8907_v62 = vsel %vm8381_vm7, %v7359_v19, -inf  ;;  %v8871_v5 = vmax.f32 %v8869_v60, %v8870_v41  ;;  %v8878_v26 = vmax.f32 %v8876_v51, %v8877_v7  ;;  %v8884_v63 = vrot.slane %v8883_v36, 1 }
 0x605   : > { %v8889_v8 = vrot.slane %v8888_v13, 2  ;;  %v12538_v56 = vpack.c.bf16 %v8864_v3, %v8864_v3  ;;  %v8895_v24 = vmax.f32 %v8893_v22, %v8894_v50  ;;  %v8902_v27 = vmax.f32 %v8900_v11, %v8901_v0  ;;  %v18233_v50 = vld [vmem:[#allocation25_spill] sm:$0xff] }
 0x606   : > { %v8908_v20 = vrot.slane %v8907_v62, 4  ;;  %v8885_v39 = vmax.f32 %v8883_v36, %v8884_v63  ;;  %v12539_v37 = vpack.c.bf16 %v8871_v5, %v8871_v5  ;;  %v12540_v16 = vpack.c.bf16 %v8878_v26, %v8878_v26 }
 0x607   : > { %v8890_v4 = vmax.f32 %v8888_v13, %v8889_v8  ;;  %v11266_v33 = vunpack.c.l.b16 %v12538_v56  ;;  %v8896_v17 = vrot.slane %v8895_v24, 2  ;;  %v8903_v9 = vrot.slane %v8902_v27, 2 }
 0x608   : > { %v8909_v42 = vmax.f32 %v8907_v62, %v8908_v20  ;;  %v12541_v46 = vpack.c.bf16 %v8885_v39, %v8885_v39  ;;  %v11267_v45 = vunpack.c.l.b16 %v12539_v37  ;;  %v11268_v19 = vunpack.c.l.b16 %v12540_v16  ;;  %v6301_v37 = vpop.permute.xlu0 %6300 }
 0x609   : > { %v8891_v60 = vrot.slane %v8890_v4, 1  ;;  %v11520_v51 = vsel %vm11460_vm11, %v11266_v33, %v11519_v52  ;;  %v8897_v41 = vmax.f32 %v8895_v24, %v8896_v17  ;;  %v8904_v7 = vmax.f32 %v8902_v27, %v8903_v9  ;;  %v18234_v33 = vld [vmem:[#allocation48_spill] sm:$0xff]  ;;  %v16741_v9 = vld [vmem:[%s17736_s4] ss:$0 sm:$0xff] }
 0x60a   : > { %v8910_v22 = vrot.slane %v8909_v42, 2  ;;  %v11269_v11 = vunpack.c.l.b16 %v12541_v46  ;;  %v11521_v36 = vsel %vm11462_vm12, %v11267_v45, %v11520_v51  ;;  %v6471_v13 = vadd.f32 %v6299_v57, %v18233_v50  ;;  %v18237_v57 = vld [vmem:[#allocation27_spill] sm:$0xff] }
 0x60b   : > { %v8892_v3 = vmax.f32 %v8890_v4, %v8891_v60  ;;  %v11522_v0 = vsel %vm11464_vm13, %v11268_v19, %v11521_v36  ;;  %v8898_v5 = vrot.slane %v8897_v41, 1  ;;  %v8905_v62 = vrot.slane %v8904_v7, 1  ;;  %v18238_v45 = vld [vmem:[#allocation31_spill] sm:$0xff]  ;;  %v18240_v60 = vld [vmem:[#allocation29_spill] sm:$0xff] }
 0x60c   : > { %v8911_v26 = vmax.f32 %v8909_v42, %v8910_v22  ;;  %v11523_v63 = vsel %vm11466_vm14, %v11269_v11, %v11522_v0  ;;  %v6793_v52 = vadd.f32 %v18234_v33, %v6471_v13  ;;  %v18235_v56 = vrot.slane %v16440_v18, 1 }
 0x60d   : > { %v12542_v8 = vpack.c.bf16 %v8892_v3, %v8892_v3  ;;  %v18236_v24 = vrot.slane %v16434_v53, 1  ;;  %v11693_v27 = vpack.c.b16 %v11523_v63, %v11523_v63  ;;  %v8899_v20 = vmax.f32 %v8897_v41, %v8898_v5  ;;  %v6303_v5 = vpop.permute.xlu0 %6302 }
 0x60e   : > { %v8906_v39 = vmax.f32 %v8904_v7, %v8905_v62  ;;  %v8912_v16 = vrot.slane %v8911_v26, 1  ;;  %v6864_v42 = vadd.f32 %v16741_v9, %v6793_v52  ;;  %v6472_v46 = vadd.f32 %v6301_v37, %v18237_v57 }
 0x60f   : > { %v6229_v4 = vsel %vm4398_vm0, %v18236_v24, %v18235_v56  ;;  %v11270_v17 = vunpack.c.l.b16 %v12542_v8  ;;  %v18239_v19 = vrot.slane %v18238_v45, 2  ;;  %v18241_v51 = vrot.slane %v18240_v60, 2  ;;  %11758 = vst.msk [vmem:[%s16298_s20 + $0x20] sm:$0xf] %vm11749_vm15, %v11693_v27 }
 0x610   : > { %6356 = vrot.lane.b32.xlu0 %v6229_v4, %s13848_s11  ;;  %v8913_v7 = vmax.f32 %v8911_v26, %v8912_v16  ;;  %v12543_v22 = vpack.c.bf16 %v8899_v20, %v8899_v20  ;;  %v12544_v11 = vpack.c.bf16 %v8906_v39, %v8906_v39  ;;  %v6230_v36 = vrot.slane %v16555_v47, 1  ;;  %v18242_v20 = vld [vmem:[#allocation30_spill] sm:$0xff] }
 0x611   : > { %v6623_v41 = vsel %vm4723_vm1, %v18241_v51, %v18239_v19  ;;  %v6928_v3 = vmax.f32 %v6864_v42, 0.0  ;;  %v17850_v0 = vrot.slane %v16567_v12, 1  ;;  %v6473_v39 = vadd.f32 %v6303_v5, %v18242_v20  ;;  %v18243_v16 = vld [vmem:[#allocation34_spill] sm:$0xff] }
 0x612   : > { %v6794_v50 = vadd.f32 %v6623_v41, %v6472_v46  ;;  %v12545_v62 = vpack.c.bf16 %v8913_v7, %v8913_v7  ;;  %v11271_v37 = vunpack.c.l.b16 %v12543_v22  ;;  %v11272_v63 = vunpack.c.l.b16 %v12544_v11 }
 0x613   : > { %v7360_v33 = vcombine.high %v6928_v3, %v6928_v3  ;;  %v7367_v52 = vrot.slane %v6928_v3, %v16197_v31  ;;  %v6231_v24 = vsel %vm4398_vm0, %v18235_v56, %v6230_v36  ;;  %v18244_v42 = vrot.slane %v18243_v16, 2  ;;  %v6305_v3 = vpop.permute.xlu1 %6304 }
 0x614   : > { %v6865_v26 = vadd.f32 %v16741_v9, %v6794_v50  ;;  %v11273_v4 = vunpack.c.l.b16 %v12545_v62  ;;  %v11524_v27 = vsel %vm11454_vm8, %v11271_v37, %v11270_v17  ;;  %6358 = vrot.lane.b32.xlu0 %v6231_v24, %s13848_s11  ;;  %v18245_v57 = vmov %v18239_v19 }
 0x615   : > { %v6625_v46 = vsel %vm4723_vm1, %v18245_v57, %v18244_v42  ;;  %v11525_v19 = vsel %vm11456_vm9, %v11272_v63, %v11524_v27  ;;  %v7374_v60 = vrot.slane %v7360_v33, %v16197_v31  ;;  %v7375_v51 = vcombine.high %v7367_v52, %v7367_v52 }
 0x616   : > { %v8914_v41 = vsel %vm8381_vm7, %v7367_v52, -inf  ;;  %v16773_v7 = vsel %vm11458_vm10, %v11273_v4, %v11525_v19  ;;  %v6929_v22 = vmax.f32 %v6865_v26, 0.0  ;;  %v6795_v11 = vadd.f32 %v6625_v46, %v6473_v39  ;;  %v18246_v4 = vld [vmem:[#allocation33_spill] sm:$0xff] }
 0x617   : > { %v8915_v17 = vrot.slane %v8914_v41, 4  ;;  %v7376_v50 = vcombine.high %v7374_v60, %v7374_v60  ;;  %v8921_v5 = vsel %vm8381_vm7, %v7375_v51, -inf  ;;  %v8928_v45 = vsel %vm8381_vm7, %v7374_v60, -inf }
 0x618   : > { %v6233_v62 = vsel %vm4398_vm0, %v6230_v36, %v17850_v0  ;;  %v8922_v63 = vrot.slane %v8921_v5, 4  ;;  %v8929_v33 = vrot.slane %v8928_v45, 4  ;;  %v7377_v52 = vcombine.high %v6929_v22, %v6929_v22  ;;  %v16787_v36 = vpop.f32.mrb[252].mxu0 }
 0x619   : > { %v8916_v37 = vmax.f32 %v8914_v41, %v8915_v17  ;;  %6360 = vrot.lane.b32.xlu1 %v6233_v62, %s13848_s11  ;;  %v8935_v56 = vsel %vm8381_vm7, %v7376_v50, -inf  ;;  %v7384_v26 = vrot.slane %v6929_v22, %v16197_v31  ;;  %v6866_v24 = vadd.f32 %v16741_v9, %v6795_v11  ;;  %v16793_v41 = vpop.f32.mrb[253].mxu0 }
 0x61a   : > { %v16785_v27 = vadd.f32 %v6305_v3, %v18246_v4  ;;  %v8923_v39 = vmax.f32 %v8921_v5, %v8922_v63  ;;  %v8930_v42 = vmax.f32 %v8928_v45, %v8929_v33  ;;  %v8936_v57 = vrot.slane %v8935_v56, 4  ;;  %v16795_v50 = vpop.f32.mrb[254].mxu0 }
 0x61b   : > { %v8917_v20 = vrot.slane %v8916_v37, 2  ;;  %v7391_v46 = vrot.slane %v7377_v52, %v16197_v31  ;;  %v7392_v19 = vcombine.high %v7384_v26, %v7384_v26  ;;  %v8942_v60 = vsel %vm8381_vm7, %v7384_v26, -inf  ;;  %v16799_v33 = vpop.f32.mrb[255].mxu0 }
 0x61c   : > { %v16791_v51 = vmax.f32 %v6866_v24, 0.0  ;;  %v8924_v22 = vrot.slane %v8923_v39, 2  ;;  %v8931_v11 = vrot.slane %v8930_v42, 2  ;;  %v8937_v3 = vmax.f32 %v8935_v56, %v8936_v57 }
 0x61d   : > { %v8918_v17 = vmax.f32 %v8916_v37, %v8917_v20  ;;  %v7393_v5 = vcombine.high %v7391_v46, %v7391_v46  ;;  %v8943_v45 = vrot.slane %v8942_v60, 4  ;;  %v8949_v62 = vsel %vm8381_vm7, %v7392_v19, -inf }
 0x61e   : > { %v8956_v63 = vsel %vm8381_vm7, %v7391_v46, -inf  ;;  %v8925_v26 = vmax.f32 %v8923_v39, %v8924_v22  ;;  %v8932_v24 = vmax.f32 %v8930_v42, %v8931_v11  ;;  %v8938_v4 = vrot.slane %v8937_v3, 2 }
 0x61f   : > { %v8919_v52 = vrot.slane %v8918_v17, 1  ;;  %v8944_v8 = vmax.f32 %v8942_v60, %v8943_v45  ;;  %v8950_v13 = vrot.slane %v8949_v62, 4  ;;  %v8957_v37 = vrot.slane %v8956_v63, 4 }
 0x620   : > { %v8963_v20 = vsel %vm8381_vm7, %v7393_v5, -inf  ;;  %v8926_v57 = vrot.slane %v8925_v26, 1  ;;  %v8933_v0 = vrot.slane %v8932_v24, 1  ;;  %v8939_v59 = vmax.f32 %v8937_v3, %v8938_v4 }
 0x621   : > { %v8920_v56 = vmax.f32 %v8918_v17, %v8919_v52  ;;  %v8945_v47 = vrot.slane %v8944_v8, 2  ;;  %v8951_v21 = vmax.f32 %v8949_v62, %v8950_v13  ;;  %v8958_v19 = vmax.f32 %v8956_v63, %v8957_v37 }
 0x622   : > { %v8964_v18 = vrot.slane %v8963_v20, 4  ;;  %v8927_v46 = vmax.f32 %v8925_v26, %v8926_v57  ;;  %v8934_v53 = vmax.f32 %v8932_v24, %v8933_v0  ;;  %v8940_v30 = vrot.slane %v8939_v59, 1 }
 0x623   : > { %v12546_v40 = vpack.c.bf16 %v8920_v56, %v8920_v56  ;;  %v8946_v39 = vmax.f32 %v8944_v8, %v8945_v47  ;;  %v8952_v42 = vrot.slane %v8951_v21, 2  ;;  %v8959_v22 = vrot.slane %v8958_v19, 2 }
 0x624   : > { %v8965_v60 = vmax.f32 %v8963_v20, %v8964_v18  ;;  %v8941_v11 = vmax.f32 %v8939_v59, %v8940_v30  ;;  %v12547_v45 = vpack.c.bf16 %v8927_v46, %v8927_v46  ;;  %v12548_v15 = vpack.c.bf16 %v8934_v53, %v8934_v53 }
 0x625   : > { %v11274_v5 = vunpack.c.l.b16 %v12546_v40  ;;  %v8947_v17 = vrot.slane %v8946_v39, 1  ;;  %v8953_v52 = vmax.f32 %v8951_v21, %v8952_v42  ;;  %v8960_v61 = vmax.f32 %v8958_v19, %v8959_v22 }
 0x626   : > { %v8966_v3 = vrot.slane %v8965_v60, 2  ;;  %v12549_v4 = vpack.c.bf16 %v8941_v11, %v8941_v11  ;;  %v11275_v13 = vunpack.c.l.b16 %v12547_v45  ;;  %v11276_v62 = vunpack.c.l.b16 %v12548_v15 }
 0x627   : > { %v11527_v0 = vsel %vm11460_vm11, %v11274_v5, %v16773_v7  ;;  %v8948_v63 = vmax.f32 %v8946_v39, %v8947_v17  ;;  %v8954_v26 = vrot.slane %v8953_v52, 1  ;;  %v8961_v47 = vrot.slane %v8960_v61, 1 }
 0x628   : > { %v8967_v8 = vmax.f32 %v8965_v60, %v8966_v3  ;;  %v11277_v24 = vunpack.c.l.b16 %v12549_v4  ;;  %v11528_v30 = vsel %vm11462_vm12, %v11275_v13, %v11527_v0  ;;  %v7394_v53 = vcombine.high %v16791_v51, %v16791_v51  ;;  %v18247_v4 = vld [vmem:[#allocation36_spill] sm:$0xff] }
 0x629   : > { %v7401_v18 = vrot.slane %v16791_v51, %v16197_v31  ;;  %v11529_v40 = vsel %vm11464_vm13, %v11276_v62, %v11528_v30  ;;  %v8955_v15 = vmax.f32 %v8953_v52, %v8954_v26  ;;  %v8962_v21 = vmax.f32 %v8960_v61, %v8961_v47 }
 0x62a   : > { %v8968_v59 = vrot.slane %v8967_v8, 1  ;;  %v11530_v7 = vsel %vm11466_vm14, %v11277_v24, %v11529_v40  ;;  %v12550_v37 = vpack.c.bf16 %v8948_v63, %v8948_v63  ;;  %v7408_v20 = vrot.slane %v7394_v53, %v16197_v31 }
 0x62b   : > { %v7409_v56 = vcombine.high %v7401_v18, %v7401_v18  ;;  %v11694_v57 = vpack.c.b16 %v11530_v7, %v11530_v7  ;;  %v12551_v46 = vpack.c.bf16 %v8955_v15, %v8955_v15  ;;  %v12552_v39 = vpack.c.bf16 %v8962_v21, %v8962_v21 }
 0x62c   : > { %v8969_v19 = vmax.f32 %v8967_v8, %v8968_v59  ;;  %v11278_v42 = vunpack.c.l.b16 %v12550_v37  ;;  %v7410_v22 = vcombine.high %v7408_v20, %v7408_v20  ;;  %v8970_v51 = vsel %vm8381_vm7, %v7401_v18, -inf }
 0x62d   : > { %v8977_v60 = vsel %vm8381_vm7, %v7409_v56, -inf  ;;  %11759 = vst.msk [vmem:[%s16298_s20 + $0x24] sm:$0xf] %vm11749_vm15, %v11694_v57  ;;  %v11279_v11 = vunpack.c.l.b16 %v12551_v46  ;;  %v11280_v45 = vunpack.c.l.b16 %v12552_v39  ;;  %v8971_v5 = vrot.slane %v8970_v51, 4  ;;  %v6307_v56 = vpop.permute.xlu1 %6306 }
 0x62e   : > { %v12553_v61 = vpack.c.bf16 %v8969_v19, %v8969_v19  ;;  %v8978_v17 = vrot.slane %v8977_v60, 4  ;;  %v8984_v52 = vsel %vm8381_vm7, %v7408_v20, -inf  ;;  %v8991_v3 = vsel %vm8381_vm7, %v7410_v22, -inf }
 0x62f   : > { %v18248_v13 = vrot.slane %v18247_v4, 2  ;;  %v18249_v62 = vrot.slane %v18243_v16, 2  ;;  %v11531_v26 = vsel %vm11454_vm8, %v11279_v11, %v11278_v42  ;;  %v8972_v47 = vmax.f32 %v8970_v51, %v8971_v5 }
 0x630   : > { %v11281_v63 = vunpack.c.l.b16 %v12553_v61  ;;  %v8985_v8 = vrot.slane %v8984_v52, 4  ;;  %v11532_v24 = vsel %vm11456_vm9, %v11280_v45, %v11531_v26  ;;  %v8979_v30 = vmax.f32 %v8977_v60, %v8978_v17  ;;  %v18251_v17 = vld [vmem:[#allocation35_spill] sm:$0xff] }
 0x631   : > { %v6627_v0 = vsel %vm4723_vm1, %v18249_v62, %v18248_v13  ;;  %v8992_v53 = vrot.slane %v8991_v3, 4  ;;  %v8973_v15 = vrot.slane %v8972_v47, 2  ;;  %v6234_v59 = vrot.slane %v16601_v58, 1 }
 0x632   : > { %v6796_v18 = vadd.f32 %v6627_v0, %v16785_v27  ;;  %v11533_v40 = vsel %vm11458_vm10, %v11281_v63, %v11532_v24  ;;  %v8986_v21 = vmax.f32 %v8984_v52, %v8985_v8  ;;  %v8980_v16 = vrot.slane %v8979_v30, 2  ;;  %v16832_v27 = vpop.f32.mrb[128].mxu0 }
 0x633   : > { %v8993_v7 = vmax.f32 %v8991_v3, %v8992_v53  ;;  %v8974_v57 = vmax.f32 %v8972_v47, %v8973_v15  ;;  %v17863_v46 = vrot.slane %v16606_v10, 1  ;;  %v18250_v60 = vrot.slane %v16567_v12, 1  ;;  %v16837_v11 = vpop.f32.mrb[129].mxu0  ;;  %v18252_v3 = vld [vmem:[#allocation71_spill] sm:$0xff] }
 0x634   : > { %v6867_v37 = vadd.f32 %v16741_v9, %v6796_v18  ;;  %v8987_v19 = vrot.slane %v8986_v21, 2  ;;  %v8981_v42 = vmax.f32 %v8979_v30, %v8980_v16  ;;  %v6475_v52 = vadd.f32 %v6307_v56, %v18251_v17  ;;  %v16846_v63 = vpop.f32.mrb[130].mxu0 }
 0x635   : > { %v8994_v22 = vrot.slane %v8993_v7, 2  ;;  %v6235_v61 = vsel %vm4398_vm0, %v18250_v60, %v6234_v59  ;;  %v8975_v45 = vrot.slane %v8974_v57, 1  ;;  %v18253_v13 = vrot.slane %v18252_v3, 2  ;;  %v16849_v30 = vpop.f32.mrb[131].mxu0 }
 0x636   : > { %v6931_v51 = vmax.f32 %v6867_v37, 0.0  ;;  %v8988_v5 = vmax.f32 %v8986_v21, %v8987_v19  ;;  %6362 = vrot.lane.b32.xlu1 %v6235_v61, %s13848_s11  ;;  %v18254_v62 = vrot.slane %v18247_v4, 2  ;;  %v8982_v26 = vrot.slane %v8981_v42, 1 }
 0x637   : > { %v8995_v47 = vmax.f32 %v8993_v7, %v8994_v22  ;;  %v8976_v53 = vmax.f32 %v8974_v57, %v8975_v45  ;;  %v6237_v21 = vsel %vm4398_vm0, %v6234_v59, %v17863_v46 }
 0x638   : > { %v6629_v0 = vsel %vm4723_vm1, %v18254_v62, %v18253_v13  ;;  %v7411_v8 = vcombine.high %v6931_v51, %v6931_v51  ;;  %v7418_v24 = vrot.slane %v6931_v51, %v16197_v31  ;;  %v8989_v18 = vrot.slane %v8988_v5, 1  ;;  %6364 = vrot.lane.b32.xlu0 %v6237_v21, %s13848_s11 }
 0x639   : > { %v6797_v15 = vadd.f32 %v6629_v0, %v6475_v52  ;;  %v8983_v16 = vmax.f32 %v8981_v42, %v8982_v26  ;;  %v8996_v4 = vrot.slane %v8995_v47, 1  ;;  %v12554_v19 = vpack.c.bf16 %v8976_v53, %v8976_v53 }
 0x63a   : > { %v7425_v37 = vrot.slane %v7411_v8, %v16197_v31  ;;  %v7426_v56 = vcombine.high %v7418_v24, %v7418_v24  ;;  %v8990_v7 = vmax.f32 %v8988_v5, %v8989_v18  ;;  %v8998_v22 = vsel %vm8381_vm7, %v7418_v24, -inf }
 0x63b   : > { %v6868_v51 = vadd.f32 %v16741_v9, %v6797_v15  ;;  %v8997_v57 = vmax.f32 %v8995_v47, %v8996_v4  ;;  %v12555_v60 = vpack.c.bf16 %v8983_v16, %v8983_v16  ;;  %v8999_v45 = vrot.slane %v8998_v22, 4  ;;  %v6309_v47 = vpop.permute.xlu0 %6308 }
 0x63c   : > { %v7427_v61 = vcombine.high %v7425_v37, %v7425_v37  ;;  %v12556_v17 = vpack.c.bf16 %v8990_v7, %v8990_v7  ;;  %v11282_v52 = vunpack.c.l.b16 %v12554_v19  ;;  %v9005_v59 = vsel %vm8381_vm7, %v7426_v56, -inf }
 0x63d   : > { %v9012_v42 = vsel %vm8381_vm7, %v7425_v37, -inf  ;;  %v12557_v13 = vpack.c.bf16 %v8997_v57, %v8997_v57  ;;  %v11283_v62 = vunpack.c.l.b16 %v12555_v60  ;;  %v9000_v0 = vmax.f32 %v8998_v22, %v8999_v45 }
 0x63e   : > { %v9006_v26 = vrot.slane %v9005_v59, 4  ;;  %v11284_v5 = vunpack.c.l.b16 %v12556_v17  ;;  %v11534_v8 = vsel %vm11460_vm11, %v11282_v52, %v11533_v40  ;;  %v9013_v24 = vrot.slane %v9012_v42, 4  ;;  %v18255_v40 = vld [vmem:[#allocation37_spill] sm:$0xff] }
 0x63f   : > { %v9019_v53 = vsel %vm8381_vm7, %v7427_v61, -inf  ;;  %v11285_v18 = vunpack.c.l.b16 %v12557_v13  ;;  %v11535_v15 = vsel %vm11462_vm12, %v11283_v62, %v11534_v8  ;;  %v9001_v21 = vrot.slane %v9000_v0, 2 }
 0x640   : > { %v9007_v16 = vmax.f32 %v9005_v59, %v9006_v26  ;;  %v11536_v4 = vsel %vm11464_vm13, %v11284_v5, %v11535_v15  ;;  %v9014_v37 = vmax.f32 %v9012_v42, %v9013_v24  ;;  %v9020_v56 = vrot.slane %v9019_v53, 4  ;;  %v18256_v26 = vld [vmem:[#allocation38_spill] sm:$0xff] }
 0x641   : > { %v6932_v7 = vmax.f32 %v6868_v51, 0.0  ;;  %v11537_v19 = vsel %vm11466_vm14, %v11285_v18, %v11536_v4  ;;  %v9002_v22 = vmax.f32 %v9000_v0, %v9001_v21  ;;  %v6476_v60 = vadd.f32 %v6309_v47, %v18255_v40 }
 0x642   : > { %v9008_v57 = vrot.slane %v9007_v16, 2  ;;  %v11695_v45 = vpack.c.b16 %v11537_v19, %v11537_v19  ;;  %v9015_v61 = vrot.slane %v9014_v37, 2  ;;  %v9021_v17 = vmax.f32 %v9019_v53, %v9020_v56 }
 0x643   : > { %v7428_v52 = vcombine.high %v6932_v7, %v6932_v7  ;;  %v9003_v13 = vrot.slane %v9002_v22, 1  ;;  %v7435_v59 = vrot.slane %v6932_v7, %v16197_v31  ;;  %v18257_v5 = vrot.slane %v18256_v26, 2 }
 0x644   : > { %v9009_v62 = vmax.f32 %v9007_v16, %v9008_v57  ;;  %v18258_v42 = vrot.slane %v18252_v3, 2  ;;  %11760 = vst.msk [vmem:[%s16298_s20 + $0x28] sm:$0xf] %vm11749_vm15, %v11695_v45  ;;  %v9016_v0 = vmax.f32 %v9014_v37, %v9015_v61  ;;  %v9022_v8 = vrot.slane %v9021_v17, 2 }
 0x645   : > { %v7442_v24 = vrot.slane %v7428_v52, %v16197_v31  ;;  %v9004_v18 = vmax.f32 %v9002_v22, %v9003_v13  ;;  %v7443_v15 = vcombine.high %v7435_v59, %v7435_v59  ;;  %v9026_v21 = vsel %vm8381_vm7, %v7435_v59, -inf }
 0x646   : > { %v6631_v51 = vsel %vm4723_vm1, %v18258_v42, %v18257_v5  ;;  %v9010_v53 = vrot.slane %v9009_v62, 1  ;;  %v9017_v16 = vrot.slane %v9016_v0, 1  ;;  %v9023_v4 = vmax.f32 %v9021_v17, %v9022_v8 }
 0x647   : > { %v6798_v47 = vadd.f32 %v6631_v51, %v6476_v60  ;;  %v7444_v56 = vcombine.high %v7442_v24, %v7442_v24  ;;  %v9027_v7 = vrot.slane %v9026_v21, 4  ;;  %v12558_v3 = vpack.c.bf16 %v9004_v18, %v9004_v18 }
 0x648   : > { %v9011_v19 = vmax.f32 %v9009_v62, %v9010_v53  ;;  %v9033_v57 = vsel %vm8381_vm7, %v7443_v15, -inf  ;;  %v9040_v40 = vsel %vm8381_vm7, %v7442_v24, -inf  ;;  %v9018_v37 = vmax.f32 %v9016_v0, %v9017_v16 }
 0x649   : > { %v9024_v45 = vrot.slane %v9023_v4, 1  ;;  %v9028_v61 = vmax.f32 %v9026_v21, %v9027_v7  ;;  %v9034_v52 = vrot.slane %v9033_v57, 4  ;;  %v11286_v22 = vunpack.c.l.b16 %v12558_v3 }
 0x64a   : > { %v12559_v60 = vpack.c.bf16 %v9011_v19, %v9011_v19  ;;  %v9041_v13 = vrot.slane %v9040_v40, 4  ;;  %v9047_v5 = vsel %vm8381_vm7, %v7444_v56, -inf  ;;  %v12560_v42 = vpack.c.bf16 %v9018_v37, %v9018_v37 }
 0x64b   : > { %v9025_v59 = vmax.f32 %v9023_v4, %v9024_v45  ;;  %v9029_v17 = vrot.slane %v9028_v61, 2  ;;  %v9035_v51 = vmax.f32 %v9033_v57, %v9034_v52  ;;  %v9048_v18 = vrot.slane %v9047_v5, 4 }
 0x64c   : > { %v11287_v8 = vunpack.c.l.b16 %v12559_v60  ;;  %v9042_v62 = vmax.f32 %v9040_v40, %v9041_v13  ;;  %v6869_v53 = vadd.f32 %v16741_v9, %v6798_v47  ;;  %v11288_v24 = vunpack.c.l.b16 %v12560_v42 }
 0x64d   : > { %v12561_v15 = vpack.c.bf16 %v9025_v59, %v9025_v59  ;;  %v9030_v0 = vmax.f32 %v9028_v61, %v9029_v17  ;;  %v9036_v16 = vrot.slane %v9035_v51, 2  ;;  %v9049_v19 = vmax.f32 %v9047_v5, %v9048_v18 }
 0x64e   : > { %v11538_v21 = vsel %vm11454_vm8, %v11287_v8, %v11286_v22  ;;  %v9043_v7 = vrot.slane %v9042_v62, 2  ;;  %v6933_v3 = vmax.f32 %v6869_v53, 0.0  ;;  %v6238_v13 = vrot.slane %v16671_v6, 1  ;;  %v16885_v22 = vpop.f32.mrb[0].mxu0 }
 0x64f   : > { %v11289_v39 = vunpack.c.l.b16 %v12561_v15  ;;  %v11539_v4 = vsel %vm11456_vm9, %v11288_v24, %v11538_v21  ;;  %v9031_v56 = vrot.slane %v9030_v0, 1  ;;  %v9037_v37 = vmax.f32 %v9035_v51, %v9036_v16  ;;  %v16888_v8 = vpop.f32.mrb[1].mxu0 }
 0x650   : > { %v9044_v57 = vmax.f32 %v9042_v62, %v9043_v7  ;;  %v9050_v45 = vrot.slane %v9049_v19, 2  ;;  %v7445_v40 = vcombine.high %v6933_v3, %v6933_v3  ;;  %v7452_v52 = vrot.slane %v6933_v3, %v16197_v31 }
 0x651   : > { %v11540_v47 = vsel %vm11458_vm10, %v11289_v39, %v11539_v4  ;;  %v9032_v60 = vmax.f32 %v9030_v0, %v9031_v56  ;;  %v9038_v61 = vrot.slane %v9037_v37, 1  ;;  %v16892_v39 = vpop.f32.mrb[2].mxu0 }
 0x652   : > { %v9045_v5 = vrot.slane %v9044_v57, 1  ;;  %v9051_v59 = vmax.f32 %v9049_v19, %v9050_v45  ;;  %v7459_v42 = vrot.slane %v7445_v40, %v16197_v31  ;;  %v7460_v17 = vcombine.high %v7452_v52, %v7452_v52  ;;  %v16894_v21 = vpop.f32.mrb[3].mxu0 }
 0x653   : > { %v9039_v51 = vmax.f32 %v9037_v37, %v9038_v61  ;;  %v12562_v62 = vpack.c.bf16 %v9032_v60, %v9032_v60  ;;  %v9054_v18 = vsel %vm8381_vm7, %v7452_v52, -inf  ;;  %18259 = vst [vmem:[#allocation95_spill] sm:$0xff] %v16894_v21 }
 0x654   : > { %v9046_v15 = vmax.f32 %v9044_v57, %v9045_v5  ;;  %v9052_v24 = vrot.slane %v9051_v59, 1  ;;  %v7461_v0 = vcombine.high %v7459_v42, %v7459_v42  ;;  %v9055_v16 = vrot.slane %v9054_v18, 4 }
 0x655   : > { %v12563_v7 = vpack.c.bf16 %v9039_v51, %v9039_v51  ;;  %v11290_v19 = vunpack.c.l.b16 %v12562_v62  ;;  %v9061_v3 = vsel %vm8381_vm7, %v7460_v17, -inf  ;;  %v9068_v4 = vsel %vm8381_vm7, %v7459_v42, -inf }
 0x656   : > { %v9053_v56 = vmax.f32 %v9051_v59, %v9052_v24  ;;  %v12564_v37 = vpack.c.bf16 %v9046_v15, %v9046_v15  ;;  %v9056_v45 = vmax.f32 %v9054_v18, %v9055_v16  ;;  %v9062_v40 = vrot.slane %v9061_v3, 4  ;;  %v6311_v59 = vpop.permute.xlu0 %6310 }
 0x657   : > { %v11291_v52 = vunpack.c.l.b16 %v12563_v7  ;;  %v11541_v60 = vsel %vm11460_vm11, %v11290_v19, %v11540_v47  ;;  %v9069_v61 = vrot.slane %v9068_v4, 4  ;;  %v9075_v57 = vsel %vm8381_vm7, %v7461_v0, -inf }
 0x658   : > { %v12565_v5 = vpack.c.bf16 %v9053_v56, %v9053_v56  ;;  %v11292_v53 = vunpack.c.l.b16 %v12564_v37  ;;  %v9057_v20 = vrot.slane %v9056_v45, 2  ;;  %v9063_v46 = vmax.f32 %v9061_v3, %v9062_v40  ;;  %v18261_v40 = vld [vmem:[#allocation72_spill] sm:$0xff] }
 0x659   : > { %v11542_v51 = vsel %vm11462_vm12, %v11291_v52, %v11541_v60  ;;  %v9070_v62 = vmax.f32 %v9068_v4, %v9069_v61  ;;  %v9076_v17 = vrot.slane %v9075_v57, 4  ;;  %v6240_v42 = vrot.slane %v16678_v44, 1  ;;  %v18262_v61 = vld [vmem:[#allocation41_spill] sm:$0xff] }
 0x65a   : > { %v11293_v15 = vunpack.c.l.b16 %v12565_v5  ;;  %v11543_v18 = vsel %vm11464_vm13, %v11292_v53, %v11542_v51  ;;  %v9058_v24 = vmax.f32 %v9056_v45, %v9057_v20  ;;  %v9064_v16 = vrot.slane %v9063_v46, 2  ;;  %v6313_v53 = vpop.permute.xlu1 %6312 }
 0x65b   : > { %v9071_v47 = vrot.slane %v9070_v62, 2  ;;  %v9077_v7 = vmax.f32 %v9075_v57, %v9076_v17  ;;  %v18260_v19 = vrot.slane %v16606_v10, 1  ;;  %v6477_v52 = vadd.f32 %v6311_v59, %v18261_v40  ;;  %v18265_v59 = vld [vmem:[#allocation40_spill] sm:$0xff] }
 0x65c   : > { %v11544_v4 = vsel %vm11466_vm14, %v11293_v15, %v11543_v18  ;;  %v9059_v56 = vrot.slane %v9058_v24, 1  ;;  %v9065_v37 = vmax.f32 %v9063_v46, %v9064_v16  ;;  %v18263_v57 = vrot.slane %v18262_v61, 2  ;;  %v18266_v16 = vld [vmem:[#allocation74_spill] sm:$0xff] }
 0x65d   : > { %v6239_v3 = vsel %vm4398_vm0, %v18260_v19, %v6238_v13  ;;  %v11696_v20 = vpack.c.b16 %v11544_v4, %v11544_v4  ;;  %v9072_v45 = vmax.f32 %v9070_v62, %v9071_v47  ;;  %v9078_v60 = vrot.slane %v9077_v7, 2 }
 0x65e   : > { %6366 = vrot.lane.b32.xlu0 %v6239_v3, %s13848_s11  ;;  %v18264_v5 = vrot.slane %v18256_v26, 2  ;;  %v9060_v17 = vmax.f32 %v9058_v24, %v9059_v56  ;;  %v9066_v19 = vrot.slane %v9065_v37, 1  ;;  %v6241_v15 = vsel %vm4398_vm0, %v6238_v13, %v6240_v42 }
 0x65f   : > { %11761 = vst.msk [vmem:[%s16298_s20 + $0x2c] sm:$0xf] %vm11749_vm15, %v11696_v20  ;;  %v9073_v46 = vrot.slane %v9072_v45, 1  ;;  %v9079_v18 = vmax.f32 %v9077_v7, %v9078_v60  ;;  %6368 = vrot.lane.b32.xlu1 %v6241_v15, %s13848_s11  ;;  %v6478_v62 = vadd.f32 %v6313_v53, %v18265_v59  ;;  %v18267_v47 = vrot.slane %v18266_v16, 2 }
 0x660   : > { %v6633_v51 = vsel %vm4723_vm1, %v18264_v5, %v18263_v57  ;;  %v18268_v3 = vmov %v18263_v57  ;;  %v9067_v4 = vmax.f32 %v9065_v37, %v9066_v19  ;;  %v12566_v24 = vpack.c.bf16 %v9060_v17, %v9060_v17 }
 0x661   : > { %v6799_v0 = vadd.f32 %v6633_v51, %v6477_v52  ;;  %v6635_v26 = vsel %vm4723_vm1, %v18268_v3, %v18267_v47  ;;  %v17864_v13 = vrot.slane %v16705_v32, 1  ;;  %v9074_v40 = vmax.f32 %v9072_v45, %v9073_v46  ;;  %v6315_v51 = vpop.permute.xlu1 %6314  ;;  %v18269_v3 = vld [vmem:[#allocation73_spill] sm:$0xff] }
 0x662   : > { %v9080_v52 = vrot.slane %v9079_v18, 1  ;;  %v6800_v20 = vadd.f32 %v6635_v26, %v6478_v62  ;;  %v12567_v60 = vpack.c.bf16 %v9067_v4, %v9067_v4  ;;  %v11294_v57 = vunpack.c.l.b16 %v12566_v24 }
 0x663   : > { %v6870_v56 = vadd.f32 %v16741_v9, %v6799_v0  ;;  %v12568_v15 = vpack.c.bf16 %v9074_v40, %v9074_v40  ;;  %v6243_v46 = vsel %vm4398_vm0, %v6240_v42, %v17864_v13 }
 0x664   : > { %v9081_v61 = vmax.f32 %v9079_v18, %v9080_v52  ;;  %v6871_v37 = vadd.f32 %v16741_v9, %v6800_v20  ;;  %v11295_v0 = vunpack.c.l.b16 %v12567_v60  ;;  %6370 = vrot.lane.b32.xlu1 %v6243_v46, %s13848_s11  ;;  %v16937_v18 = vadd.f32 %v6315_v51, %v18269_v3 }
 0x665   : > { %v6934_v53 = vmax.f32 %v6870_v56, 0.0  ;;  %v11296_v62 = vunpack.c.l.b16 %v12568_v15 }
 0x666   : > { %v12569_v59 = vpack.c.bf16 %v9081_v61, %v9081_v61  ;;  %v6935_v47 = vmax.f32 %v6871_v37, 0.0  ;;  %v11545_v26 = vsel %vm11454_vm8, %v11295_v0, %v11294_v57 }
 0x667   : > { %v7462_v19 = vcombine.high %v6934_v53, %v6934_v53  ;;  %v7469_v45 = vrot.slane %v6934_v53, %v16197_v31  ;;  %v11546_v52 = vsel %vm11456_vm9, %v11296_v62, %v11545_v26 }
 0x668   : > { %v11297_v40 = vunpack.c.l.b16 %v12569_v59  ;;  %v7479_v42 = vcombine.high %v6935_v47, %v6935_v47  ;;  %v7486_v51 = vrot.slane %v6935_v47, %v16197_v31 }
 0x669   : > { %v7476_v4 = vrot.slane %v7462_v19, %v16197_v31  ;;  %v7477_v24 = vcombine.high %v7469_v45, %v7469_v45  ;;  %v9082_v56 = vsel %vm8381_vm7, %v7469_v45, -inf }
 0x66a   : > { %v9083_v20 = vrot.slane %v9082_v56, 4  ;;  %v16947_v15 = vsel %vm11458_vm10, %v11297_v40, %v11546_v52  ;;  %v7493_v45 = vrot.slane %v7479_v42, %v16197_v31  ;;  %v7494_v46 = vcombine.high %v7486_v51, %v7486_v51 }
 0x66b   : > { %v7478_v60 = vcombine.high %v7476_v4, %v7476_v4  ;;  %v9089_v53 = vsel %vm8381_vm7, %v7477_v24, -inf  ;;  %v9096_v61 = vsel %vm8381_vm7, %v7476_v4, -inf  ;;  %v9110_v59 = vsel %vm8381_vm7, %v7486_v51, -inf }
 0x66c   : > { %v9084_v57 = vmax.f32 %v9082_v56, %v9083_v20  ;;  %v9090_v37 = vrot.slane %v9089_v53, 4  ;;  %v9097_v0 = vrot.slane %v9096_v61, 4  ;;  %v7495_v4 = vcombine.high %v7493_v45, %v7493_v45  ;;  %v16954_v56 = vpop.f32.mrb[4].mxu0 }
 0x66d   : > { %v9103_v19 = vsel %vm8381_vm7, %v7478_v60, -inf  ;;  %v9111_v17 = vrot.slane %v9110_v59, 4  ;;  %v9117_v47 = vsel %vm8381_vm7, %v7494_v46, -inf  ;;  %v9124_v40 = vsel %vm8381_vm7, %v7493_v45, -inf  ;;  %v16956_v42 = vpop.f32.mrb[5].mxu0 }
 0x66e   : > { %v9085_v62 = vrot.slane %v9084_v57, 2  ;;  %v9091_v3 = vmax.f32 %v9089_v53, %v9090_v37  ;;  %v9098_v26 = vmax.f32 %v9096_v61, %v9097_v0  ;;  %v9104_v24 = vrot.slane %v9103_v19, 4  ;;  %v6063_v61 = vpop.f32.mrb[6].mxu0 }
 0x66f   : > { %v9112_v13 = vmax.f32 %v9110_v59, %v9111_v17  ;;  %v9118_v51 = vrot.slane %v9117_v47, 4  ;;  %v9125_v5 = vrot.slane %v9124_v40, 4  ;;  %v9131_v53 = vsel %vm8381_vm7, %v7495_v4, -inf  ;;  %v6064_v54 = vpop.f32.mrb[7].mxu0 }
 0x670   : > { %v9086_v52 = vmax.f32 %v9084_v57, %v9085_v62  ;;  %v9092_v20 = vrot.slane %v9091_v3, 2  ;;  %v9099_v60 = vrot.slane %v9098_v26, 2  ;;  %v9105_v7 = vmax.f32 %v9103_v19, %v9104_v24 }
 0x671   : > { %v9113_v45 = vrot.slane %v9112_v13, 2  ;;  %v9119_v44 = vmax.f32 %v9117_v47, %v9118_v51  ;;  %v9126_v43 = vmax.f32 %v9124_v40, %v9125_v5  ;;  %v9132_v57 = vrot.slane %v9131_v53, 4 }
 0x672   : > { %v9087_v37 = vrot.slane %v9086_v52, 1  ;;  %v9093_v0 = vmax.f32 %v9091_v3, %v9092_v20  ;;  %v9100_v28 = vmax.f32 %v9098_v26, %v9099_v60  ;;  %v9106_v46 = vrot.slane %v9105_v7, 2 }
 0x673   : > { %v9114_v49 = vmax.f32 %v9112_v13, %v9113_v45  ;;  %v9120_v17 = vrot.slane %v9119_v44, 2  ;;  %v9127_v59 = vrot.slane %v9126_v43, 2  ;;  %v9133_v10 = vmax.f32 %v9131_v53, %v9132_v57 }
 0x674   : > { %v9088_v62 = vmax.f32 %v9086_v52, %v9087_v37  ;;  %v9094_v6 = vrot.slane %v9093_v0, 1  ;;  %v9101_v19 = vrot.slane %v9100_v28, 1  ;;  %v9107_v24 = vmax.f32 %v9105_v7, %v9106_v46 }
 0x675   : > { %v9115_v3 = vrot.slane %v9114_v49, 1  ;;  %v9121_v26 = vmax.f32 %v9119_v44, %v9120_v17  ;;  %v9128_v20 = vmax.f32 %v9126_v43, %v9127_v59  ;;  %v9134_v54 = vrot.slane %v9133_v10, 2  ;;  %v6317_v43 = vpop.permute.xlu0 %6316 }
 0x676   : > { %v9095_v34 = vmax.f32 %v9093_v0, %v9094_v6  ;;  %v9102_v4 = vmax.f32 %v9100_v28, %v9101_v19  ;;  %v9108_v61 = vrot.slane %v9107_v24, 1  ;;  %v12570_v58 = vpack.c.bf16 %v9088_v62, %v9088_v62  ;;  %v18270_v62 = vld [vmem:[#allocation43_spill] sm:$0xff] }
 0x677   : > { %v9116_v52 = vmax.f32 %v9114_v49, %v9115_v3  ;;  %v9122_v51 = vrot.slane %v9121_v26, 1  ;;  %v9129_v37 = vrot.slane %v9128_v20, 1  ;;  %v9135_v7 = vmax.f32 %v9133_v10, %v9134_v54 }
 0x678   : > { %v9109_v60 = vmax.f32 %v9107_v24, %v9108_v61  ;;  %v12571_v47 = vpack.c.bf16 %v9095_v34, %v9095_v34  ;;  %v12572_v5 = vpack.c.bf16 %v9102_v4, %v9102_v4  ;;  %v11298_v40 = vunpack.c.l.b16 %v12570_v58 }
 0x679   : > { %v9123_v28 = vmax.f32 %v9121_v26, %v9122_v51  ;;  %v9130_v53 = vmax.f32 %v9128_v20, %v9129_v37  ;;  %v9136_v0 = vrot.slane %v9135_v7, 1  ;;  %v12574_v44 = vpack.c.bf16 %v9116_v52, %v9116_v52  ;;  %v18275_v20 = vld [vmem:[#allocation42_spill] sm:$0xff]  ;;  %v18276_v51 = vld [vmem:[#allocation45_spill] sm:$0xff] }
 0x67a   : > { %v12573_v13 = vpack.c.bf16 %v9109_v60, %v9109_v60  ;;  %v11299_v46 = vunpack.c.l.b16 %v12571_v47  ;;  %v11300_v45 = vunpack.c.l.b16 %v12572_v5  ;;  %v11548_v6 = vsel %vm11460_vm11, %v11298_v40, %v16947_v15 }
 0x67b   : > { %v18271_v58 = vrot.slane %v18270_v62, 2  ;;  %v18272_v49 = vrot.slane %v18266_v16, 2  ;;  %v18273_v19 = vrot.slane %v16716_v1, 1  ;;  %v18274_v24 = vrot.slane %v16705_v32, 1 }
 0x67c   : > { %v11301_v57 = vunpack.c.l.b16 %v12573_v13  ;;  %v11549_v34 = vsel %vm11462_vm12, %v11299_v46, %v11548_v6  ;;  %v9137_v59 = vmax.f32 %v9135_v7, %v9136_v0  ;;  %v12575_v4 = vpack.c.bf16 %v9123_v28, %v9123_v28  ;;  %v6319_v6 = vpop.permute.xlu0 %6318 }
 0x67d   : > { %v6637_v10 = vsel %vm4723_vm1, %v18272_v49, %v18271_v58  ;;  %v6245_v15 = vsel %vm4398_vm0, %v18274_v24, %v18273_v19  ;;  %v11550_v17 = vsel %vm11464_vm13, %v11300_v45, %v11549_v34  ;;  %v12576_v61 = vpack.c.bf16 %v9130_v53, %v9130_v53 }
 0x67e   : > { %6372 = vrot.lane.b32.xlu0 %v6245_v15, %s13848_s11  ;;  %v11551_v3 = vsel %vm11466_vm14, %v11301_v57, %v11550_v17  ;;  %v11302_v26 = vunpack.c.l.b16 %v12574_v44  ;;  %v6801_v16 = vadd.f32 %v6637_v10, %v16937_v18  ;;  %v6480_v54 = vadd.f32 %v6317_v43, %v18275_v20  ;;  %v6321_v44 = vpop.permute.xlu1 %6320  ;;  %v18281_v15 = vld [vmem:[#allocation75_spill] sm:$0xff] }
 0x67f   : > { %v11697_v60 = vpack.c.b16 %v11551_v3, %v11551_v3  ;;  %v12577_v47 = vpack.c.bf16 %v9137_v59, %v9137_v59  ;;  %v11303_v5 = vunpack.c.l.b16 %v12575_v4  ;;  %v11304_v40 = vunpack.c.l.b16 %v12576_v61 }
 0x680   : > { %v6872_v52 = vadd.f32 %v16741_v9, %v6801_v16  ;;  %v18277_v37 = vrot.slane %v18276_v51, 2  ;;  %v18278_v7 = vmov %v18271_v58  ;;  %v6246_v46 = vrot.slane %v16787_v36, 1  ;;  %v18284_v16 = vld [vmem:[#allocation53_spill] sm:$0xff] }
 0x681   : > { %11762 = vst.msk [vmem:[%s16298_s20 + $0x30] sm:$0xf] %vm11749_vm15, %v11697_v60  ;;  %v11305_v18 = vunpack.c.l.b16 %v12577_v47  ;;  %v11552_v28 = vsel %vm11454_vm8, %v11303_v5, %v11302_v26  ;;  %v17879_v0 = vrot.slane %v16795_v50, 1  ;;  %v18279_v62 = vmov %v18273_v19  ;;  %v18280_v19 = vld [vmem:[#allocation44_spill] sm:$0xff]  ;;  %v18285_v47 = vld [vmem:[#allocation47_spill] sm:$0xff] }
 0x682   : > { %v6639_v13 = vsel %vm4723_vm1, %v18278_v7, %v18277_v37  ;;  %v11553_v43 = vsel %vm11456_vm9, %v11304_v40, %v11552_v28  ;;  %v6936_v57 = vmax.f32 %v6872_v52, 0.0  ;;  %v6247_v58 = vsel %vm4398_vm0, %v18279_v62, %v6246_v46 }
 0x683   : > { %v6802_v53 = vadd.f32 %v6639_v13, %v6480_v54  ;;  %v16995_v49 = vsel %vm11458_vm10, %v11305_v18, %v11553_v43  ;;  %6374 = vrot.lane.b32.xlu0 %v6247_v58, %s13848_s11  ;;  %v6481_v24 = vadd.f32 %v6319_v6, %v18280_v19  ;;  %v18282_v17 = vrot.slane %v18281_v15, 2 }
 0x684   : > { %v18283_v59 = vmov %v18277_v37  ;;  %v7496_v61 = vcombine.high %v6936_v57, %v6936_v57  ;;  %v7503_v3 = vrot.slane %v6936_v57, %v16197_v31  ;;  %v6249_v26 = vsel %vm4398_vm0, %v6246_v46, %v17879_v0 }
 0x685   : > { %v6873_v10 = vadd.f32 %v16741_v9, %v6802_v53  ;;  %v6641_v4 = vsel %vm4723_vm1, %v18283_v59, %v18282_v17  ;;  %v6482_v20 = vadd.f32 %v6321_v44, %v18284_v16  ;;  %6376 = vrot.lane.b32.xlu1 %v6249_v26, %s13848_s11  ;;  %v18286_v5 = vrot.slane %v18285_v47, 2 }
 0x686   : > { %v6803_v60 = vadd.f32 %v6641_v4, %v6481_v24  ;;  %v18287_v40 = vmov %v18282_v17  ;;  %v7510_v37 = vrot.slane %v7496_v61, %v16197_v31  ;;  %v7511_v7 = vcombine.high %v7503_v3, %v7503_v3 }
 0x687   : > { %v6937_v54 = vmax.f32 %v6873_v10, 0.0  ;;  %v6643_v52 = vsel %vm4723_vm1, %v18287_v40, %v18286_v5  ;;  %v9138_v13 = vsel %vm8381_vm7, %v7503_v3, -inf }
 0x688   : > { %v6804_v46 = vadd.f32 %v6643_v52, %v6482_v20  ;;  %v9139_v6 = vrot.slane %v9138_v13, 4  ;;  %v6874_v53 = vadd.f32 %v16741_v9, %v6803_v60  ;;  %v7512_v44 = vcombine.high %v7510_v37, %v7510_v37 }
 0x689   : > { %v7513_v18 = vcombine.high %v6937_v54, %v6937_v54  ;;  %v7520_v28 = vrot.slane %v6937_v54, %v16197_v31  ;;  %v9145_v43 = vsel %vm8381_vm7, %v7511_v7, -inf  ;;  %v9152_v57 = vsel %vm8381_vm7, %v7510_v37, -inf }
 0x68a   : > { %v17024_v62 = vadd.f32 %v16741_v9, %v6804_v46  ;;  %v9140_v58 = vmax.f32 %v9138_v13, %v9139_v6  ;;  %v9146_v10 = vrot.slane %v9145_v43, 4  ;;  %v9153_v19 = vrot.slane %v9152_v57, 4 }
 0x68b   : > { %v7527_v24 = vrot.slane %v7513_v18, %v16197_v31  ;;  %v9159_v15 = vsel %vm8381_vm7, %v7512_v44, -inf  ;;  %v7528_v17 = vcombine.high %v7520_v28, %v7520_v28  ;;  %v9166_v59 = vsel %vm8381_vm7, %v7520_v28, -inf }
 0x68c   : > { %v17029_v4 = vmax.f32 %v6874_v53, 0.0  ;;  %v9141_v61 = vrot.slane %v9140_v58, 2  ;;  %v9147_v3 = vmax.f32 %v9145_v43, %v9146_v10  ;;  %v9154_v26 = vmax.f32 %v9152_v57, %v9153_v19 }
 0x68d   : > { %v9160_v16 = vrot.slane %v9159_v15, 4  ;;  %v7529_v20 = vcombine.high %v7527_v24, %v7527_v24  ;;  %v9167_v54 = vrot.slane %v9166_v59, 4  ;;  %v9173_v9 = vsel %vm8381_vm7, %v7528_v17, -inf }
 0x68e   : > { %v9180_v60 = vsel %vm8381_vm7, %v7527_v24, -inf  ;;  %v9142_v5 = vmax.f32 %v9140_v58, %v9141_v61  ;;  %v9148_v40 = vrot.slane %v9147_v3, 2  ;;  %v9155_v52 = vrot.slane %v9154_v26, 2 }
 0x68f   : > { %v9161_v37 = vmax.f32 %v9159_v15, %v9160_v16  ;;  %v9168_v7 = vmax.f32 %v9166_v59, %v9167_v54  ;;  %v9174_v13 = vrot.slane %v9173_v9, 4  ;;  %v9181_v46 = vrot.slane %v9180_v60, 4 }
 0x690   : > { %v9187_v6 = vsel %vm8381_vm7, %v7529_v20, -inf  ;;  %v9143_v18 = vrot.slane %v9142_v5, 1  ;;  %v9149_v28 = vmax.f32 %v9147_v3, %v9148_v40  ;;  %v9156_v53 = vmax.f32 %v9154_v26, %v9155_v52 }
 0x691   : > { %v9162_v44 = vrot.slane %v9161_v37, 2  ;;  %v9169_v43 = vrot.slane %v9168_v7, 2  ;;  %v9175_v57 = vmax.f32 %v9173_v9, %v9174_v13  ;;  %v9182_v10 = vmax.f32 %v9180_v60, %v9181_v46 }
 0x692   : > { %v9188_v19 = vrot.slane %v9187_v6, 4  ;;  %v9144_v17 = vmax.f32 %v9142_v5, %v9143_v18  ;;  %v9150_v34 = vrot.slane %v9149_v28, 1  ;;  %v9157_v24 = vrot.slane %v9156_v53, 1 }
 0x693   : > { %v9163_v58 = vmax.f32 %v9161_v37, %v9162_v44  ;;  %v9170_v61 = vmax.f32 %v9168_v7, %v9169_v43  ;;  %v9176_v45 = vrot.slane %v9175_v57, 2  ;;  %v9183_v15 = vrot.slane %v9182_v10, 2 }
 0x694   : > { %v9189_v59 = vmax.f32 %v9187_v6, %v9188_v19  ;;  %v9151_v16 = vmax.f32 %v9149_v28, %v9150_v34  ;;  %v9158_v54 = vmax.f32 %v9156_v53, %v9157_v24  ;;  %v12578_v20 = vpack.c.bf16 %v9144_v17, %v9144_v17 }
 0x695   : > { %v9164_v0 = vrot.slane %v9163_v58, 1  ;;  %v9171_v51 = vrot.slane %v9170_v61, 1  ;;  %v9177_v3 = vmax.f32 %v9175_v57, %v9176_v45  ;;  %v9184_v26 = vmax.f32 %v9182_v10, %v9183_v15 }
 0x696   : > { %v9190_v40 = vrot.slane %v9189_v59, 2  ;;  %v12579_v9 = vpack.c.bf16 %v9151_v16, %v9151_v16  ;;  %v12580_v60 = vpack.c.bf16 %v9158_v54, %v9158_v54  ;;  %v11306_v13 = vunpack.c.l.b16 %v12578_v20 }
 0x697   : > { %v9165_v52 = vmax.f32 %v9163_v58, %v9164_v0  ;;  %v9172_v5 = vmax.f32 %v9170_v61, %v9171_v51  ;;  %v9178_v46 = vrot.slane %v9177_v3, 1  ;;  %v9185_v18 = vrot.slane %v9184_v26, 1 }
 0x698   : > { %v9191_v37 = vmax.f32 %v9189_v59, %v9190_v40  ;;  %v11307_v44 = vunpack.c.l.b16 %v12579_v9  ;;  %v11308_v43 = vunpack.c.l.b16 %v12580_v60  ;;  %v11555_v34 = vsel %vm11460_vm11, %v11306_v13, %v16995_v49 }
 0x699   : > { %v12581_v7 = vpack.c.bf16 %v9165_v52, %v9165_v52  ;;  %v9179_v6 = vmax.f32 %v9177_v3, %v9178_v46  ;;  %v9186_v28 = vmax.f32 %v9184_v26, %v9185_v18  ;;  %v12582_v45 = vpack.c.bf16 %v9172_v5, %v9172_v5 }
 0x69a   : > { %v9192_v53 = vrot.slane %v9191_v37, 1  ;;  %v11556_v0 = vsel %vm11462_vm12, %v11307_v44, %v11555_v34  ;;  %v7530_v10 = vcombine.high %v17029_v4, %v17029_v4  ;;  %v7537_v51 = vrot.slane %v17029_v4, %v16197_v31 }
 0x69b   : > { %v11309_v57 = vunpack.c.l.b16 %v12581_v7  ;;  %v11557_v19 = vsel %vm11464_vm13, %v11308_v43, %v11556_v0  ;;  %v12583_v24 = vpack.c.bf16 %v9179_v6, %v9179_v6  ;;  %v12584_v58 = vpack.c.bf16 %v9186_v28, %v9186_v28 }
 0x69c   : > { %v9193_v17 = vmax.f32 %v9191_v37, %v9192_v53  ;;  %v11310_v61 = vunpack.c.l.b16 %v12582_v45  ;;  %v7544_v15 = vrot.slane %v7530_v10, %v16197_v31  ;;  %v7545_v59 = vcombine.high %v7537_v51, %v7537_v51 }
 0x69d   : > { %v11558_v49 = vsel %vm11466_vm14, %v11309_v57, %v11557_v19  ;;  %v11311_v20 = vunpack.c.l.b16 %v12583_v24  ;;  %v11312_v3 = vunpack.c.l.b16 %v12584_v58  ;;  %v9194_v40 = vsel %vm8381_vm7, %v7537_v51, -inf }
 0x69e   : > { %v11698_v16 = vpack.c.b16 %v11558_v49, %v11558_v49  ;;  %v12585_v54 = vpack.c.bf16 %v9193_v17, %v9193_v17  ;;  %v7546_v26 = vcombine.high %v7544_v15, %v7544_v15  ;;  %v9201_v4 = vsel %vm8381_vm7, %v7545_v59, -inf }
 0x69f   : > { %v9208_v52 = vsel %vm8381_vm7, %v7544_v15, -inf  ;;  %v11559_v60 = vsel %vm11454_vm8, %v11311_v20, %v11310_v61  ;;  %v9195_v13 = vrot.slane %v9194_v40, 4  ;;  %v9202_v5 = vrot.slane %v9201_v4, 4 }
 0x6a0   : > { %11763 = vst.msk [vmem:[%s16298_s20 + $0x34] sm:$0xf] %vm11749_vm15, %v11698_v16  ;;  %v11313_v9 = vunpack.c.l.b16 %v12585_v54  ;;  %v11560_v46 = vsel %vm11456_vm9, %v11312_v3, %v11559_v60  ;;  %v9209_v18 = vrot.slane %v9208_v52, 4  ;;  %v9215_v37 = vsel %vm8381_vm7, %v7546_v26, -inf }
 0x6a1   : > { %v6939_v7 = vmax.f32 %v17024_v62, 0.0  ;;  %v9196_v43 = vmax.f32 %v9194_v40, %v9195_v13  ;;  %v9203_v34 = vmax.f32 %v9201_v4, %v9202_v5  ;;  %v9216_v6 = vrot.slane %v9215_v37, 4 }
 0x6a2   : > { %v11561_v44 = vsel %vm11458_vm10, %v11313_v9, %v11560_v46  ;;  %v9210_v28 = vmax.f32 %v9208_v52, %v9209_v18  ;;  %v6252_v19 = vrot.slane %v16846_v63, 1 }
 0x6a3   : > { %v7547_v53 = vcombine.high %v6939_v7, %v6939_v7  ;;  %v7554_v45 = vrot.slane %v6939_v7, %v16197_v31  ;;  %v9197_v0 = vrot.slane %v9196_v43, 2  ;;  %v9204_v10 = vrot.slane %v9203_v34, 2 }
 0x6a4   : > { %v9217_v51 = vmax.f32 %v9215_v37, %v9216_v6  ;;  %v9211_v17 = vrot.slane %v9210_v28, 2 }
 0x6a5   : > { %v7561_v24 = vrot.slane %v7547_v53, %v16197_v31  ;;  %v7562_v62 = vcombine.high %v7554_v45, %v7554_v45  ;;  %v9222_v58 = vsel %vm8381_vm7, %v7554_v45, -inf  ;;  %v9198_v49 = vmax.f32 %v9196_v43, %v9197_v0 }
 0x6a6   : > { %v9205_v61 = vmax.f32 %v9203_v34, %v9204_v10  ;;  %v9218_v15 = vrot.slane %v9217_v51, 2  ;;  %v9223_v59 = vrot.slane %v9222_v58, 4  ;;  %v9212_v16 = vmax.f32 %v9210_v28, %v9211_v17 }
 0x6a7   : > { %v7563_v54 = vcombine.high %v7561_v24, %v7561_v24  ;;  %v9229_v20 = vsel %vm8381_vm7, %v7562_v62, -inf  ;;  %v9236_v3 = vsel %vm8381_vm7, %v7561_v24, -inf  ;;  %v9199_v26 = vrot.slane %v9198_v49, 1 }
 0x6a8   : > { %v9206_v40 = vrot.slane %v9205_v61, 1  ;;  %v9219_v4 = vmax.f32 %v9217_v51, %v9218_v15  ;;  %v9224_v52 = vmax.f32 %v9222_v58, %v9223_v59  ;;  %v9213_v9 = vrot.slane %v9212_v16, 1 }
 0x6a9   : > { %v9230_v60 = vrot.slane %v9229_v20, 4  ;;  %v9237_v13 = vrot.slane %v9236_v3, 4  ;;  %v9243_v5 = vsel %vm8381_vm7, %v7563_v54, -inf  ;;  %v9200_v46 = vmax.f32 %v9198_v49, %v9199_v26 }
 0x6aa   : > { %v9207_v18 = vmax.f32 %v9205_v61, %v9206_v40  ;;  %v9220_v37 = vrot.slane %v9219_v4, 1  ;;  %v9225_v7 = vrot.slane %v9224_v52, 2  ;;  %v9214_v43 = vmax.f32 %v9212_v16, %v9213_v9  ;;  %v6323_v16 = vpop.permute.xlu1 %6322 }
 0x6ab   : > { %v9231_v34 = vmax.f32 %v9229_v20, %v9230_v60  ;;  %v9238_v6 = vmax.f32 %v9236_v3, %v9237_v13  ;;  %v9244_v28 = vrot.slane %v9243_v5, 4  ;;  %v12586_v45 = vpack.c.bf16 %v9200_v46, %v9200_v46 }
 0x6ac   : > { %v9221_v53 = vmax.f32 %v9219_v4, %v9220_v37  ;;  %v12587_v0 = vpack.c.bf16 %v9207_v18, %v9207_v18  ;;  %v9226_v10 = vmax.f32 %v9224_v52, %v9225_v7  ;;  %v12588_v17 = vpack.c.bf16 %v9214_v43, %v9214_v43 }
 0x6ad   : > { %v9232_v51 = vrot.slane %v9231_v34, 2  ;;  %v9239_v24 = vrot.slane %v9238_v6, 2  ;;  %v9245_v62 = vmax.f32 %v9243_v5, %v9244_v28  ;;  %v11314_v15 = vunpack.c.l.b16 %v12586_v45 }
 0x6ae   : > { %v12589_v58 = vpack.c.bf16 %v9221_v53, %v9221_v53  ;;  %v11315_v59 = vunpack.c.l.b16 %v12587_v0  ;;  %v9227_v54 = vrot.slane %v9226_v10, 1  ;;  %v11316_v49 = vunpack.c.l.b16 %v12588_v17 }
 0x6af   : > { %v9233_v61 = vmax.f32 %v9231_v34, %v9232_v51  ;;  %v9240_v26 = vmax.f32 %v9238_v6, %v9239_v24  ;;  %v9246_v40 = vrot.slane %v9245_v62, 2  ;;  %v11562_v3 = vsel %vm11460_vm11, %v11314_v15, %v11561_v44  ;;  %v18290_v34 = vld [vmem:[#allocation46_spill] sm:$0xff]  ;;  %v6325_v44 = vpop.permute.xlu0 %6324  ;;  %v18291_v51 = vld [vmem:[#allocation57_spill] sm:$0xff] }
 0x6b0   : > { %v11317_v20 = vunpack.c.l.b16 %v12589_v58  ;;  %v9228_v4 = vmax.f32 %v9226_v10, %v9227_v54  ;;  %v11563_v52 = vsel %vm11462_vm12, %v11315_v59, %v11562_v3  ;;  %v18288_v37 = vrot.slane %v16832_v27, 1 }
 0x6b1   : > { %v9234_v60 = vrot.slane %v9233_v61, 1  ;;  %v9241_v13 = vrot.slane %v9240_v26, 1  ;;  %v9247_v5 = vmax.f32 %v9245_v62, %v9246_v40  ;;  %v11564_v46 = vsel %vm11464_vm13, %v11316_v49, %v11563_v52  ;;  %v18295_v40 = vld [vmem:[#allocation49_spill] sm:$0xff] }
 0x6b2   : > { %v12590_v18 = vpack.c.bf16 %v9228_v4, %v9228_v4  ;;  %v18289_v7 = vrot.slane %v16795_v50, 1  ;;  %v6483_v6 = vadd.f32 %v6323_v16, %v18290_v34  ;;  %v11565_v28 = vsel %vm11466_vm14, %v11317_v20, %v11564_v46  ;;  %v18296_v20 = vld [vmem:[#allocation50_spill] sm:$0xff] }
 0x6b3   : > { %v9235_v53 = vmax.f32 %v9233_v61, %v9234_v60  ;;  %v9242_v45 = vmax.f32 %v9240_v26, %v9241_v13  ;;  %v9248_v0 = vrot.slane %v9247_v5, 1  ;;  %v11699_v10 = vpack.c.b16 %v11565_v28, %v11565_v28  ;;  %v6327_v13 = vpop.permute.xlu0 %6326 }
 0x6b4   : > { %v6251_v43 = vsel %vm4398_vm0, %v18289_v7, %v18288_v37  ;;  %v11318_v17 = vunpack.c.l.b16 %v12590_v18  ;;  %v18292_v24 = vrot.slane %v18291_v51, 2  ;;  %v18293_v62 = vrot.slane %v18285_v47, 2  ;;  %v6329_v51 = vpop.permute.xlu1 %6328 }
 0x6b5   : > { %6378 = vrot.lane.b32.xlu1 %v6251_v43, %s13848_s11  ;;  %v18294_v15 = vmov %v18288_v37  ;;  %v9249_v54 = vmax.f32 %v9247_v5, %v9248_v0  ;;  %v12591_v49 = vpack.c.bf16 %v9235_v53, %v9235_v53  ;;  %v12592_v61 = vpack.c.bf16 %v9242_v45, %v9242_v45  ;;  %11764 = vst.msk [vmem:[%s16298_s20 + $0x38] sm:$0xf] %vm11749_vm15, %v11699_v10  ;;  %v17098_v37 = vld [vmem:[%s17736_s4] ss:$0 sm:$0xff]  ;;  %v18299_v0 = vld [vmem:[#allocation59_spill] sm:$0xff] }
 0x6b6   : > { %v6645_v58 = vsel %vm4723_vm1, %v18293_v62, %v18292_v24  ;;  %v6253_v59 = vsel %vm4398_vm0, %v18294_v15, %v6252_v19  ;;  %v6484_v16 = vadd.f32 %v6325_v44, %v18295_v40  ;;  %v18297_v47 = vrot.slane %v18296_v20, 2 }
 0x6b7   : > { %v6805_v26 = vadd.f32 %v6645_v58, %v6483_v6  ;;  %6380 = vrot.lane.b32.xlu0 %v6253_v59, %s13848_s11  ;;  %v18298_v3 = vmov %v18292_v24  ;;  %v6254_v52 = vrot.slane %v16885_v22, 1  ;;  %v12593_v5 = vpack.c.bf16 %v9249_v54, %v9249_v54  ;;  %v18300_v58 = vld [vmem:[#allocation51_spill] sm:$0xff] }
 0x6b8   : > { %v6647_v4 = vsel %vm4723_vm1, %v18298_v3, %v18297_v47  ;;  %v11319_v46 = vunpack.c.l.b16 %v12591_v49  ;;  %v11320_v18 = vunpack.c.l.b16 %v12592_v61  ;;  %v17880_v34 = vrot.slane %v16892_v39, 1 }
 0x6b9   : > { %v6876_v7 = vadd.f32 %v17098_v37, %v6805_v26  ;;  %v6806_v43 = vadd.f32 %v6647_v4, %v6484_v16  ;;  %v6255_v44 = vsel %vm4398_vm0, %v6252_v19, %v6254_v52  ;;  %v11321_v28 = vunpack.c.l.b16 %v12593_v5 }
 0x6ba   : > { %v11566_v53 = vsel %vm11454_vm8, %v11319_v46, %v11318_v17  ;;  %v6485_v10 = vadd.f32 %v6327_v13, %v18299_v0  ;;  %v18301_v15 = vrot.slane %v18300_v58, 2  ;;  %v18302_v59 = vmov %v18297_v47  ;;  %v18303_v47 = vld [vmem:[#allocation52_spill] sm:$0xff] }
 0x6bb   : > { %v6940_v45 = vmax.f32 %v6876_v7, 0.0  ;;  %6382 = vrot.lane.b32.xlu0 %v6255_v44, %s13848_s11  ;;  %v11567_v24 = vsel %vm11456_vm9, %v11320_v18, %v11566_v53  ;;  %v6877_v62 = vadd.f32 %v17098_v37, %v6806_v43  ;;  %v6257_v19 = vsel %vm4398_vm0, %v6254_v52, %v17880_v34 }
 0x6bc   : > { %v6649_v54 = vsel %vm4723_vm1, %v18302_v59, %v18301_v15  ;;  %v17120_v17 = vsel %vm11458_vm10, %v11321_v28, %v11567_v24  ;;  %6384 = vrot.lane.b32.xlu1 %v6257_v19, %s13848_s11  ;;  %v6486_v16 = vadd.f32 %v6329_v51, %v16247_v35  ;;  %v18304_v20 = vrot.slane %v18303_v47, 2 }
 0x6bd   : > { %v7564_v49 = vcombine.high %v6940_v45, %v6940_v45  ;;  %v7571_v61 = vrot.slane %v6940_v45, %v16197_v31  ;;  %v6807_v26 = vadd.f32 %v6649_v54, %v6485_v10  ;;  %v6941_v40 = vmax.f32 %v6877_v62, 0.0 }
 0x6be   : > { %v18305_v3 = vmov %v18301_v15 }
 0x6bf   : > { %v6651_v4 = vsel %vm4723_vm1, %v18305_v3, %v18304_v20  ;;  %v7578_v13 = vrot.slane %v7564_v49, %v16197_v31  ;;  %v7579_v5 = vcombine.high %v7571_v61, %v7571_v61  ;;  %v9250_v46 = vsel %vm8381_vm7, %v7571_v61, -inf }
 0x6c0   : > { %v6878_v18 = vadd.f32 %v17098_v37, %v6807_v26  ;;  %v9251_v7 = vrot.slane %v9250_v46, 4  ;;  %v7581_v43 = vcombine.high %v6941_v40, %v6941_v40  ;;  %v7588_v44 = vrot.slane %v6941_v40, %v16197_v31 }
 0x6c1   : > { %v17135_v35 = vadd.f32 %v6651_v4, %v6486_v16  ;;  %v7580_v28 = vcombine.high %v7578_v13, %v7578_v13  ;;  %v9257_v53 = vsel %vm8381_vm7, %v7579_v5, -inf  ;;  %v9264_v45 = vsel %vm8381_vm7, %v7578_v13, -inf }
 0x6c2   : > { %v17139_v0 = vmax.f32 %v6878_v18, 0.0  ;;  %v9252_v10 = vmax.f32 %v9250_v46, %v9251_v7  ;;  %v9258_v51 = vrot.slane %v9257_v53, 4  ;;  %v9265_v24 = vrot.slane %v9264_v45, 4 }
 0x6c3   : > { %v7595_v62 = vrot.slane %v7581_v43, %v16197_v31  ;;  %v9271_v58 = vsel %vm8381_vm7, %v7580_v28, -inf  ;;  %v7596_v15 = vcombine.high %v7588_v44, %v7588_v44  ;;  %v9278_v59 = vsel %vm8381_vm7, %v7588_v44, -inf }
 0x6c4   : > { %v7598_v54 = vcombine.high %v17139_v0, %v17139_v0  ;;  %v9253_v19 = vrot.slane %v9252_v10, 2  ;;  %v9259_v49 = vmax.f32 %v9257_v53, %v9258_v51  ;;  %v9266_v61 = vmax.f32 %v9264_v45, %v9265_v24 }
 0x6c5   : > { %v9272_v26 = vrot.slane %v9271_v58, 4  ;;  %v7597_v40 = vcombine.high %v7595_v62, %v7595_v62  ;;  %v9279_v16 = vrot.slane %v9278_v59, 4  ;;  %v9285_v20 = vsel %vm8381_vm7, %v7596_v15, -inf }
 0x6c6   : > { %v9292_v3 = vsel %vm8381_vm7, %v7595_v62, -inf  ;;  %v9254_v4 = vmax.f32 %v9252_v10, %v9253_v19  ;;  %v9260_v13 = vrot.slane %v9259_v49, 2  ;;  %v9267_v5 = vrot.slane %v9266_v61, 2 }
 0x6c7   : > { %v9273_v46 = vmax.f32 %v9271_v58, %v9272_v26  ;;  %v9280_v18 = vmax.f32 %v9278_v59, %v9279_v16  ;;  %v9286_v7 = vrot.slane %v9285_v20, 4  ;;  %v9293_v43 = vrot.slane %v9292_v3, 4 }
 0x6c8   : > { %v9299_v44 = vsel %vm8381_vm7, %v7597_v40, -inf  ;;  %v9255_v28 = vrot.slane %v9254_v4, 1  ;;  %v9261_v6 = vmax.f32 %v9259_v49, %v9260_v13  ;;  %v9268_v53 = vmax.f32 %v9266_v61, %v9267_v5 }
 0x6c9   : > { %v9274_v45 = vrot.slane %v9273_v46, 2  ;;  %v9281_v51 = vrot.slane %v9280_v18, 2  ;;  %v9287_v24 = vmax.f32 %v9285_v20, %v9286_v7  ;;  %v9294_v60 = vmax.f32 %v9292_v3, %v9293_v43 }
 0x6ca   : > { %v9300_v9 = vrot.slane %v9299_v44, 4  ;;  %v9256_v15 = vmax.f32 %v9254_v4, %v9255_v28  ;;  %v9262_v57 = vrot.slane %v9261_v6, 1  ;;  %v9269_v62 = vrot.slane %v9268_v53, 1 }
 0x6cb   : > { %v9275_v10 = vmax.f32 %v9273_v46, %v9274_v45  ;;  %v9282_v19 = vmax.f32 %v9280_v18, %v9281_v51  ;;  %v9288_v34 = vrot.slane %v9287_v24, 2  ;;  %v9295_v58 = vrot.slane %v9294_v60, 2 }
 0x6cc   : > { %v9301_v59 = vmax.f32 %v9299_v44, %v9300_v9  ;;  %v9263_v26 = vmax.f32 %v9261_v6, %v9262_v57  ;;  %v9270_v16 = vmax.f32 %v9268_v53, %v9269_v62  ;;  %v12594_v40 = vpack.c.bf16 %v9256_v15, %v9256_v15 }
 0x6cd   : > { %v9276_v52 = vrot.slane %v9275_v10, 1  ;;  %v9283_v21 = vrot.slane %v9282_v19, 1  ;;  %v9289_v49 = vmax.f32 %v9287_v24, %v9288_v34  ;;  %v9296_v61 = vmax.f32 %v9294_v60, %v9295_v58 }
 0x6ce   : > { %v9302_v13 = vrot.slane %v9301_v59, 2  ;;  %v12595_v20 = vpack.c.bf16 %v9263_v26, %v9263_v26  ;;  %v12596_v3 = vpack.c.bf16 %v9270_v16, %v9270_v16  ;;  %v11322_v7 = vunpack.c.l.b16 %v12594_v40 }
 0x6cf   : > { %v9277_v5 = vmax.f32 %v9275_v10, %v9276_v52  ;;  %v9284_v4 = vmax.f32 %v9282_v19, %v9283_v21  ;;  %v9290_v43 = vrot.slane %v9289_v49, 1  ;;  %v9297_v28 = vrot.slane %v9296_v61, 1 }
 0x6d0   : > { %v9303_v46 = vmax.f32 %v9301_v59, %v9302_v13  ;;  %v11323_v45 = vunpack.c.l.b16 %v12595_v20  ;;  %v11324_v51 = vunpack.c.l.b16 %v12596_v3  ;;  %v11569_v57 = vsel %vm11460_vm11, %v11322_v7, %v17120_v17 }
 0x6d1   : > { %v12597_v18 = vpack.c.bf16 %v9277_v5, %v9277_v5  ;;  %v9291_v9 = vmax.f32 %v9289_v49, %v9290_v43  ;;  %v9298_v6 = vmax.f32 %v9296_v61, %v9297_v28  ;;  %v12598_v34 = vpack.c.bf16 %v9284_v4, %v9284_v4 }
 0x6d2   : > { %v9304_v44 = vrot.slane %v9303_v46, 1  ;;  %v11570_v52 = vsel %vm11462_vm12, %v11323_v45, %v11569_v57  ;;  %v7605_v53 = vrot.slane %v17139_v0, %v16197_v31  ;;  %v7612_v21 = vrot.slane %v7598_v54, %v16197_v31 }
 0x6d3   : > { %v11325_v60 = vunpack.c.l.b16 %v12597_v18  ;;  %v11571_v24 = vsel %vm11464_vm13, %v11324_v51, %v11570_v52  ;;  %v12599_v62 = vpack.c.bf16 %v9291_v9, %v9291_v9  ;;  %v12600_v10 = vpack.c.bf16 %v9298_v6, %v9298_v6  ;;  %v6331_v18 = vpop.permute.xlu1 %6330 }
 0x6d4   : > { %v9305_v15 = vmax.f32 %v9303_v46, %v9304_v44  ;;  %v11326_v19 = vunpack.c.l.b16 %v12598_v34  ;;  %v7613_v58 = vcombine.high %v7605_v53, %v7605_v53  ;;  %v7614_v59 = vcombine.high %v7612_v21, %v7612_v21 }
 0x6d5   : > { %v11572_v17 = vsel %vm11466_vm14, %v11325_v60, %v11571_v24  ;;  %v11327_v40 = vunpack.c.l.b16 %v12599_v62  ;;  %v11328_v49 = vunpack.c.l.b16 %v12600_v10  ;;  %v9306_v61 = vsel %vm8381_vm7, %v7605_v53, -inf }
 0x6d6   : > { %v11700_v26 = vpack.c.b16 %v11572_v17, %v11572_v17  ;;  %v12601_v16 = vpack.c.bf16 %v9305_v15, %v9305_v15  ;;  %v9313_v0 = vsel %vm8381_vm7, %v7613_v58, -inf  ;;  %v9320_v54 = vsel %vm8381_vm7, %v7612_v21, -inf  ;;  %v6333_v21 = vpop.permute.xlu0 %6332 }
 0x6d7   : > { %v9327_v13 = vsel %vm8381_vm7, %v7614_v59, -inf  ;;  %v11573_v20 = vsel %vm11454_vm8, %v11327_v40, %v11326_v19  ;;  %v9307_v3 = vrot.slane %v9306_v61, 4  ;;  %v9314_v7 = vrot.slane %v9313_v0, 4 }
 0x6d8   : > { %11765 = vst.msk [vmem:[%s16298_s20 + $0x3c] sm:$0xf] %vm11749_vm15, %v11700_v26  ;;  %v11329_v5 = vunpack.c.l.b16 %v12601_v16  ;;  %v11574_v4 = vsel %vm11456_vm9, %v11328_v49, %v11573_v20  ;;  %v9321_v43 = vrot.slane %v9320_v54, 4  ;;  %v9328_v28 = vrot.slane %v9327_v13, 4 }
 0x6d9   : > { %v6879_v46 = vadd.f32 %v17098_v37, %v17135_v35  ;;  %v9308_v51 = vmax.f32 %v9306_v61, %v9307_v3  ;;  %v9315_v57 = vmax.f32 %v9313_v0, %v9314_v7  ;;  %v6708_v9 = vrot.slane %v16956_v42, 2 }
 0x6da   : > { %v11575_v45 = vsel %vm11458_vm10, %v11329_v5, %v11574_v4  ;;  %v9322_v6 = vmax.f32 %v9320_v54, %v9321_v43  ;;  %v9329_v44 = vmax.f32 %v9327_v13, %v9328_v28  ;;  %v18306_v60 = vrot.slane %v16954_v56, 1 }
 0x6db   : > { %v6943_v34 = vmax.f32 %v6879_v46, 0.0  ;;  %v18307_v52 = vrot.slane %v16892_v39, 1  ;;  %v9309_v24 = vrot.slane %v9308_v51, 2  ;;  %v9316_v15 = vrot.slane %v9315_v57, 2 }
 0x6dc   : > { %v6487_v35 = vadd.f32 %v6331_v18, %v16255_v55  ;;  %v18308_v62 = vrot.slane %v16264_v14, 2  ;;  %v18309_v10 = vrot.slane %v18303_v47, 2  ;;  %v9323_v19 = vrot.slane %v9322_v6, 2 }
 0x6dd   : > { %v6259_v53 = vsel %vm4398_vm0, %v18307_v52, %v18306_v60  ;;  %v9330_v58 = vrot.slane %v9329_v44, 2  ;;  %v7615_v56 = vcombine.high %v6943_v34, %v6943_v34  ;;  %v7622_v59 = vrot.slane %v6943_v34, %v16197_v31 }
 0x6de   : > { %6386 = vrot.lane.b32.xlu1 %v6259_v53, %s13848_s11  ;;  %v6653_v17 = vsel %vm4723_vm1, %v18309_v10, %v18308_v62  ;;  %v9310_v26 = vmax.f32 %v9308_v51, %v9309_v24  ;;  %v9317_v16 = vmax.f32 %v9315_v57, %v9316_v15  ;;  %v17183_v49 = vadd.f32 %v6333_v21, %v16262_v23 }
 0x6df   : > { %v6809_v40 = vadd.f32 %v6653_v17, %v6487_v35  ;;  %v9324_v61 = vmax.f32 %v9322_v6, %v9323_v19  ;;  %v9331_v0 = vmax.f32 %v9329_v44, %v9330_v58  ;;  %v7629_v55 = vrot.slane %v7615_v56, %v16197_v31 }
 0x6e0   : > { %v7630_v54 = vcombine.high %v7622_v59, %v7622_v59  ;;  %v9311_v13 = vrot.slane %v9310_v26, 1  ;;  %v9318_v47 = vrot.slane %v9317_v16, 1  ;;  %v9334_v5 = vsel %vm8381_vm7, %v7622_v59, -inf }
 0x6e1   : > { %v6880_v20 = vadd.f32 %v17098_v37, %v6809_v40  ;;  %v9325_v3 = vrot.slane %v9324_v61, 1  ;;  %v9332_v7 = vrot.slane %v9331_v0, 1  ;;  %v7631_v4 = vcombine.high %v7629_v55, %v7629_v55 }
 0x6e2   : > { %v9335_v43 = vrot.slane %v9334_v5, 4  ;;  %v9312_v28 = vmax.f32 %v9310_v26, %v9311_v13  ;;  %v9319_v46 = vmax.f32 %v9317_v16, %v9318_v47  ;;  %v9341_v23 = vsel %vm8381_vm7, %v7630_v54, -inf }
 0x6e3   : > { %v9348_v18 = vsel %vm8381_vm7, %v7629_v55, -inf  ;;  %v9326_v51 = vmax.f32 %v9324_v61, %v9325_v3  ;;  %v9333_v57 = vmax.f32 %v9331_v0, %v9332_v7  ;;  %v9342_v44 = vrot.slane %v9341_v23, 4 }
 0x6e4   : > { %v9336_v6 = vmax.f32 %v9334_v5, %v9335_v43  ;;  %v12602_v34 = vpack.c.bf16 %v9312_v28, %v9312_v28  ;;  %v12603_v60 = vpack.c.bf16 %v9319_v46, %v9319_v46  ;;  %v9349_v52 = vrot.slane %v9348_v18, 4 }
 0x6e5   : > { %v9355_v53 = vsel %vm8381_vm7, %v7631_v4, -inf  ;;  %v12604_v21 = vpack.c.bf16 %v9326_v51, %v9326_v51  ;;  %v12605_v24 = vpack.c.bf16 %v9333_v57, %v9333_v57  ;;  %v9343_v35 = vmax.f32 %v9341_v23, %v9342_v44 }
 0x6e6   : > { %v9337_v15 = vrot.slane %v9336_v6, 2  ;;  %v11330_v62 = vunpack.c.l.b16 %v12602_v34  ;;  %v11331_v10 = vunpack.c.l.b16 %v12603_v60  ;;  %v9350_v17 = vmax.f32 %v9348_v18, %v9349_v52 }
 0x6e7   : > { %v9356_v19 = vrot.slane %v9355_v53, 4  ;;  %v11332_v58 = vunpack.c.l.b16 %v12604_v21  ;;  %v11333_v56 = vunpack.c.l.b16 %v12605_v24  ;;  %v9344_v26 = vrot.slane %v9343_v35, 2 }
 0x6e8   : > { %v9338_v59 = vmax.f32 %v9336_v6, %v9337_v15  ;;  %v11576_v16 = vsel %vm11460_vm11, %v11330_v62, %v11575_v45  ;;  %v9351_v40 = vrot.slane %v9350_v17, 2  ;;  %v6944_v0 = vmax.f32 %v6880_v20, 0.0 }
 0x6e9   : > { %v9357_v61 = vmax.f32 %v9355_v53, %v9356_v19  ;;  %v11577_v55 = vsel %vm11462_vm12, %v11331_v10, %v11576_v16  ;;  %v9345_v13 = vmax.f32 %v9343_v35, %v9344_v26  ;;  %v18310_v47 = vrot.slane %v16268_v29, 2 }
 0x6ea   : > { %v9339_v54 = vrot.slane %v9338_v59, 1  ;;  %v18311_v5 = vrot.slane %v16264_v14, 2  ;;  %v11578_v7 = vsel %vm11464_vm13, %v11332_v58, %v11577_v55  ;;  %v9352_v4 = vmax.f32 %v9350_v17, %v9351_v40 }
 0x6eb   : > { %v9358_v43 = vrot.slane %v9357_v61, 2  ;;  %v7632_v28 = vcombine.high %v6944_v0, %v6944_v0  ;;  %v11579_v45 = vsel %vm11466_vm14, %v11333_v56, %v11578_v7  ;;  %v9346_v20 = vrot.slane %v9345_v13, 1 }
 0x6ec   : > { %v6655_v3 = vsel %vm4723_vm1, %v18311_v5, %v18310_v47  ;;  %v9340_v46 = vmax.f32 %v9338_v59, %v9339_v54  ;;  %v7639_v23 = vrot.slane %v6944_v0, %v16197_v31  ;;  %v11701_v18 = vpack.c.b16 %v11579_v45, %v11579_v45 }
 0x6ed   : > { %v9353_v51 = vrot.slane %v9352_v4, 1  ;;  %v9359_v57 = vmax.f32 %v9357_v61, %v9358_v43  ;;  %v7646_v6 = vrot.slane %v7632_v28, %v16197_v31  ;;  %v9347_v14 = vmax.f32 %v9345_v13, %v9346_v20  ;;  %v6335_v13 = vpop.permute.xlu0 %6334 }
 0x6ee   : > { %v12606_v44 = vpack.c.bf16 %v9340_v46, %v9340_v46  ;;  %v7647_v34 = vcombine.high %v7639_v23, %v7639_v23  ;;  %v9362_v60 = vsel %vm8381_vm7, %v7639_v23, -inf  ;;  %11766 = vst.msk [vmem:[%s16298_s20 + $0x40] sm:$0xf] %vm11749_vm15, %v11701_v18  ;;  %v6810_v40 = vadd.f32 %v6655_v3, %v17183_v49  ;;  %v6337_v3 = vpop.permute.xlu1 %6336 }
 0x6ef   : > { %v9354_v52 = vmax.f32 %v9352_v4, %v9353_v51  ;;  %v9360_v53 = vrot.slane %v9359_v57, 1  ;;  %v7648_v21 = vcombine.high %v7646_v6, %v7646_v6  ;;  %v9363_v24 = vrot.slane %v9362_v60, 4 }
 0x6f0   : > { %v12607_v15 = vpack.c.bf16 %v9347_v14, %v9347_v14  ;;  %v11334_v35 = vunpack.c.l.b16 %v12606_v44  ;;  %v9369_v62 = vsel %vm8381_vm7, %v7647_v34, -inf  ;;  %v9376_v10 = vsel %vm8381_vm7, %v7646_v6, -inf }
 0x6f1   : > { %v9361_v17 = vmax.f32 %v9359_v57, %v9360_v53  ;;  %v12608_v19 = vpack.c.bf16 %v9354_v52, %v9354_v52  ;;  %v9364_v58 = vmax.f32 %v9362_v60, %v9363_v24  ;;  %v9370_v56 = vrot.slane %v9369_v62, 4 }
 0x6f2   : > { %v11335_v59 = vunpack.c.l.b16 %v12607_v15  ;;  %v9377_v26 = vrot.slane %v9376_v10, 4  ;;  %v9383_v16 = vsel %vm8381_vm7, %v7648_v21, -inf  ;;  %v6881_v4 = vadd.f32 %v17098_v37, %v6810_v40 }
 0x6f3   : > { %v12609_v61 = vpack.c.bf16 %v9361_v17, %v9361_v17  ;;  %v11336_v0 = vunpack.c.l.b16 %v12608_v19  ;;  %v9365_v55 = vrot.slane %v9364_v58, 2  ;;  %v9371_v54 = vmax.f32 %v9369_v62, %v9370_v56 }
 0x6f4   : > { %v11580_v47 = vsel %vm11454_vm8, %v11335_v59, %v11334_v35  ;;  %v9378_v5 = vmax.f32 %v9376_v10, %v9377_v26  ;;  %v9384_v7 = vrot.slane %v9383_v16, 4  ;;  %v6945_v18 = vmax.f32 %v6881_v4, 0.0 }
 0x6f5   : > { %v11337_v43 = vunpack.c.l.b16 %v12609_v61  ;;  %v11581_v28 = vsel %vm11456_vm9, %v11336_v0, %v11580_v47  ;;  %v9366_v45 = vmax.f32 %v9364_v58, %v9365_v55  ;;  %v9372_v46 = vrot.slane %v9371_v54, 2 }
 0x6f6   : > { %v9379_v20 = vrot.slane %v9378_v5, 2  ;;  %v9385_v23 = vmax.f32 %v9383_v16, %v9384_v7  ;;  %v6489_v49 = vadd.f32 %v6335_v13, %v16266_v48  ;;  %v18312_v14 = vrot.slane %v16281_v2, 2 }
 0x6f7   : > { %v11582_v51 = vsel %vm11458_vm10, %v11337_v43, %v11581_v28  ;;  %v9367_v57 = vrot.slane %v9366_v45, 1  ;;  %v9373_v6 = vmax.f32 %v9371_v54, %v9372_v46  ;;  %v18313_v44 = vrot.slane %v16268_v29, 2 }
 0x6f8   : > { %v9380_v60 = vmax.f32 %v9378_v5, %v9379_v20  ;;  %v9386_v52 = vrot.slane %v9385_v23, 2  ;;  %v7649_v53 = vcombine.high %v6945_v18, %v6945_v18  ;;  %v7656_v21 = vrot.slane %v6945_v18, %v16197_v31 }
 0x6f9   : > { %v6657_v34 = vsel %vm4723_vm1, %v18313_v44, %v18312_v14  ;;  %v9368_v24 = vmax.f32 %v9366_v45, %v9367_v57  ;;  %v9374_v15 = vrot.slane %v9373_v6, 1  ;;  %v17221_v48 = vadd.f32 %v6337_v3, %v16278_v25 }
 0x6fa   : > { %v6811_v35 = vadd.f32 %v6657_v34, %v6489_v49  ;;  %v9381_v62 = vrot.slane %v9380_v60, 1  ;;  %v9387_v10 = vmax.f32 %v9385_v23, %v9386_v52  ;;  %v7663_v17 = vrot.slane %v7649_v53, %v16197_v31 }
 0x6fb   : > { %v7664_v19 = vcombine.high %v7656_v21, %v7656_v21  ;;  %v9375_v58 = vmax.f32 %v9373_v6, %v9374_v15  ;;  %v12610_v29 = vpack.c.bf16 %v9368_v24, %v9368_v24  ;;  %v9390_v56 = vsel %vm8381_vm7, %v7656_v21, -inf }
 0x6fc   : > { %v6882_v59 = vadd.f32 %v17098_v37, %v6811_v35  ;;  %v9382_v26 = vmax.f32 %v9380_v60, %v9381_v62  ;;  %v9388_v16 = vrot.slane %v9387_v10, 1  ;;  %v7665_v40 = vcombine.high %v7663_v17, %v7663_v17  ;;  %v18314_v62 = vld [vmem:[#allocation63_spill] sm:$0xff] }
 0x6fd   : > { %v9391_v61 = vrot.slane %v9390_v56, 4  ;;  %v12611_v0 = vpack.c.bf16 %v9375_v58, %v9375_v58  ;;  %v11338_v55 = vunpack.c.l.b16 %v12610_v29  ;;  %v9397_v25 = vsel %vm8381_vm7, %v7664_v19, -inf }
 0x6fe   : > { %v9404_v54 = vsel %vm8381_vm7, %v7663_v17, -inf  ;;  %v9389_v13 = vmax.f32 %v9387_v10, %v9388_v16  ;;  %v12612_v47 = vpack.c.bf16 %v9382_v26, %v9382_v26  ;;  %v9398_v7 = vrot.slane %v9397_v25, 4 }
 0x6ff   : > { %v9392_v5 = vmax.f32 %v9390_v56, %v9391_v61  ;;  %v11339_v4 = vunpack.c.l.b16 %v12611_v0  ;;  %v11583_v43 = vsel %vm11460_vm11, %v11338_v55, %v11582_v51  ;;  %v9405_v28 = vrot.slane %v9404_v54, 4 }
 0x700   : > { %v9411_v45 = vsel %vm8381_vm7, %v7665_v40, -inf  ;;  %v12613_v46 = vpack.c.bf16 %v9389_v13, %v9389_v13  ;;  %v11340_v20 = vunpack.c.l.b16 %v12612_v47  ;;  %v9399_v18 = vmax.f32 %v9397_v25, %v9398_v7 }
 0x701   : > { %v9393_v23 = vrot.slane %v9392_v5, 2  ;;  %v11584_v49 = vsel %vm11462_vm12, %v11339_v4, %v11583_v43  ;;  %v9406_v3 = vmax.f32 %v9404_v54, %v9405_v28  ;;  %v9412_v57 = vrot.slane %v9411_v45, 4 }
 0x702   : > { %v6946_v6 = vmax.f32 %v6882_v59, 0.0  ;;  %v11341_v14 = vunpack.c.l.b16 %v12613_v46  ;;  %v11585_v44 = vsel %vm11464_vm13, %v11340_v20, %v11584_v49  ;;  %v9400_v60 = vrot.slane %v9399_v18, 2 }
 0x703   : > { %v9394_v34 = vmax.f32 %v9392_v5, %v9393_v23  ;;  %v9407_v52 = vrot.slane %v9406_v3, 2  ;;  %v9413_v51 = vmax.f32 %v9411_v45, %v9412_v57  ;;  %v18315_v10 = vrot.slane %v18314_v62, 2 }
 0x704   : > { %v7666_v53 = vcombine.high %v6946_v6, %v6946_v6  ;;  %v7673_v21 = vrot.slane %v6946_v6, %v16197_v31  ;;  %v11586_v24 = vsel %vm11466_vm14, %v11341_v14, %v11585_v44  ;;  %v9401_v35 = vmax.f32 %v9399_v18, %v9400_v60 }
 0x705   : > { %v9395_v15 = vrot.slane %v9394_v34, 1  ;;  %v18316_v17 = vrot.slane %v16281_v2, 2  ;;  %v11702_v58 = vpack.c.b16 %v11586_v24, %v11586_v24  ;;  %v9408_v29 = vmax.f32 %v9406_v3, %v9407_v52 }
 0x706   : > { %v9414_v56 = vrot.slane %v9413_v51, 2  ;;  %v7680_v59 = vrot.slane %v7666_v53, %v16197_v31  ;;  %v9402_v16 = vrot.slane %v9401_v35, 1  ;;  %v7681_v40 = vcombine.high %v7673_v21, %v7673_v21 }
 0x707   : > { %v6659_v19 = vsel %vm4723_vm1, %v18316_v17, %v18315_v10  ;;  %v9396_v26 = vmax.f32 %v9394_v34, %v9395_v15  ;;  %v9418_v61 = vsel %vm8381_vm7, %v7673_v21, -inf  ;;  %11767 = vst.msk [vmem:[%s16298_s20 + $0x44] sm:$0xf] %vm11749_vm15, %v11702_v58  ;;  %v9409_v0 = vrot.slane %v9408_v29, 1  ;;  %v6339_v21 = vpop.permute.xlu1 %6338 }
 0x708   : > { %v9415_v55 = vmax.f32 %v9413_v51, %v9414_v56  ;;  %v7682_v25 = vcombine.high %v7680_v59, %v7680_v59  ;;  %v9419_v54 = vrot.slane %v9418_v61, 4  ;;  %v9403_v13 = vmax.f32 %v9401_v35, %v9402_v16 }
 0x709   : > { %v12614_v2 = vpack.c.bf16 %v9396_v26, %v9396_v26  ;;  %v9425_v47 = vsel %vm8381_vm7, %v7681_v40, -inf  ;;  %v9432_v5 = vsel %vm8381_vm7, %v7680_v59, -inf  ;;  %v9410_v7 = vmax.f32 %v9408_v29, %v9409_v0  ;;  %v6341_v40 = vpop.permute.xlu0 %6340 }
 0x70a   : > { %v9416_v4 = vrot.slane %v9415_v55, 1  ;;  %v9420_v43 = vmax.f32 %v9418_v61, %v9419_v54  ;;  %v9426_v28 = vrot.slane %v9425_v47, 4  ;;  %v12615_v45 = vpack.c.bf16 %v9403_v13, %v9403_v13 }
 0x70b   : > { %v11342_v46 = vunpack.c.l.b16 %v12614_v2  ;;  %v9433_v20 = vrot.slane %v9432_v5, 4  ;;  %v9439_v23 = vsel %vm8381_vm7, %v7682_v25, -inf  ;;  %v12616_v49 = vpack.c.bf16 %v9410_v7, %v9410_v7  ;;  %v18318_v25 = vld [vmem:[#allocation55_spill] sm:$0xff] }
 0x70c   : > { %v9417_v18 = vmax.f32 %v9415_v55, %v9416_v4  ;;  %v9421_v3 = vrot.slane %v9420_v43, 2  ;;  %v9427_v57 = vmax.f32 %v9425_v47, %v9426_v28  ;;  %v11343_v6 = vunpack.c.l.b16 %v12615_v45 }
 0x70d   : > { %v9434_v14 = vmax.f32 %v9432_v5, %v9433_v20  ;;  %v9440_v44 = vrot.slane %v9439_v23, 4  ;;  %v6812_v34 = vadd.f32 %v6659_v19, %v17221_v48  ;;  %v11344_v52 = vunpack.c.l.b16 %v12616_v49  ;;  %v18317_v48 = vld [vmem:[#allocation54_spill] sm:$0xff] }
 0x70e   : > { %v12617_v60 = vpack.c.bf16 %v9417_v18, %v9417_v18  ;;  %v9422_v51 = vmax.f32 %v9420_v43, %v9421_v3  ;;  %v9428_v53 = vrot.slane %v9427_v57, 2  ;;  %v11587_v24 = vsel %vm11454_vm8, %v11343_v6, %v11342_v46  ;;  %v18321_v46 = vld [vmem:[#allocation76_spill] sm:$0xff] }
 0x70f   : > { %v9435_v15 = vrot.slane %v9434_v14, 2  ;;  %v9441_v35 = vmax.f32 %v9439_v23, %v9440_v44  ;;  %v6883_v10 = vadd.f32 %v17098_v37, %v6812_v34  ;;  %v11588_v58 = vsel %vm11456_vm9, %v11344_v52, %v11587_v24 }
 0x710   : > { %v11345_v17 = vunpack.c.l.b16 %v12617_v60  ;;  %v9423_v29 = vrot.slane %v9422_v51, 1  ;;  %v9429_v56 = vmax.f32 %v9427_v57, %v9428_v53  ;;  %v6491_v19 = vadd.f32 %v6339_v21, %v18317_v48 }
 0x711   : > { %v9436_v59 = vmax.f32 %v9434_v14, %v9435_v15  ;;  %v9442_v26 = vrot.slane %v9441_v35, 2  ;;  %v6947_v16 = vmax.f32 %v6883_v10, 0.0  ;;  %v18319_v54 = vrot.slane %v18318_v25, 2 }
 0x712   : > { %v11589_v61 = vsel %vm11458_vm10, %v11345_v17, %v11588_v58  ;;  %v9424_v0 = vmax.f32 %v9422_v51, %v9423_v29  ;;  %v9430_v55 = vrot.slane %v9429_v56, 1  ;;  %v18320_v13 = vrot.slane %v18314_v62, 2 }
 0x713   : > { %v9437_v47 = vrot.slane %v9436_v59, 1  ;;  %v9443_v5 = vmax.f32 %v9441_v35, %v9442_v26  ;;  %v7683_v7 = vcombine.high %v6947_v16, %v6947_v16  ;;  %v7690_v4 = vrot.slane %v6947_v16, %v16197_v31 }
 0x714   : > { %v6661_v2 = vsel %vm4723_vm1, %v18320_v13, %v18319_v54  ;;  %v9431_v43 = vmax.f32 %v9429_v56, %v9430_v55  ;;  %v12618_v28 = vpack.c.bf16 %v9424_v0, %v9424_v0  ;;  %v17259_v20 = vadd.f32 %v6341_v40, %v18321_v46 }
 0x715   : > { %v6813_v45 = vadd.f32 %v6661_v2, %v6491_v19  ;;  %v9438_v23 = vmax.f32 %v9436_v59, %v9437_v47  ;;  %v9444_v18 = vrot.slane %v9443_v5, 1  ;;  %v7697_v49 = vrot.slane %v7683_v7, %v16197_v31  ;;  %v18322_v47 = vld [vmem:[#allocation58_spill] sm:$0xff] }
 0x716   : > { %v7698_v3 = vcombine.high %v7690_v4, %v7690_v4  ;;  %v12619_v57 = vpack.c.bf16 %v9431_v43, %v9431_v43  ;;  %v11346_v62 = vunpack.c.l.b16 %v12618_v28  ;;  %v9446_v6 = vsel %vm8381_vm7, %v7690_v4, -inf }
 0x717   : > { %v6884_v14 = vadd.f32 %v17098_v37, %v6813_v45  ;;  %v9445_v44 = vmax.f32 %v9443_v5, %v9444_v18  ;;  %v12620_v34 = vpack.c.bf16 %v9438_v23, %v9438_v23  ;;  %v7699_v60 = vcombine.high %v7697_v49, %v7697_v49 }
 0x718   : > { %v9447_v52 = vrot.slane %v9446_v6, 4  ;;  %v11347_v51 = vunpack.c.l.b16 %v12619_v57  ;;  %v11590_v53 = vsel %vm11460_vm11, %v11346_v62, %v11589_v61  ;;  %v9453_v21 = vsel %vm8381_vm7, %v7698_v3, -inf }
 0x719   : > { %v9460_v24 = vsel %vm8381_vm7, %v7697_v49, -inf  ;;  %v12621_v15 = vpack.c.bf16 %v9445_v44, %v9445_v44  ;;  %v11348_v35 = vunpack.c.l.b16 %v12620_v34  ;;  %v9454_v17 = vrot.slane %v9453_v21, 4 }
 0x71a   : > { %v9448_v10 = vmax.f32 %v9446_v6, %v9447_v52  ;;  %v11591_v58 = vsel %vm11462_vm12, %v11347_v51, %v11590_v53  ;;  %v9461_v29 = vrot.slane %v9460_v24, 4  ;;  %v9467_v56 = vsel %vm8381_vm7, %v7699_v60, -inf }
 0x71b   : > { %v6948_v59 = vmax.f32 %v6884_v14, 0.0  ;;  %v11349_v26 = vunpack.c.l.b16 %v12621_v15  ;;  %v11592_v16 = vsel %vm11464_vm13, %v11348_v35, %v11591_v58  ;;  %v9455_v19 = vmax.f32 %v9453_v21, %v9454_v17 }
 0x71c   : > { %v9449_v48 = vrot.slane %v9448_v10, 2  ;;  %v9462_v40 = vmax.f32 %v9460_v24, %v9461_v29  ;;  %v9468_v61 = vrot.slane %v9467_v56, 4  ;;  %v18323_v5 = vrot.slane %v18322_v47, 2 }
 0x71d   : > { %v7700_v0 = vcombine.high %v6948_v59, %v6948_v59  ;;  %v7707_v55 = vrot.slane %v6948_v59, %v16197_v31  ;;  %v11593_v54 = vsel %vm11466_vm14, %v11349_v26, %v11592_v16  ;;  %v9456_v2 = vrot.slane %v9455_v19, 2 }
 0x71e   : > { %v9450_v13 = vmax.f32 %v9448_v10, %v9449_v48  ;;  %v18324_v7 = vrot.slane %v18318_v25, 2  ;;  %v11703_v43 = vpack.c.b16 %v11593_v54, %v11593_v54  ;;  %v9463_v28 = vrot.slane %v9462_v40, 2 }
 0x71f   : > { %v9469_v45 = vmax.f32 %v9467_v56, %v9468_v61  ;;  %v7714_v46 = vrot.slane %v7700_v0, %v16197_v31  ;;  %v9457_v18 = vmax.f32 %v9455_v19, %v9456_v2  ;;  %v7715_v49 = vcombine.high %v7707_v55, %v7707_v55 }
 0x720   : > { %v6663_v4 = vsel %vm4723_vm1, %v18324_v7, %v18323_v5  ;;  %v9451_v23 = vrot.slane %v9450_v13, 1  ;;  %v9474_v3 = vsel %vm8381_vm7, %v7707_v55, -inf  ;;  %11768 = vst.msk [vmem:[%s16298_s20 + $0x48] sm:$0xf] %vm11749_vm15, %v11703_v43  ;;  %v9464_v57 = vmax.f32 %v9462_v40, %v9463_v28 }
 0x721   : > { %v9470_v62 = vrot.slane %v9469_v45, 2  ;;  %v7716_v6 = vcombine.high %v7714_v46, %v7714_v46  ;;  %v9475_v14 = vrot.slane %v9474_v3, 4  ;;  %v9458_v25 = vrot.slane %v9457_v18, 1 }
 0x722   : > { %v9452_v44 = vmax.f32 %v9450_v13, %v9451_v23  ;;  %v9481_v34 = vsel %vm8381_vm7, %v7715_v49, -inf  ;;  %v9488_v60 = vsel %vm8381_vm7, %v7714_v46, -inf  ;;  %v9465_v52 = vrot.slane %v9464_v57, 1 }
 0x723   : > { %v9471_v51 = vmax.f32 %v9469_v45, %v9470_v62  ;;  %v9476_v53 = vmax.f32 %v9474_v3, %v9475_v14  ;;  %v9482_v21 = vrot.slane %v9481_v34, 4  ;;  %v9459_v24 = vmax.f32 %v9457_v18, %v9458_v25  ;;  %v6343_v45 = vpop.permute.xlu0 %6342 }
 0x724   : > { %v12622_v15 = vpack.c.bf16 %v9452_v44, %v9452_v44  ;;  %v9489_v35 = vrot.slane %v9488_v60, 4  ;;  %v9495_v10 = vsel %vm8381_vm7, %v7716_v6, -inf  ;;  %v9466_v17 = vmax.f32 %v9464_v57, %v9465_v52 }
 0x725   : > { %v9472_v58 = vrot.slane %v9471_v51, 1  ;;  %v9477_v29 = vrot.slane %v9476_v53, 2  ;;  %v9483_v56 = vmax.f32 %v9481_v34, %v9482_v21  ;;  %v12623_v59 = vpack.c.bf16 %v9459_v24, %v9459_v24  ;;  %v6345_v34 = vpop.permute.xlu1 %6344 }
 0x726   : > { %v11350_v26 = vunpack.c.l.b16 %v12622_v15  ;;  %v9490_v16 = vmax.f32 %v9488_v60, %v9489_v35  ;;  %v9496_v48 = vrot.slane %v9495_v10, 4  ;;  %v12624_v40 = vpack.c.bf16 %v9466_v17, %v9466_v17 }
 0x727   : > { %v9473_v19 = vmax.f32 %v9471_v51, %v9472_v58  ;;  %v9478_v61 = vmax.f32 %v9476_v53, %v9477_v29  ;;  %v9484_v0 = vrot.slane %v9483_v56, 2  ;;  %v11351_v55 = vunpack.c.l.b16 %v12623_v59  ;;  %v18326_v53 = vld [vmem:[#allocation68_spill] sm:$0xff] }
 0x728   : > { %v9491_v54 = vrot.slane %v9490_v16, 2  ;;  %v9497_v13 = vmax.f32 %v9495_v10, %v9496_v48  ;;  %v6814_v2 = vadd.f32 %v6663_v4, %v17259_v20  ;;  %v11352_v7 = vunpack.c.l.b16 %v12624_v40  ;;  %v18325_v20 = vld [vmem:[#allocation56_spill] sm:$0xff] }
 0x729   : > { %v12625_v5 = vpack.c.bf16 %v9473_v19, %v9473_v19  ;;  %v9479_v43 = vrot.slane %v9478_v61, 1  ;;  %v9485_v28 = vmax.f32 %v9483_v56, %v9484_v0  ;;  %v11594_v46 = vsel %vm11454_vm8, %v11351_v55, %v11350_v26  ;;  %v18329_v26 = vld [vmem:[#allocation60_spill] sm:$0xff] }
 0x72a   : > { %v9492_v23 = vmax.f32 %v9490_v16, %v9491_v54  ;;  %v9498_v18 = vrot.slane %v9497_v13, 2  ;;  %v6885_v49 = vadd.f32 %v17098_v37, %v6814_v2  ;;  %v11595_v57 = vsel %vm11456_vm9, %v11352_v7, %v11594_v46 }
 0x72b   : > { %v11353_v3 = vunpack.c.l.b16 %v12625_v5  ;;  %v9480_v62 = vmax.f32 %v9478_v61, %v9479_v43  ;;  %v9486_v6 = vrot.slane %v9485_v28, 1  ;;  %v6493_v4 = vadd.f32 %v6343_v45, %v18325_v20 }
 0x72c   : > { %v9493_v14 = vrot.slane %v9492_v23, 1  ;;  %v9499_v44 = vmax.f32 %v9497_v13, %v9498_v18  ;;  %v6949_v25 = vmax.f32 %v6885_v49, 0.0  ;;  %v18327_v21 = vrot.slane %v18326_v53, 2 }
 0x72d   : > { %v11596_v60 = vsel %vm11458_vm10, %v11353_v3, %v11595_v57  ;;  %v9487_v52 = vmax.f32 %v9485_v28, %v9486_v6  ;;  %v12626_v51 = vpack.c.bf16 %v9480_v62, %v9480_v62  ;;  %v18328_v24 = vrot.slane %v18322_v47, 2 }
 0x72e   : > { %v9494_v35 = vmax.f32 %v9492_v23, %v9493_v14  ;;  %v9500_v10 = vrot.slane %v9499_v44, 1  ;;  %v7717_v17 = vcombine.high %v6949_v25, %v6949_v25  ;;  %v7724_v58 = vrot.slane %v6949_v25, %v16197_v31 }
 0x72f   : > { %v6665_v15 = vsel %vm4723_vm1, %v18328_v24, %v18327_v21  ;;  %v12627_v29 = vpack.c.bf16 %v9487_v52, %v9487_v52  ;;  %v11354_v56 = vunpack.c.l.b16 %v12626_v51  ;;  %v17297_v16 = vadd.f32 %v6345_v34, %v18329_v26 }
 0x730   : > { %v6815_v59 = vadd.f32 %v6665_v15, %v6493_v4  ;;  %v9501_v48 = vmax.f32 %v9499_v44, %v9500_v10  ;;  %v12628_v19 = vpack.c.bf16 %v9494_v35, %v9494_v35  ;;  %v7731_v40 = vrot.slane %v7717_v17, %v16197_v31 }
 0x731   : > { %v7732_v61 = vcombine.high %v7724_v58, %v7724_v58  ;;  %v11355_v0 = vunpack.c.l.b16 %v12627_v29  ;;  %v11597_v47 = vsel %vm11460_vm11, %v11354_v56, %v11596_v60  ;;  %v9502_v55 = vsel %vm8381_vm7, %v7724_v58, -inf }
 0x732   : > { %v6886_v54 = vadd.f32 %v17098_v37, %v6815_v59  ;;  %v12629_v13 = vpack.c.bf16 %v9501_v48, %v9501_v48  ;;  %v11356_v2 = vunpack.c.l.b16 %v12628_v19  ;;  %v7733_v5 = vcombine.high %v7731_v40, %v7731_v40 }
 0x733   : > { %v9503_v7 = vrot.slane %v9502_v55, 4  ;;  %v11598_v43 = vsel %vm11462_vm12, %v11355_v0, %v11597_v47  ;;  %v9509_v28 = vsel %vm8381_vm7, %v7732_v61, -inf  ;;  %v9516_v45 = vsel %vm8381_vm7, %v7731_v40, -inf }
 0x734   : > { %v6950_v46 = vmax.f32 %v6886_v54, 0.0  ;;  %v11357_v23 = vunpack.c.l.b16 %v12629_v13  ;;  %v11599_v18 = vsel %vm11464_vm13, %v11356_v2, %v11598_v43  ;;  %v9510_v3 = vrot.slane %v9509_v28, 4 }
 0x735   : > { %v9504_v49 = vmax.f32 %v9502_v55, %v9503_v7  ;;  %v9517_v57 = vrot.slane %v9516_v45, 4  ;;  %v9523_v37 = vsel %vm8381_vm7, %v7733_v5, -inf }
 0x736   : > { %v7734_v62 = vcombine.high %v6950_v46, %v6950_v46  ;;  %v7741_v6 = vrot.slane %v6950_v46, %v16197_v31  ;;  %v11600_v14 = vsel %vm11466_vm14, %v11357_v23, %v11599_v18  ;;  %v9511_v25 = vmax.f32 %v9509_v28, %v9510_v3 }
 0x737   : > { %v9505_v44 = vrot.slane %v9504_v49, 2  ;;  %v9524_v20 = vrot.slane %v9523_v37, 4  ;;  %v11704_v4 = vpack.c.b16 %v11600_v14, %v11600_v14  ;;  %v9518_v34 = vmax.f32 %v9516_v45, %v9517_v57 }
 0x738   : > { %v7748_v60 = vrot.slane %v7734_v62, %v16197_v31  ;;  %v7749_v52 = vcombine.high %v7741_v6, %v7741_v6  ;;  %v9512_v21 = vrot.slane %v9511_v25, 2  ;;  %v9530_v15 = vsel %vm8381_vm7, %v7741_v6, -inf }
 0x739   : > { %v9506_v51 = vmax.f32 %v9504_v49, %v9505_v44  ;;  %v9525_v24 = vmax.f32 %v9523_v37, %v9524_v20  ;;  %11769 = vst.msk [vmem:[%s16298_s20 + $0x4c] sm:$0xf] %vm11749_vm15, %v11704_v4  ;;  %v9519_v35 = vrot.slane %v9518_v34, 2  ;;  %v9531_v17 = vrot.slane %v9530_v15, 4 }
 0x73a   : > { %v7750_v10 = vcombine.high %v7748_v60, %v7748_v60  ;;  %v9537_v58 = vsel %vm8381_vm7, %v7749_v52, -inf  ;;  %v9513_v56 = vmax.f32 %v9511_v25, %v9512_v21  ;;  %v9544_v40 = vsel %vm8381_vm7, %v7748_v60, -inf  ;;  %v18330_v52 = vld [vmem:[#allocation61_spill] sm:$0xff] }
 0x73b   : > { %v9507_v29 = vrot.slane %v9506_v51, 1  ;;  %v9526_v59 = vrot.slane %v9525_v24, 2  ;;  %v9538_v26 = vrot.slane %v9537_v58, 4  ;;  %v9520_v48 = vmax.f32 %v9518_v34, %v9519_v35 }
 0x73c   : > { %v9532_v19 = vmax.f32 %v9530_v15, %v9531_v17  ;;  %v9551_v61 = vsel %vm8381_vm7, %v7750_v10, -inf  ;;  %v9514_v47 = vrot.slane %v9513_v56, 1  ;;  %v9545_v5 = vrot.slane %v9544_v40, 4 }
 0x73d   : > { %v9508_v0 = vmax.f32 %v9506_v51, %v9507_v29  ;;  %v9527_v55 = vmax.f32 %v9525_v24, %v9526_v59  ;;  %v9539_v54 = vmax.f32 %v9537_v58, %v9538_v26  ;;  %v9521_v13 = vrot.slane %v9520_v48, 1  ;;  %v6347_v58 = vpop.permute.xlu1 %6346 }
 0x73e   : > { %v9533_v2 = vrot.slane %v9532_v19, 2  ;;  %v9552_v7 = vrot.slane %v9551_v61, 4  ;;  %v9515_v43 = vmax.f32 %v9513_v56, %v9514_v47  ;;  %v9546_v49 = vmax.f32 %v9544_v40, %v9545_v5 }
 0x73f   : > { %v9528_v28 = vrot.slane %v9527_v55, 1  ;;  %v12630_v45 = vpack.c.bf16 %v9508_v0, %v9508_v0  ;;  %v9540_v46 = vrot.slane %v9539_v54, 2  ;;  %v9522_v23 = vmax.f32 %v9520_v48, %v9521_v13  ;;  %v6349_v48 = vpop.permute.xlu0 %6348  ;;  %v18333_v13 = vld [vmem:[#allocation77_spill] sm:$0xff] }
 0x740   : > { %v9534_v18 = vmax.f32 %v9532_v19, %v9533_v2  ;;  %v9553_v3 = vmax.f32 %v9551_v61, %v9552_v7  ;;  %v12631_v37 = vpack.c.bf16 %v9515_v43, %v9515_v43  ;;  %v9547_v25 = vrot.slane %v9546_v49, 2  ;;  %v18334_v43 = vld [vmem:[#allocation64_spill] sm:$0xff] }
 0x741   : > { %v9529_v57 = vmax.f32 %v9527_v55, %v9528_v28  ;;  %v11358_v62 = vunpack.c.l.b16 %v12630_v45  ;;  %v9541_v6 = vmax.f32 %v9539_v54, %v9540_v46  ;;  %v12632_v14 = vpack.c.bf16 %v9522_v23, %v9522_v23  ;;  %v17329_v55 = vld [vmem:[%s17736_s4] ss:$0 sm:$0xff] }
 0x742   : > { %v9535_v44 = vrot.slane %v9534_v18, 1  ;;  %v9554_v20 = vrot.slane %v9553_v3, 2  ;;  %v11359_v34 = vunpack.c.l.b16 %v12631_v37  ;;  %v18331_v51 = vrot.slane %v18330_v52, 2 }
 0x743   : > { %v12633_v4 = vpack.c.bf16 %v9529_v57, %v9529_v57  ;;  %v9542_v60 = vrot.slane %v9541_v6, 1  ;;  %v18332_v21 = vrot.slane %v18326_v53, 2  ;;  %v11360_v15 = vunpack.c.l.b16 %v12632_v14  ;;  %v6351_v37 = vpop.permute.xlu0 %6350 }
 0x744   : > { %v9536_v35 = vmax.f32 %v9534_v18, %v9535_v44  ;;  %v9548_v10 = vmax.f32 %v9546_v49, %v9547_v25  ;;  %v9555_v17 = vmax.f32 %v9553_v3, %v9554_v20  ;;  %v11601_v56 = vsel %vm11454_vm8, %v11359_v34, %v11358_v62  ;;  %v18337_v3 = vld [vmem:[#allocation62_spill] sm:$0xff]  ;;  %v18338_v44 = vld [vmem:[#allocation69_spill] sm:$0xff] }
 0x745   : > { %v6667_v24 = vsel %vm4723_vm1, %v18332_v21, %v18331_v51  ;;  %v11361_v29 = vunpack.c.l.b16 %v12633_v4  ;;  %v9543_v59 = vmax.f32 %v9541_v6, %v9542_v60  ;;  %v11602_v19 = vsel %vm11456_vm9, %v11360_v15, %v11601_v56 }
 0x746   : > { %v6816_v26 = vadd.f32 %v6667_v24, %v17297_v16  ;;  %v9549_v40 = vrot.slane %v9548_v10, 1  ;;  %v9556_v61 = vrot.slane %v9555_v17, 1  ;;  %v12634_v0 = vpack.c.bf16 %v9536_v35, %v9536_v35  ;;  %v18341_v35 = vld [vmem:[#allocation65_spill] sm:$0xff] }
 0x747   : > { %v11603_v53 = vsel %vm11458_vm10, %v11361_v29, %v11602_v19  ;;  %v12635_v47 = vpack.c.bf16 %v9543_v59, %v9543_v59  ;;  %v6495_v2 = vadd.f32 %v6347_v58, %v18333_v13  ;;  %v18335_v28 = vrot.slane %v18334_v43, 2  ;;  %v18342_v19 = vld [vmem:[#allocation66_spill] sm:$0xff] }
 0x748   : > { %v6887_v54 = vadd.f32 %v17329_v55, %v6816_v26  ;;  %v9550_v5 = vmax.f32 %v9548_v10, %v9549_v40  ;;  %v9557_v16 = vmax.f32 %v9555_v17, %v9556_v61  ;;  %v11362_v7 = vunpack.c.l.b16 %v12634_v0 }
 0x749   : > { %v18336_v45 = vmov %v18331_v51  ;;  %v11363_v23 = vunpack.c.l.b16 %v12635_v47  ;;  %v6496_v57 = vadd.f32 %v6349_v48, %v18337_v3  ;;  %v18339_v25 = vrot.slane %v18338_v44, 2 }
 0x74a   : > { %v6669_v46 = vsel %vm4723_vm1, %v18336_v45, %v18335_v28  ;;  %v6951_v18 = vmax.f32 %v6887_v54, 0.0  ;;  %v12636_v62 = vpack.c.bf16 %v9550_v5, %v9550_v5  ;;  %v12637_v6 = vpack.c.bf16 %v9557_v16, %v9557_v16 }
 0x74b   : > { %v6817_v49 = vadd.f32 %v6669_v46, %v6495_v2  ;;  %v11604_v14 = vsel %vm11460_vm11, %v11362_v7, %v11603_v53  ;;  %v18340_v20 = vmov %v18335_v28  ;;  %v17349_v10 = vadd.f32 %v6351_v37, %v18341_v35 }
 0x74c   : > { %v6671_v4 = vsel %vm4723_vm1, %v18340_v20, %v18339_v25  ;;  %v11605_v34 = vsel %vm11462_vm12, %v11363_v23, %v11604_v14  ;;  %v7751_v60 = vcombine.high %v6951_v18, %v6951_v18  ;;  %v7758_v52 = vrot.slane %v6951_v18, %v16197_v31 }
 0x74d   : > { %v6888_v51 = vadd.f32 %v17329_v55, %v6817_v49  ;;  %v11364_v21 = vunpack.c.l.b16 %v12636_v62  ;;  %v11365_v24 = vunpack.c.l.b16 %v12637_v6  ;;  %v6818_v15 = vadd.f32 %v6671_v4, %v6496_v57 }
 0x74e   : > { %v7765_v17 = vrot.slane %v7751_v60, %v16197_v31  ;;  %v7766_v58 = vcombine.high %v7758_v52, %v7758_v52  ;;  %v9558_v29 = vsel %vm8381_vm7, %v7758_v52, -inf  ;;  %v18343_v40 = vrot.slane %v18342_v19, 2 }
 0x74f   : > { %v6952_v56 = vmax.f32 %v6888_v51, 0.0  ;;  %v11606_v59 = vsel %vm11464_vm13, %v11364_v21, %v11605_v34  ;;  %v9559_v26 = vrot.slane %v9558_v29, 4  ;;  %v6889_v48 = vadd.f32 %v17329_v55, %v6818_v15 }
 0x750   : > { %v18344_v61 = vmov %v18339_v25  ;;  %v11607_v53 = vsel %vm11466_vm14, %v11365_v24, %v11606_v59  ;;  %v7767_v47 = vcombine.high %v7765_v17, %v7765_v17  ;;  %v9565_v54 = vsel %vm8381_vm7, %v7766_v58, -inf }
 0x751   : > { %v17360_v0 = vsel %vm4723_vm1, %v18344_v61, %v18343_v40  ;;  %v9572_v13 = vsel %vm8381_vm7, %v7765_v17, -inf  ;;  %v11705_v2 = vpack.c.b16 %v11607_v53, %v11607_v53  ;;  %v9560_v5 = vmax.f32 %v9558_v29, %v9559_v26 }
 0x752   : > { %v9566_v16 = vrot.slane %v9565_v54, 4  ;;  %v9573_v7 = vrot.slane %v9572_v13, 4  ;;  %v9579_v43 = vsel %vm8381_vm7, %v7767_v47, -inf  ;;  %v7768_v28 = vcombine.high %v6952_v56, %v6952_v56 }
 0x753   : > { %v7775_v45 = vrot.slane %v6952_v56, %v16197_v31  ;;  %v6953_v46 = vmax.f32 %v6889_v48, 0.0  ;;  %11770 = vst.msk [vmem:[%s16298_s20 + $0x50] sm:$0xf] %vm11749_vm15, %v11705_v2  ;;  %v9561_v23 = vrot.slane %v9560_v5, 2  ;;  %v9580_v3 = vrot.slane %v9579_v43, 4 }
 0x754   : > { %v9567_v18 = vmax.f32 %v9565_v54, %v9566_v16  ;;  %v9574_v49 = vmax.f32 %v9572_v13, %v9573_v7  ;;  %v7782_v57 = vrot.slane %v7768_v28, %v16197_v31 }
 0x755   : > { %v7783_v37 = vcombine.high %v7775_v45, %v7775_v45  ;;  %v9586_v62 = vsel %vm8381_vm7, %v7775_v45, -inf  ;;  %v7785_v6 = vcombine.high %v6953_v46, %v6953_v46  ;;  %v9562_v14 = vmax.f32 %v9560_v5, %v9561_v23 }
 0x756   : > { %v9568_v44 = vrot.slane %v9567_v18, 2  ;;  %v9575_v25 = vrot.slane %v9574_v49, 2  ;;  %v9581_v20 = vmax.f32 %v9579_v43, %v9580_v3  ;;  %v7784_v4 = vcombine.high %v7782_v57, %v7782_v57 }
 0x757   : > { %v9587_v34 = vrot.slane %v9586_v62, 4  ;;  %v9593_v60 = vsel %vm8381_vm7, %v7783_v37, -inf  ;;  %v9600_v52 = vsel %vm8381_vm7, %v7782_v57, -inf  ;;  %v9563_v51 = vrot.slane %v9562_v14, 1 }
 0x758   : > { %v9569_v21 = vmax.f32 %v9567_v18, %v9568_v44  ;;  %v9576_v24 = vmax.f32 %v9574_v49, %v9575_v25  ;;  %v9582_v15 = vrot.slane %v9581_v20, 2  ;;  %v9594_v17 = vrot.slane %v9593_v60, 4 }
 0x759   : > { %v9588_v35 = vmax.f32 %v9586_v62, %v9587_v34  ;;  %v9601_v58 = vrot.slane %v9600_v52, 4  ;;  %v9607_v29 = vsel %vm8381_vm7, %v7784_v4, -inf  ;;  %v9564_v56 = vmax.f32 %v9562_v14, %v9563_v51 }
 0x75a   : > { %v9570_v59 = vrot.slane %v9569_v21, 1  ;;  %v9577_v26 = vrot.slane %v9576_v24, 1  ;;  %v9583_v48 = vmax.f32 %v9581_v20, %v9582_v15  ;;  %v9595_v61 = vmax.f32 %v9593_v60, %v9594_v17 }
 0x75b   : > { %v9589_v40 = vrot.slane %v9588_v35, 2  ;;  %v9602_v53 = vmax.f32 %v9600_v52, %v9601_v58  ;;  %v9608_v47 = vrot.slane %v9607_v29, 4  ;;  %v12638_v5 = vpack.c.bf16 %v9564_v56, %v9564_v56 }
 0x75c   : > { %v9571_v54 = vmax.f32 %v9569_v21, %v9570_v59  ;;  %v9578_v13 = vmax.f32 %v9576_v24, %v9577_v26  ;;  %v9584_v2 = vrot.slane %v9583_v48, 1  ;;  %v9596_v7 = vrot.slane %v9595_v61, 2 }
 0x75d   : > { %v9590_v16 = vmax.f32 %v9588_v35, %v9589_v40  ;;  %v9603_v43 = vrot.slane %v9602_v53, 2  ;;  %v9609_v28 = vmax.f32 %v9607_v29, %v9608_v47  ;;  %v11366_v49 = vunpack.c.l.b16 %v12638_v5 }
 0x75e   : > { %v9585_v45 = vmax.f32 %v9583_v48, %v9584_v2  ;;  %v12639_v23 = vpack.c.bf16 %v9571_v54, %v9571_v54  ;;  %v12640_v18 = vpack.c.bf16 %v9578_v13, %v9578_v13  ;;  %v9597_v57 = vmax.f32 %v9595_v61, %v9596_v7  ;;  %v6353_v2 = vpop.permute.xlu1 %6352 }
 0x75f   : > { %v9591_v3 = vrot.slane %v9590_v16, 1  ;;  %v9604_v37 = vmax.f32 %v9602_v53, %v9603_v43  ;;  %v9610_v62 = vrot.slane %v9609_v28, 2  ;;  %v7792_v20 = vrot.slane %v6953_v46, %v16197_v31 }
 0x760   : > { %v12641_v14 = vpack.c.bf16 %v9585_v45, %v9585_v45  ;;  %v11367_v44 = vunpack.c.l.b16 %v12639_v23  ;;  %v11368_v25 = vunpack.c.l.b16 %v12640_v18  ;;  %v9598_v34 = vrot.slane %v9597_v57, 1 }
 0x761   : > { %v9592_v4 = vmax.f32 %v9590_v16, %v9591_v3  ;;  %v9605_v60 = vrot.slane %v9604_v37, 1  ;;  %v9611_v52 = vmax.f32 %v9609_v28, %v9610_v62  ;;  %v7799_v24 = vrot.slane %v7785_v6, %v16197_v31 }
 0x762   : > { %v11369_v51 = vunpack.c.l.b16 %v12641_v14  ;;  %v11608_v21 = vsel %vm11454_vm8, %v11367_v44, %v11366_v49  ;;  %v7800_v15 = vcombine.high %v7792_v20, %v7792_v20  ;;  %v9599_v17 = vmax.f32 %v9597_v57, %v9598_v34 }
 0x763   : > { %v11609_v35 = vsel %vm11456_vm9, %v11368_v25, %v11608_v21  ;;  %v9606_v58 = vmax.f32 %v9604_v37, %v9605_v60  ;;  %v9612_v29 = vrot.slane %v9611_v52, 1  ;;  %v12642_v59 = vpack.c.bf16 %v9592_v4, %v9592_v4 }
 0x764   : > { %v11610_v56 = vsel %vm11458_vm10, %v11369_v51, %v11609_v35  ;;  %v7801_v26 = vcombine.high %v7799_v24, %v7799_v24  ;;  %v9614_v46 = vsel %vm8381_vm7, %v7792_v20, -inf  ;;  %v12643_v40 = vpack.c.bf16 %v9599_v17, %v9599_v17  ;;  %v6355_v20 = vpop.permute.xlu1 %6354 }
 0x765   : > { %v9613_v48 = vmax.f32 %v9611_v52, %v9612_v29  ;;  %v12644_v61 = vpack.c.bf16 %v9606_v58, %v9606_v58  ;;  %v9615_v53 = vrot.slane %v9614_v46, 4  ;;  %v11370_v47 = vunpack.c.l.b16 %v12642_v59  ;;  %v18345_v52 = vld [vmem:[#allocation78_spill] sm:$0xff]  ;;  %v18349_v59 = vld [vmem:[#allocation67_spill] sm:$0xff] }
 0x766   : > { %v9621_v54 = vsel %vm8381_vm7, %v7800_v15, -inf  ;;  %v9628_v6 = vsel %vm8381_vm7, %v7799_v24, -inf  ;;  %v9635_v13 = vsel %vm8381_vm7, %v7801_v26, -inf  ;;  %v11371_v16 = vunpack.c.l.b16 %v12643_v40 }
 0x767   : > { %v12645_v5 = vpack.c.bf16 %v9613_v48, %v9613_v48  ;;  %v11372_v7 = vunpack.c.l.b16 %v12644_v61  ;;  %v9616_v43 = vmax.f32 %v9614_v46, %v9615_v53  ;;  %v11611_v28 = vsel %vm11460_vm11, %v11370_v47, %v11610_v56 }
 0x768   : > { %v9622_v45 = vrot.slane %v9621_v54, 4  ;;  %v9629_v23 = vrot.slane %v9628_v6, 4  ;;  %v9636_v18 = vrot.slane %v9635_v13, 4  ;;  %v11612_v3 = vsel %vm11462_vm12, %v11371_v16, %v11611_v28 }
 0x769   : > { %v11373_v49 = vunpack.c.l.b16 %v12645_v5  ;;  %v9617_v57 = vrot.slane %v9616_v43, 2  ;;  %v6819_v37 = vadd.f32 %v17360_v0, %v17349_v10  ;;  %v11613_v62 = vsel %vm11464_vm13, %v11372_v7, %v11612_v3  ;;  %v18346_v0 = vld [vmem:[#allocation79_spill] sm:$0xff] }
 0x76a   : > { %v9623_v14 = vmax.f32 %v9621_v54, %v9622_v45  ;;  %v9630_v44 = vmax.f32 %v9628_v6, %v9629_v23  ;;  %v9637_v25 = vmax.f32 %v9635_v13, %v9636_v18  ;;  %v6498_v51 = vadd.f32 %v6353_v2, %v18345_v52  ;;  %v18350_v6 = vld [vmem:[#allocation80_spill] sm:$0xff] }
 0x76b   : > { %v11614_v4 = vsel %vm11466_vm14, %v11373_v49, %v11613_v62  ;;  %v9618_v34 = vmax.f32 %v9616_v43, %v9617_v57  ;;  %v6890_v60 = vadd.f32 %v17329_v55, %v6819_v37  ;;  %v18347_v58 = vrot.slane %v18346_v0, 2 }
 0x76c   : > { %v11706_v21 = vpack.c.b16 %v11614_v4, %v11614_v4  ;;  %v9624_v24 = vrot.slane %v9623_v14, 2  ;;  %v9631_v15 = vrot.slane %v9630_v44, 2  ;;  %v9638_v35 = vrot.slane %v9637_v25, 2 }
 0x76d   : > { %v9619_v17 = vrot.slane %v9618_v34, 1  ;;  %v6954_v10 = vmax.f32 %v6890_v60, 0.0  ;;  %v18348_v29 = vrot.slane %v18342_v19, 2  ;;  %v6499_v26 = vadd.f32 %v6355_v20, %v18349_v59 }
 0x76e   : > { %11771 = vst.msk [vmem:[%s16298_s20 + $0x54] sm:$0xf] %vm11749_vm15, %v11706_v21  ;;  %v9625_v46 = vmax.f32 %v9623_v14, %v9624_v24  ;;  %v9632_v48 = vmax.f32 %v9630_v44, %v9631_v15  ;;  %v9639_v40 = vmax.f32 %v9637_v25, %v9638_v35  ;;  %v18351_v13 = vrot.slane %v18350_v6, 2 }
 0x76f   : > { %v6675_v56 = vsel %vm4723_vm1, %v18348_v29, %v18347_v58  ;;  %v9620_v53 = vmax.f32 %v9618_v34, %v9619_v17  ;;  %v7802_v47 = vcombine.high %v6954_v10, %v6954_v10  ;;  %v7809_v54 = vrot.slane %v6954_v10, %v16197_v31 }
 0x770   : > { %v6820_v61 = vadd.f32 %v6675_v56, %v6498_v51  ;;  %v18352_v2 = vmov %v18347_v58  ;;  %v9626_v5 = vrot.slane %v9625_v46, 1  ;;  %v9633_v16 = vrot.slane %v9632_v48, 1 }
 0x771   : > { %v6677_v19 = vsel %vm4723_vm1, %v18352_v2, %v18351_v13  ;;  %v9640_v7 = vrot.slane %v9639_v40, 1  ;;  %v12646_v28 = vpack.c.bf16 %v9620_v53, %v9620_v53  ;;  %v7816_v45 = vrot.slane %v7802_v47, %v16197_v31 }
 0x772   : > { %v6891_v43 = vadd.f32 %v17329_v55, %v6820_v61  ;;  %v7817_v23 = vcombine.high %v7809_v54, %v7809_v54  ;;  %v9642_v18 = vsel %vm8381_vm7, %v7809_v54, -inf  ;;  %v9627_v49 = vmax.f32 %v9625_v46, %v9626_v5 }
 0x773   : > { %v9634_v3 = vmax.f32 %v9632_v48, %v9633_v16  ;;  %v9641_v57 = vmax.f32 %v9639_v40, %v9640_v7  ;;  %v9643_v37 = vrot.slane %v9642_v18, 4  ;;  %v11374_v62 = vunpack.c.l.b16 %v12646_v28 }
 0x774   : > { %v7818_v14 = vcombine.high %v7816_v45, %v7816_v45  ;;  %v9649_v44 = vsel %vm8381_vm7, %v7817_v23, -inf  ;;  %v9656_v25 = vsel %vm8381_vm7, %v7816_v45, -inf  ;;  %v12647_v20 = vpack.c.bf16 %v9627_v49, %v9627_v49 }
 0x775   : > { %v12648_v4 = vpack.c.bf16 %v9634_v3, %v9634_v3  ;;  %v12649_v34 = vpack.c.bf16 %v9641_v57, %v9641_v57  ;;  %v9644_v60 = vmax.f32 %v9642_v18, %v9643_v37  ;;  %v9650_v52 = vrot.slane %v9649_v44, 4 }
 0x776   : > { %v9657_v51 = vrot.slane %v9656_v25, 4  ;;  %v9663_v21 = vsel %vm8381_vm7, %v7818_v14, -inf  ;;  %v6955_v24 = vmax.f32 %v6891_v43, 0.0  ;;  %v11375_v15 = vunpack.c.l.b16 %v12647_v20 }
 0x777   : > { %v11376_v35 = vunpack.c.l.b16 %v12648_v4  ;;  %v11377_v17 = vunpack.c.l.b16 %v12649_v34  ;;  %v9645_v10 = vrot.slane %v9644_v60, 2  ;;  %v9651_v0 = vmax.f32 %v9649_v44, %v9650_v52 }
 0x778   : > { %v9658_v58 = vmax.f32 %v9656_v25, %v9657_v51  ;;  %v9664_v29 = vrot.slane %v9663_v21, 4  ;;  %v7819_v56 = vcombine.high %v6955_v24, %v6955_v24  ;;  %v11615_v59 = vsel %vm11454_vm8, %v11375_v15, %v11374_v62 }
 0x779   : > { %v9646_v46 = vmax.f32 %v9644_v60, %v9645_v10  ;;  %v7826_v48 = vrot.slane %v6955_v24, %v16197_v31  ;;  %v6821_v40 = vadd.f32 %v6677_v19, %v6499_v26  ;;  %v11616_v61 = vsel %vm11456_vm9, %v11376_v35, %v11615_v59  ;;  %v6357_v59 = vpop.permute.xlu0 %6356 }
 0x77a   : > { %v9652_v53 = vrot.slane %v9651_v0, 2  ;;  %v9659_v47 = vrot.slane %v9658_v58, 2  ;;  %v9665_v54 = vmax.f32 %v9663_v21, %v9664_v29  ;;  %v11617_v13 = vsel %vm11458_vm10, %v11377_v17, %v11616_v61 }
 0x77b   : > { %v9647_v2 = vrot.slane %v9646_v46, 1  ;;  %v7833_v5 = vrot.slane %v7819_v56, %v16197_v31  ;;  %v7834_v16 = vcombine.high %v7826_v48, %v7826_v48  ;;  %v9670_v45 = vsel %vm8381_vm7, %v7826_v48, -inf }
 0x77c   : > { %v9653_v7 = vmax.f32 %v9651_v0, %v9652_v53  ;;  %v9660_v43 = vmax.f32 %v9658_v58, %v9659_v47  ;;  %v9666_v28 = vrot.slane %v9665_v54, 2  ;;  %v9671_v49 = vrot.slane %v9670_v45, 4 }
 0x77d   : > { %v9648_v23 = vmax.f32 %v9646_v46, %v9647_v2  ;;  %v7835_v18 = vcombine.high %v7833_v5, %v7833_v5  ;;  %v9677_v26 = vsel %vm8381_vm7, %v7834_v16, -inf  ;;  %v9684_v44 = vsel %vm8381_vm7, %v7833_v5, -inf }
 0x77e   : > { %v9654_v19 = vrot.slane %v9653_v7, 1  ;;  %v9661_v3 = vrot.slane %v9660_v43, 1  ;;  %v9667_v57 = vmax.f32 %v9665_v54, %v9666_v28  ;;  %v9678_v37 = vrot.slane %v9677_v26, 4  ;;  %v18353_v28 = vld [vmem:[#allocation81_spill] sm:$0xff] }
 0x77f   : > { %v12650_v62 = vpack.c.bf16 %v9648_v23, %v9648_v23  ;;  %v9672_v14 = vmax.f32 %v9670_v45, %v9671_v49  ;;  %v9691_v25 = vsel %vm8381_vm7, %v7835_v18, -inf  ;;  %v9685_v21 = vrot.slane %v9684_v44, 4 }
 0x780   : > { %v9655_v20 = vmax.f32 %v9653_v7, %v9654_v19  ;;  %v9662_v4 = vmax.f32 %v9660_v43, %v9661_v3  ;;  %v9668_v34 = vrot.slane %v9667_v57, 1  ;;  %v9679_v60 = vmax.f32 %v9677_v26, %v9678_v37 }
 0x781   : > { %v11378_v52 = vunpack.c.l.b16 %v12650_v62  ;;  %v9673_v51 = vrot.slane %v9672_v14, 2  ;;  %v9692_v24 = vrot.slane %v9691_v25, 4  ;;  %v9686_v29 = vmax.f32 %v9684_v44, %v9685_v21 }
 0x782   : > { %v9669_v15 = vmax.f32 %v9667_v57, %v9668_v34  ;;  %v12651_v35 = vpack.c.bf16 %v9655_v20, %v9655_v20  ;;  %v12652_v17 = vpack.c.bf16 %v9662_v4, %v9662_v4  ;;  %v9680_v10 = vrot.slane %v9679_v60, 2  ;;  %v18354_v57 = vld [vmem:[#allocation70_spill] sm:$0xff] }
 0x783   : > { %v11618_v0 = vsel %vm11460_vm11, %v11378_v52, %v11617_v13  ;;  %v9674_v58 = vmax.f32 %v9672_v14, %v9673_v51  ;;  %v9693_v56 = vmax.f32 %v9691_v25, %v9692_v24  ;;  %v9687_v54 = vrot.slane %v9686_v29, 2  ;;  %v6359_v14 = vpop.permute.xlu0 %6358 }
 0x784   : > { %v12653_v46 = vpack.c.bf16 %v9669_v15, %v9669_v15  ;;  %v11379_v48 = vunpack.c.l.b16 %v12651_v35  ;;  %v11380_v61 = vunpack.c.l.b16 %v12652_v17  ;;  %v9681_v53 = vmax.f32 %v9679_v60, %v9680_v10  ;;  %v18357_v35 = vld [vmem:[#allocation82_spill] sm:$0xff] }
 0x785   : > { %v9675_v47 = vrot.slane %v9674_v58, 1  ;;  %v9694_v2 = vrot.slane %v9693_v56, 2  ;;  %v6892_v5 = vadd.f32 %v17329_v55, %v6821_v40  ;;  %v6500_v45 = vadd.f32 %v6357_v59, %v18353_v28 }
 0x786   : > { %v11381_v16 = vunpack.c.l.b16 %v12653_v46  ;;  %v11619_v7 = vsel %vm11462_vm12, %v11379_v48, %v11618_v0  ;;  %v9682_v43 = vrot.slane %v9681_v53, 1  ;;  %v9688_v18 = vmax.f32 %v9686_v29, %v9687_v54 }
 0x787   : > { %v11620_v13 = vsel %vm11464_vm13, %v11380_v61, %v11619_v7  ;;  %v9676_v23 = vmax.f32 %v9674_v58, %v9675_v47  ;;  %v9695_v49 = vmax.f32 %v9693_v56, %v9694_v2  ;;  %v6956_v3 = vmax.f32 %v6892_v5, 0.0 }
 0x788   : > { %v11621_v26 = vsel %vm11466_vm14, %v11381_v16, %v11620_v13  ;;  %v9683_v19 = vmax.f32 %v9681_v53, %v9682_v43  ;;  %v18355_v37 = vrot.slane %v18354_v57, 2  ;;  %v18356_v40 = vrot.slane %v18350_v6, 2 }
 0x789   : > { %v11707_v44 = vpack.c.b16 %v11621_v26, %v11621_v26  ;;  %v9689_v25 = vrot.slane %v9688_v18, 1  ;;  %v9696_v20 = vrot.slane %v9695_v49, 1  ;;  %v12654_v4 = vpack.c.bf16 %v9676_v23, %v9676_v23 }
 0x78a   : > { %v6679_v62 = vsel %vm4723_vm1, %v18356_v40, %v18355_v37  ;;  %v12655_v34 = vpack.c.bf16 %v9683_v19, %v9683_v19  ;;  %v7836_v60 = vcombine.high %v6956_v3, %v6956_v3  ;;  %v7843_v52 = vrot.slane %v6956_v3, %v16197_v31 }
 0x78b   : > { %v6822_v51 = vadd.f32 %v6679_v62, %v6500_v45  ;;  %11772 = vst.msk [vmem:[%s16298_s20 + $0x58] sm:$0xf] %vm11749_vm15, %v11707_v44  ;;  %v9690_v21 = vmax.f32 %v9688_v18, %v9689_v25  ;;  %v9697_v24 = vmax.f32 %v9695_v49, %v9696_v20  ;;  %v11382_v15 = vunpack.c.l.b16 %v12654_v4  ;;  %v18358_v45 = vld [vmem:[#allocation84_spill] sm:$0xff] }
 0x78c   : > { %v6501_v17 = vadd.f32 %v6359_v14, %v18357_v35  ;;  %v11383_v6 = vunpack.c.l.b16 %v12655_v34  ;;  %v7850_v10 = vrot.slane %v7836_v60, %v16197_v31  ;;  %v7851_v0 = vcombine.high %v7843_v52, %v7843_v52 }
 0x78d   : > { %v9698_v58 = vsel %vm8381_vm7, %v7843_v52, -inf  ;;  %v12656_v29 = vpack.c.bf16 %v9690_v21, %v9690_v21  ;;  %v12657_v56 = vpack.c.bf16 %v9697_v24, %v9697_v24  ;;  %v6893_v46 = vadd.f32 %v17329_v55, %v6822_v51 }
 0x78e   : > { %v9699_v59 = vrot.slane %v9698_v58, 4  ;;  %v11622_v48 = vsel %vm11454_vm8, %v11383_v6, %v11382_v15  ;;  %v7852_v61 = vcombine.high %v7850_v10, %v7850_v10  ;;  %v9705_v53 = vsel %vm8381_vm7, %v7851_v0, -inf }
 0x78f   : > { %v9712_v47 = vsel %vm8381_vm7, %v7850_v10, -inf  ;;  %v11384_v54 = vunpack.c.l.b16 %v12656_v29  ;;  %v11385_v2 = vunpack.c.l.b16 %v12657_v56  ;;  %v9706_v16 = vrot.slane %v9705_v53, 4 }
 0x790   : > { %v9700_v5 = vmax.f32 %v9698_v58, %v9699_v59  ;;  %v9713_v7 = vrot.slane %v9712_v47, 4  ;;  %v9719_v43 = vsel %vm8381_vm7, %v7852_v61, -inf  ;;  %v6957_v28 = vmax.f32 %v6893_v46, 0.0 }
 0x791   : > { %v18359_v13 = vrot.slane %v18358_v45, 2  ;;  %v18360_v23 = vmov %v18355_v37  ;;  %v11623_v49 = vsel %vm11456_vm9, %v11384_v54, %v11622_v48  ;;  %v9707_v19 = vmax.f32 %v9705_v53, %v9706_v16 }
 0x792   : > { %v9701_v26 = vrot.slane %v9700_v5, 2  ;;  %v9720_v3 = vrot.slane %v9719_v43, 4  ;;  %v11624_v37 = vsel %vm11458_vm10, %v11385_v2, %v11623_v49  ;;  %v9714_v40 = vmax.f32 %v9712_v47, %v9713_v7 }
 0x793   : > { %v6681_v18 = vsel %vm4723_vm1, %v18360_v23, %v18359_v13  ;;  %v7853_v62 = vcombine.high %v6957_v28, %v6957_v28  ;;  %v7860_v14 = vrot.slane %v6957_v28, %v16197_v31  ;;  %v9708_v25 = vrot.slane %v9707_v19, 2 }
 0x794   : > { %v9702_v44 = vmax.f32 %v9700_v5, %v9701_v26  ;;  %v9721_v20 = vmax.f32 %v9719_v43, %v9720_v3  ;;  %v6823_v4 = vadd.f32 %v6681_v18, %v6501_v17  ;;  %v9715_v34 = vrot.slane %v9714_v40, 2 }
 0x795   : > { %v7867_v57 = vrot.slane %v7853_v62, %v16197_v31  ;;  %v7868_v60 = vcombine.high %v7860_v14, %v7860_v14  ;;  %v9726_v52 = vsel %vm8381_vm7, %v7860_v14, -inf  ;;  %v9709_v21 = vmax.f32 %v9707_v19, %v9708_v25 }
 0x796   : > { %v9703_v51 = vrot.slane %v9702_v44, 1  ;;  %v9722_v24 = vrot.slane %v9721_v20, 2  ;;  %v9727_v15 = vrot.slane %v9726_v52, 4  ;;  %v9716_v35 = vmax.f32 %v9714_v40, %v9715_v34 }
 0x797   : > { %v7869_v6 = vcombine.high %v7867_v57, %v7867_v57  ;;  %v9733_v10 = vsel %vm8381_vm7, %v7868_v60, -inf  ;;  %v9740_v0 = vsel %vm8381_vm7, %v7867_v57, -inf  ;;  %v9710_v29 = vrot.slane %v9709_v21, 1  ;;  %v6361_v60 = vpop.permute.xlu1 %6360 }
 0x798   : > { %v9704_v58 = vmax.f32 %v9702_v44, %v9703_v51  ;;  %v9723_v56 = vmax.f32 %v9721_v20, %v9722_v24  ;;  %v9728_v17 = vmax.f32 %v9726_v52, %v9727_v15  ;;  %v9717_v59 = vrot.slane %v9716_v35, 1 }
 0x799   : > { %v9734_v46 = vrot.slane %v9733_v10, 4  ;;  %v9741_v48 = vrot.slane %v9740_v0, 4  ;;  %v9747_v61 = vsel %vm8381_vm7, %v7869_v6, -inf  ;;  %v9711_v53 = vmax.f32 %v9709_v21, %v9710_v29  ;;  %v18361_v29 = vld [vmem:[#allocation83_spill] sm:$0xff] }
 0x79a   : > { %v9724_v47 = vrot.slane %v9723_v56, 1  ;;  %v12658_v54 = vpack.c.bf16 %v9704_v58, %v9704_v58  ;;  %v9729_v2 = vrot.slane %v9728_v17, 2  ;;  %v9718_v5 = vmax.f32 %v9716_v35, %v9717_v59 }
 0x79b   : > { %v9735_v16 = vmax.f32 %v9733_v10, %v9734_v46  ;;  %v9742_v7 = vmax.f32 %v9740_v0, %v9741_v48  ;;  %v9748_v43 = vrot.slane %v9747_v61, 4  ;;  %v12659_v13 = vpack.c.bf16 %v9711_v53, %v9711_v53 }
 0x79c   : > { %v9725_v28 = vmax.f32 %v9723_v56, %v9724_v47  ;;  %v11386_v23 = vunpack.c.l.b16 %v12658_v54  ;;  %v9730_v18 = vmax.f32 %v9728_v17, %v9729_v2  ;;  %v12660_v49 = vpack.c.bf16 %v9718_v5, %v9718_v5  ;;  %v18362_v54 = vld [vmem:[#allocation86_spill] sm:$0xff] }
 0x79d   : > { %v9736_v26 = vrot.slane %v9735_v16, 2  ;;  %v9743_v19 = vrot.slane %v9742_v7, 2  ;;  %v9749_v3 = vmax.f32 %v9747_v61, %v9748_v43  ;;  %v11387_v62 = vunpack.c.l.b16 %v12659_v13  ;;  %v6363_v61 = vpop.permute.xlu1 %6362 }
 0x79e   : > { %v12661_v40 = vpack.c.bf16 %v9725_v28, %v9725_v28  ;;  %v11625_v14 = vsel %vm11460_vm11, %v11386_v23, %v11624_v37  ;;  %v9731_v44 = vrot.slane %v9730_v18, 1  ;;  %v11388_v25 = vunpack.c.l.b16 %v12660_v49 }
 0x79f   : > { %v9737_v20 = vmax.f32 %v9735_v16, %v9736_v26  ;;  %v9744_v34 = vmax.f32 %v9742_v7, %v9743_v19  ;;  %v9750_v57 = vrot.slane %v9749_v3, 2  ;;  %v11626_v51 = vsel %vm11462_vm12, %v11387_v62, %v11625_v14 }
 0x7a0   : > { %v11389_v52 = vunpack.c.l.b16 %v12661_v40  ;;  %v9732_v21 = vmax.f32 %v9730_v18, %v9731_v44  ;;  %v6894_v24 = vadd.f32 %v17329_v55, %v6823_v4  ;;  %v11627_v15 = vsel %vm11464_vm13, %v11388_v25, %v11626_v51 }
 0x7a1   : > { %v9738_v35 = vrot.slane %v9737_v20, 1  ;;  %v9745_v6 = vrot.slane %v9744_v34, 1  ;;  %v9751_v10 = vmax.f32 %v9749_v3, %v9750_v57  ;;  %v6502_v56 = vadd.f32 %v6361_v60, %v18361_v29 }
 0x7a2   : > { %v11628_v37 = vsel %vm11466_vm14, %v11389_v52, %v11627_v15  ;;  %v12662_v0 = vpack.c.bf16 %v9732_v21, %v9732_v21  ;;  %v6958_v58 = vmax.f32 %v6894_v24, 0.0  ;;  %v18363_v2 = vrot.slane %v18362_v54, 2 }
 0x7a3   : > { %v11708_v17 = vpack.c.b16 %v11628_v37, %v11628_v37  ;;  %v9739_v59 = vmax.f32 %v9737_v20, %v9738_v35  ;;  %v9746_v46 = vmax.f32 %v9744_v34, %v9745_v6  ;;  %v9752_v48 = vrot.slane %v9751_v10, 1 }
 0x7a4   : > { %v11390_v53 = vunpack.c.l.b16 %v12662_v0  ;;  %v7870_v47 = vcombine.high %v6958_v58, %v6958_v58  ;;  %v7877_v4 = vrot.slane %v6958_v58, %v16197_v31  ;;  %v18364_v5 = vrot.slane %v18358_v45, 2 }
 0x7a5   : > { %11773 = vst.msk [vmem:[%s16298_s20 + $0x5c] sm:$0xf] %vm11749_vm15, %v11708_v17  ;;  %v9753_v7 = vmax.f32 %v9751_v10, %v9752_v48  ;;  %v12663_v43 = vpack.c.bf16 %v9739_v59, %v9739_v59  ;;  %v12664_v28 = vpack.c.bf16 %v9746_v46, %v9746_v46  ;;  %v6503_v26 = vadd.f32 %v6363_v61, %v16567_v12 }
 0x7a6   : > { %v6683_v16 = vsel %vm4723_vm1, %v18364_v5, %v18363_v2  ;;  %v7884_v23 = vrot.slane %v7870_v47, %v16197_v31  ;;  %v7885_v18 = vcombine.high %v7877_v4, %v7877_v4  ;;  %v9754_v49 = vsel %vm8381_vm7, %v7877_v4, -inf }
 0x7a7   : > { %v6824_v13 = vadd.f32 %v6683_v16, %v6502_v56  ;;  %v12665_v19 = vpack.c.bf16 %v9753_v7, %v9753_v7  ;;  %v11391_v3 = vunpack.c.l.b16 %v12663_v43  ;;  %v11392_v40 = vunpack.c.l.b16 %v12664_v28 }
 0x7a8   : > { %v9755_v62 = vrot.slane %v9754_v49, 4  ;;  %v7886_v45 = vcombine.high %v7884_v23, %v7884_v23  ;;  %v9761_v14 = vsel %vm8381_vm7, %v7885_v18, -inf  ;;  %v9768_v44 = vsel %vm8381_vm7, %v7884_v23, -inf }
 0x7a9   : > { %v6895_v25 = vadd.f32 %v17329_v55, %v6824_v13  ;;  %v11393_v20 = vunpack.c.l.b16 %v12665_v19  ;;  %v11629_v34 = vsel %vm11454_vm8, %v11391_v3, %v11390_v53  ;;  %v9762_v60 = vrot.slane %v9761_v14, 4 }
 0x7aa   : > { %v9756_v57 = vmax.f32 %v9754_v49, %v9755_v62  ;;  %v11630_v52 = vsel %vm11456_vm9, %v11392_v40, %v11629_v34  ;;  %v9769_v51 = vrot.slane %v9768_v44, 4  ;;  %v9775_v12 = vsel %vm8381_vm7, %v7886_v45, -inf }
 0x7ab   : > { %v6959_v21 = vmax.f32 %v6895_v25, 0.0  ;;  %v11631_v24 = vsel %vm11458_vm10, %v11393_v20, %v11630_v52  ;;  %v9763_v35 = vmax.f32 %v9761_v14, %v9762_v60  ;;  %v9776_v6 = vrot.slane %v9775_v12, 4 }
 0x7ac   : > { %v9757_v15 = vrot.slane %v9756_v57, 2  ;;  %v9770_v10 = vmax.f32 %v9768_v44, %v9769_v51  ;;  %v18365_v58 = vrot.slane %v16603_v38, 2  ;;  %v18366_v29 = vmov %v18363_v2 }
 0x7ad   : > { %v7887_v37 = vcombine.high %v6959_v21, %v6959_v21  ;;  %v7894_v0 = vrot.slane %v6959_v21, %v16197_v31  ;;  %v9764_v59 = vrot.slane %v9763_v35, 2  ;;  %v9777_v46 = vmax.f32 %v9775_v12, %v9776_v6 }
 0x7ae   : > { %v6685_v56 = vsel %vm4723_vm1, %v18366_v29, %v18365_v58  ;;  %v9758_v17 = vmax.f32 %v9756_v57, %v9757_v15  ;;  %v9771_v61 = vrot.slane %v9770_v10, 2 }
 0x7af   : > { %v6825_v48 = vadd.f32 %v6685_v56, %v6503_v26  ;;  %v7901_v53 = vrot.slane %v7887_v37, %v16197_v31  ;;  %v7902_v47 = vcombine.high %v7894_v0, %v7894_v0  ;;  %v9782_v4 = vsel %vm8381_vm7, %v7894_v0, -inf }
 0x7b0   : > { %v9759_v2 = vrot.slane %v9758_v17, 1  ;;  %v9765_v5 = vmax.f32 %v9763_v35, %v9764_v59  ;;  %v9778_v16 = vrot.slane %v9777_v46, 2  ;;  %v9783_v7 = vrot.slane %v9782_v4, 4 }
 0x7b1   : > { %v9772_v43 = vmax.f32 %v9770_v10, %v9771_v61  ;;  %v7903_v28 = vcombine.high %v7901_v53, %v7901_v53  ;;  %v9789_v54 = vsel %vm8381_vm7, %v7902_v47, -inf  ;;  %v9796_v13 = vsel %vm8381_vm7, %v7901_v53, -inf  ;;  %v6365_v61 = vpop.permute.xlu0 %6364 }
 0x7b2   : > { %v9760_v23 = vmax.f32 %v9758_v17, %v9759_v2  ;;  %v9766_v18 = vrot.slane %v9765_v5, 1  ;;  %v9779_v49 = vmax.f32 %v9777_v46, %v9778_v16  ;;  %v9784_v26 = vmax.f32 %v9782_v4, %v9783_v7 }
 0x7b3   : > { %v9773_v19 = vrot.slane %v9772_v43, 1  ;;  %v9790_v3 = vrot.slane %v9789_v54, 4  ;;  %v9797_v40 = vrot.slane %v9796_v13, 4  ;;  %v9803_v62 = vsel %vm8381_vm7, %v7903_v28, -inf }
 0x7b4   : > { %v9767_v45 = vmax.f32 %v9765_v5, %v9766_v18  ;;  %v9780_v14 = vrot.slane %v9779_v49, 1  ;;  %v12666_v44 = vpack.c.bf16 %v9760_v23, %v9760_v23  ;;  %v9785_v25 = vrot.slane %v9784_v26, 2 }
 0x7b5   : > { %v9774_v20 = vmax.f32 %v9772_v43, %v9773_v19  ;;  %v9791_v34 = vmax.f32 %v9789_v54, %v9790_v3  ;;  %v9798_v57 = vmax.f32 %v9796_v13, %v9797_v40  ;;  %v9804_v60 = vrot.slane %v9803_v62, 4  ;;  %v18367_v13 = vld [vmem:[#allocation85_spill] sm:$0xff]  ;;  %v6367_v3 = vpop.permute.xlu0 %6366 }
 0x7b6   : > { %v9781_v52 = vmax.f32 %v9779_v49, %v9780_v14  ;;  %v12667_v51 = vpack.c.bf16 %v9767_v45, %v9767_v45  ;;  %v11394_v12 = vunpack.c.l.b16 %v12666_v44  ;;  %v9786_v21 = vmax.f32 %v9784_v26, %v9785_v25  ;;  %v18368_v45 = vld [vmem:[#allocation88_spill] sm:$0xff] }
 0x7b7   : > { %v12668_v15 = vpack.c.bf16 %v9774_v20, %v9774_v20  ;;  %v9792_v35 = vrot.slane %v9791_v34, 2  ;;  %v9799_v6 = vrot.slane %v9798_v57, 2  ;;  %v9805_v10 = vmax.f32 %v9803_v62, %v9804_v60 }
 0x7b8   : > { %v12669_v37 = vpack.c.bf16 %v9781_v52, %v9781_v52  ;;  %v11395_v0 = vunpack.c.l.b16 %v12667_v51  ;;  %v11632_v58 = vsel %vm11460_vm11, %v11394_v12, %v11631_v24  ;;  %v9787_v29 = vrot.slane %v9786_v21, 1 }
 0x7b9   : > { %v11396_v56 = vunpack.c.l.b16 %v12668_v15  ;;  %v9793_v17 = vmax.f32 %v9791_v34, %v9792_v35  ;;  %v9800_v59 = vmax.f32 %v9798_v57, %v9799_v6  ;;  %v9806_v46 = vrot.slane %v9805_v10, 2 }
 0x7ba   : > { %v11397_v53 = vunpack.c.l.b16 %v12669_v37  ;;  %v11633_v47 = vsel %vm11462_vm12, %v11395_v0, %v11632_v58  ;;  %v9788_v4 = vmax.f32 %v9786_v21, %v9787_v29  ;;  %v6896_v2 = vadd.f32 %v17329_v55, %v6825_v48  ;;  %v18371_v21 = vld [vmem:[#allocation87_spill] sm:$0xff] }
 0x7bb   : > { %v11634_v5 = vsel %vm11464_vm13, %v11396_v56, %v11633_v47  ;;  %v9794_v16 = vrot.slane %v9793_v17, 1  ;;  %v9801_v7 = vrot.slane %v9800_v59, 1  ;;  %v9807_v43 = vmax.f32 %v9805_v10, %v9806_v46 }
 0x7bc   : > { %v11635_v24 = vsel %vm11466_vm14, %v11397_v53, %v11634_v5  ;;  %v12670_v28 = vpack.c.bf16 %v9788_v4, %v9788_v4  ;;  %v6960_v54 = vmax.f32 %v6896_v2, 0.0  ;;  %v6504_v23 = vadd.f32 %v6365_v61, %v18367_v13 }
 0x7bd   : > { %v11709_v18 = vpack.c.b16 %v11635_v24, %v11635_v24  ;;  %v9795_v49 = vmax.f32 %v9793_v17, %v9794_v16  ;;  %v9802_v26 = vmax.f32 %v9800_v59, %v9801_v7  ;;  %v9808_v19 = vrot.slane %v9807_v43, 1 }
 0x7be   : > { %v11398_v40 = vunpack.c.l.b16 %v12670_v28  ;;  %v7904_v62 = vcombine.high %v6960_v54, %v6960_v54  ;;  %v7911_v48 = vrot.slane %v6960_v54, %v16197_v31  ;;  %v18369_v14 = vrot.slane %v18368_v45, 2  ;;  %v18372_v28 = vld [vmem:[#allocation89_spill] sm:$0xff] }
 0x7bf   : > { %v18370_v44 = vrot.slane %v16603_v38, 2  ;;  %11774 = vst.msk [vmem:[%s16298_s20 + $0x60] sm:$0xf] %vm11749_vm15, %v11709_v18  ;;  %v9809_v20 = vmax.f32 %v9807_v43, %v9808_v19  ;;  %v12671_v34 = vpack.c.bf16 %v9795_v49, %v9795_v49  ;;  %v12672_v57 = vpack.c.bf16 %v9802_v26, %v9802_v26 }
 0x7c0   : > { %v7918_v52 = vrot.slane %v7904_v62, %v16197_v31  ;;  %v7919_v51 = vcombine.high %v7911_v48, %v7911_v48  ;;  %v9810_v12 = vsel %vm8381_vm7, %v7911_v48, -inf  ;;  %v6505_v15 = vadd.f32 %v6367_v3, %v18371_v21 }
 0x7c1   : > { %v6687_v25 = vsel %vm4723_vm1, %v18370_v44, %v18369_v14  ;;  %v12673_v35 = vpack.c.bf16 %v9809_v20, %v9809_v20  ;;  %v11399_v6 = vunpack.c.l.b16 %v12671_v34  ;;  %v11400_v10 = vunpack.c.l.b16 %v12672_v57 }
 0x7c2   : > { %v6826_v60 = vadd.f32 %v6687_v25, %v6504_v23  ;;  %v9811_v37 = vrot.slane %v9810_v12, 4  ;;  %v7920_v38 = vcombine.high %v7918_v52, %v7918_v52  ;;  %v9817_v0 = vsel %vm8381_vm7, %v7919_v51, -inf }
 0x7c3   : > { %v9824_v58 = vsel %vm8381_vm7, %v7918_v52, -inf  ;;  %v11401_v56 = vunpack.c.l.b16 %v12673_v35  ;;  %v11636_v17 = vsel %vm11454_vm8, %v11399_v6, %v11398_v40  ;;  %v9818_v46 = vrot.slane %v9817_v0, 4 }
 0x7c4   : > { %v6897_v29 = vadd.f32 %v17329_v55, %v6826_v60  ;;  %v9812_v59 = vmax.f32 %v9810_v12, %v9811_v37  ;;  %v11637_v61 = vsel %vm11456_vm9, %v11400_v10, %v11636_v17  ;;  %v9825_v53 = vrot.slane %v9824_v58, 4 }
 0x7c5   : > { %v9831_v47 = vsel %vm8381_vm7, %v7920_v38, -inf  ;;  %v11638_v2 = vsel %vm11458_vm10, %v11401_v56, %v11637_v61  ;;  %v9819_v16 = vmax.f32 %v9817_v0, %v9818_v46  ;;  %v18373_v54 = vrot.slane %v18372_v28, 2 }
 0x7c6   : > { %v6961_v4 = vmax.f32 %v6897_v29, 0.0  ;;  %v9813_v5 = vrot.slane %v9812_v59, 2  ;;  %v9832_v7 = vrot.slane %v9831_v47, 4  ;;  %v9826_v43 = vmax.f32 %v9824_v58, %v9825_v53 }
 0x7c7   : > { %v18374_v13 = vmov %v18369_v14  ;;  %v9820_v49 = vrot.slane %v9819_v16, 2 }
 0x7c8   : > { %v7921_v24 = vcombine.high %v6961_v4, %v6961_v4  ;;  %v7928_v55 = vrot.slane %v6961_v4, %v16197_v31  ;;  %v6689_v23 = vsel %vm4723_vm1, %v18374_v13, %v18373_v54  ;;  %v9814_v18 = vmax.f32 %v9812_v59, %v9813_v5 }
 0x7c9   : > { %v9833_v26 = vmax.f32 %v9831_v47, %v9832_v7  ;;  %v6827_v19 = vadd.f32 %v6689_v23, %v6505_v15  ;;  %v9827_v3 = vrot.slane %v9826_v43, 2  ;;  %v9821_v44 = vmax.f32 %v9819_v16, %v9820_v49 }
 0x7ca   : > { %v7935_v40 = vrot.slane %v7921_v24, %v16197_v31  ;;  %v7936_v62 = vcombine.high %v7928_v55, %v7928_v55  ;;  %v9838_v48 = vsel %vm8381_vm7, %v7928_v55, -inf  ;;  %v9815_v14 = vrot.slane %v9814_v18, 1 }
 0x7cb   : > { %v9834_v25 = vrot.slane %v9833_v26, 2  ;;  %v9839_v20 = vrot.slane %v9838_v48, 4  ;;  %v9828_v34 = vmax.f32 %v9826_v43, %v9827_v3  ;;  %v9822_v51 = vrot.slane %v9821_v44, 1 }
 0x7cc   : > { %v7937_v57 = vcombine.high %v7935_v40, %v7935_v40  ;;  %v9845_v45 = vsel %vm8381_vm7, %v7936_v62, -inf  ;;  %v9852_v60 = vsel %vm8381_vm7, %v7935_v40, -inf  ;;  %v9816_v52 = vmax.f32 %v9814_v18, %v9815_v14 }
 0x7cd   : > { %v9835_v12 = vmax.f32 %v9833_v26, %v9834_v25  ;;  %v9840_v21 = vmax.f32 %v9838_v48, %v9839_v20  ;;  %v9829_v15 = vrot.slane %v9828_v34, 1  ;;  %v9846_v35 = vrot.slane %v9845_v45, 4  ;;  %v6369_v26 = vpop.permute.xlu1 %6368  ;;  %v17530_v48 = vld [vmem:[%s17736_s4] ss:$0 sm:$0xff] }
 0x7ce   : > { %v9853_v6 = vrot.slane %v9852_v60, 4  ;;  %v9859_v10 = vsel %vm8381_vm7, %v7937_v57, -inf  ;;  %v9823_v37 = vmax.f32 %v9821_v44, %v9822_v51  ;;  %v12674_v0 = vpack.c.bf16 %v9816_v52, %v9816_v52 }
 0x7cf   : > { %v9836_v38 = vrot.slane %v9835_v12, 1  ;;  %v9841_v58 = vrot.slane %v9840_v21, 2  ;;  %v9830_v29 = vmax.f32 %v9828_v34, %v9829_v15  ;;  %v9847_v56 = vmax.f32 %v9845_v45, %v9846_v35 }
 0x7d0   : > { %v9854_v17 = vmax.f32 %v9852_v60, %v9853_v6  ;;  %v9860_v59 = vrot.slane %v9859_v10, 4  ;;  %v12675_v61 = vpack.c.bf16 %v9823_v37, %v9823_v37  ;;  %v11402_v53 = vunpack.c.l.b16 %v12674_v0  ;;  %v18375_v60 = vld [vmem:[#allocation90_spill] sm:$0xff]  ;;  %v18376_v37 = vld [vmem:[#allocation92_spill] sm:$0xff] }
 0x7d1   : > { %v9837_v46 = vmax.f32 %v9835_v12, %v9836_v38  ;;  %v9842_v47 = vmax.f32 %v9840_v21, %v9841_v58  ;;  %v12676_v4 = vpack.c.bf16 %v9830_v29, %v9830_v29  ;;  %v9848_v5 = vrot.slane %v9847_v56, 2  ;;  %v6371_v35 = vpop.permute.xlu1 %6370 }
 0x7d2   : > { %v9855_v16 = vrot.slane %v9854_v17, 2  ;;  %v9861_v7 = vmax.f32 %v9859_v10, %v9860_v59  ;;  %v11403_v24 = vunpack.c.l.b16 %v12675_v61  ;;  %v11639_v55 = vsel %vm11460_vm11, %v11402_v53, %v11638_v2 }
 0x7d3   : > { %v12677_v43 = vpack.c.bf16 %v9837_v46, %v9837_v46  ;;  %v9843_v54 = vrot.slane %v9842_v47, 1  ;;  %v11404_v13 = vunpack.c.l.b16 %v12676_v4  ;;  %v9849_v23 = vmax.f32 %v9847_v56, %v9848_v5 }
 0x7d4   : > { %v9856_v18 = vmax.f32 %v9854_v17, %v9855_v16  ;;  %v9862_v49 = vrot.slane %v9861_v7, 2  ;;  %v11640_v40 = vsel %vm11462_vm12, %v11403_v24, %v11639_v55  ;;  %v6898_v14 = vadd.f32 %v17530_v48, %v6827_v19 }
 0x7d5   : > { %v11405_v3 = vunpack.c.l.b16 %v12677_v43  ;;  %v9844_v62 = vmax.f32 %v9842_v47, %v9843_v54  ;;  %v11641_v44 = vsel %vm11464_vm13, %v11404_v13, %v11640_v40  ;;  %v9850_v2 = vrot.slane %v9849_v23, 1  ;;  %v18379_v47 = vld [vmem:[#allocation91_spill] sm:$0xff] }
 0x7d6   : > { %v9857_v25 = vrot.slane %v9856_v18, 1  ;;  %v9863_v20 = vmax.f32 %v9861_v7, %v9862_v49  ;;  %v6962_v45 = vmax.f32 %v6898_v14, 0.0  ;;  %v6506_v52 = vadd.f32 %v6369_v26, %v18375_v60 }
 0x7d7   : > { %v11642_v34 = vsel %vm11466_vm14, %v11405_v3, %v11641_v44  ;;  %v12678_v57 = vpack.c.bf16 %v9844_v62, %v9844_v62  ;;  %v9851_v12 = vmax.f32 %v9849_v23, %v9850_v2  ;;  %v18377_v38 = vrot.slane %v18376_v37, 2 }
 0x7d8   : > { %v11710_v51 = vpack.c.b16 %v11642_v34, %v11642_v34  ;;  %v9858_v21 = vmax.f32 %v9856_v18, %v9857_v25  ;;  %v9864_v15 = vrot.slane %v9863_v20, 1  ;;  %v7938_v10 = vcombine.high %v6962_v45, %v6962_v45 }
 0x7d9   : > { %v11406_v6 = vunpack.c.l.b16 %v12678_v57  ;;  %v7945_v19 = vrot.slane %v6962_v45, %v16197_v31  ;;  %v18378_v0 = vrot.slane %v18372_v28, 2  ;;  %v12679_v56 = vpack.c.bf16 %v9851_v12, %v9851_v12  ;;  %v18380_v45 = vld [vmem:[#allocation93_spill] sm:$0xff] }
 0x7da   : > { %11775 = vst.msk [vmem:[%s16298_s20 + $0x64] sm:$0xf] %vm11749_vm15, %v11710_v51  ;;  %v9865_v29 = vmax.f32 %v9863_v20, %v9864_v15  ;;  %v12680_v17 = vpack.c.bf16 %v9858_v21, %v9858_v21  ;;  %v7952_v46 = vrot.slane %v7938_v10, %v16197_v31  ;;  %v6507_v4 = vadd.f32 %v6371_v35, %v18379_v47 }
 0x7db   : > { %v6691_v58 = vsel %vm4723_vm1, %v18378_v0, %v18377_v38  ;;  %v7953_v61 = vcombine.high %v7945_v19, %v7945_v19  ;;  %v9866_v53 = vsel %vm8381_vm7, %v7945_v19, -inf  ;;  %v11407_v16 = vunpack.c.l.b16 %v12679_v56 }
 0x7dc   : > { %v6828_v59 = vadd.f32 %v6691_v58, %v6506_v52  ;;  %v12681_v5 = vpack.c.bf16 %v9865_v29, %v9865_v29  ;;  %v11408_v7 = vunpack.c.l.b16 %v12680_v17  ;;  %v9867_v43 = vrot.slane %v9866_v53, 4 }
 0x7dd   : > { %v7954_v28 = vcombine.high %v7952_v46, %v7952_v46  ;;  %v9873_v24 = vsel %vm8381_vm7, %v7953_v61, -inf  ;;  %v9880_v55 = vsel %vm8381_vm7, %v7952_v46, -inf  ;;  %v11643_v23 = vsel %vm11454_vm8, %v11407_v16, %v11406_v6 }
 0x7de   : > { %v6899_v54 = vadd.f32 %v17530_v48, %v6828_v59  ;;  %v11409_v13 = vunpack.c.l.b16 %v12681_v5  ;;  %v9868_v18 = vmax.f32 %v9866_v53, %v9867_v43  ;;  %v9874_v49 = vrot.slane %v9873_v24, 4 }
 0x7df   : > { %v11644_v26 = vsel %vm11456_vm9, %v11408_v7, %v11643_v23  ;;  %v9881_v3 = vrot.slane %v9880_v55, 4  ;;  %v9887_v40 = vsel %vm8381_vm7, %v7954_v28, -inf  ;;  %v18381_v60 = vrot.slane %v18380_v45, 2 }
 0x7e0   : > { %v6963_v62 = vmax.f32 %v6899_v54, 0.0  ;;  %v11645_v14 = vsel %vm11458_vm10, %v11409_v13, %v11644_v26  ;;  %v9869_v44 = vrot.slane %v9868_v18, 2  ;;  %v9875_v2 = vmax.f32 %v9873_v24, %v9874_v49 }
 0x7e1   : > { %v9888_v25 = vrot.slane %v9887_v40, 4  ;;  %v9882_v20 = vmax.f32 %v9880_v55, %v9881_v3  ;;  %v18382_v52 = vmov %v18377_v38 }
 0x7e2   : > { %v7955_v34 = vcombine.high %v6963_v62, %v6963_v62  ;;  %v7962_v57 = vrot.slane %v6963_v62, %v16197_v31  ;;  %v6693_v51 = vsel %vm4723_vm1, %v18382_v52, %v18381_v60  ;;  %v9870_v12 = vmax.f32 %v9868_v18, %v9869_v44 }
 0x7e3   : > { %v9876_v21 = vrot.slane %v9875_v2, 2  ;;  %v9889_v15 = vmax.f32 %v9887_v40, %v9888_v25  ;;  %v6829_v35 = vadd.f32 %v6693_v51, %v6507_v4  ;;  %v9883_v6 = vrot.slane %v9882_v20, 2 }
 0x7e4   : > { %v7969_v10 = vrot.slane %v7955_v34, %v16197_v31  ;;  %v7970_v19 = vcombine.high %v7962_v57, %v7962_v57  ;;  %v9894_v38 = vsel %vm8381_vm7, %v7962_v57, -inf  ;;  %v9871_v0 = vrot.slane %v9870_v12, 1 }
 0x7e5   : > { %v9877_v58 = vmax.f32 %v9875_v2, %v9876_v21  ;;  %v9890_v29 = vrot.slane %v9889_v15, 2  ;;  %v9895_v56 = vrot.slane %v9894_v38, 4  ;;  %v9884_v17 = vmax.f32 %v9882_v20, %v9883_v6  ;;  %v6373_v6 = vpop.permute.xlu0 %6372 }
 0x7e6   : > { %v7971_v59 = vcombine.high %v7969_v10, %v7969_v10  ;;  %v9901_v37 = vsel %vm8381_vm7, %v7970_v19, -inf  ;;  %v9908_v46 = vsel %vm8381_vm7, %v7969_v10, -inf  ;;  %v9872_v61 = vmax.f32 %v9870_v12, %v9871_v0 }
 0x7e7   : > { %v9878_v53 = vrot.slane %v9877_v58, 1  ;;  %v9891_v47 = vmax.f32 %v9889_v15, %v9890_v29  ;;  %v9896_v4 = vmax.f32 %v9894_v38, %v9895_v56  ;;  %v9885_v5 = vrot.slane %v9884_v17, 1 }
 0x7e8   : > { %v9902_v16 = vrot.slane %v9901_v37, 4  ;;  %v9909_v7 = vrot.slane %v9908_v46, 4  ;;  %v9915_v43 = vsel %vm8381_vm7, %v7971_v59, -inf  ;;  %v12682_v55 = vpack.c.bf16 %v9872_v61, %v9872_v61 }
 0x7e9   : > { %v9879_v28 = vmax.f32 %v9877_v58, %v9878_v53  ;;  %v9892_v24 = vrot.slane %v9891_v47, 1  ;;  %v9897_v54 = vrot.slane %v9896_v4, 2  ;;  %v9886_v13 = vmax.f32 %v9884_v17, %v9885_v5  ;;  %v6375_v5 = vpop.permute.xlu0 %6374 }
 0x7ea   : > { %v9903_v23 = vmax.f32 %v9901_v37, %v9902_v16  ;;  %v9910_v18 = vmax.f32 %v9908_v46, %v9909_v7  ;;  %v9916_v49 = vrot.slane %v9915_v43, 4  ;;  %v11410_v40 = vunpack.c.l.b16 %v12682_v55 }
 0x7eb   : > { %v9893_v26 = vmax.f32 %v9891_v47, %v9892_v24  ;;  %v12683_v3 = vpack.c.bf16 %v9879_v28, %v9879_v28  ;;  %v9898_v62 = vmax.f32 %v9896_v4, %v9897_v54  ;;  %v12684_v44 = vpack.c.bf16 %v9886_v13, %v9886_v13 }
 0x7ec   : > { %v9904_v2 = vrot.slane %v9903_v23, 2  ;;  %v9911_v25 = vrot.slane %v9910_v18, 2  ;;  %v9917_v20 = vmax.f32 %v9915_v43, %v9916_v49  ;;  %v11646_v60 = vsel %vm11460_vm11, %v11410_v40, %v11645_v14  ;;  %v18383_v43 = vld [vmem:[#allocation94_spill] sm:$0xff] }
 0x7ed   : > { %v12685_v34 = vpack.c.bf16 %v9893_v26, %v9893_v26  ;;  %v11411_v57 = vunpack.c.l.b16 %v12683_v3  ;;  %v9899_v52 = vrot.slane %v9898_v62, 1  ;;  %v11412_v51 = vunpack.c.l.b16 %v12684_v44 }
 0x7ee   : > { %v9905_v12 = vmax.f32 %v9903_v23, %v9904_v2  ;;  %v9912_v21 = vmax.f32 %v9910_v18, %v9911_v25  ;;  %v9918_v15 = vrot.slane %v9917_v20, 2  ;;  %v6900_v0 = vadd.f32 %v17530_v48, %v6829_v35 }
 0x7ef   : > { %v11413_v10 = vunpack.c.l.b16 %v12685_v34  ;;  %v11647_v19 = vsel %vm11462_vm12, %v11411_v57, %v11646_v60  ;;  %v9900_v38 = vmax.f32 %v9898_v62, %v9899_v52  ;;  %v6508_v46 = vadd.f32 %v6373_v6, %v16705_v32 }
 0x7f0   : > { %v11648_v58 = vsel %vm11464_vm13, %v11412_v51, %v11647_v19  ;;  %v9906_v29 = vrot.slane %v9905_v12, 1  ;;  %v9913_v56 = vrot.slane %v9912_v21, 1  ;;  %v9919_v17 = vmax.f32 %v9917_v20, %v9918_v15 }
 0x7f1   : > { %v11649_v14 = vsel %vm11466_vm14, %v11413_v10, %v11648_v58  ;;  %v12686_v59 = vpack.c.bf16 %v9900_v38, %v9900_v38  ;;  %v6964_v37 = vmax.f32 %v6900_v0, 0.0  ;;  %v18384_v28 = vrot.slane %v18383_v43, 2 }
 0x7f2   : > { %v11711_v61 = vpack.c.b16 %v11649_v14, %v11649_v14  ;;  %v9907_v53 = vmax.f32 %v9905_v12, %v9906_v29  ;;  %v9914_v47 = vmax.f32 %v9912_v21, %v9913_v56  ;;  %v9920_v4 = vrot.slane %v9919_v17, 1 }
 0x7f3   : > { %v11414_v16 = vunpack.c.l.b16 %v12686_v59  ;;  %v7972_v7 = vcombine.high %v6964_v37, %v6964_v37  ;;  %v7979_v35 = vrot.slane %v6964_v37, %v16197_v31  ;;  %v18385_v24 = vrot.slane %v18380_v45, 2 }
 0x7f4   : > { %11776 = vst.msk [vmem:[%s16298_s20 + $0x68] sm:$0xf] %vm11749_vm15, %v11711_v61  ;;  %v9921_v54 = vmax.f32 %v9919_v17, %v9920_v4  ;;  %v12687_v13 = vpack.c.bf16 %v9907_v53, %v9907_v53  ;;  %v12688_v32 = vpack.c.bf16 %v9914_v47, %v9914_v47  ;;  %v6509_v3 = vadd.f32 %v6375_v5, %v16716_v1 }
 0x7f5   : > { %v6695_v55 = vsel %vm4723_vm1, %v18385_v24, %v18384_v28  ;;  %v7986_v18 = vrot.slane %v7972_v7, %v16197_v31  ;;  %v7987_v49 = vcombine.high %v7979_v35, %v7979_v35  ;;  %v9922_v26 = vsel %vm8381_vm7, %v7979_v35, -inf }
 0x7f6   : > { %v6830_v23 = vadd.f32 %v6695_v55, %v6508_v46  ;;  %v12689_v40 = vpack.c.bf16 %v9921_v54, %v9921_v54  ;;  %v11415_v62 = vunpack.c.l.b16 %v12687_v13  ;;  %v11416_v44 = vunpack.c.l.b16 %v12688_v32 }
 0x7f7   : > { %v9923_v2 = vrot.slane %v9922_v26, 4  ;;  %v7988_v45 = vcombine.high %v7986_v18, %v7986_v18  ;;  %v9929_v25 = vsel %vm8381_vm7, %v7987_v49, -inf  ;;  %v9936_v20 = vsel %vm8381_vm7, %v7986_v18, -inf }
 0x7f8   : > { %v6901_v34 = vadd.f32 %v17530_v48, %v6830_v23  ;;  %v11417_v57 = vunpack.c.l.b16 %v12689_v40  ;;  %v11650_v60 = vsel %vm11454_vm8, %v11415_v62, %v11414_v16  ;;  %v9930_v51 = vrot.slane %v9929_v25, 4 }
 0x7f9   : > { %v9924_v52 = vmax.f32 %v9922_v26, %v9923_v2  ;;  %v11651_v12 = vsel %vm11456_vm9, %v11416_v44, %v11650_v60  ;;  %v9937_v21 = vrot.slane %v9936_v20, 4  ;;  %v9943_v1 = vsel %vm8381_vm7, %v7988_v45, -inf }
 0x7fa   : > { %v6965_v15 = vmax.f32 %v6901_v34, 0.0  ;;  %v11652_v6 = vsel %vm11458_vm10, %v11417_v57, %v11651_v12  ;;  %v9931_v19 = vmax.f32 %v9929_v25, %v9930_v51  ;;  %v9944_v38 = vrot.slane %v9943_v1, 4 }
 0x7fb   : > { %v9925_v10 = vrot.slane %v9924_v52, 2  ;;  %v9938_v0 = vmax.f32 %v9936_v20, %v9937_v21  ;;  %v18386_v56 = vrot.slane %v16793_v41, 2  ;;  %v18387_v17 = vmov %v18384_v28 }
 0x7fc   : > { %v7989_v58 = vcombine.high %v6965_v15, %v6965_v15  ;;  %v7996_v29 = vrot.slane %v6965_v15, %v16197_v31  ;;  %v9932_v37 = vrot.slane %v9931_v19, 2  ;;  %v9945_v46 = vmax.f32 %v9943_v1, %v9944_v38 }
 0x7fd   : > { %v6697_v14 = vsel %vm4723_vm1, %v18387_v17, %v18386_v56  ;;  %v9926_v59 = vmax.f32 %v9924_v52, %v9925_v10  ;;  %v9939_v53 = vrot.slane %v9938_v0, 2 }
 0x7fe   : > { %v6831_v61 = vadd.f32 %v6697_v14, %v6509_v3  ;;  %v8003_v47 = vrot.slane %v7989_v58, %v16197_v31  ;;  %v8004_v4 = vcombine.high %v7996_v29, %v7996_v29  ;;  %v9950_v5 = vsel %vm8381_vm7, %v7996_v29, -inf }
 0x7ff   : > { %v9927_v16 = vrot.slane %v9926_v59, 1  ;;  %v9933_v7 = vmax.f32 %v9931_v19, %v9932_v37  ;;  %v9946_v35 = vrot.slane %v9945_v46, 2  ;;  %v9951_v28 = vrot.slane %v9950_v5, 4 }
 0x800   : > { %v9940_v24 = vmax.f32 %v9938_v0, %v9939_v53  ;;  %v8005_v55 = vcombine.high %v8003_v47, %v8003_v47  ;;  %v9957_v43 = vsel %vm8381_vm7, %v8004_v4, -inf  ;;  %v9964_v54 = vsel %vm8381_vm7, %v8003_v47, -inf }
 0x801   : > { %v9928_v13 = vmax.f32 %v9926_v59, %v9927_v16  ;;  %v9934_v32 = vrot.slane %v9933_v7, 1  ;;  %v9947_v23 = vmax.f32 %v9945_v46, %v9946_v35  ;;  %v9952_v18 = vmax.f32 %v9950_v5, %v9951_v28  ;;  %v6377_v59 = vpop.permute.xlu1 %6376 }
 0x802   : > { %v9941_v49 = vrot.slane %v9940_v24, 1  ;;  %v9958_v26 = vrot.slane %v9957_v43, 4  ;;  %v9965_v3 = vrot.slane %v9964_v54, 4  ;;  %v9971_v40 = vsel %vm8381_vm7, %v8005_v55, -inf }
 0x803   : > { %v9935_v62 = vmax.f32 %v9933_v7, %v9934_v32  ;;  %v9948_v44 = vrot.slane %v9947_v23, 1  ;;  %v12690_v2 = vpack.c.bf16 %v9928_v13, %v9928_v13  ;;  %v9953_v45 = vrot.slane %v9952_v18, 2 }
 0x804   : > { %v9942_v25 = vmax.f32 %v9940_v24, %v9941_v49  ;;  %v9959_v20 = vmax.f32 %v9957_v43, %v9958_v26  ;;  %v9966_v34 = vmax.f32 %v9964_v54, %v9965_v3  ;;  %v9972_v57 = vrot.slane %v9971_v40, 4 }
 0x805   : > { %v9949_v60 = vmax.f32 %v9947_v23, %v9948_v44  ;;  %v12691_v52 = vpack.c.bf16 %v9935_v62, %v9935_v62  ;;  %v11418_v51 = vunpack.c.l.b16 %v12690_v2  ;;  %v9954_v12 = vmax.f32 %v9952_v18, %v9953_v45  ;;  %v6379_v32 = vpop.permute.xlu1 %6378 }
 0x806   : > { %v12692_v21 = vpack.c.bf16 %v9942_v25, %v9942_v25  ;;  %v9960_v1 = vrot.slane %v9959_v20, 2  ;;  %v9967_v15 = vrot.slane %v9966_v34, 2  ;;  %v9973_v10 = vmax.f32 %v9971_v40, %v9972_v57 }
 0x807   : > { %v12693_v19 = vpack.c.bf16 %v9949_v60, %v9949_v60  ;;  %v11419_v38 = vunpack.c.l.b16 %v12691_v52  ;;  %v11653_v0 = vsel %vm11460_vm11, %v11418_v51, %v11652_v6  ;;  %v9955_v58 = vrot.slane %v9954_v12, 1 }
 0x808   : > { %v11420_v29 = vunpack.c.l.b16 %v12692_v21  ;;  %v9961_v56 = vmax.f32 %v9959_v20, %v9960_v1  ;;  %v9968_v17 = vmax.f32 %v9966_v34, %v9967_v15  ;;  %v9974_v14 = vrot.slane %v9973_v10, 2 }
 0x809   : > { %v11421_v37 = vunpack.c.l.b16 %v12693_v19  ;;  %v11654_v46 = vsel %vm11462_vm12, %v11419_v38, %v11653_v0  ;;  %v9956_v53 = vmax.f32 %v9954_v12, %v9955_v58  ;;  %v6902_v47 = vadd.f32 %v17530_v48, %v6831_v61 }
 0x80a   : > { %v11655_v4 = vsel %vm11464_vm13, %v11420_v29, %v11654_v46  ;;  %v9962_v5 = vrot.slane %v9961_v56, 1  ;;  %v9969_v16 = vrot.slane %v9968_v17, 1  ;;  %v9975_v7 = vmax.f32 %v9973_v10, %v9974_v14 }
 0x80b   : > { %v11656_v6 = vsel %vm11466_vm14, %v11421_v37, %v11655_v4  ;;  %v12694_v35 = vpack.c.bf16 %v9956_v53, %v9956_v53  ;;  %v6966_v28 = vmax.f32 %v6902_v47, 0.0  ;;  %v6510_v24 = vadd.f32 %v6377_v59, %v16787_v36 }
 0x80c   : > { %v11712_v55 = vpack.c.b16 %v11656_v6, %v11656_v6  ;;  %v9963_v43 = vmax.f32 %v9961_v56, %v9962_v5  ;;  %v9970_v54 = vmax.f32 %v9968_v17, %v9969_v16  ;;  %v9976_v13 = vrot.slane %v9975_v7, 1 }
 0x80d   : > { %v11422_v23 = vunpack.c.l.b16 %v12694_v35  ;;  %v8006_v18 = vcombine.high %v6966_v28, %v6966_v28  ;;  %v8013_v61 = vrot.slane %v6966_v28, %v16197_v31  ;;  %v18388_v49 = vrot.slane %v16799_v33, 2 }
 0x80e   : > { %v18389_v26 = vrot.slane %v16793_v41, 2  ;;  %11777 = vst.msk [vmem:[%s16298_s20 + $0x6c] sm:$0xf] %vm11749_vm15, %v11712_v55  ;;  %v9977_v40 = vmax.f32 %v9975_v7, %v9976_v13  ;;  %v12695_v62 = vpack.c.bf16 %v9963_v43, %v9963_v43  ;;  %v12696_v36 = vpack.c.bf16 %v9970_v54, %v9970_v54 }
 0x80f   : > { %v8020_v2 = vrot.slane %v8006_v18, %v16197_v31  ;;  %v8021_v45 = vcombine.high %v8013_v61, %v8013_v61  ;;  %v9978_v25 = vsel %vm8381_vm7, %v8013_v61, -inf  ;;  %v6511_v20 = vadd.f32 %v6379_v32, %v16795_v50 }
 0x810   : > { %v6699_v3 = vsel %vm4723_vm1, %v18389_v26, %v18388_v49  ;;  %v12697_v34 = vpack.c.bf16 %v9977_v40, %v9977_v40  ;;  %v11423_v57 = vunpack.c.l.b16 %v12695_v62  ;;  %v11424_v60 = vunpack.c.l.b16 %v12696_v36 }
 0x811   : > { %v6832_v44 = vadd.f32 %v6699_v3, %v6510_v24  ;;  %v9979_v52 = vrot.slane %v9978_v25, 4  ;;  %v8022_v41 = vcombine.high %v8020_v2, %v8020_v2  ;;  %v9985_v51 = vsel %vm8381_vm7, %v8021_v45, -inf }
 0x812   : > { %v9992_v12 = vsel %vm8381_vm7, %v8020_v2, -inf  ;;  %v11425_v1 = vunpack.c.l.b16 %v12697_v34  ;;  %v11657_v15 = vsel %vm11454_vm8, %v11423_v57, %v11422_v23  ;;  %v9986_v19 = vrot.slane %v9985_v51, 4 }
 0x813   : > { %v6903_v21 = vadd.f32 %v17530_v48, %v6832_v44  ;;  %v9980_v10 = vmax.f32 %v9978_v25, %v9979_v52  ;;  %v11658_v38 = vsel %vm11456_vm9, %v11424_v60, %v11657_v15  ;;  %v9993_v0 = vrot.slane %v9992_v12, 4 }
 0x814   : > { %v9999_v50 = vsel %vm8381_vm7, %v8022_v41, -inf  ;;  %v11659_v29 = vsel %vm11458_vm10, %v11425_v1, %v11658_v38  ;;  %v9987_v17 = vmax.f32 %v9985_v51, %v9986_v19  ;;  %v18390_v53 = vrot.slane %v16837_v11, 2 }
 0x815   : > { %v6967_v58 = vmax.f32 %v6903_v21, 0.0  ;;  %v9981_v56 = vrot.slane %v9980_v10, 2  ;;  %v10000_v14 = vrot.slane %v9999_v50, 4  ;;  %v9994_v59 = vmax.f32 %v9992_v12, %v9993_v0 }
 0x816   : > { %v18391_v47 = vmov %v18388_v49  ;;  %v9988_v16 = vrot.slane %v9987_v17, 2 }
 0x817   : > { %v8023_v37 = vcombine.high %v6967_v58, %v6967_v58  ;;  %v8030_v46 = vrot.slane %v6967_v58, %v16197_v31  ;;  %v6701_v4 = vsel %vm4723_vm1, %v18391_v47, %v18390_v53  ;;  %v9982_v5 = vmax.f32 %v9980_v10, %v9981_v56 }
 0x818   : > { %v10001_v7 = vmax.f32 %v9999_v50, %v10000_v14  ;;  %v6833_v6 = vadd.f32 %v6701_v4, %v6511_v20  ;;  %v9995_v35 = vrot.slane %v9994_v59, 2  ;;  %v9989_v54 = vmax.f32 %v9987_v17, %v9988_v16 }
 0x819   : > { %v8037_v28 = vrot.slane %v8023_v37, %v16197_v31  ;;  %v8038_v24 = vcombine.high %v8030_v46, %v8030_v46  ;;  %v10006_v55 = vsel %vm8381_vm7, %v8030_v46, -inf  ;;  %v9983_v43 = vrot.slane %v9982_v5, 1  ;;  %v6381_v46 = vpop.permute.xlu0 %6380 }
 0x81a   : > { %v10002_v13 = vrot.slane %v10001_v7, 2  ;;  %v10007_v32 = vrot.slane %v10006_v55, 4  ;;  %v9996_v23 = vmax.f32 %v9994_v59, %v9995_v35  ;;  %v9990_v26 = vrot.slane %v9989_v54, 1 }
 0x81b   : > { %v8039_v18 = vcombine.high %v8037_v28, %v8037_v28  ;;  %v10013_v33 = vsel %vm8381_vm7, %v8038_v24, -inf  ;;  %v10020_v61 = vsel %vm8381_vm7, %v8037_v28, -inf  ;;  %v9984_v49 = vmax.f32 %v9982_v5, %v9983_v43 }
 0x81c   : > { %v10003_v3 = vmax.f32 %v10001_v7, %v10002_v13  ;;  %v10008_v40 = vmax.f32 %v10006_v55, %v10007_v32  ;;  %v9997_v62 = vrot.slane %v9996_v23, 1  ;;  %v10014_v36 = vrot.slane %v10013_v33, 4 }
 0x81d   : > { %v10021_v44 = vrot.slane %v10020_v61, 4  ;;  %v10027_v2 = vsel %vm8381_vm7, %v8039_v18, -inf  ;;  %v9991_v45 = vmax.f32 %v9989_v54, %v9990_v26  ;;  %v12698_v20 = vpack.c.bf16 %v9984_v49, %v9984_v49  ;;  %v6383_v18 = vpop.permute.xlu0 %6382 }
 0x81e   : > { %v10004_v25 = vrot.slane %v10003_v3, 1  ;;  %v10009_v34 = vrot.slane %v10008_v40, 2  ;;  %v9998_v57 = vmax.f32 %v9996_v23, %v9997_v62  ;;  %v10015_v60 = vmax.f32 %v10013_v33, %v10014_v36 }
 0x81f   : > { %v10022_v52 = vmax.f32 %v10020_v61, %v10021_v44  ;;  %v10028_v41 = vrot.slane %v10027_v2, 4  ;;  %v12699_v12 = vpack.c.bf16 %v9991_v45, %v9991_v45  ;;  %v11426_v21 = vunpack.c.l.b16 %v12698_v20 }
 0x820   : > { %v10005_v51 = vmax.f32 %v10003_v3, %v10004_v25  ;;  %v10010_v1 = vmax.f32 %v10008_v40, %v10009_v34  ;;  %v12700_v15 = vpack.c.bf16 %v9998_v57, %v9998_v57  ;;  %v10016_v10 = vrot.slane %v10015_v60, 2 }
 0x821   : > { %v10023_v19 = vrot.slane %v10022_v52, 2  ;;  %v10029_v38 = vmax.f32 %v10027_v2, %v10028_v41  ;;  %v11427_v50 = vunpack.c.l.b16 %v12699_v12  ;;  %v11660_v58 = vsel %vm11460_vm11, %v11426_v21, %v11659_v29 }
 0x822   : > { %v12701_v0 = vpack.c.bf16 %v10005_v51, %v10005_v51  ;;  %v10011_v56 = vrot.slane %v10010_v1, 1  ;;  %v11428_v17 = vunpack.c.l.b16 %v12700_v15  ;;  %v10017_v14 = vmax.f32 %v10015_v60, %v10016_v10 }
 0x823   : > { %v10024_v59 = vmax.f32 %v10022_v52, %v10023_v19  ;;  %v10030_v37 = vrot.slane %v10029_v38, 2  ;;  %v11661_v47 = vsel %vm11462_vm12, %v11427_v50, %v11660_v58  ;;  %v6904_v5 = vadd.f32 %v17530_v48, %v6833_v6 }
 0x824   : > { %v11429_v53 = vunpack.c.l.b16 %v12701_v0  ;;  %v10012_v4 = vmax.f32 %v10010_v1, %v10011_v56  ;;  %v11662_v16 = vsel %vm11464_vm13, %v11428_v17, %v11661_v47  ;;  %v10018_v7 = vrot.slane %v10017_v14, 1 }
 0x825   : > { %v10025_v35 = vrot.slane %v10024_v59, 1  ;;  %v10031_v28 = vmax.f32 %v10029_v38, %v10030_v37  ;;  %v6968_v55 = vmax.f32 %v6904_v5, 0.0  ;;  %v6512_v43 = vadd.f32 %v6381_v46, %v16832_v27 }
 0x826   : > { %v11663_v29 = vsel %vm11466_vm14, %v11429_v53, %v11662_v16  ;;  %v12702_v24 = vpack.c.bf16 %v10012_v4, %v10012_v4  ;;  %v10019_v13 = vmax.f32 %v10017_v14, %v10018_v7  ;;  %v18392_v49 = vrot.slane %v16849_v30, 2 }
 0x827   : > { %v11713_v54 = vpack.c.b16 %v11663_v29, %v11663_v29  ;;  %v10026_v32 = vmax.f32 %v10024_v59, %v10025_v35  ;;  %v10032_v23 = vrot.slane %v10031_v28, 1  ;;  %v8040_v61 = vcombine.high %v6968_v55, %v6968_v55 }
 0x828   : > { %v11430_v33 = vunpack.c.l.b16 %v12702_v24  ;;  %v8047_v6 = vrot.slane %v6968_v55, %v16197_v31  ;;  %v18393_v26 = vrot.slane %v16837_v11, 2  ;;  %v12703_v62 = vpack.c.bf16 %v10019_v13, %v10019_v13 }
 0x829   : > { %11778 = vst.msk [vmem:[%s16298_s20 + $0x70] sm:$0xf] %vm11749_vm15, %v11713_v54  ;;  %v10033_v40 = vmax.f32 %v10031_v28, %v10032_v23  ;;  %v12704_v27 = vpack.c.bf16 %v10026_v32, %v10026_v32  ;;  %v8054_v44 = vrot.slane %v8040_v61, %v16197_v31  ;;  %v6513_v25 = vadd.f32 %v6383_v18, %v16846_v63 }
 0x82a   : > { %v6703_v3 = vsel %vm4723_vm1, %v18393_v26, %v18392_v49  ;;  %v8055_v2 = vcombine.high %v8047_v6, %v8047_v6  ;;  %v10034_v45 = vsel %vm8381_vm7, %v8047_v6, -inf  ;;  %v11431_v34 = vunpack.c.l.b16 %v12703_v62 }
 0x82b   : > { %v6834_v36 = vadd.f32 %v6703_v3, %v6512_v43  ;;  %v12705_v20 = vpack.c.bf16 %v10033_v40, %v10033_v40  ;;  %v11432_v57 = vunpack.c.l.b16 %v12704_v27  ;;  %v10035_v60 = vrot.slane %v10034_v45, 4 }
 0x82c   : > { %v8056_v11 = vcombine.high %v8054_v44, %v8054_v44  ;;  %v10041_v52 = vsel %vm8381_vm7, %v8055_v2, -inf  ;;  %v10048_v41 = vsel %vm8381_vm7, %v8054_v44, -inf  ;;  %v11664_v21 = vsel %vm11454_vm8, %v11431_v34, %v11430_v33 }
 0x82d   : > { %v6905_v51 = vadd.f32 %v17530_v48, %v6834_v36  ;;  %v11433_v12 = vunpack.c.l.b16 %v12705_v20  ;;  %v10036_v1 = vmax.f32 %v10034_v45, %v10035_v60  ;;  %v10042_v15 = vrot.slane %v10041_v52, 4 }
 0x82e   : > { %v11665_v10 = vsel %vm11456_vm9, %v11432_v57, %v11664_v21  ;;  %v10049_v19 = vrot.slane %v10048_v41, 4  ;;  %v10055_v63 = vsel %vm8381_vm7, %v8056_v11, -inf  ;;  %v18394_v37 = vrot.slane %v16888_v8, 2 }
 0x82f   : > { %v6969_v38 = vmax.f32 %v6905_v51, 0.0  ;;  %v11666_v0 = vsel %vm11458_vm10, %v11433_v12, %v11665_v10  ;;  %v10037_v50 = vrot.slane %v10036_v1, 2  ;;  %v10043_v58 = vmax.f32 %v10041_v52, %v10042_v15 }
 0x830   : > { %v10056_v56 = vrot.slane %v10055_v63, 4  ;;  %v10050_v17 = vmax.f32 %v10048_v41, %v10049_v19  ;;  %v18395_v46 = vmov %v18392_v49 }
 0x831   : > { %v8057_v14 = vcombine.high %v6969_v38, %v6969_v38  ;;  %v8064_v59 = vrot.slane %v6969_v38, %v16197_v31  ;;  %v6705_v53 = vsel %vm4723_vm1, %v18395_v46, %v18394_v37  ;;  %v10038_v47 = vmax.f32 %v10036_v1, %v10037_v50 }
 0x832   : > { %v10044_v4 = vrot.slane %v10043_v58, 2  ;;  %v10057_v5 = vmax.f32 %v10055_v63, %v10056_v56  ;;  %v6835_v16 = vadd.f32 %v6705_v53, %v6513_v25  ;;  %v10051_v7 = vrot.slane %v10050_v17, 2 }
 0x833   : > { %v8071_v35 = vrot.slane %v8057_v14, %v16197_v31  ;;  %v8072_v28 = vcombine.high %v8064_v59, %v8064_v59  ;;  %v10062_v29 = vsel %vm8381_vm7, %v8064_v59, -inf  ;;  %v10039_v24 = vrot.slane %v10038_v47, 1 }
 0x834   : > { %v10045_v55 = vmax.f32 %v10043_v58, %v10044_v4  ;;  %v10058_v43 = vrot.slane %v10057_v5, 2  ;;  %v10063_v54 = vrot.slane %v10062_v29, 4  ;;  %v10052_v13 = vmax.f32 %v10050_v17, %v10051_v7  ;;  %v6385_v58 = vpop.permute.xlu1 %6384 }
 0x835   : > { %v8073_v32 = vcombine.high %v8071_v35, %v8071_v35  ;;  %v10069_v30 = vsel %vm8381_vm7, %v8072_v28, -inf  ;;  %v10076_v23 = vsel %vm8381_vm7, %v8071_v35, -inf  ;;  %v10040_v18 = vmax.f32 %v10038_v47, %v10039_v24 }
 0x836   : > { %v10046_v33 = vrot.slane %v10045_v55, 1  ;;  %v10059_v61 = vmax.f32 %v10057_v5, %v10058_v43  ;;  %v10064_v6 = vmax.f32 %v10062_v29, %v10063_v54  ;;  %v10053_v49 = vrot.slane %v10052_v13, 1 }
 0x837   : > { %v10070_v26 = vrot.slane %v10069_v30, 4  ;;  %v10077_v3 = vrot.slane %v10076_v23, 4  ;;  %v10083_v40 = vsel %vm8381_vm7, %v8073_v32, -inf  ;;  %v12706_v36 = vpack.c.bf16 %v10040_v18, %v10040_v18 }
 0x838   : > { %v10047_v62 = vmax.f32 %v10045_v55, %v10046_v33  ;;  %v10060_v27 = vrot.slane %v10059_v61, 1  ;;  %v10065_v44 = vrot.slane %v10064_v6, 2  ;;  %v10054_v2 = vmax.f32 %v10052_v13, %v10053_v49  ;;  %v6387_v55 = vpop.permute.xlu1 %6386  ;;  %v18396_v13 = vld [vmem:[#allocation95_spill] sm:$0xff] }
 0x839   : > { %v10071_v45 = vmax.f32 %v10069_v30, %v10070_v26  ;;  %v10078_v25 = vmax.f32 %v10076_v23, %v10077_v3  ;;  %v10084_v20 = vrot.slane %v10083_v40, 4  ;;  %v11434_v60 = vunpack.c.l.b16 %v12706_v36 }
 0x83a   : > { %v10061_v34 = vmax.f32 %v10059_v61, %v10060_v27  ;;  %v12707_v57 = vpack.c.bf16 %v10047_v62, %v10047_v62  ;;  %v10066_v11 = vmax.f32 %v10064_v6, %v10065_v44  ;;  %v12708_v52 = vpack.c.bf16 %v10054_v2, %v10054_v2 }
 0x83b   : > { %v10072_v41 = vrot.slane %v10071_v45, 2  ;;  %v10079_v51 = vrot.slane %v10078_v25, 2  ;;  %v10085_v12 = vmax.f32 %v10083_v40, %v10084_v20  ;;  %v11667_v15 = vsel %vm11460_vm11, %v11434_v60, %v11666_v0 }
 0x83c   : > { %v12709_v21 = vpack.c.bf16 %v10061_v34, %v10061_v34  ;;  %v11435_v1 = vunpack.c.l.b16 %v12707_v57  ;;  %v10067_v10 = vrot.slane %v10066_v11, 1  ;;  %v11436_v19 = vunpack.c.l.b16 %v12708_v52 }
 0x83d   : > { %v10073_v63 = vmax.f32 %v10071_v45, %v10072_v41  ;;  %v10080_v38 = vmax.f32 %v10078_v25, %v10079_v51  ;;  %v10086_v50 = vrot.slane %v10085_v12, 2  ;;  %v6906_v59 = vadd.f32 %v17530_v48, %v6835_v16 }
 0x83e   : > { %v11437_v56 = vunpack.c.l.b16 %v12709_v21  ;;  %v11668_v17 = vsel %vm11462_vm12, %v11435_v1, %v11667_v15  ;;  %v10068_v14 = vmax.f32 %v10066_v11, %v10067_v10  ;;  %v6514_v7 = vadd.f32 %v6385_v58, %v16885_v22 }
 0x83f   : > { %v11669_v37 = vsel %vm11464_vm13, %v11436_v19, %v11668_v17  ;;  %v10074_v46 = vrot.slane %v10073_v63, 1  ;;  %v10081_v53 = vrot.slane %v10080_v38, 1  ;;  %v10087_v47 = vmax.f32 %v10085_v12, %v10086_v50 }
 0x840   : > { %v11670_v0 = vsel %vm11466_vm14, %v11437_v56, %v11669_v37  ;;  %v12710_v4 = vpack.c.bf16 %v10068_v14, %v10068_v14  ;;  %v6970_v5 = vmax.f32 %v6906_v59, 0.0  ;;  %v18397_v32 = vrot.slane %v18396_v13, 2 }
 0x841   : > { %v11714_v35 = vpack.c.b16 %v11670_v0, %v11670_v0  ;;  %v10075_v28 = vmax.f32 %v10073_v63, %v10074_v46  ;;  %v10082_v29 = vmax.f32 %v10080_v38, %v10081_v53  ;;  %v10088_v24 = vrot.slane %v10087_v47, 1 }
 0x842   : > { %v11438_v43 = vunpack.c.l.b16 %v12710_v4  ;;  %v8074_v54 = vcombine.high %v6970_v5, %v6970_v5  ;;  %v8081_v16 = vrot.slane %v6970_v5, %v16197_v31  ;;  %v18398_v30 = vrot.slane %v16888_v8, 2 }
 0x843   : > { %11779 = vst.msk [vmem:[%s16298_s20 + $0x74] sm:$0xf] %vm11749_vm15, %v11714_v35  ;;  %v10089_v18 = vmax.f32 %v10087_v47, %v10088_v24  ;;  %v12711_v33 = vpack.c.bf16 %v10075_v28, %v10075_v28  ;;  %v12712_v22 = vpack.c.bf16 %v10082_v29, %v10082_v29  ;;  %v6515_v3 = vadd.f32 %v6387_v55, %v16892_v39 }
 0x844   : > { %v6707_v23 = vsel %vm4723_vm1, %v18398_v30, %v18397_v32  ;;  %v8088_v6 = vrot.slane %v8074_v54, %v16197_v31  ;;  %v8089_v49 = vcombine.high %v8081_v16, %v8081_v16  ;;  %v10090_v26 = vsel %vm8381_vm7, %v8081_v16, -inf }
 0x845   : > { %v6836_v61 = vadd.f32 %v6707_v23, %v6514_v7  ;;  %v12713_v40 = vpack.c.bf16 %v10089_v18, %v10089_v18  ;;  %v11439_v62 = vunpack.c.l.b16 %v12711_v33  ;;  %v11440_v27 = vunpack.c.l.b16 %v12712_v22 }
 0x846   : > { %v10091_v36 = vrot.slane %v10090_v26, 4  ;;  %v8090_v8 = vcombine.high %v8088_v6, %v8088_v6  ;;  %v10097_v44 = vsel %vm8381_vm7, %v8089_v49, -inf  ;;  %v10104_v2 = vsel %vm8381_vm7, %v8088_v6, -inf }
 0x847   : > { %v6907_v45 = vadd.f32 %v17530_v48, %v6836_v61  ;;  %v11441_v25 = vunpack.c.l.b16 %v12713_v40  ;;  %v11671_v20 = vsel %vm11454_vm8, %v11439_v62, %v11438_v43  ;;  %v10098_v57 = vrot.slane %v10097_v44, 4 }
 0x848   : > { %v10092_v34 = vmax.f32 %v10090_v26, %v10091_v36  ;;  %v11672_v60 = vsel %vm11456_vm9, %v11440_v27, %v11671_v20  ;;  %v10105_v11 = vrot.slane %v10104_v2, 4  ;;  %v10111_v39 = vsel %vm8381_vm7, %v8090_v8, -inf }
 0x849   : > { %v6971_v52 = vmax.f32 %v6907_v45, 0.0  ;;  %v11673_v41 = vsel %vm11458_vm10, %v11441_v25, %v11672_v60  ;;  %v10099_v12 = vmax.f32 %v10097_v44, %v10098_v57  ;;  %v10112_v21 = vrot.slane %v10111_v39, 4  ;;  %v13837_v60 = vld [vmem:[%s17736_s4] ss:$0 sm:$0xff] }
 0x84a   : > { %v10093_v51 = vrot.slane %v10092_v34, 2  ;;  %v10106_v1 = vmax.f32 %v10104_v2, %v10105_v11  ;;  %v18399_v10 = vmov %v18397_v32 }
 0x84b   : > { %v8091_v15 = vcombine.high %v6971_v52, %v6971_v52  ;;  %v8098_v48 = vrot.slane %v6971_v52, %v16197_v31  ;;  %v6709_v19 = vsel %vm4723_vm1, %v18399_v10, %v6708_v9  ;;  %v10100_v38 = vrot.slane %v10099_v12, 2 }
 0x84c   : > { %v10094_v63 = vmax.f32 %v10092_v34, %v10093_v51  ;;  %v10113_v50 = vmax.f32 %v10111_v39, %v10112_v21  ;;  %v6837_v58 = vadd.f32 %v6709_v19, %v6515_v3  ;;  %v10107_v56 = vrot.slane %v10106_v1, 2 }
 0x84d   : > { %v8105_v17 = vrot.slane %v8091_v15, %v16197_v31  ;;  %v8106_v14 = vcombine.high %v8098_v48, %v8098_v48  ;;  %v10118_v59 = vsel %vm8381_vm7, %v8098_v48, -inf  ;;  %v10101_v46 = vmax.f32 %v10099_v12, %v10100_v38 }
 0x84e   : > { %v10095_v37 = vrot.slane %v10094_v63, 1  ;;  %v10114_v53 = vrot.slane %v10113_v50, 2  ;;  %v10119_v47 = vrot.slane %v10118_v59, 4  ;;  %v10108_v0 = vmax.f32 %v10106_v1, %v10107_v56 }
 0x84f   : > { %v8107_v42 = vcombine.high %v8105_v17, %v8105_v17  ;;  %v10125_v4 = vsel %vm8381_vm7, %v8106_v14, -inf  ;;  %v10132_v9 = vsel %vm8381_vm7, %v8105_v17, -inf  ;;  %v10102_v7 = vrot.slane %v10101_v46, 1 }
 0x850   : > { %v10096_v5 = vmax.f32 %v10094_v63, %v10095_v37  ;;  %v10115_v35 = vmax.f32 %v10113_v50, %v10114_v53  ;;  %v10120_v28 = vmax.f32 %v10118_v59, %v10119_v47  ;;  %v10109_v29 = vrot.slane %v10108_v0, 1 }
 0x851   : > { %v10126_v24 = vrot.slane %v10125_v4, 4  ;;  %v10133_v55 = vrot.slane %v10132_v9, 4  ;;  %v10139_v43 = vsel %vm8381_vm7, %v8107_v42, -inf  ;;  %v10103_v54 = vmax.f32 %v10101_v46, %v10102_v7 }
 0x852   : > { %v10116_v16 = vrot.slane %v10115_v35, 1  ;;  %v12714_v13 = vpack.c.bf16 %v10096_v5, %v10096_v5  ;;  %v10121_v32 = vrot.slane %v10120_v28, 2  ;;  %v10110_v30 = vmax.f32 %v10108_v0, %v10109_v29 }
 0x853   : > { %v10127_v23 = vmax.f32 %v10125_v4, %v10126_v24  ;;  %v10134_v18 = vmax.f32 %v10132_v9, %v10133_v55  ;;  %v10140_v33 = vrot.slane %v10139_v43, 4  ;;  %v12715_v61 = vpack.c.bf16 %v10103_v54, %v10103_v54 }
 0x854   : > { %v10117_v22 = vmax.f32 %v10115_v35, %v10116_v16  ;;  %v11442_v6 = vunpack.c.l.b16 %v12714_v13  ;;  %v10122_v49 = vmax.f32 %v10120_v28, %v10121_v32  ;;  %v12716_v26 = vpack.c.bf16 %v10110_v30, %v10110_v30 }
 0x855   : > { %v10128_v3 = vrot.slane %v10127_v23, 2  ;;  %v10135_v40 = vrot.slane %v10134_v18, 2  ;;  %v10141_v62 = vmax.f32 %v10139_v43, %v10140_v33  ;;  %v11443_v36 = vunpack.c.l.b16 %v12715_v61 }
 0x856   : > { %v12717_v27 = vpack.c.bf16 %v10117_v22, %v10117_v22  ;;  %v11674_v8 = vsel %vm11460_vm11, %v11442_v6, %v11673_v41  ;;  %v10123_v44 = vrot.slane %v10122_v49, 1  ;;  %v11444_v2 = vunpack.c.l.b16 %v12716_v26 }
 0x857   : > { %v10129_v45 = vmax.f32 %v10127_v23, %v10128_v3  ;;  %v10136_v25 = vmax.f32 %v10134_v18, %v10135_v40  ;;  %v10142_v20 = vrot.slane %v10141_v62, 2  ;;  %v11675_v57 = vsel %vm11462_vm12, %v11443_v36, %v11674_v8 }
 0x858   : > { %v11445_v34 = vunpack.c.l.b16 %v12717_v27  ;;  %v6908_v11 = vadd.f32 %v13837_v60, %v6837_v58  ;;  %v11676_v39 = vsel %vm11464_vm13, %v11444_v2, %v11675_v57  ;;  %v10124_v15 = vmax.f32 %v10122_v49, %v10123_v44 }
 0x859   : > { %v10130_v52 = vrot.slane %v10129_v45, 1  ;;  %v10137_v51 = vrot.slane %v10136_v25, 1  ;;  %v10143_v12 = vmax.f32 %v10141_v62, %v10142_v20 }
 0x85a   : > { %v11677_v41 = vsel %vm11466_vm14, %v11445_v34, %v11676_v39  ;;  %v6972_v21 = vmax.f32 %v6908_v11, 0.0  ;;  %v12718_v14 = vpack.c.bf16 %v10124_v15, %v10124_v15 }
 0x85b   : > { %v11715_v1 = vpack.c.b16 %v11677_v41, %v11677_v41  ;;  %v10131_v48 = vmax.f32 %v10129_v45, %v10130_v52  ;;  %v10144_v10 = vrot.slane %v10143_v12, 1  ;;  %v10138_v38 = vmax.f32 %v10136_v25, %v10137_v51 }
 0x85c   : > { %v8108_v19 = vcombine.high %v6972_v21, %v6972_v21  ;;  %v8115_v63 = vrot.slane %v6972_v21, %v16197_v31  ;;  %v11446_v24 = vunpack.c.l.b16 %v12718_v14 }
 0x85d   : > { %11780 = vst.msk [vmem:[%s16298_s20 + $0x78] sm:$0xf] %vm11749_vm15, %v11715_v1  ;;  %v12719_v50 = vpack.c.bf16 %v10131_v48, %v10131_v48  ;;  %v10145_v37 = vmax.f32 %v10143_v12, %v10144_v10  ;;  %v12720_v0 = vpack.c.bf16 %v10138_v38, %v10138_v38 }
 0x85e   : > { %v8122_v58 = vrot.slane %v8108_v19, %v16197_v31  ;;  %v8123_v56 = vcombine.high %v8115_v63, %v8115_v63  ;;  %v10146_v17 = vsel %vm8381_vm7, %v8115_v63, -inf }
 0x85f   : > { %v10147_v59 = vrot.slane %v10146_v17, 4  ;;  %v11447_v9 = vunpack.c.l.b16 %v12719_v50  ;;  %v12721_v29 = vpack.c.bf16 %v10145_v37, %v10145_v37  ;;  %v11448_v43 = vunpack.c.l.b16 %v12720_v0 }
 0x860   : > { %v8124_v46 = vcombine.high %v8122_v58, %v8122_v58  ;;  %v10153_v53 = vsel %vm8381_vm7, %v8123_v56, -inf  ;;  %v10160_v47 = vsel %vm8381_vm7, %v8122_v58, -inf }
 0x861   : > { %v10148_v42 = vmax.f32 %v10146_v17, %v10147_v59  ;;  %v10154_v4 = vrot.slane %v10153_v53, 4  ;;  %v10161_v5 = vrot.slane %v10160_v47, 4  ;;  %v11678_v32 = vsel %vm11454_vm8, %v11447_v9, %v11446_v24 }
 0x862   : > { %v10167_v7 = vsel %vm8381_vm7, %v8124_v46, -inf  ;;  %v11449_v22 = vunpack.c.l.b16 %v12721_v29  ;;  %v11679_v6 = vsel %vm11456_vm9, %v11448_v43, %v11678_v32 }
 0x863   : > { %v10149_v35 = vrot.slane %v10148_v42, 2  ;;  %v10155_v31 = vmax.f32 %v10153_v53, %v10154_v4  ;;  %v10168_v28 = vrot.slane %v10167_v7, 4  ;;  %v10162_v55 = vmax.f32 %v10160_v47, %v10161_v5 }
 0x864   : > { %v11680_v8 = vsel %vm11458_vm10, %v11449_v22, %v11679_v6 }
 0x865   : > { %v10150_v54 = vmax.f32 %v10148_v42, %v10149_v35  ;;  %v10156_v16 = vrot.slane %v10155_v31, 2  ;;  %v10169_v13 = vmax.f32 %v10167_v7, %v10168_v28  ;;  %v10163_v30 = vrot.slane %v10162_v55, 2 }
 0x867   : > { %v10151_v23 = vrot.slane %v10150_v54, 1  ;;  %v10157_v18 = vmax.f32 %v10155_v31, %v10156_v16  ;;  %v10170_v33 = vrot.slane %v10169_v13, 2  ;;  %v10164_v61 = vmax.f32 %v10162_v55, %v10163_v30 }
 0x869   : > { %v10152_v49 = vmax.f32 %v10150_v54, %v10151_v23  ;;  %v10158_v26 = vrot.slane %v10157_v18, 1  ;;  %v10171_v3 = vmax.f32 %v10169_v13, %v10170_v33  ;;  %v10165_v40 = vrot.slane %v10164_v61, 1 }
 0x86b   : > { %v10159_v62 = vmax.f32 %v10157_v18, %v10158_v26  ;;  %v10172_v27 = vrot.slane %v10171_v3, 1  ;;  %v12722_v36 = vpack.c.bf16 %v10152_v49, %v10152_v49  ;;  %v10166_v44 = vmax.f32 %v10164_v61, %v10165_v40 }
 0x86d   : > { %v10173_v2 = vmax.f32 %v10171_v3, %v10172_v27  ;;  %v12723_v45 = vpack.c.bf16 %v10159_v62, %v10159_v62  ;;  %v11450_v25 = vunpack.c.l.b16 %v12722_v36  ;;  %v12724_v20 = vpack.c.bf16 %v10166_v44, %v10166_v44 }
 0x86f   : > { %v12725_v34 = vpack.c.bf16 %v10173_v2, %v10173_v2  ;;  %v11451_v57 = vunpack.c.l.b16 %v12723_v45  ;;  %v11681_v60 = vsel %vm11460_vm11, %v11450_v25, %v11680_v8  ;;  %v11452_v11 = vunpack.c.l.b16 %v12724_v20 }
 0x871   : > { %v11453_v39 = vunpack.c.l.b16 %v12725_v34  ;;  %v11682_v52 = vsel %vm11462_vm12, %v11451_v57, %v11681_v60 }
 0x872   : > { %v11683_v51 = vsel %vm11464_vm13, %v11452_v11, %v11682_v52 }
 0x873   : > { %v11684_v12 = vsel %vm11466_vm14, %v11453_v39, %v11683_v51 }
 0x874   : > { %v11716_v41 = vpack.c.b16 %v11684_v12, %v11684_v12 }
 0x876   : > { %11781 = vst.msk [vmem:[%s16298_s20 + $0x7c] sm:$0xf] %vm11749_vm15, %v11716_v41 }
 0x877 PF: > { %s15_s18 = sadd.s32 1, %s13844_s18  }
 0x878   : > { %p12_p4 = scmp.ge.s32.totalorder %s15_s18, 4  }
 0x87a   :  { %14 = sbr.rel (!%p12_p4) target bundleno = 1 (0x1), region = 70 }

</bundles_post_ra>
